<compile_context>
chip_gen: v5e
topology: v5e:2x2
jax: 0.10.0
libtpu: 0.0.40
codegen_flags: <defaults>
</compile_context>

<pallas_src>
import functools

import jax
import jax.numpy as jnp
from jax import lax
from jax.experimental import pallas as pl
from jax.experimental.pallas import tpu as pltpu

D_MODEL = 192          # encoder width
N_MEL = 80             # logical mel channels
MEL_P = 128            # mel padded to one full lane width (input block only)
MID = 36               # mid width between the two attention blocks
HEADS0, HEADS1 = 2, 8
HD0, HD1 = MID // HEADS0, D_MODEL // HEADS1          # 18, 24


# ----------------------------- in-kernel math ------------------------------


def _relu(x):
    return jnp.maximum(x, 0.0)


def _conv1d_k3(x2, w_ref, b, first_row, last_row):
    """Conv1d(kernel=3, stride=1, padding=1) on a flattened (Bt*T, Cin) tile.

    Shifts use pltpu.roll (XLU slot); `first_row` / `last_row` are hoisted
    (row % T == 0 / T-1) masks so batched items never leak into each other.
    w_ref: (3, Cin, Cout) bf16 (tap k multiplies x[t + k - 1]);  b: (1, Cout).
    """
    n = x2.shape[0]
    # pltpu.roll matches jnp.roll: result[i] = x[i - shift].
    x_m1 = jnp.where(first_row, 0.0, pltpu.roll(x2, shift=1, axis=0))      # x[t-1]
    x_p1 = jnp.where(last_row, 0.0, pltpu.roll(x2, shift=n - 1, axis=0))   # x[t+1]
    y = (jnp.dot(x_m1.astype(jnp.bfloat16), w_ref[0],
                 preferred_element_type=jnp.float32)
         + jnp.dot(x2.astype(jnp.bfloat16), w_ref[1],
                   preferred_element_type=jnp.float32)
         + jnp.dot(x_p1.astype(jnp.bfloat16), w_ref[2],
                   preferred_element_type=jnp.float32))
    return y + b


def _mha(x2, wq_ref, bq_ref, wk_ref, bk_ref, wv_ref, bv_ref, wo_ref, bo_ref,
         *, bt, t, num_heads, head_dim):
    """nn.MultiheadAttention-style self attention on Bt stacked items.

    x2: (Bt*T, C) f32.  Dense projections at the logical width C (scale folded
    into wq/bq); heads split once into a (Bt*H, T, hd) stack; scores / PV run
    as 3-D batched einsums.
    """
    xb = x2.astype(jnp.bfloat16)
    q = jnp.dot(xb, wq_ref[...], preferred_element_type=jnp.float32) + bq_ref[...]
    k = jnp.dot(xb, wk_ref[...], preferred_element_type=jnp.float32) + bk_ref[...]
    v = jnp.dot(xb, wv_ref[...], preferred_element_type=jnp.float32) + bv_ref[...]

    def split_heads(a):
        a = a.astype(jnp.bfloat16)
        return jnp.stack(
            [a[i * t:(i + 1) * t, h * head_dim:(h + 1) * head_dim]
             for i in range(bt) for h in range(num_heads)], axis=0)    # (Bt*H, T, hd)

    qh, kh, vh = split_heads(q), split_heads(k), split_heads(v)

    s = jnp.einsum("gqd,gkd->gqk", qh, kh,
                   preferred_element_type=jnp.float32)                 # (Bt*H, T, T)
    s = s - jnp.max(s, axis=-1, keepdims=True)
    p = jnp.exp(s)
    p = p / jnp.sum(p, axis=-1, keepdims=True)      # exact division (parity)
    o = jnp.einsum("gqk,gkd->gqd", p.astype(jnp.bfloat16), vh,
                   preferred_element_type=jnp.float32)                 # (Bt*H, T, hd)

    ob = o.astype(jnp.bfloat16)
    rows = [jnp.concatenate([ob[i * num_heads + h] for h in range(num_heads)],
                            axis=-1)
            for i in range(bt)]                                        # Bt x (T, C)
    o_all = jnp.concatenate(rows, axis=0)                              # (Bt*T, C)
    return (jnp.dot(o_all, wo_ref[...], preferred_element_type=jnp.float32)
            + bo_ref[...])


def _instance_norm_time(x2, bt, t, eps=1e-5):
    """InstanceNorm1d (affine=False): per item, per channel, over time."""
    c = x2.shape[-1]
    x3 = x2.reshape(bt, t, c)
    mean = jnp.mean(x3, axis=1, keepdims=True)
    xc = x3 - mean
    var = jnp.mean(xc * xc, axis=1, keepdims=True)   # two-pass (stability)
    return (xc * lax.rsqrt(var + eps)).reshape(bt * t, c)


# --------------------------------- kernel ----------------------------------


def _cont_encoder_kernel(
    x_ref,
    w0a_ref, b0a_ref, w0b_ref, b0b_ref,
    wq0_ref, bq0_ref, wk0_ref, bk0_ref, wv0_ref, bv0_ref, wo0_ref, bo0_ref,
    w1a_ref, b1a_ref, w1b_ref, b1b_ref,
    wq1_ref, bq1_ref, wk1_ref, bk1_ref, wv1_ref, bv1_ref, wo1_ref, bo1_ref,
    out_ref,
    *, nct_out,
):
    bt, t = x_ref.shape[0], x_ref.shape[1]
    n = bt * t
    x = x_ref[...].reshape(n, x_ref.shape[2])                  # (Bt*T, MEL_P)

    # Hoisted conv boundary masks, shared by all four convs.
    tpos = lax.broadcasted_iota(jnp.int32, (n, 1), 0) % t
    first_row = tpos == 0
    last_row = tpos == t - 1

    # conv_block0: Block_Unit(80, 192, ReLU) -> Block_Unit(192, 36)
    h = _relu(_conv1d_k3(x, w0a_ref, b0a_ref[...], first_row, last_row))   # (N,192)
    h = _conv1d_k3(h, w0b_ref, b0b_ref[...], first_row, last_row)          # (N, 36)

    # attention_norm0: Attention(36, 2) -> ReLU -> InstanceNorm1d(36)
    h = _mha(h, wq0_ref, bq0_ref, wk0_ref, bk0_ref, wv0_ref, bv0_ref,
             wo0_ref, bo0_ref, bt=bt, t=t, num_heads=HEADS0, head_dim=HD0)
    h = _instance_norm_time(_relu(h), bt, t)                               # (N, 36)

    # conv_block1: Block_Unit(36, 192, ReLU) -> Block_Unit(192, 192)
    h = _relu(_conv1d_k3(h, w1a_ref, b1a_ref[...], first_row, last_row))   # (N,192)
    h = _conv1d_k3(h, w1b_ref, b1b_ref[...], first_row, last_row)          # (N,192)

    # attention_norm1: Attention(192, 8) -> ReLU -> InstanceNorm1d(192)
    h = _mha(h, wq1_ref, bq1_ref, wk1_ref, bk1_ref, wv1_ref, bv1_ref,
             wo1_ref, bo1_ref, bt=bt, t=t, num_heads=HEADS1, head_dim=HD1)
    h = _instance_norm_time(_relu(h), bt, t)                               # (N,192)

    h3 = h.reshape(bt, t, D_MODEL)
    if nct_out:
        out_ref[...] = jnp.transpose(h3, (0, 2, 1)).astype(out_ref.dtype)  # NCT
    else:
        out_ref[...] = h3.astype(out_ref.dtype)                            # NTC


# -------------------------------- wrapper -----------------------------------

_PARAM_ORDER = (
    "w0a", "b0a", "w0b", "b0b",
    "wq0", "bq0", "wk0", "bk0", "wv0", "bv0", "wo0", "bo0",
    "w1a", "b1a", "w1b", "b1b",
    "wq1", "bq1", "wk1", "bk1", "wv1", "bv1", "wo1", "bo1",
)


def cont_encoder(x, params, *, out_dtype=jnp.float32):
    """x: (B, T, 80) mel (same tensor PyTorch receives before its transpose).

    `params` must be the kernel-layout params from `prepare_params`.
    Returns (B, 192, T) to match the PyTorch NCT output.
    """
    b, t, n_mel = x.shape
    assert n_mel == N_MEL

    # Items per grid step: raise matmul M toward the 128/256-row MXU tile and
    # amortize per-step pipeline overhead.  Requires T % 8 == 0 for cheap
    # (Bt*T, C) <-> (Bt, T, C) reshapes; otherwise one item per step.
    if t % 8 == 0:
        bt = max(1, min(b, max(1, 256 // t), 8))
    else:
        bt = 1
    b_pad = -(-b // bt) * bt

    xp = jnp.pad(x, ((0, b_pad - b), (0, 0), (0, MEL_P - N_MEL)))   # mel 80->128
    args = [params[name] for name in _PARAM_ORDER]

    # Weights: whole-array VMEM residency — one HBM->VMEM copy, no per-step
    # double buffering, no re-streaming over HBM across the batch grid.
    weight_spec = pl.BlockSpec(memory_space=pltpu.MemorySpace.VMEM)
    in_specs = ([pl.BlockSpec((bt, t, MEL_P), lambda i: (i, 0, 0))]
                + [weight_spec] * len(args))

    # In-kernel transpose to NCT only when the (192, T) store is lane-dense.
    nct_out = (t % 128 == 0)
    if nct_out:
        out_shape = jax.ShapeDtypeStruct((b_pad, D_MODEL, t), out_dtype)
        out_specs = pl.BlockSpec((bt, D_MODEL, t), lambda i: (i, 0, 0))
    else:
        out_shape = jax.ShapeDtypeStruct((b_pad, t, D_MODEL), out_dtype)
        out_specs = pl.BlockSpec((bt, t, D_MODEL), lambda i: (i, 0, 0))

    # Generation-aware scoped-VMEM budget (v7x: 64 MiB, v5e/v6e: 128 MiB).
    try:
        phys = int(pltpu.get_tpu_info().vmem_capacity_bytes)
        if phys <= 0:
            phys = 64 << 20
    except Exception:
        phys = 64 << 20
    weight_bytes = sum(int(a.size) * a.dtype.itemsize for a in args)
    n_rows = bt * t
    act_bytes = 4 * (16 * n_rows * D_MODEL + 3 * bt * HEADS1 * t * t)
    io_bytes = 2 * 4 * n_rows * (MEL_P + D_MODEL)
    want = weight_bytes + act_bytes + io_bytes + (8 << 20)
    vmem_limit = int(min(max(want, 32 << 20), (phys * 3) // 4))

    out = pl.pallas_call(
        functools.partial(_cont_encoder_kernel, nct_out=nct_out),
        out_shape=out_shape,
        grid=(b_pad // bt,),
        in_specs=in_specs,
        out_specs=out_specs,
        compiler_params=pltpu.CompilerParams(
            dimension_semantics=("parallel",),
            vmem_limit_bytes=vmem_limit),
    )(xp, *args)

    out = out[:b]
    if not nct_out:
        out = jnp.transpose(out, (0, 2, 1))                       # (B, 192, T)
    return out


# ------------------- parameter init & kernel-layout repack -------------------


def init_params(key):
    """Logical (PyTorch-equivalent) params, pre-transposed so y = x @ W + b.

    Conv weights are (3, Cin, Cout) = torch (Cout, Cin, 3).transpose(2, 1, 0);
    attention projections are dense (in, out) matrices (nn.MultiheadAttention
    in_proj split into q/k/v, plus out_proj).  weight_norm is already folded.
    """
    names_shapes = [
        ("w0a", (3, N_MEL, D_MODEL)), ("b0a", (1, D_MODEL)),
        ("w0b", (3, D_MODEL, MID)),   ("b0b", (1, MID)),
        ("wq0", (MID, MID)), ("bq0", (1, MID)),
        ("wk0", (MID, MID)), ("bk0", (1, MID)),
        ("wv0", (MID, MID)), ("bv0", (1, MID)),
        ("wo0", (MID, MID)), ("bo0", (1, MID)),
        ("w1a", (3, MID, D_MODEL)),     ("b1a", (1, D_MODEL)),
        ("w1b", (3, D_MODEL, D_MODEL)), ("b1b", (1, D_MODEL)),
        ("wq1", (D_MODEL, D_MODEL)), ("bq1", (1, D_MODEL)),
        ("wk1", (D_MODEL, D_MODEL)), ("bk1", (1, D_MODEL)),
        ("wv1", (D_MODEL, D_MODEL)), ("bv1", (1, D_MODEL)),
        ("wo1", (D_MODEL, D_MODEL)), ("bo1", (1, D_MODEL)),
    ]
    keys = jax.random.split(key, len(names_shapes))
    return {n: 0.05 * jax.random.normal(k, s, dtype=jnp.float32)
            for (n, s), k in zip(names_shapes, keys)}


def prepare_params(p):
    """Logical params -> kernel-layout params.

    bf16 weights (f32 biases); mel-input conv padded 80->128 on its input
    channel axis; 1/sqrt(head_dim) folded into Wq / bq.
    """
    def bf16(a):
        return a.astype(jnp.bfloat16)

    kp = {}
    kp["w0a"] = bf16(jnp.pad(p["w0a"], ((0, 0), (0, MEL_P - N_MEL), (0, 0))))
    kp["b0a"] = p["b0a"].astype(jnp.float32)
    for name in ("w0b", "w1a", "w1b"):
        kp[name] = bf16(p[name])
    for name in ("b0b", "b1a", "b1b"):
        kp[name] = p[name].astype(jnp.float32)

    for blk, hd in (("0", HD0), ("1", HD1)):
        scale = 1.0 / (hd ** 0.5)
        kp["wq" + blk] = bf16(p["wq" + blk] * scale)
        kp["bq" + blk] = (p["bq" + blk] * scale).astype(jnp.float32)
        for nm in ("wk", "wv", "wo"):
            kp[nm + blk] = bf16(p[nm + blk])
        for nm in ("bk", "bv", "bo"):
            kp[nm + blk] = p[nm + blk].astype(jnp.float32)
    return kp


if __name__ == "__main__":
    key = jax.random.PRNGKey(0)
    kx, kp = jax.random.split(key)

    B, T = 2, 16
    x = jax.random.normal(kx, (B, T, N_MEL), dtype=jnp.float32)  # (batch, time, 80)
    params = prepare_params(init_params(kp))

    y = cont_encoder(x, params)
    y = jax.block_until_ready(y)
    assert y.shape == (B, D_MODEL, T), y.shape
    assert bool(jnp.all(jnp.isfinite(y)))
    print("KERNEL_OK")
</pallas_src>

<mosaic_0001>
module attributes {stable_mosaic.version = 11 : i64} {
  func.func @_cont_encoder_kernel(%arg0: i32, %arg1: memref<2x16x128xf32, #tpu.memory_space<vmem>>, %arg2: memref<3x128x192xbf16, #tpu.memory_space<vmem>>, %arg3: memref<1x192xf32, #tpu.memory_space<vmem>>, %arg4: memref<3x192x36xbf16, #tpu.memory_space<vmem>>, %arg5: memref<1x36xf32, #tpu.memory_space<vmem>>, %arg6: memref<36x36xbf16, #tpu.memory_space<vmem>>, %arg7: memref<1x36xf32, #tpu.memory_space<vmem>>, %arg8: memref<36x36xbf16, #tpu.memory_space<vmem>>, %arg9: memref<1x36xf32, #tpu.memory_space<vmem>>, %arg10: memref<36x36xbf16, #tpu.memory_space<vmem>>, %arg11: memref<1x36xf32, #tpu.memory_space<vmem>>, %arg12: memref<36x36xbf16, #tpu.memory_space<vmem>>, %arg13: memref<1x36xf32, #tpu.memory_space<vmem>>, %arg14: memref<3x36x192xbf16, #tpu.memory_space<vmem>>, %arg15: memref<1x192xf32, #tpu.memory_space<vmem>>, %arg16: memref<3x192x192xbf16, #tpu.memory_space<vmem>>, %arg17: memref<1x192xf32, #tpu.memory_space<vmem>>, %arg18: memref<192x192xbf16, #tpu.memory_space<vmem>>, %arg19: memref<1x192xf32, #tpu.memory_space<vmem>>, %arg20: memref<192x192xbf16, #tpu.memory_space<vmem>>, %arg21: memref<1x192xf32, #tpu.memory_space<vmem>>, %arg22: memref<192x192xbf16, #tpu.memory_space<vmem>>, %arg23: memref<1x192xf32, #tpu.memory_space<vmem>>, %arg24: memref<192x192xbf16, #tpu.memory_space<vmem>>, %arg25: memref<1x192xf32, #tpu.memory_space<vmem>>, %arg26: memref<2x16x192xf32, #tpu.memory_space<vmem>>) attributes {dimension_semantics = [#tpu.dimension_semantics<parallel>], iteration_bounds = array<i64: 1>, scalar_prefetch = 0 : i64, scratch_operands = 0 : i64, tpu.core_type = #tpu.core_type<tc>, window_params = [{transform_indices = @transform_0, window_bounds = array<i64: 2, 16, 128>}, {pipeline_mode = #tpu.pipeline_mode<synchronous>, transform_indices = @transform_1, window_bounds = array<i64: 3, 128, 192>}, {pipeline_mode = #tpu.pipeline_mode<synchronous>, transform_indices = @transform_2, window_bounds = array<i64: 1, 192>}, {pipeline_mode = #tpu.pipeline_mode<synchronous>, transform_indices = @transform_3, window_bounds = array<i64: 3, 192, 36>}, {pipeline_mode = #tpu.pipeline_mode<synchronous>, transform_indices = @transform_4, window_bounds = array<i64: 1, 36>}, {pipeline_mode = #tpu.pipeline_mode<synchronous>, transform_indices = @transform_5, window_bounds = array<i64: 36, 36>}, {pipeline_mode = #tpu.pipeline_mode<synchronous>, transform_indices = @transform_6, window_bounds = array<i64: 1, 36>}, {pipeline_mode = #tpu.pipeline_mode<synchronous>, transform_indices = @transform_7, window_bounds = array<i64: 36, 36>}, {pipeline_mode = #tpu.pipeline_mode<synchronous>, transform_indices = @transform_8, window_bounds = array<i64: 1, 36>}, {pipeline_mode = #tpu.pipeline_mode<synchronous>, transform_indices = @transform_9, window_bounds = array<i64: 36, 36>}, {pipeline_mode = #tpu.pipeline_mode<synchronous>, transform_indices = @transform_10, window_bounds = array<i64: 1, 36>}, {pipeline_mode = #tpu.pipeline_mode<synchronous>, transform_indices = @transform_11, window_bounds = array<i64: 36, 36>}, {pipeline_mode = #tpu.pipeline_mode<synchronous>, transform_indices = @transform_12, window_bounds = array<i64: 1, 36>}, {pipeline_mode = #tpu.pipeline_mode<synchronous>, transform_indices = @transform_13, window_bounds = array<i64: 3, 36, 192>}, {pipeline_mode = #tpu.pipeline_mode<synchronous>, transform_indices = @transform_14, window_bounds = array<i64: 1, 192>}, {pipeline_mode = #tpu.pipeline_mode<synchronous>, transform_indices = @transform_15, window_bounds = array<i64: 3, 192, 192>}, {pipeline_mode = #tpu.pipeline_mode<synchronous>, transform_indices = @transform_16, window_bounds = array<i64: 1, 192>}, {pipeline_mode = #tpu.pipeline_mode<synchronous>, transform_indices = @transform_17, window_bounds = array<i64: 192, 192>}, {pipeline_mode = #tpu.pipeline_mode<synchronous>, transform_indices = @transform_18, window_bounds = array<i64: 1, 192>}, {pipeline_mode = #tpu.pipeline_mode<synchronous>, transform_indices = @transform_19, window_bounds = array<i64: 192, 192>}, {pipeline_mode = #tpu.pipeline_mode<synchronous>, transform_indices = @transform_20, window_bounds = array<i64: 1, 192>}, {pipeline_mode = #tpu.pipeline_mode<synchronous>, transform_indices = @transform_21, window_bounds = array<i64: 192, 192>}, {pipeline_mode = #tpu.pipeline_mode<synchronous>, transform_indices = @transform_22, window_bounds = array<i64: 1, 192>}, {pipeline_mode = #tpu.pipeline_mode<synchronous>, transform_indices = @transform_23, window_bounds = array<i64: 192, 192>}, {pipeline_mode = #tpu.pipeline_mode<synchronous>, transform_indices = @transform_24, window_bounds = array<i64: 1, 192>}, {transform_indices = @transform_25, window_bounds = array<i64: 2, 16, 192>}]} {
    %c0 = arith.constant 0 : index
    %c0_0 = arith.constant 0 : index
    %c0_1 = arith.constant 0 : index
    %0 = vector.load %arg1[%c0, %c0_0, %c0_1] : memref<2x16x128xf32, #tpu.memory_space<vmem>>, vector<2x16x128xf32>
    %1 = vector.shape_cast %0 : vector<2x16x128xf32> to vector<32x128xf32>
    %2 = tpu.iota {dimensions = array<i32: 0>} : vector<32x1xi32>
    %c16_i32 = arith.constant 16 : i32
    %c0_i32 = arith.constant 0 : i32
    %3 = arith.cmpi eq, %c16_i32, %c0_i32 : i32
    %c1_i32 = arith.constant 1 : i32
    %4 = arith.select %3, %c1_i32, %c16_i32 : i32
    %5 = vector.broadcast %4 : i32 to vector<32x1xi32>
    %6 = arith.remsi %2, %5 : vector<32x1xi32>
    %c0_i32_2 = arith.constant 0 : i32
    %7 = vector.broadcast %c0_i32_2 : i32 to vector<32x1xi32>
    %8 = arith.cmpi ne, %6, %7 : vector<32x1xi32>
    %c0_i32_3 = arith.constant 0 : i32
    %9 = vector.broadcast %c0_i32_3 : i32 to vector<32x1xi32>
    %10 = arith.cmpi slt, %6, %9 : vector<32x1xi32>
    %c0_i32_4 = arith.constant 0 : i32
    %11 = arith.cmpi slt, %4, %c0_i32_4 : i32
    %12 = vector.broadcast %11 : i1 to vector<32x1xi1>
    %13 = vector.broadcast %12 : vector<32x1xi1> to vector<32x1xi1>
    %14 = arith.xori %10, %13 : vector<32x1xi1>
    %15 = arith.andi %14, %8 : vector<32x1xi1>
    %16 = vector.broadcast %4 : i32 to vector<32x1xi32>
    %17 = arith.addi %6, %16 : vector<32x1xi32>
    %18 = arith.select %15, %17, %6 : vector<32x1xi1>, vector<32x1xi32>
    %c0_i32_5 = arith.constant 0 : i32
    %19 = vector.broadcast %c0_i32_5 : i32 to vector<32x1xi32>
    %20 = arith.cmpi eq, %18, %19 : vector<32x1xi32>
    %c15_i32 = arith.constant 15 : i32
    %21 = vector.broadcast %c15_i32 : i32 to vector<32x1xi32>
    %22 = arith.cmpi eq, %18, %21 : vector<32x1xi32>
    %c0_6 = arith.constant 0 : index
    %c0_7 = arith.constant 0 : index
    %23 = vector.load %arg3[%c0_6, %c0_7] : memref<1x192xf32, #tpu.memory_space<vmem>>, vector<1x192xf32>
    %c1_i32_8 = arith.constant 1 : i32
    %24 = tpu.dynamic_rotate %1 by %c1_i32_8 dim 0 : vector<32x128xf32>, i32 -> vector<32x128xf32>
    %cst = arith.constant 0.000000e+00 : f32
    %25 = vector.shape_cast %20 : vector<32x1xi1> to vector<32x1xi1>
    %26 = vector.broadcast %25 : vector<32x1xi1> to vector<32x128xi1>
    %27 = vector.broadcast %cst : f32 to vector<32x128xf32>
    %28 = arith.select %26, %27, %24 : vector<32x128xi1>, vector<32x128xf32>
    %c31_i32 = arith.constant 31 : i32
    %29 = tpu.dynamic_rotate %1 by %c31_i32 dim 0 : vector<32x128xf32>, i32 -> vector<32x128xf32>
    %cst_9 = arith.constant 0.000000e+00 : f32
    %30 = vector.shape_cast %22 : vector<32x1xi1> to vector<32x1xi1>
    %31 = vector.broadcast %30 : vector<32x1xi1> to vector<32x128xi1>
    %32 = vector.broadcast %cst_9 : f32 to vector<32x128xf32>
    %33 = arith.select %31, %32, %29 : vector<32x128xi1>, vector<32x128xf32>
    %34 = arith.truncf %28 : vector<32x128xf32> to vector<32x128xbf16>
    %c0_10 = arith.constant 0 : index
    %c0_11 = arith.constant 0 : index
    %c0_12 = arith.constant 0 : index
    %35 = vector.load %arg2[%c0_10, %c0_11, %c0_12] : memref<3x128x192xbf16, #tpu.memory_space<vmem>>, vector<1x128x192xbf16>
    %36 = vector.shape_cast %35 : vector<1x128x192xbf16> to vector<128x192xbf16>
    %cst_13 = arith.constant dense<0.000000e+00> : vector<32x192xf32>
    %37 = tpu.matmul %34, %36, %cst_13 {dimension_numbers = #tpu.dot_dimension_numbers<[1], [0], [0], [1], [0, 0, 1, 1], [], []>} : vector<32x128xbf16>, vector<128x192xbf16>, vector<32x192xf32> -> vector<32x192xf32>
    %38 = arith.truncf %1 : vector<32x128xf32> to vector<32x128xbf16>
    %c1 = arith.constant 1 : index
    %c0_14 = arith.constant 0 : index
    %c0_15 = arith.constant 0 : index
    %39 = vector.load %arg2[%c1, %c0_14, %c0_15] : memref<3x128x192xbf16, #tpu.memory_space<vmem>>, vector<1x128x192xbf16>
    %40 = vector.shape_cast %39 : vector<1x128x192xbf16> to vector<128x192xbf16>
    %cst_16 = arith.constant dense<0.000000e+00> : vector<32x192xf32>
    %41 = tpu.matmul %38, %40, %cst_16 {dimension_numbers = #tpu.dot_dimension_numbers<[1], [0], [0], [1], [0, 0, 1, 1], [], []>} : vector<32x128xbf16>, vector<128x192xbf16>, vector<32x192xf32> -> vector<32x192xf32>
    %42 = arith.addf %37, %41 : vector<32x192xf32>
    %43 = arith.truncf %33 : vector<32x128xf32> to vector<32x128xbf16>
    %c2 = arith.constant 2 : index
    %c0_17 = arith.constant 0 : index
    %c0_18 = arith.constant 0 : index
    %44 = vector.load %arg2[%c2, %c0_17, %c0_18] : memref<3x128x192xbf16, #tpu.memory_space<vmem>>, vector<1x128x192xbf16>
    %45 = vector.shape_cast %44 : vector<1x128x192xbf16> to vector<128x192xbf16>
    %cst_19 = arith.constant dense<0.000000e+00> : vector<32x192xf32>
    %46 = tpu.matmul %43, %45, %cst_19 {dimension_numbers = #tpu.dot_dimension_numbers<[1], [0], [0], [1], [0, 0, 1, 1], [], []>} : vector<32x128xbf16>, vector<128x192xbf16>, vector<32x192xf32> -> vector<32x192xf32>
    %47 = arith.addf %42, %46 : vector<32x192xf32>
    %48 = vector.broadcast %23 : vector<1x192xf32> to vector<32x192xf32>
    %49 = arith.addf %47, %48 : vector<32x192xf32>
    %cst_20 = arith.constant 0.000000e+00 : f32
    %50 = vector.broadcast %cst_20 : f32 to vector<32x192xf32>
    %51 = arith.maximumf %49, %50 : vector<32x192xf32>
    %c0_21 = arith.constant 0 : index
    %c0_22 = arith.constant 0 : index
    %52 = vector.load %arg5[%c0_21, %c0_22] : memref<1x36xf32, #tpu.memory_space<vmem>>, vector<1x36xf32>
    %c1_i32_23 = arith.constant 1 : i32
    %53 = tpu.dynamic_rotate %51 by %c1_i32_23 dim 0 : vector<32x192xf32>, i32 -> vector<32x192xf32>
    %cst_24 = arith.constant 0.000000e+00 : f32
    %54 = vector.shape_cast %20 : vector<32x1xi1> to vector<32x1xi1>
    %55 = vector.broadcast %54 : vector<32x1xi1> to vector<32x192xi1>
    %56 = vector.broadcast %cst_24 : f32 to vector<32x192xf32>
    %57 = arith.select %55, %56, %53 : vector<32x192xi1>, vector<32x192xf32>
    %c31_i32_25 = arith.constant 31 : i32
    %58 = tpu.dynamic_rotate %51 by %c31_i32_25 dim 0 : vector<32x192xf32>, i32 -> vector<32x192xf32>
    %cst_26 = arith.constant 0.000000e+00 : f32
    %59 = vector.shape_cast %22 : vector<32x1xi1> to vector<32x1xi1>
    %60 = vector.broadcast %59 : vector<32x1xi1> to vector<32x192xi1>
    %61 = vector.broadcast %cst_26 : f32 to vector<32x192xf32>
    %62 = arith.select %60, %61, %58 : vector<32x192xi1>, vector<32x192xf32>
    %63 = arith.truncf %57 : vector<32x192xf32> to vector<32x192xbf16>
    %c0_27 = arith.constant 0 : index
    %c0_28 = arith.constant 0 : index
    %c0_29 = arith.constant 0 : index
    %64 = vector.load %arg4[%c0_27, %c0_28, %c0_29] : memref<3x192x36xbf16, #tpu.memory_space<vmem>>, vector<1x192x36xbf16>
    %65 = vector.shape_cast %64 : vector<1x192x36xbf16> to vector<192x36xbf16>
    %cst_30 = arith.constant dense<0.000000e+00> : vector<32x36xf32>
    %66 = tpu.matmul %63, %65, %cst_30 {dimension_numbers = #tpu.dot_dimension_numbers<[1], [0], [0], [1], [0, 0, 1, 1], [], []>} : vector<32x192xbf16>, vector<192x36xbf16>, vector<32x36xf32> -> vector<32x36xf32>
    %67 = arith.truncf %51 : vector<32x192xf32> to vector<32x192xbf16>
    %c1_31 = arith.constant 1 : index
    %c0_32 = arith.constant 0 : index
    %c0_33 = arith.constant 0 : index
    %68 = vector.load %arg4[%c1_31, %c0_32, %c0_33] : memref<3x192x36xbf16, #tpu.memory_space<vmem>>, vector<1x192x36xbf16>
    %69 = vector.shape_cast %68 : vector<1x192x36xbf16> to vector<192x36xbf16>
    %cst_34 = arith.constant dense<0.000000e+00> : vector<32x36xf32>
    %70 = tpu.matmul %67, %69, %cst_34 {dimension_numbers = #tpu.dot_dimension_numbers<[1], [0], [0], [1], [0, 0, 1, 1], [], []>} : vector<32x192xbf16>, vector<192x36xbf16>, vector<32x36xf32> -> vector<32x36xf32>
    %71 = arith.addf %66, %70 : vector<32x36xf32>
    %72 = arith.truncf %62 : vector<32x192xf32> to vector<32x192xbf16>
    %c2_35 = arith.constant 2 : index
    %c0_36 = arith.constant 0 : index
    %c0_37 = arith.constant 0 : index
    %73 = vector.load %arg4[%c2_35, %c0_36, %c0_37] : memref<3x192x36xbf16, #tpu.memory_space<vmem>>, vector<1x192x36xbf16>
    %74 = vector.shape_cast %73 : vector<1x192x36xbf16> to vector<192x36xbf16>
    %cst_38 = arith.constant dense<0.000000e+00> : vector<32x36xf32>
    %75 = tpu.matmul %72, %74, %cst_38 {dimension_numbers = #tpu.dot_dimension_numbers<[1], [0], [0], [1], [0, 0, 1, 1], [], []>} : vector<32x192xbf16>, vector<192x36xbf16>, vector<32x36xf32> -> vector<32x36xf32>
    %76 = arith.addf %71, %75 : vector<32x36xf32>
    %77 = vector.broadcast %52 : vector<1x36xf32> to vector<32x36xf32>
    %78 = arith.addf %76, %77 : vector<32x36xf32>
    %79 = arith.truncf %78 : vector<32x36xf32> to vector<32x36xbf16>
    %c0_39 = arith.constant 0 : index
    %c0_40 = arith.constant 0 : index
    %80 = vector.load %arg6[%c0_39, %c0_40] : memref<36x36xbf16, #tpu.memory_space<vmem>>, vector<36x36xbf16>
    %cst_41 = arith.constant dense<0.000000e+00> : vector<32x36xf32>
    %81 = tpu.matmul %79, %80, %cst_41 {dimension_numbers = #tpu.dot_dimension_numbers<[1], [0], [0], [1], [0, 0, 1, 1], [], []>} : vector<32x36xbf16>, vector<36x36xbf16>, vector<32x36xf32> -> vector<32x36xf32>
    %c0_42 = arith.constant 0 : index
    %c0_43 = arith.constant 0 : index
    %82 = vector.load %arg7[%c0_42, %c0_43] : memref<1x36xf32, #tpu.memory_space<vmem>>, vector<1x36xf32>
    %83 = vector.broadcast %82 : vector<1x36xf32> to vector<32x36xf32>
    %84 = arith.addf %81, %83 : vector<32x36xf32>
    %c0_44 = arith.constant 0 : index
    %c0_45 = arith.constant 0 : index
    %85 = vector.load %arg8[%c0_44, %c0_45] : memref<36x36xbf16, #tpu.memory_space<vmem>>, vector<36x36xbf16>
    %cst_46 = arith.constant dense<0.000000e+00> : vector<32x36xf32>
    %86 = tpu.matmul %79, %85, %cst_46 {dimension_numbers = #tpu.dot_dimension_numbers<[1], [0], [0], [1], [0, 0, 1, 1], [], []>} : vector<32x36xbf16>, vector<36x36xbf16>, vector<32x36xf32> -> vector<32x36xf32>
    %c0_47 = arith.constant 0 : index
    %c0_48 = arith.constant 0 : index
    %87 = vector.load %arg9[%c0_47, %c0_48] : memref<1x36xf32, #tpu.memory_space<vmem>>, vector<1x36xf32>
    %88 = vector.broadcast %87 : vector<1x36xf32> to vector<32x36xf32>
    %89 = arith.addf %86, %88 : vector<32x36xf32>
    %c0_49 = arith.constant 0 : index
    %c0_50 = arith.constant 0 : index
    %90 = vector.load %arg10[%c0_49, %c0_50] : memref<36x36xbf16, #tpu.memory_space<vmem>>, vector<36x36xbf16>
    %cst_51 = arith.constant dense<0.000000e+00> : vector<32x36xf32>
    %91 = tpu.matmul %79, %90, %cst_51 {dimension_numbers = #tpu.dot_dimension_numbers<[1], [0], [0], [1], [0, 0, 1, 1], [], []>} : vector<32x36xbf16>, vector<36x36xbf16>, vector<32x36xf32> -> vector<32x36xf32>
    %c0_52 = arith.constant 0 : index
    %c0_53 = arith.constant 0 : index
    %92 = vector.load %arg11[%c0_52, %c0_53] : memref<1x36xf32, #tpu.memory_space<vmem>>, vector<1x36xf32>
    %93 = vector.broadcast %92 : vector<1x36xf32> to vector<32x36xf32>
    %94 = arith.addf %91, %93 : vector<32x36xf32>
    %95 = arith.truncf %84 : vector<32x36xf32> to vector<32x36xbf16>
    %96 = vector.extract_strided_slice %95 {offsets = [0, 0], sizes = [16, 18], strides = [1, 1]} : vector<32x36xbf16> to vector<16x18xbf16>
    %97 = vector.extract_strided_slice %95 {offsets = [0, 18], sizes = [16, 18], strides = [1, 1]} : vector<32x36xbf16> to vector<16x18xbf16>
    %98 = vector.extract_strided_slice %95 {offsets = [16, 0], sizes = [16, 18], strides = [1, 1]} : vector<32x36xbf16> to vector<16x18xbf16>
    %99 = vector.extract_strided_slice %95 {offsets = [16, 18], sizes = [16, 18], strides = [1, 1]} : vector<32x36xbf16> to vector<16x18xbf16>
    %100 = vector.shape_cast %96 : vector<16x18xbf16> to vector<1x16x18xbf16>
    %101 = vector.shape_cast %97 : vector<16x18xbf16> to vector<1x16x18xbf16>
    %102 = vector.shape_cast %98 : vector<16x18xbf16> to vector<1x16x18xbf16>
    %103 = vector.shape_cast %99 : vector<16x18xbf16> to vector<1x16x18xbf16>
    %104 = tpu.concatenate %100, %101, %102, %103 in 0 : vector<1x16x18xbf16>, vector<1x16x18xbf16>, vector<1x16x18xbf16>, vector<1x16x18xbf16> -> vector<4x16x18xbf16>
    %105 = arith.truncf %89 : vector<32x36xf32> to vector<32x36xbf16>
    %106 = vector.extract_strided_slice %105 {offsets = [0, 0], sizes = [16, 18], strides = [1, 1]} : vector<32x36xbf16> to vector<16x18xbf16>
    %107 = vector.extract_strided_slice %105 {offsets = [0, 18], sizes = [16, 18], strides = [1, 1]} : vector<32x36xbf16> to vector<16x18xbf16>
    %108 = vector.extract_strided_slice %105 {offsets = [16, 0], sizes = [16, 18], strides = [1, 1]} : vector<32x36xbf16> to vector<16x18xbf16>
    %109 = vector.extract_strided_slice %105 {offsets = [16, 18], sizes = [16, 18], strides = [1, 1]} : vector<32x36xbf16> to vector<16x18xbf16>
    %110 = vector.shape_cast %106 : vector<16x18xbf16> to vector<1x16x18xbf16>
    %111 = vector.shape_cast %107 : vector<16x18xbf16> to vector<1x16x18xbf16>
    %112 = vector.shape_cast %108 : vector<16x18xbf16> to vector<1x16x18xbf16>
    %113 = vector.shape_cast %109 : vector<16x18xbf16> to vector<1x16x18xbf16>
    %114 = tpu.concatenate %110, %111, %112, %113 in 0 : vector<1x16x18xbf16>, vector<1x16x18xbf16>, vector<1x16x18xbf16>, vector<1x16x18xbf16> -> vector<4x16x18xbf16>
    %115 = arith.truncf %94 : vector<32x36xf32> to vector<32x36xbf16>
    %116 = vector.extract_strided_slice %115 {offsets = [0, 0], sizes = [16, 18], strides = [1, 1]} : vector<32x36xbf16> to vector<16x18xbf16>
    %117 = vector.extract_strided_slice %115 {offsets = [0, 18], sizes = [16, 18], strides = [1, 1]} : vector<32x36xbf16> to vector<16x18xbf16>
    %118 = vector.extract_strided_slice %115 {offsets = [16, 0], sizes = [16, 18], strides = [1, 1]} : vector<32x36xbf16> to vector<16x18xbf16>
    %119 = vector.extract_strided_slice %115 {offsets = [16, 18], sizes = [16, 18], strides = [1, 1]} : vector<32x36xbf16> to vector<16x18xbf16>
    %120 = vector.shape_cast %116 : vector<16x18xbf16> to vector<1x16x18xbf16>
    %121 = vector.shape_cast %117 : vector<16x18xbf16> to vector<1x16x18xbf16>
    %122 = vector.shape_cast %118 : vector<16x18xbf16> to vector<1x16x18xbf16>
    %123 = vector.shape_cast %119 : vector<16x18xbf16> to vector<1x16x18xbf16>
    %124 = tpu.concatenate %120, %121, %122, %123 in 0 : vector<1x16x18xbf16>, vector<1x16x18xbf16>, vector<1x16x18xbf16>, vector<1x16x18xbf16> -> vector<4x16x18xbf16>
    "tpu.trace_start"() <{level = 10 : i32, message = "gqd,gkd->gqk"}> : () -> ()
    %cst_54 = arith.constant dense<0.000000e+00> : vector<4x16x16xf32>
    %125 = tpu.matmul %104, %114, %cst_54 {dimension_numbers = #tpu.dot_dimension_numbers<[2], [2], [1], [1], [0, 0, 0, 1, 1, 1], [0], [0]>} : vector<4x16x18xbf16>, vector<4x16x18xbf16>, vector<4x16x16xf32> -> vector<4x16x16xf32>
    "tpu.trace_stop"() : () -> ()
    %cst_55 = arith.constant dense<0xFF800000> : vector<4x16xf32>
    %126 = vector.multi_reduction <maximumf>, %125, %cst_55 [2] : vector<4x16x16xf32> to vector<4x16xf32>
    %127 = vector.shape_cast %126 : vector<4x16xf32> to vector<4x16x1xf32>
    %128 = vector.broadcast %127 : vector<4x16x1xf32> to vector<4x16x16xf32>
    %129 = arith.subf %125, %128 : vector<4x16x16xf32>
    %130 = math.exp %129 : vector<4x16x16xf32>
    %cst_56 = arith.constant dense<0.000000e+00> : vector<4x16xf32>
    %131 = vector.multi_reduction <add>, %130, %cst_56 [2] : vector<4x16x16xf32> to vector<4x16xf32>
    %132 = vector.shape_cast %131 : vector<4x16xf32> to vector<4x16x1xf32>
    %133 = vector.broadcast %132 : vector<4x16x1xf32> to vector<4x16x16xf32>
    %134 = arith.divf %130, %133 : vector<4x16x16xf32>
    %135 = arith.truncf %134 : vector<4x16x16xf32> to vector<4x16x16xbf16>
    "tpu.trace_start"() <{level = 10 : i32, message = "gqk,gkd->gqd"}> : () -> ()
    %cst_57 = arith.constant dense<0.000000e+00> : vector<4x16x18xf32>
    %136 = tpu.matmul %135, %124, %cst_57 {dimension_numbers = #tpu.dot_dimension_numbers<[2], [1], [1], [2], [0, 0, 0, 1, 1, 2], [0], [0]>} : vector<4x16x16xbf16>, vector<4x16x18xbf16>, vector<4x16x18xf32> -> vector<4x16x18xf32>
    "tpu.trace_stop"() : () -> ()
    %137 = arith.truncf %136 : vector<4x16x18xf32> to vector<4x16x18xbf16>
    %138 = vector.extract_strided_slice %137 {offsets = [0, 0, 0], sizes = [1, 16, 18], strides = [1, 1, 1]} : vector<4x16x18xbf16> to vector<1x16x18xbf16>
    %139 = vector.shape_cast %138 : vector<1x16x18xbf16> to vector<16x18xbf16>
    %140 = vector.extract_strided_slice %137 {offsets = [1, 0, 0], sizes = [1, 16, 18], strides = [1, 1, 1]} : vector<4x16x18xbf16> to vector<1x16x18xbf16>
    %141 = vector.shape_cast %140 : vector<1x16x18xbf16> to vector<16x18xbf16>
    %142 = tpu.concatenate %139, %141 in 1 : vector<16x18xbf16>, vector<16x18xbf16> -> vector<16x36xbf16>
    %143 = vector.extract_strided_slice %137 {offsets = [2, 0, 0], sizes = [1, 16, 18], strides = [1, 1, 1]} : vector<4x16x18xbf16> to vector<1x16x18xbf16>
    %144 = vector.shape_cast %143 : vector<1x16x18xbf16> to vector<16x18xbf16>
    %145 = vector.extract_strided_slice %137 {offsets = [3, 0, 0], sizes = [1, 16, 18], strides = [1, 1, 1]} : vector<4x16x18xbf16> to vector<1x16x18xbf16>
    %146 = vector.shape_cast %145 : vector<1x16x18xbf16> to vector<16x18xbf16>
    %147 = tpu.concatenate %144, %146 in 1 : vector<16x18xbf16>, vector<16x18xbf16> -> vector<16x36xbf16>
    %148 = tpu.concatenate %142, %147 in 0 : vector<16x36xbf16>, vector<16x36xbf16> -> vector<32x36xbf16>
    %c0_58 = arith.constant 0 : index
    %c0_59 = arith.constant 0 : index
    %149 = vector.load %arg12[%c0_58, %c0_59] : memref<36x36xbf16, #tpu.memory_space<vmem>>, vector<36x36xbf16>
    %cst_60 = arith.constant dense<0.000000e+00> : vector<32x36xf32>
    %150 = tpu.matmul %148, %149, %cst_60 {dimension_numbers = #tpu.dot_dimension_numbers<[1], [0], [0], [1], [0, 0, 1, 1], [], []>} : vector<32x36xbf16>, vector<36x36xbf16>, vector<32x36xf32> -> vector<32x36xf32>
    %c0_61 = arith.constant 0 : index
    %c0_62 = arith.constant 0 : index
    %151 = vector.load %arg13[%c0_61, %c0_62] : memref<1x36xf32, #tpu.memory_space<vmem>>, vector<1x36xf32>
    %152 = vector.broadcast %151 : vector<1x36xf32> to vector<32x36xf32>
    %153 = arith.addf %150, %152 : vector<32x36xf32>
    %cst_63 = arith.constant 0.000000e+00 : f32
    %154 = vector.broadcast %cst_63 : f32 to vector<32x36xf32>
    %155 = arith.maximumf %153, %154 : vector<32x36xf32>
    %156 = vector.shape_cast %155 : vector<32x36xf32> to vector<2x16x36xf32>
    %cst_64 = arith.constant dense<0.000000e+00> : vector<2x36xf32>
    %157 = vector.multi_reduction <add>, %156, %cst_64 [1] : vector<2x16x36xf32> to vector<2x36xf32>
    %158 = vector.shape_cast %157 : vector<2x36xf32> to vector<2x1x36xf32>
    %cst_65 = arith.constant 1.600000e+01 : f32
    %159 = vector.broadcast %cst_65 : f32 to vector<2x1x36xf32>
    %160 = arith.divf %158, %159 : vector<2x1x36xf32>
    %161 = vector.broadcast %160 : vector<2x1x36xf32> to vector<2x16x36xf32>
    %162 = arith.subf %156, %161 : vector<2x16x36xf32>
    %163 = arith.mulf %162, %162 : vector<2x16x36xf32>
    %cst_66 = arith.constant dense<0.000000e+00> : vector<2x36xf32>
    %164 = vector.multi_reduction <add>, %163, %cst_66 [1] : vector<2x16x36xf32> to vector<2x36xf32>
    %165 = vector.shape_cast %164 : vector<2x36xf32> to vector<2x1x36xf32>
    %cst_67 = arith.constant 1.600000e+01 : f32
    %166 = vector.broadcast %cst_67 : f32 to vector<2x1x36xf32>
    %167 = arith.divf %165, %166 : vector<2x1x36xf32>
    %cst_68 = arith.constant 9.99999974E-6 : f32
    %168 = vector.broadcast %cst_68 : f32 to vector<2x1x36xf32>
    %169 = arith.addf %167, %168 : vector<2x1x36xf32>
    %170 = math.rsqrt %169 : vector<2x1x36xf32>
    %171 = vector.broadcast %170 : vector<2x1x36xf32> to vector<2x16x36xf32>
    %172 = arith.mulf %162, %171 : vector<2x16x36xf32>
    %173 = vector.shape_cast %172 : vector<2x16x36xf32> to vector<32x36xf32>
    %c0_69 = arith.constant 0 : index
    %c0_70 = arith.constant 0 : index
    %174 = vector.load %arg15[%c0_69, %c0_70] : memref<1x192xf32, #tpu.memory_space<vmem>>, vector<1x192xf32>
    %c1_i32_71 = arith.constant 1 : i32
    %175 = tpu.dynamic_rotate %173 by %c1_i32_71 dim 0 : vector<32x36xf32>, i32 -> vector<32x36xf32>
    %cst_72 = arith.constant 0.000000e+00 : f32
    %176 = vector.shape_cast %20 : vector<32x1xi1> to vector<32x1xi1>
    %177 = vector.broadcast %176 : vector<32x1xi1> to vector<32x36xi1>
    %178 = vector.broadcast %cst_72 : f32 to vector<32x36xf32>
    %179 = arith.select %177, %178, %175 : vector<32x36xi1>, vector<32x36xf32>
    %c31_i32_73 = arith.constant 31 : i32
    %180 = tpu.dynamic_rotate %173 by %c31_i32_73 dim 0 : vector<32x36xf32>, i32 -> vector<32x36xf32>
    %cst_74 = arith.constant 0.000000e+00 : f32
    %181 = vector.shape_cast %22 : vector<32x1xi1> to vector<32x1xi1>
    %182 = vector.broadcast %181 : vector<32x1xi1> to vector<32x36xi1>
    %183 = vector.broadcast %cst_74 : f32 to vector<32x36xf32>
    %184 = arith.select %182, %183, %180 : vector<32x36xi1>, vector<32x36xf32>
    %185 = arith.truncf %179 : vector<32x36xf32> to vector<32x36xbf16>
    %c0_75 = arith.constant 0 : index
    %c0_76 = arith.constant 0 : index
    %c0_77 = arith.constant 0 : index
    %186 = vector.load %arg14[%c0_75, %c0_76, %c0_77] : memref<3x36x192xbf16, #tpu.memory_space<vmem>>, vector<1x36x192xbf16>
    %187 = vector.shape_cast %186 : vector<1x36x192xbf16> to vector<36x192xbf16>
    %cst_78 = arith.constant dense<0.000000e+00> : vector<32x192xf32>
    %188 = tpu.matmul %185, %187, %cst_78 {dimension_numbers = #tpu.dot_dimension_numbers<[1], [0], [0], [1], [0, 0, 1, 1], [], []>} : vector<32x36xbf16>, vector<36x192xbf16>, vector<32x192xf32> -> vector<32x192xf32>
    %189 = arith.truncf %173 : vector<32x36xf32> to vector<32x36xbf16>
    %c1_79 = arith.constant 1 : index
    %c0_80 = arith.constant 0 : index
    %c0_81 = arith.constant 0 : index
    %190 = vector.load %arg14[%c1_79, %c0_80, %c0_81] : memref<3x36x192xbf16, #tpu.memory_space<vmem>>, vector<1x36x192xbf16>
    %191 = vector.shape_cast %190 : vector<1x36x192xbf16> to vector<36x192xbf16>
    %cst_82 = arith.constant dense<0.000000e+00> : vector<32x192xf32>
    %192 = tpu.matmul %189, %191, %cst_82 {dimension_numbers = #tpu.dot_dimension_numbers<[1], [0], [0], [1], [0, 0, 1, 1], [], []>} : vector<32x36xbf16>, vector<36x192xbf16>, vector<32x192xf32> -> vector<32x192xf32>
    %193 = arith.addf %188, %192 : vector<32x192xf32>
    %194 = arith.truncf %184 : vector<32x36xf32> to vector<32x36xbf16>
    %c2_83 = arith.constant 2 : index
    %c0_84 = arith.constant 0 : index
    %c0_85 = arith.constant 0 : index
    %195 = vector.load %arg14[%c2_83, %c0_84, %c0_85] : memref<3x36x192xbf16, #tpu.memory_space<vmem>>, vector<1x36x192xbf16>
    %196 = vector.shape_cast %195 : vector<1x36x192xbf16> to vector<36x192xbf16>
    %cst_86 = arith.constant dense<0.000000e+00> : vector<32x192xf32>
    %197 = tpu.matmul %194, %196, %cst_86 {dimension_numbers = #tpu.dot_dimension_numbers<[1], [0], [0], [1], [0, 0, 1, 1], [], []>} : vector<32x36xbf16>, vector<36x192xbf16>, vector<32x192xf32> -> vector<32x192xf32>
    %198 = arith.addf %193, %197 : vector<32x192xf32>
    %199 = vector.broadcast %174 : vector<1x192xf32> to vector<32x192xf32>
    %200 = arith.addf %198, %199 : vector<32x192xf32>
    %cst_87 = arith.constant 0.000000e+00 : f32
    %201 = vector.broadcast %cst_87 : f32 to vector<32x192xf32>
    %202 = arith.maximumf %200, %201 : vector<32x192xf32>
    %c0_88 = arith.constant 0 : index
    %c0_89 = arith.constant 0 : index
    %203 = vector.load %arg17[%c0_88, %c0_89] : memref<1x192xf32, #tpu.memory_space<vmem>>, vector<1x192xf32>
    %c1_i32_90 = arith.constant 1 : i32
    %204 = tpu.dynamic_rotate %202 by %c1_i32_90 dim 0 : vector<32x192xf32>, i32 -> vector<32x192xf32>
    %cst_91 = arith.constant 0.000000e+00 : f32
    %205 = vector.shape_cast %20 : vector<32x1xi1> to vector<32x1xi1>
    %206 = vector.broadcast %205 : vector<32x1xi1> to vector<32x192xi1>
    %207 = vector.broadcast %cst_91 : f32 to vector<32x192xf32>
    %208 = arith.select %206, %207, %204 : vector<32x192xi1>, vector<32x192xf32>
    %c31_i32_92 = arith.constant 31 : i32
    %209 = tpu.dynamic_rotate %202 by %c31_i32_92 dim 0 : vector<32x192xf32>, i32 -> vector<32x192xf32>
    %cst_93 = arith.constant 0.000000e+00 : f32
    %210 = vector.shape_cast %22 : vector<32x1xi1> to vector<32x1xi1>
    %211 = vector.broadcast %210 : vector<32x1xi1> to vector<32x192xi1>
    %212 = vector.broadcast %cst_93 : f32 to vector<32x192xf32>
    %213 = arith.select %211, %212, %209 : vector<32x192xi1>, vector<32x192xf32>
    %214 = arith.truncf %208 : vector<32x192xf32> to vector<32x192xbf16>
    %c0_94 = arith.constant 0 : index
    %c0_95 = arith.constant 0 : index
    %c0_96 = arith.constant 0 : index
    %215 = vector.load %arg16[%c0_94, %c0_95, %c0_96] : memref<3x192x192xbf16, #tpu.memory_space<vmem>>, vector<1x192x192xbf16>
    %216 = vector.shape_cast %215 : vector<1x192x192xbf16> to vector<192x192xbf16>
    %cst_97 = arith.constant dense<0.000000e+00> : vector<32x192xf32>
    %217 = tpu.matmul %214, %216, %cst_97 {dimension_numbers = #tpu.dot_dimension_numbers<[1], [0], [0], [1], [0, 0, 1, 1], [], []>} : vector<32x192xbf16>, vector<192x192xbf16>, vector<32x192xf32> -> vector<32x192xf32>
    %218 = arith.truncf %202 : vector<32x192xf32> to vector<32x192xbf16>
    %c1_98 = arith.constant 1 : index
    %c0_99 = arith.constant 0 : index
    %c0_100 = arith.constant 0 : index
    %219 = vector.load %arg16[%c1_98, %c0_99, %c0_100] : memref<3x192x192xbf16, #tpu.memory_space<vmem>>, vector<1x192x192xbf16>
    %220 = vector.shape_cast %219 : vector<1x192x192xbf16> to vector<192x192xbf16>
    %cst_101 = arith.constant dense<0.000000e+00> : vector<32x192xf32>
    %221 = tpu.matmul %218, %220, %cst_101 {dimension_numbers = #tpu.dot_dimension_numbers<[1], [0], [0], [1], [0, 0, 1, 1], [], []>} : vector<32x192xbf16>, vector<192x192xbf16>, vector<32x192xf32> -> vector<32x192xf32>
    %222 = arith.addf %217, %221 : vector<32x192xf32>
    %223 = arith.truncf %213 : vector<32x192xf32> to vector<32x192xbf16>
    %c2_102 = arith.constant 2 : index
    %c0_103 = arith.constant 0 : index
    %c0_104 = arith.constant 0 : index
    %224 = vector.load %arg16[%c2_102, %c0_103, %c0_104] : memref<3x192x192xbf16, #tpu.memory_space<vmem>>, vector<1x192x192xbf16>
    %225 = vector.shape_cast %224 : vector<1x192x192xbf16> to vector<192x192xbf16>
    %cst_105 = arith.constant dense<0.000000e+00> : vector<32x192xf32>
    %226 = tpu.matmul %223, %225, %cst_105 {dimension_numbers = #tpu.dot_dimension_numbers<[1], [0], [0], [1], [0, 0, 1, 1], [], []>} : vector<32x192xbf16>, vector<192x192xbf16>, vector<32x192xf32> -> vector<32x192xf32>
    %227 = arith.addf %222, %226 : vector<32x192xf32>
    %228 = vector.broadcast %203 : vector<1x192xf32> to vector<32x192xf32>
    %229 = arith.addf %227, %228 : vector<32x192xf32>
    %230 = arith.truncf %229 : vector<32x192xf32> to vector<32x192xbf16>
    %c0_106 = arith.constant 0 : index
    %c0_107 = arith.constant 0 : index
    %231 = vector.load %arg18[%c0_106, %c0_107] : memref<192x192xbf16, #tpu.memory_space<vmem>>, vector<192x192xbf16>
    %cst_108 = arith.constant dense<0.000000e+00> : vector<32x192xf32>
    %232 = tpu.matmul %230, %231, %cst_108 {dimension_numbers = #tpu.dot_dimension_numbers<[1], [0], [0], [1], [0, 0, 1, 1], [], []>} : vector<32x192xbf16>, vector<192x192xbf16>, vector<32x192xf32> -> vector<32x192xf32>
    %c0_109 = arith.constant 0 : index
    %c0_110 = arith.constant 0 : index
    %233 = vector.load %arg19[%c0_109, %c0_110] : memref<1x192xf32, #tpu.memory_space<vmem>>, vector<1x192xf32>
    %234 = vector.broadcast %233 : vector<1x192xf32> to vector<32x192xf32>
    %235 = arith.addf %232, %234 : vector<32x192xf32>
    %c0_111 = arith.constant 0 : index
    %c0_112 = arith.constant 0 : index
    %236 = vector.load %arg20[%c0_111, %c0_112] : memref<192x192xbf16, #tpu.memory_space<vmem>>, vector<192x192xbf16>
    %cst_113 = arith.constant dense<0.000000e+00> : vector<32x192xf32>
    %237 = tpu.matmul %230, %236, %cst_113 {dimension_numbers = #tpu.dot_dimension_numbers<[1], [0], [0], [1], [0, 0, 1, 1], [], []>} : vector<32x192xbf16>, vector<192x192xbf16>, vector<32x192xf32> -> vector<32x192xf32>
    %c0_114 = arith.constant 0 : index
    %c0_115 = arith.constant 0 : index
    %238 = vector.load %arg21[%c0_114, %c0_115] : memref<1x192xf32, #tpu.memory_space<vmem>>, vector<1x192xf32>
    %239 = vector.broadcast %238 : vector<1x192xf32> to vector<32x192xf32>
    %240 = arith.addf %237, %239 : vector<32x192xf32>
    %c0_116 = arith.constant 0 : index
    %c0_117 = arith.constant 0 : index
    %241 = vector.load %arg22[%c0_116, %c0_117] : memref<192x192xbf16, #tpu.memory_space<vmem>>, vector<192x192xbf16>
    %cst_118 = arith.constant dense<0.000000e+00> : vector<32x192xf32>
    %242 = tpu.matmul %230, %241, %cst_118 {dimension_numbers = #tpu.dot_dimension_numbers<[1], [0], [0], [1], [0, 0, 1, 1], [], []>} : vector<32x192xbf16>, vector<192x192xbf16>, vector<32x192xf32> -> vector<32x192xf32>
    %c0_119 = arith.constant 0 : index
    %c0_120 = arith.constant 0 : index
    %243 = vector.load %arg23[%c0_119, %c0_120] : memref<1x192xf32, #tpu.memory_space<vmem>>, vector<1x192xf32>
    %244 = vector.broadcast %243 : vector<1x192xf32> to vector<32x192xf32>
    %245 = arith.addf %242, %244 : vector<32x192xf32>
    %246 = arith.truncf %235 : vector<32x192xf32> to vector<32x192xbf16>
    %247 = vector.extract_strided_slice %246 {offsets = [0, 0], sizes = [16, 24], strides = [1, 1]} : vector<32x192xbf16> to vector<16x24xbf16>
    %248 = vector.extract_strided_slice %246 {offsets = [0, 24], sizes = [16, 24], strides = [1, 1]} : vector<32x192xbf16> to vector<16x24xbf16>
    %249 = vector.extract_strided_slice %246 {offsets = [0, 48], sizes = [16, 24], strides = [1, 1]} : vector<32x192xbf16> to vector<16x24xbf16>
    %250 = vector.extract_strided_slice %246 {offsets = [0, 72], sizes = [16, 24], strides = [1, 1]} : vector<32x192xbf16> to vector<16x24xbf16>
    %251 = vector.extract_strided_slice %246 {offsets = [0, 96], sizes = [16, 24], strides = [1, 1]} : vector<32x192xbf16> to vector<16x24xbf16>
    %252 = vector.extract_strided_slice %246 {offsets = [0, 120], sizes = [16, 24], strides = [1, 1]} : vector<32x192xbf16> to vector<16x24xbf16>
    %253 = vector.extract_strided_slice %246 {offsets = [0, 144], sizes = [16, 24], strides = [1, 1]} : vector<32x192xbf16> to vector<16x24xbf16>
    %254 = vector.extract_strided_slice %246 {offsets = [0, 168], sizes = [16, 24], strides = [1, 1]} : vector<32x192xbf16> to vector<16x24xbf16>
    %255 = vector.extract_strided_slice %246 {offsets = [16, 0], sizes = [16, 24], strides = [1, 1]} : vector<32x192xbf16> to vector<16x24xbf16>
    %256 = vector.extract_strided_slice %246 {offsets = [16, 24], sizes = [16, 24], strides = [1, 1]} : vector<32x192xbf16> to vector<16x24xbf16>
    %257 = vector.extract_strided_slice %246 {offsets = [16, 48], sizes = [16, 24], strides = [1, 1]} : vector<32x192xbf16> to vector<16x24xbf16>
    %258 = vector.extract_strided_slice %246 {offsets = [16, 72], sizes = [16, 24], strides = [1, 1]} : vector<32x192xbf16> to vector<16x24xbf16>
    %259 = vector.extract_strided_slice %246 {offsets = [16, 96], sizes = [16, 24], strides = [1, 1]} : vector<32x192xbf16> to vector<16x24xbf16>
    %260 = vector.extract_strided_slice %246 {offsets = [16, 120], sizes = [16, 24], strides = [1, 1]} : vector<32x192xbf16> to vector<16x24xbf16>
    %261 = vector.extract_strided_slice %246 {offsets = [16, 144], sizes = [16, 24], strides = [1, 1]} : vector<32x192xbf16> to vector<16x24xbf16>
    %262 = vector.extract_strided_slice %246 {offsets = [16, 168], sizes = [16, 24], strides = [1, 1]} : vector<32x192xbf16> to vector<16x24xbf16>
    %263 = vector.shape_cast %247 : vector<16x24xbf16> to vector<1x16x24xbf16>
    %264 = vector.shape_cast %248 : vector<16x24xbf16> to vector<1x16x24xbf16>
    %265 = vector.shape_cast %249 : vector<16x24xbf16> to vector<1x16x24xbf16>
    %266 = vector.shape_cast %250 : vector<16x24xbf16> to vector<1x16x24xbf16>
    %267 = vector.shape_cast %251 : vector<16x24xbf16> to vector<1x16x24xbf16>
    %268 = vector.shape_cast %252 : vector<16x24xbf16> to vector<1x16x24xbf16>
    %269 = vector.shape_cast %253 : vector<16x24xbf16> to vector<1x16x24xbf16>
    %270 = vector.shape_cast %254 : vector<16x24xbf16> to vector<1x16x24xbf16>
    %271 = vector.shape_cast %255 : vector<16x24xbf16> to vector<1x16x24xbf16>
    %272 = vector.shape_cast %256 : vector<16x24xbf16> to vector<1x16x24xbf16>
    %273 = vector.shape_cast %257 : vector<16x24xbf16> to vector<1x16x24xbf16>
    %274 = vector.shape_cast %258 : vector<16x24xbf16> to vector<1x16x24xbf16>
    %275 = vector.shape_cast %259 : vector<16x24xbf16> to vector<1x16x24xbf16>
    %276 = vector.shape_cast %260 : vector<16x24xbf16> to vector<1x16x24xbf16>
    %277 = vector.shape_cast %261 : vector<16x24xbf16> to vector<1x16x24xbf16>
    %278 = vector.shape_cast %262 : vector<16x24xbf16> to vector<1x16x24xbf16>
    %279 = tpu.concatenate %263, %264, %265, %266, %267, %268, %269, %270, %271, %272, %273, %274, %275, %276, %277, %278 in 0 : vector<1x16x24xbf16>, vector<1x16x24xbf16>, vector<1x16x24xbf16>, vector<1x16x24xbf16>, vector<1x16x24xbf16>, vector<1x16x24xbf16>, vector<1x16x24xbf16>, vector<1x16x24xbf16>, vector<1x16x24xbf16>, vector<1x16x24xbf16>, vector<1x16x24xbf16>, vector<1x16x24xbf16>, vector<1x16x24xbf16>, vector<1x16x24xbf16>, vector<1x16x24xbf16>, vector<1x16x24xbf16> -> vector<16x16x24xbf16>
    %280 = arith.truncf %240 : vector<32x192xf32> to vector<32x192xbf16>
    %281 = vector.extract_strided_slice %280 {offsets = [0, 0], sizes = [16, 24], strides = [1, 1]} : vector<32x192xbf16> to vector<16x24xbf16>
    %282 = vector.extract_strided_slice %280 {offsets = [0, 24], sizes = [16, 24], strides = [1, 1]} : vector<32x192xbf16> to vector<16x24xbf16>
    %283 = vector.extract_strided_slice %280 {offsets = [0, 48], sizes = [16, 24], strides = [1, 1]} : vector<32x192xbf16> to vector<16x24xbf16>
    %284 = vector.extract_strided_slice %280 {offsets = [0, 72], sizes = [16, 24], strides = [1, 1]} : vector<32x192xbf16> to vector<16x24xbf16>
    %285 = vector.extract_strided_slice %280 {offsets = [0, 96], sizes = [16, 24], strides = [1, 1]} : vector<32x192xbf16> to vector<16x24xbf16>
    %286 = vector.extract_strided_slice %280 {offsets = [0, 120], sizes = [16, 24], strides = [1, 1]} : vector<32x192xbf16> to vector<16x24xbf16>
    %287 = vector.extract_strided_slice %280 {offsets = [0, 144], sizes = [16, 24], strides = [1, 1]} : vector<32x192xbf16> to vector<16x24xbf16>
    %288 = vector.extract_strided_slice %280 {offsets = [0, 168], sizes = [16, 24], strides = [1, 1]} : vector<32x192xbf16> to vector<16x24xbf16>
    %289 = vector.extract_strided_slice %280 {offsets = [16, 0], sizes = [16, 24], strides = [1, 1]} : vector<32x192xbf16> to vector<16x24xbf16>
    %290 = vector.extract_strided_slice %280 {offsets = [16, 24], sizes = [16, 24], strides = [1, 1]} : vector<32x192xbf16> to vector<16x24xbf16>
    %291 = vector.extract_strided_slice %280 {offsets = [16, 48], sizes = [16, 24], strides = [1, 1]} : vector<32x192xbf16> to vector<16x24xbf16>
    %292 = vector.extract_strided_slice %280 {offsets = [16, 72], sizes = [16, 24], strides = [1, 1]} : vector<32x192xbf16> to vector<16x24xbf16>
    %293 = vector.extract_strided_slice %280 {offsets = [16, 96], sizes = [16, 24], strides = [1, 1]} : vector<32x192xbf16> to vector<16x24xbf16>
    %294 = vector.extract_strided_slice %280 {offsets = [16, 120], sizes = [16, 24], strides = [1, 1]} : vector<32x192xbf16> to vector<16x24xbf16>
    %295 = vector.extract_strided_slice %280 {offsets = [16, 144], sizes = [16, 24], strides = [1, 1]} : vector<32x192xbf16> to vector<16x24xbf16>
    %296 = vector.extract_strided_slice %280 {offsets = [16, 168], sizes = [16, 24], strides = [1, 1]} : vector<32x192xbf16> to vector<16x24xbf16>
    %297 = vector.shape_cast %281 : vector<16x24xbf16> to vector<1x16x24xbf16>
    %298 = vector.shape_cast %282 : vector<16x24xbf16> to vector<1x16x24xbf16>
    %299 = vector.shape_cast %283 : vector<16x24xbf16> to vector<1x16x24xbf16>
    %300 = vector.shape_cast %284 : vector<16x24xbf16> to vector<1x16x24xbf16>
    %301 = vector.shape_cast %285 : vector<16x24xbf16> to vector<1x16x24xbf16>
    %302 = vector.shape_cast %286 : vector<16x24xbf16> to vector<1x16x24xbf16>
    %303 = vector.shape_cast %287 : vector<16x24xbf16> to vector<1x16x24xbf16>
    %304 = vector.shape_cast %288 : vector<16x24xbf16> to vector<1x16x24xbf16>
    %305 = vector.shape_cast %289 : vector<16x24xbf16> to vector<1x16x24xbf16>
    %306 = vector.shape_cast %290 : vector<16x24xbf16> to vector<1x16x24xbf16>
    %307 = vector.shape_cast %291 : vector<16x24xbf16> to vector<1x16x24xbf16>
    %308 = vector.shape_cast %292 : vector<16x24xbf16> to vector<1x16x24xbf16>
    %309 = vector.shape_cast %293 : vector<16x24xbf16> to vector<1x16x24xbf16>
    %310 = vector.shape_cast %294 : vector<16x24xbf16> to vector<1x16x24xbf16>
    %311 = vector.shape_cast %295 : vector<16x24xbf16> to vector<1x16x24xbf16>
    %312 = vector.shape_cast %296 : vector<16x24xbf16> to vector<1x16x24xbf16>
    %313 = tpu.concatenate %297, %298, %299, %300, %301, %302, %303, %304, %305, %306, %307, %308, %309, %310, %311, %312 in 0 : vector<1x16x24xbf16>, vector<1x16x24xbf16>, vector<1x16x24xbf16>, vector<1x16x24xbf16>, vector<1x16x24xbf16>, vector<1x16x24xbf16>, vector<1x16x24xbf16>, vector<1x16x24xbf16>, vector<1x16x24xbf16>, vector<1x16x24xbf16>, vector<1x16x24xbf16>, vector<1x16x24xbf16>, vector<1x16x24xbf16>, vector<1x16x24xbf16>, vector<1x16x24xbf16>, vector<1x16x24xbf16> -> vector<16x16x24xbf16>
    %314 = arith.truncf %245 : vector<32x192xf32> to vector<32x192xbf16>
    %315 = vector.extract_strided_slice %314 {offsets = [0, 0], sizes = [16, 24], strides = [1, 1]} : vector<32x192xbf16> to vector<16x24xbf16>
    %316 = vector.extract_strided_slice %314 {offsets = [0, 24], sizes = [16, 24], strides = [1, 1]} : vector<32x192xbf16> to vector<16x24xbf16>
    %317 = vector.extract_strided_slice %314 {offsets = [0, 48], sizes = [16, 24], strides = [1, 1]} : vector<32x192xbf16> to vector<16x24xbf16>
    %318 = vector.extract_strided_slice %314 {offsets = [0, 72], sizes = [16, 24], strides = [1, 1]} : vector<32x192xbf16> to vector<16x24xbf16>
    %319 = vector.extract_strided_slice %314 {offsets = [0, 96], sizes = [16, 24], strides = [1, 1]} : vector<32x192xbf16> to vector<16x24xbf16>
    %320 = vector.extract_strided_slice %314 {offsets = [0, 120], sizes = [16, 24], strides = [1, 1]} : vector<32x192xbf16> to vector<16x24xbf16>
    %321 = vector.extract_strided_slice %314 {offsets = [0, 144], sizes = [16, 24], strides = [1, 1]} : vector<32x192xbf16> to vector<16x24xbf16>
    %322 = vector.extract_strided_slice %314 {offsets = [0, 168], sizes = [16, 24], strides = [1, 1]} : vector<32x192xbf16> to vector<16x24xbf16>
    %323 = vector.extract_strided_slice %314 {offsets = [16, 0], sizes = [16, 24], strides = [1, 1]} : vector<32x192xbf16> to vector<16x24xbf16>
    %324 = vector.extract_strided_slice %314 {offsets = [16, 24], sizes = [16, 24], strides = [1, 1]} : vector<32x192xbf16> to vector<16x24xbf16>
    %325 = vector.extract_strided_slice %314 {offsets = [16, 48], sizes = [16, 24], strides = [1, 1]} : vector<32x192xbf16> to vector<16x24xbf16>
    %326 = vector.extract_strided_slice %314 {offsets = [16, 72], sizes = [16, 24], strides = [1, 1]} : vector<32x192xbf16> to vector<16x24xbf16>
    %327 = vector.extract_strided_slice %314 {offsets = [16, 96], sizes = [16, 24], strides = [1, 1]} : vector<32x192xbf16> to vector<16x24xbf16>
    %328 = vector.extract_strided_slice %314 {offsets = [16, 120], sizes = [16, 24], strides = [1, 1]} : vector<32x192xbf16> to vector<16x24xbf16>
    %329 = vector.extract_strided_slice %314 {offsets = [16, 144], sizes = [16, 24], strides = [1, 1]} : vector<32x192xbf16> to vector<16x24xbf16>
    %330 = vector.extract_strided_slice %314 {offsets = [16, 168], sizes = [16, 24], strides = [1, 1]} : vector<32x192xbf16> to vector<16x24xbf16>
    %331 = vector.shape_cast %315 : vector<16x24xbf16> to vector<1x16x24xbf16>
    %332 = vector.shape_cast %316 : vector<16x24xbf16> to vector<1x16x24xbf16>
    %333 = vector.shape_cast %317 : vector<16x24xbf16> to vector<1x16x24xbf16>
    %334 = vector.shape_cast %318 : vector<16x24xbf16> to vector<1x16x24xbf16>
    %335 = vector.shape_cast %319 : vector<16x24xbf16> to vector<1x16x24xbf16>
    %336 = vector.shape_cast %320 : vector<16x24xbf16> to vector<1x16x24xbf16>
    %337 = vector.shape_cast %321 : vector<16x24xbf16> to vector<1x16x24xbf16>
    %338 = vector.shape_cast %322 : vector<16x24xbf16> to vector<1x16x24xbf16>
    %339 = vector.shape_cast %323 : vector<16x24xbf16> to vector<1x16x24xbf16>
    %340 = vector.shape_cast %324 : vector<16x24xbf16> to vector<1x16x24xbf16>
    %341 = vector.shape_cast %325 : vector<16x24xbf16> to vector<1x16x24xbf16>
    %342 = vector.shape_cast %326 : vector<16x24xbf16> to vector<1x16x24xbf16>
    %343 = vector.shape_cast %327 : vector<16x24xbf16> to vector<1x16x24xbf16>
    %344 = vector.shape_cast %328 : vector<16x24xbf16> to vector<1x16x24xbf16>
    %345 = vector.shape_cast %329 : vector<16x24xbf16> to vector<1x16x24xbf16>
    %346 = vector.shape_cast %330 : vector<16x24xbf16> to vector<1x16x24xbf16>
    %347 = tpu.concatenate %331, %332, %333, %334, %335, %336, %337, %338, %339, %340, %341, %342, %343, %344, %345, %346 in 0 : vector<1x16x24xbf16>, vector<1x16x24xbf16>, vector<1x16x24xbf16>, vector<1x16x24xbf16>, vector<1x16x24xbf16>, vector<1x16x24xbf16>, vector<1x16x24xbf16>, vector<1x16x24xbf16>, vector<1x16x24xbf16>, vector<1x16x24xbf16>, vector<1x16x24xbf16>, vector<1x16x24xbf16>, vector<1x16x24xbf16>, vector<1x16x24xbf16>, vector<1x16x24xbf16>, vector<1x16x24xbf16> -> vector<16x16x24xbf16>
    "tpu.trace_start"() <{level = 10 : i32, message = "gqd,gkd->gqk"}> : () -> ()
    %cst_121 = arith.constant dense<0.000000e+00> : vector<16x16x16xf32>
    %348 = tpu.matmul %279, %313, %cst_121 {dimension_numbers = #tpu.dot_dimension_numbers<[2], [2], [1], [1], [0, 0, 0, 1, 1, 1], [0], [0]>} : vector<16x16x24xbf16>, vector<16x16x24xbf16>, vector<16x16x16xf32> -> vector<16x16x16xf32>
    "tpu.trace_stop"() : () -> ()
    %cst_122 = arith.constant dense<0xFF800000> : vector<16x16xf32>
    %349 = vector.multi_reduction <maximumf>, %348, %cst_122 [2] : vector<16x16x16xf32> to vector<16x16xf32>
    %350 = vector.shape_cast %349 : vector<16x16xf32> to vector<16x16x1xf32>
    %351 = vector.broadcast %350 : vector<16x16x1xf32> to vector<16x16x16xf32>
    %352 = arith.subf %348, %351 : vector<16x16x16xf32>
    %353 = math.exp %352 : vector<16x16x16xf32>
    %cst_123 = arith.constant dense<0.000000e+00> : vector<16x16xf32>
    %354 = vector.multi_reduction <add>, %353, %cst_123 [2] : vector<16x16x16xf32> to vector<16x16xf32>
    %355 = vector.shape_cast %354 : vector<16x16xf32> to vector<16x16x1xf32>
    %356 = vector.broadcast %355 : vector<16x16x1xf32> to vector<16x16x16xf32>
    %357 = arith.divf %353, %356 : vector<16x16x16xf32>
    %358 = arith.truncf %357 : vector<16x16x16xf32> to vector<16x16x16xbf16>
    "tpu.trace_start"() <{level = 10 : i32, message = "gqk,gkd->gqd"}> : () -> ()
    %cst_124 = arith.constant dense<0.000000e+00> : vector<16x16x24xf32>
    %359 = tpu.matmul %358, %347, %cst_124 {dimension_numbers = #tpu.dot_dimension_numbers<[2], [1], [1], [2], [0, 0, 0, 1, 1, 2], [0], [0]>} : vector<16x16x16xbf16>, vector<16x16x24xbf16>, vector<16x16x24xf32> -> vector<16x16x24xf32>
    "tpu.trace_stop"() : () -> ()
    %360 = arith.truncf %359 : vector<16x16x24xf32> to vector<16x16x24xbf16>
    %361 = vector.extract_strided_slice %360 {offsets = [0, 0, 0], sizes = [1, 16, 24], strides = [1, 1, 1]} : vector<16x16x24xbf16> to vector<1x16x24xbf16>
    %362 = vector.shape_cast %361 : vector<1x16x24xbf16> to vector<16x24xbf16>
    %363 = vector.extract_strided_slice %360 {offsets = [1, 0, 0], sizes = [1, 16, 24], strides = [1, 1, 1]} : vector<16x16x24xbf16> to vector<1x16x24xbf16>
    %364 = vector.shape_cast %363 : vector<1x16x24xbf16> to vector<16x24xbf16>
    %365 = vector.extract_strided_slice %360 {offsets = [2, 0, 0], sizes = [1, 16, 24], strides = [1, 1, 1]} : vector<16x16x24xbf16> to vector<1x16x24xbf16>
    %366 = vector.shape_cast %365 : vector<1x16x24xbf16> to vector<16x24xbf16>
    %367 = vector.extract_strided_slice %360 {offsets = [3, 0, 0], sizes = [1, 16, 24], strides = [1, 1, 1]} : vector<16x16x24xbf16> to vector<1x16x24xbf16>
    %368 = vector.shape_cast %367 : vector<1x16x24xbf16> to vector<16x24xbf16>
    %369 = vector.extract_strided_slice %360 {offsets = [4, 0, 0], sizes = [1, 16, 24], strides = [1, 1, 1]} : vector<16x16x24xbf16> to vector<1x16x24xbf16>
    %370 = vector.shape_cast %369 : vector<1x16x24xbf16> to vector<16x24xbf16>
    %371 = vector.extract_strided_slice %360 {offsets = [5, 0, 0], sizes = [1, 16, 24], strides = [1, 1, 1]} : vector<16x16x24xbf16> to vector<1x16x24xbf16>
    %372 = vector.shape_cast %371 : vector<1x16x24xbf16> to vector<16x24xbf16>
    %373 = vector.extract_strided_slice %360 {offsets = [6, 0, 0], sizes = [1, 16, 24], strides = [1, 1, 1]} : vector<16x16x24xbf16> to vector<1x16x24xbf16>
    %374 = vector.shape_cast %373 : vector<1x16x24xbf16> to vector<16x24xbf16>
    %375 = vector.extract_strided_slice %360 {offsets = [7, 0, 0], sizes = [1, 16, 24], strides = [1, 1, 1]} : vector<16x16x24xbf16> to vector<1x16x24xbf16>
    %376 = vector.shape_cast %375 : vector<1x16x24xbf16> to vector<16x24xbf16>
    %377 = tpu.concatenate %362, %364, %366, %368, %370, %372, %374, %376 in 1 : vector<16x24xbf16>, vector<16x24xbf16>, vector<16x24xbf16>, vector<16x24xbf16>, vector<16x24xbf16>, vector<16x24xbf16>, vector<16x24xbf16>, vector<16x24xbf16> -> vector<16x192xbf16>
    %378 = vector.extract_strided_slice %360 {offsets = [8, 0, 0], sizes = [1, 16, 24], strides = [1, 1, 1]} : vector<16x16x24xbf16> to vector<1x16x24xbf16>
    %379 = vector.shape_cast %378 : vector<1x16x24xbf16> to vector<16x24xbf16>
    %380 = vector.extract_strided_slice %360 {offsets = [9, 0, 0], sizes = [1, 16, 24], strides = [1, 1, 1]} : vector<16x16x24xbf16> to vector<1x16x24xbf16>
    %381 = vector.shape_cast %380 : vector<1x16x24xbf16> to vector<16x24xbf16>
    %382 = vector.extract_strided_slice %360 {offsets = [10, 0, 0], sizes = [1, 16, 24], strides = [1, 1, 1]} : vector<16x16x24xbf16> to vector<1x16x24xbf16>
    %383 = vector.shape_cast %382 : vector<1x16x24xbf16> to vector<16x24xbf16>
    %384 = vector.extract_strided_slice %360 {offsets = [11, 0, 0], sizes = [1, 16, 24], strides = [1, 1, 1]} : vector<16x16x24xbf16> to vector<1x16x24xbf16>
    %385 = vector.shape_cast %384 : vector<1x16x24xbf16> to vector<16x24xbf16>
    %386 = vector.extract_strided_slice %360 {offsets = [12, 0, 0], sizes = [1, 16, 24], strides = [1, 1, 1]} : vector<16x16x24xbf16> to vector<1x16x24xbf16>
    %387 = vector.shape_cast %386 : vector<1x16x24xbf16> to vector<16x24xbf16>
    %388 = vector.extract_strided_slice %360 {offsets = [13, 0, 0], sizes = [1, 16, 24], strides = [1, 1, 1]} : vector<16x16x24xbf16> to vector<1x16x24xbf16>
    %389 = vector.shape_cast %388 : vector<1x16x24xbf16> to vector<16x24xbf16>
    %390 = vector.extract_strided_slice %360 {offsets = [14, 0, 0], sizes = [1, 16, 24], strides = [1, 1, 1]} : vector<16x16x24xbf16> to vector<1x16x24xbf16>
    %391 = vector.shape_cast %390 : vector<1x16x24xbf16> to vector<16x24xbf16>
    %392 = vector.extract_strided_slice %360 {offsets = [15, 0, 0], sizes = [1, 16, 24], strides = [1, 1, 1]} : vector<16x16x24xbf16> to vector<1x16x24xbf16>
    %393 = vector.shape_cast %392 : vector<1x16x24xbf16> to vector<16x24xbf16>
    %394 = tpu.concatenate %379, %381, %383, %385, %387, %389, %391, %393 in 1 : vector<16x24xbf16>, vector<16x24xbf16>, vector<16x24xbf16>, vector<16x24xbf16>, vector<16x24xbf16>, vector<16x24xbf16>, vector<16x24xbf16>, vector<16x24xbf16> -> vector<16x192xbf16>
    %395 = tpu.concatenate %377, %394 in 0 : vector<16x192xbf16>, vector<16x192xbf16> -> vector<32x192xbf16>
    %c0_125 = arith.constant 0 : index
    %c0_126 = arith.constant 0 : index
    %396 = vector.load %arg24[%c0_125, %c0_126] : memref<192x192xbf16, #tpu.memory_space<vmem>>, vector<192x192xbf16>
    %cst_127 = arith.constant dense<0.000000e+00> : vector<32x192xf32>
    %397 = tpu.matmul %395, %396, %cst_127 {dimension_numbers = #tpu.dot_dimension_numbers<[1], [0], [0], [1], [0, 0, 1, 1], [], []>} : vector<32x192xbf16>, vector<192x192xbf16>, vector<32x192xf32> -> vector<32x192xf32>
    %c0_128 = arith.constant 0 : index
    %c0_129 = arith.constant 0 : index
    %398 = vector.load %arg25[%c0_128, %c0_129] : memref<1x192xf32, #tpu.memory_space<vmem>>, vector<1x192xf32>
    %399 = vector.broadcast %398 : vector<1x192xf32> to vector<32x192xf32>
    %400 = arith.addf %397, %399 : vector<32x192xf32>
    %cst_130 = arith.constant 0.000000e+00 : f32
    %401 = vector.broadcast %cst_130 : f32 to vector<32x192xf32>
    %402 = arith.maximumf %400, %401 : vector<32x192xf32>
    %403 = vector.shape_cast %402 : vector<32x192xf32> to vector<2x16x192xf32>
    %cst_131 = arith.constant dense<0.000000e+00> : vector<2x192xf32>
    %404 = vector.multi_reduction <add>, %403, %cst_131 [1] : vector<2x16x192xf32> to vector<2x192xf32>
    %405 = vector.shape_cast %404 : vector<2x192xf32> to vector<2x1x192xf32>
    %cst_132 = arith.constant 1.600000e+01 : f32
    %406 = vector.broadcast %cst_132 : f32 to vector<2x1x192xf32>
    %407 = arith.divf %405, %406 : vector<2x1x192xf32>
    %408 = vector.broadcast %407 : vector<2x1x192xf32> to vector<2x16x192xf32>
    %409 = arith.subf %403, %408 : vector<2x16x192xf32>
    %410 = arith.mulf %409, %409 : vector<2x16x192xf32>
    %cst_133 = arith.constant dense<0.000000e+00> : vector<2x192xf32>
    %411 = vector.multi_reduction <add>, %410, %cst_133 [1] : vector<2x16x192xf32> to vector<2x192xf32>
    %412 = vector.shape_cast %411 : vector<2x192xf32> to vector<2x1x192xf32>
    %cst_134 = arith.constant 1.600000e+01 : f32
    %413 = vector.broadcast %cst_134 : f32 to vector<2x1x192xf32>
    %414 = arith.divf %412, %413 : vector<2x1x192xf32>
    %cst_135 = arith.constant 9.99999974E-6 : f32
    %415 = vector.broadcast %cst_135 : f32 to vector<2x1x192xf32>
    %416 = arith.addf %414, %415 : vector<2x1x192xf32>
    %417 = math.rsqrt %416 : vector<2x1x192xf32>
    %418 = vector.broadcast %417 : vector<2x1x192xf32> to vector<2x16x192xf32>
    %419 = arith.mulf %409, %418 : vector<2x16x192xf32>
    %420 = vector.shape_cast %419 : vector<2x16x192xf32> to vector<32x192xf32>
    %421 = vector.shape_cast %420 : vector<32x192xf32> to vector<2x16x192xf32>
    %c0_136 = arith.constant 0 : index
    %c0_137 = arith.constant 0 : index
    %c0_138 = arith.constant 0 : index
    %422 = vector.load %arg26[%c0_136, %c0_137, %c0_138] : memref<2x16x192xf32, #tpu.memory_space<vmem>>, vector<2x16x192xf32>
    tpu.vector_store %arg26[%c0_136, %c0_137, %c0_138], %421 {strides = array<i32>} : memref<2x16x192xf32, #tpu.memory_space<vmem>>, vector<2x16x192xf32>,
    return
  }
  func.func @transform_0(%arg0: i32) -> (i32, i32, i32) {
    %c0_i32 = arith.constant 0 : i32
    %c0_i32_0 = arith.constant 0 : i32
    %c0_i32_1 = arith.constant 0 : i32
    return %arg0, %c0_i32, %c0_i32_0 : i32, i32, i32
  }
  func.func @transform_1(%arg0: i32) -> (i32, i32, i32) {
    %c0_i32 = arith.constant 0 : i32
    %c0_i32_0 = arith.constant 0 : i32
    %c0_i32_1 = arith.constant 0 : i32
    %c0_i32_2 = arith.constant 0 : i32
    return %c0_i32, %c0_i32_0, %c0_i32_1 : i32, i32, i32
  }
  func.func @transform_2(%arg0: i32) -> (i32, i32) {
    %c0_i32 = arith.constant 0 : i32
    %c0_i32_0 = arith.constant 0 : i32
    %c0_i32_1 = arith.constant 0 : i32
    return %c0_i32, %c0_i32_0 : i32, i32
  }
  func.func @transform_3(%arg0: i32) -> (i32, i32, i32) {
    %c0_i32 = arith.constant 0 : i32
    %c0_i32_0 = arith.constant 0 : i32
    %c0_i32_1 = arith.constant 0 : i32
    %c0_i32_2 = arith.constant 0 : i32
    return %c0_i32, %c0_i32_0, %c0_i32_1 : i32, i32, i32
  }
  func.func @transform_4(%arg0: i32) -> (i32, i32) {
    %c0_i32 = arith.constant 0 : i32
    %c0_i32_0 = arith.constant 0 : i32
    %c0_i32_1 = arith.constant 0 : i32
    return %c0_i32, %c0_i32_0 : i32, i32
  }
  func.func @transform_5(%arg0: i32) -> (i32, i32) {
    %c0_i32 = arith.constant 0 : i32
    %c0_i32_0 = arith.constant 0 : i32
    %c0_i32_1 = arith.constant 0 : i32
    return %c0_i32, %c0_i32_0 : i32, i32
  }
  func.func @transform_6(%arg0: i32) -> (i32, i32) {
    %c0_i32 = arith.constant 0 : i32
    %c0_i32_0 = arith.constant 0 : i32
    %c0_i32_1 = arith.constant 0 : i32
    return %c0_i32, %c0_i32_0 : i32, i32
  }
  func.func @transform_7(%arg0: i32) -> (i32, i32) {
    %c0_i32 = arith.constant 0 : i32
    %c0_i32_0 = arith.constant 0 : i32
    %c0_i32_1 = arith.constant 0 : i32
    return %c0_i32, %c0_i32_0 : i32, i32
  }
  func.func @transform_8(%arg0: i32) -> (i32, i32) {
    %c0_i32 = arith.constant 0 : i32
    %c0_i32_0 = arith.constant 0 : i32
    %c0_i32_1 = arith.constant 0 : i32
    return %c0_i32, %c0_i32_0 : i32, i32
  }
  func.func @transform_9(%arg0: i32) -> (i32, i32) {
    %c0_i32 = arith.constant 0 : i32
    %c0_i32_0 = arith.constant 0 : i32
    %c0_i32_1 = arith.constant 0 : i32
    return %c0_i32, %c0_i32_0 : i32, i32
  }
  func.func @transform_10(%arg0: i32) -> (i32, i32) {
    %c0_i32 = arith.constant 0 : i32
    %c0_i32_0 = arith.constant 0 : i32
    %c0_i32_1 = arith.constant 0 : i32
    return %c0_i32, %c0_i32_0 : i32, i32
  }
  func.func @transform_11(%arg0: i32) -> (i32, i32) {
    %c0_i32 = arith.constant 0 : i32
    %c0_i32_0 = arith.constant 0 : i32
    %c0_i32_1 = arith.constant 0 : i32
    return %c0_i32, %c0_i32_0 : i32, i32
  }
  func.func @transform_12(%arg0: i32) -> (i32, i32) {
    %c0_i32 = arith.constant 0 : i32
    %c0_i32_0 = arith.constant 0 : i32
    %c0_i32_1 = arith.constant 0 : i32
    return %c0_i32, %c0_i32_0 : i32, i32
  }
  func.func @transform_13(%arg0: i32) -> (i32, i32, i32) {
    %c0_i32 = arith.constant 0 : i32
    %c0_i32_0 = arith.constant 0 : i32
    %c0_i32_1 = arith.constant 0 : i32
    %c0_i32_2 = arith.constant 0 : i32
    return %c0_i32, %c0_i32_0, %c0_i32_1 : i32, i32, i32
  }
  func.func @transform_14(%arg0: i32) -> (i32, i32) {
    %c0_i32 = arith.constant 0 : i32
    %c0_i32_0 = arith.constant 0 : i32
    %c0_i32_1 = arith.constant 0 : i32
    return %c0_i32, %c0_i32_0 : i32, i32
  }
  func.func @transform_15(%arg0: i32) -> (i32, i32, i32) {
    %c0_i32 = arith.constant 0 : i32
    %c0_i32_0 = arith.constant 0 : i32
    %c0_i32_1 = arith.constant 0 : i32
    %c0_i32_2 = arith.constant 0 : i32
    return %c0_i32, %c0_i32_0, %c0_i32_1 : i32, i32, i32
  }
  func.func @transform_16(%arg0: i32) -> (i32, i32) {
    %c0_i32 = arith.constant 0 : i32
    %c0_i32_0 = arith.constant 0 : i32
    %c0_i32_1 = arith.constant 0 : i32
    return %c0_i32, %c0_i32_0 : i32, i32
  }
  func.func @transform_17(%arg0: i32) -> (i32, i32) {
    %c0_i32 = arith.constant 0 : i32
    %c0_i32_0 = arith.constant 0 : i32
    %c0_i32_1 = arith.constant 0 : i32
    return %c0_i32, %c0_i32_0 : i32, i32
  }
  func.func @transform_18(%arg0: i32) -> (i32, i32) {
    %c0_i32 = arith.constant 0 : i32
    %c0_i32_0 = arith.constant 0 : i32
    %c0_i32_1 = arith.constant 0 : i32
    return %c0_i32, %c0_i32_0 : i32, i32
  }
  func.func @transform_19(%arg0: i32) -> (i32, i32) {
    %c0_i32 = arith.constant 0 : i32
    %c0_i32_0 = arith.constant 0 : i32
    %c0_i32_1 = arith.constant 0 : i32
    return %c0_i32, %c0_i32_0 : i32, i32
  }
  func.func @transform_20(%arg0: i32) -> (i32, i32) {
    %c0_i32 = arith.constant 0 : i32
    %c0_i32_0 = arith.constant 0 : i32
    %c0_i32_1 = arith.constant 0 : i32
    return %c0_i32, %c0_i32_0 : i32, i32
  }
  func.func @transform_21(%arg0: i32) -> (i32, i32) {
    %c0_i32 = arith.constant 0 : i32
    %c0_i32_0 = arith.constant 0 : i32
    %c0_i32_1 = arith.constant 0 : i32
    return %c0_i32, %c0_i32_0 : i32, i32
  }
  func.func @transform_22(%arg0: i32) -> (i32, i32) {
    %c0_i32 = arith.constant 0 : i32
    %c0_i32_0 = arith.constant 0 : i32
    %c0_i32_1 = arith.constant 0 : i32
    return %c0_i32, %c0_i32_0 : i32, i32
  }
  func.func @transform_23(%arg0: i32) -> (i32, i32) {
    %c0_i32 = arith.constant 0 : i32
    %c0_i32_0 = arith.constant 0 : i32
    %c0_i32_1 = arith.constant 0 : i32
    return %c0_i32, %c0_i32_0 : i32, i32
  }
  func.func @transform_24(%arg0: i32) -> (i32, i32) {
    %c0_i32 = arith.constant 0 : i32
    %c0_i32_0 = arith.constant 0 : i32
    %c0_i32_1 = arith.constant 0 : i32
    return %c0_i32, %c0_i32_0 : i32, i32
  }
  func.func @transform_25(%arg0: i32) -> (i32, i32, i32) {
    %c0_i32 = arith.constant 0 : i32
    %c0_i32_0 = arith.constant 0 : i32
    %c0_i32_1 = arith.constant 0 : i32
    return %arg0, %c0_i32, %c0_i32_0 : i32, i32, i32
  }
}

</mosaic_0001>

<bundles_post_ra>
// kernel: tpu_custom_call.1
= control target key start
LH: loop header
LB: loop body
LE: loop exit
PB: predicated region body
PF: predicated region fallthrough
CT: control target
= control target key end

     0   :  { %s11753_s0 = inlined_call_operand.hbm [shape: f32[2,16,128], index: 0, kind: input, shape index: {}]   ;;  %s11754_s1 = inlined_call_operand.vmem [shape: bf16[3,128,192], index: 1, kind: input, shape index: {}]   ;;  %s11755_s2 = inlined_call_operand.vmem [shape: f32[1,192], index: 2, kind: input, shape index: {}]   ;;  %s11756_s3 = inlined_call_operand.vmem [shape: bf16[3,192,36], index: 3, kind: input, shape index: {}]   ;;  %s11757_s4 = inlined_call_operand.hbm [shape: f32[1,36], index: 4, kind: input, shape index: {}]   ;;  %s11758_s5 = inlined_call_operand.vmem [shape: bf16[36,36], index: 5, kind: input, shape index: {}]   ;;  %s11759_s6 = inlined_call_operand.hbm [shape: f32[1,36], index: 6, kind: input, shape index: {}]   ;;  %s11760_s7 = inlined_call_operand.hbm [shape: bf16[36,36], index: 7, kind: input, shape index: {}]   ;;  %s11761_s8 = inlined_call_operand.hbm [shape: f32[1,36], index: 8, kind: input, shape index: {}]   ;;  %s11762_s9 = inlined_call_operand.hbm [shape: bf16[36,36], index: 9, kind: input, shape index: {}]   ;;  %s11763_s10 = inlined_call_operand.hbm [shape: f32[1,36], index: 10, kind: input, shape index: {}]   ;;  %s11764_s11 = inlined_call_operand.hbm [shape: bf16[36,36], index: 11, kind: input, shape index: {}]   ;;  %s11765_s12 = inlined_call_operand.vmem [shape: f32[1,36], index: 12, kind: input, shape index: {}]   ;;  %s11766_s13 = inlined_call_operand.hbm [shape: bf16[3,36,192], index: 13, kind: input, shape index: {}]   ;;  %s11767_s14 = inlined_call_operand.vmem [shape: f32[1,192], index: 14, kind: input, shape index: {}]   ;;  %s11768_s15 = inlined_call_operand.vmem [shape: bf16[3,192,192], index: 15, kind: input, shape index: {}]   ;;  %s11769_s16 = inlined_call_operand.vmem [shape: f32[1,192], index: 16, kind: input, shape index: {}]   ;;  %s11770_s17 = inlined_call_operand.vmem [shape: bf16[192,192], index: 17, kind: input, shape index: {}]   ;;  %s11771_s18 = inlined_call_operand.vmem [shape: f32[1,192], index: 18, kind: input, shape index: {}]   ;;  %s11772_s19 = inlined_call_operand.hbm [shape: bf16[192,192], index: 19, kind: input, shape index: {}]   ;;  %s11773_s20 = inlined_call_operand.vmem [shape: f32[1,192], index: 20, kind: input, shape index: {}]   ;;  %s11774_s21 = inlined_call_operand.hbm [shape: bf16[192,192], index: 21, kind: input, shape index: {}]   ;;  %s11775_s22 = inlined_call_operand.vmem [shape: f32[1,192], index: 22, kind: input, shape index: {}]   ;;  %s11776_s23 = inlined_call_operand.hbm [shape: bf16[192,192], index: 23, kind: input, shape index: {}]   ;;  %s11777_s24 = inlined_call_operand.vmem [shape: f32[1,192], index: 24, kind: input, shape index: {}]   ;;  %s11778_s25 = inlined_call_operand.hbm [shape: f32[2,16,192], index: 25, kind: output, shape index: {}]  }
   0x1   :  { %11793 = sst [smem:[#allocation31_spill]] %s11753_s0 }
   0x2   :  { %11794 = sst [smem:[#allocation32_spill]] %s11754_s1 }
   0x3   :  { %11795 = sst [smem:[#allocation33_spill]] %s11755_s2 }
   0x4   :  { %11796 = sst [smem:[#allocation34_spill]] %s11756_s3 }
   0x5   :  { %11797 = sst [smem:[#allocation35_spill]] %s11757_s4 }
   0x6   :  { %11798 = sst [smem:[#allocation36_spill]] %s11758_s5 }
   0x7   :  { %11799 = sst [smem:[#allocation37_spill]] %s11759_s6 }
   0x8   :  { %11800 = sst [smem:[#allocation38_spill]] %s11760_s7 }
   0x9   :  { %11801 = sst [smem:[#allocation39_spill]] %s11761_s8 }
   0xa   :  { %11802 = sst [smem:[#allocation40_spill]] %s11762_s9 }
   0xb   :  { %11803 = sst [smem:[#allocation41_spill]] %s11775_s22 }
   0xc   :  { %11804 = sst [smem:[#allocation42_spill]] %s11777_s24 }
   0xd   :  { %11805 = sst [smem:[#allocation43_spill]] %s11778_s25 }
   0xe   :  { %30 = vsyncpa [#allocation3], 0 }
   0xf   :  { %31 = vsyncpa [#allocation6], 0 }
  0x10   :  { %32 = vsyncpa [#allocation9], 0 }
  0x11   :  { %33 = vsyncpa [#allocation12], 0 }
  0x12   :  { %34 = vsyncpa [#allocation15], 0 }
  0x13   :  { %35 = vsyncpa [#allocation18], 0 }
  0x14   :  { %36 = vsyncpa [#allocation21], 0  ;;  %s11806_s6 = sld [smem:[#allocation35_spill]] }
  0x1a   :  { %s62_s30 = sshll.u32 %s11806_s6, 4  ;;  %s63_s30 = int_to_ptr.hbm [resolvable:$true] %s62_s30 }
  0x1b   :  { %37 = vsyncpa [#allocation4], 0  ;;  %s8500_s7 = smov [#allocation5]   ;;  %s11807_s8 = sld [smem:[#allocation38_spill]] }
  0x1c   :  { %s64_s3 = sshll.u32 %s8500_s7, 4  ;;  %s8501_s4 = smov [#allocation8]   ;;  %s65_s3 = int_to_ptr.vmem [resolvable:$true] %s64_s3 }
  0x1d   :  { %67 = dma.hbm_to_vmem [thread:$0]  %s63_s30, 16, %s65_s3, [#allocation6]  }
  0x1e   :  { %s87_s28 = sshll.u32 %s8501_s4, 4  ;;  %s8502_s9 = smov 64   ;;  %s88_s28 = int_to_ptr.vmem [resolvable:$true] %s87_s28 }
  0x1f   :  { %s8503_s5 = smov 4   ;;  %s11808_s2 = sld [smem:[#allocation40_spill]] }
  0x20   :  { %s8504_s25 = smov [#allocation11]   ;;  %s133_s26 = sshll.u32 %s11764_s11, 4  ;;  %s134_s26 = int_to_ptr.hbm [resolvable:$true] %s133_s26 }
  0x21   :  { %s85_s27 = sshll.u32 %s11807_s8, 4  ;;  %s111_s7 = sshll.u32 %s8504_s25, 4  ;;  %s86_s27 = int_to_ptr.hbm [resolvable:$true] %s85_s27  ;;  %s112_s7 = int_to_ptr.vmem [resolvable:$true] %s111_s7 }
  0x22   :  { %93 = dma.hbm_to_vmem [thread:$0]  %s86_s27, 320, %s88_s28, [#allocation9], %s8502_s9, %s8502_s9, %s8503_s5  }
  0x23   :  { %s8505_s30 = smov [#allocation14]   ;;  %s171_s27 = sshll.u32 %s11772_s19, 4  ;;  %s172_s27 = int_to_ptr.hbm [resolvable:$true] %s171_s27 }
  0x24   :  { %s135_s3 = sshll.u32 %s8505_s30, 4  ;;  %s8506_s4 = smov [#allocation17]   ;;  %s136_s3 = int_to_ptr.vmem [resolvable:$true] %s135_s3 }
  0x25   :  { %s109_s6 = sshll.u32 %s11808_s2, 4  ;;  %s173_s28 = sshll.u32 %s8506_s4, 4  ;;  %s110_s6 = int_to_ptr.hbm [resolvable:$true] %s109_s6  ;;  %s174_s28 = int_to_ptr.vmem [resolvable:$true] %s173_s28 }
  0x26   :  { %117 = dma.hbm_to_vmem [thread:$0]  %s110_s6, 320, %s112_s7, [#allocation12], %s8502_s9, %s8502_s9, %s8503_s5  }
  0x27   :  { %141 = dma.hbm_to_vmem [thread:$0]  %s134_s26, 320, %s136_s3, [#allocation15], %s8502_s9, %s8502_s9, %s8503_s5  }
  0x28   :  { %s11809_s29 = sld [smem:[#allocation31_spill]]  ;;  %s8507_s22 = smov 128  }
  0x29   :  { %s8508_s11 = smov 8   ;;  %s8509_s24 = smov [#allocation2]  }
  0x2a   :  { %179 = dma.hbm_to_vmem [thread:$0]  %s172_s27, 3072, %s174_s28, [#allocation18], %s8507_s22, %s8507_s22, %s8508_s11  }
  0x2b   :  { %s44_s9 = sshll.u32 %s8509_s24, 4  ;;  %s11810_s19 = sld [smem:[#allocation37_spill]]  ;;  %s45_s9 = int_to_ptr.vmem [resolvable:$true] %s44_s9 }
  0x2c   :  { %s11811_s3 = sld [smem:[#allocation39_spill]]  ;;  %s8510_s8 = smov [#allocation7]  }
  0x2d   :  { %s77_s4 = sshll.u32 %s8510_s8, 4  ;;  %s8511_s27 = smov [#allocation10]   ;;  %s78_s4 = int_to_ptr.vmem [resolvable:$true] %s77_s4 }
  0x2e   :  { %s42_s2 = sshll.u32 %s11809_s29, 4  ;;  %s101_s28 = sshll.u32 %s8511_s27, 4  ;;  %s43_s2 = int_to_ptr.hbm [resolvable:$true] %s42_s2  ;;  %s102_s28 = int_to_ptr.vmem [resolvable:$true] %s101_s28 }
  0x2f   :  { %50 = dma.hbm_to_vmem [thread:$0]  %s43_s2, 512, %s45_s9, [#allocation3], %s8507_s22, %s8507_s22, %s8508_s11  }
  0x30   :  { %s123_s29 = sshll.u32 %s11763_s10, 4  ;;  %s148_s9 = sshll.u32 %s11766_s13, 4  ;;  %s124_s29 = int_to_ptr.hbm [resolvable:$true] %s123_s29  ;;  %s149_s9 = int_to_ptr.hbm [resolvable:$true] %s148_s9 }
  0x31   :  { %s75_s7 = sshll.u32 %s11810_s19, 4  ;;  %s8512_s5 = smov [#allocation13]   ;;  %s76_s7 = int_to_ptr.hbm [resolvable:$true] %s75_s7 }
  0x32   :  { %s99_s1 = sshll.u32 %s11811_s3, 4  ;;  %s125_s6 = sshll.u32 %s8512_s5, 4  ;;  %s100_s1 = int_to_ptr.hbm [resolvable:$true] %s99_s1  ;;  %s126_s6 = int_to_ptr.vmem [resolvable:$true] %s125_s6 }
  0x33   :  { %80 = dma.hbm_to_vmem [thread:$0]  %s76_s7, 16, %s78_s4, [#allocation6]  }
  0x34   :  { %104 = dma.hbm_to_vmem [thread:$0]  %s100_s1, 16, %s102_s28, [#allocation9]  }
  0x35   :  { %128 = dma.hbm_to_vmem [thread:$0]  %s124_s29, 16, %s126_s6, [#allocation12]  }
  0x36   :  { %s8513_s19 = smov [#allocation16]   ;;  %s186_s3 = sshll.u32 %s11774_s21, 4  ;;  %s187_s3 = int_to_ptr.hbm [resolvable:$true] %s186_s3 }
  0x37   :  { %s150_s7 = sshll.u32 %s8513_s19, 4  ;;  %s201_s13 = sshll.u32 %s11776_s23, 4  ;;  %s151_s7 = int_to_ptr.vmem [resolvable:$true] %s150_s7  ;;  %s202_s13 = int_to_ptr.hbm [resolvable:$true] %s201_s13 }
  0x38   :  { %156 = dma.hbm_to_vmem [thread:$0]  %s149_s9, 1920, %s151_s7, [#allocation15], %s8507_s22, %s8507_s22, %s8508_s11  }
  0x39   :  { %s8514_s8 = smov [#allocation19]   ;;  %s8515_s27 = smov [#allocation20]  }
  0x3a   :  { %s188_s4 = sshll.u32 %s8514_s8, 4  ;;  %s203_s21 = sshll.u32 %s8515_s27, 4  ;;  %s189_s4 = int_to_ptr.vmem [resolvable:$true] %s188_s4  ;;  %s204_s21 = int_to_ptr.vmem [resolvable:$true] %s203_s21 }
  0x3b   :  { %194 = dma.hbm_to_vmem [thread:$0]  %s187_s3, 3072, %s189_s4, [#allocation18], %s8507_s22, %s8507_s22, %s8508_s11  }
  0x3c   :  { %209 = dma.hbm_to_vmem [thread:$0]  %s202_s13, 3072, %s204_s21, [#allocation21], %s8507_s22, %s8507_s22, %s8508_s11  }
  0x3d   :  { %8484 = dma.done.wait [#allocation3], 512  }
  0x3e   :  { %8485 = vsyncadd [#allocation3], 4294966784 }
  0x3f   :  { %8486 = dma.done.wait [#allocation6], 32  }
  0x40   :  { %8487 = vsyncadd [#allocation6], 4294967264 }
  0x41   :  { %8488 = dma.done.wait [#allocation9], 336  }
  0x42   :  { %8489 = vsyncadd [#allocation9], 4294966960 }
  0x43   :  { %8490 = dma.done.wait [#allocation12], 336  }
  0x44   :  { %8491 = vsyncadd [#allocation12], 4294966960 }
  0x45   :  { %8492 = dma.done.wait [#allocation15], 2240  }
  0x46   :  { %8493 = vsyncadd [#allocation15], 4294965056 }
  0x47   :  { %8494 = dma.done.wait [#allocation18], 6144  }
  0x48   :  { %8495 = vsyncadd [#allocation18], 4294961152 }
  0x49   :  { %8496 = dma.done.wait [#allocation21], 3072  }
  0x4a   :  { %8497 = vsyncadd [#allocation21], 4294964224  ;;  %s11812_s25 = sld [smem:[#allocation32_spill]]  ;;  %v265_v45 = vlaneseq  ;;  %vm8516_vm3 = vmmov 1   ;;  %vm11782_vm15 = vcmask 523264   ;;  %s8517_s6 = smov 110  }
  0x4b   :  { %s11829_s13 = sld [smem:[#allocation34_spill]]  ;;  %s8518_s19 = smov 18  }
  0x4c   :  { %v8836_v58 = vshrl.u32 %v265_v45, 7  ;;  %s11830_s29 = sld [smem:[#allocation33_spill]]  ;;  %s8520_s22 = smov 88  }
  0x4d   :  { %s8524_s24 = smov 32   ;;  %s8525_s2 = smov 104  }
  0x4e   :  { %vm11784_vm0 = vcmp.lt.s32.totalorder %v8836_v58, 1  ;;  %vm11783_vm8 = vcmp.lt.s32.totalorder %v8836_v58, 7  ;;  %s8528_s7 = smov 96   ;;  %s8529_s26 = smov 72  }
  0x4f   :  { %s8531_s30 = smov 40   ;;  %s8532_s3 = smov 16  }
  0x50   :  { %v6370_v0 = vld [vmem:[%s11812_s25 + $0xf0] sm:$0xf]  ;;  %v7717_v1 = vld [vmem:[%s11812_s25 + $0xf4] sm:$0xf0]  ;;  %v7716_v2 = vld [vmem:[%s11812_s25 + $0xf4] sm:$0xf] }
  0x51   :  { %v6371_v3 = vor.u32 %v7717_v1, %v6370_v0  ;;  %v6372_v4 = vld [vmem:[%s11812_s25 + $0xf8] sm:$0xf0]  ;;  %v6434_v5 = vld [vmem:[%s11812_s25 + $0x70] sm:$0xf]  ;;  %v7701_v6 = vld [vmem:[%s11812_s25 + $0x74] sm:$0xf0] }
  0x52   :  { %v6375_v7 = vor.u32 %v7716_v2, %v6372_v4  ;;  %v6435_v8 = vor.u32 %v7701_v6, %v6434_v5  ;;  %v7700_v9 = vld [vmem:[%s11812_s25 + $0x74] sm:$0xf]  ;;  %v6436_v10 = vld [vmem:[%s11812_s25 + $0x78] sm:$0xf0]  ;;  %v6362_v11 = vld [vmem:[%s11812_s25 + $0xe0] sm:$0xf] }
  0x53   :  { %486 = vmatpush.bf16.msra.mxu0 %v6371_v3  ;;  %v6439_v12 = vor.u32 %v7700_v9, %v6436_v10  ;;  %v7715_v13 = vld [vmem:[%s11812_s25 + $0xe4] sm:$0xf0]  ;;  %v7714_v14 = vld [vmem:[%s11812_s25 + $0xe4] sm:$0xf]  ;;  %v6364_v15 = vld [vmem:[%s11812_s25 + $0xe8] sm:$0xf0] }
  0x54   :  { %505 = vmatpush.bf16.msra.mxu1 %v6375_v7  ;;  %604 = vmatpush.bf16.msra.mxu2 %v6435_v8  ;;  %v6363_v16 = vor.u32 %v7715_v13, %v6362_v11  ;;  %v6367_v17 = vor.u32 %v7714_v14, %v6364_v15  ;;  %v6426_v18 = vld [vmem:[%s11812_s25 + $0x60] sm:$0xf]  ;;  %v7699_v19 = vld [vmem:[%s11812_s25 + $0x64] sm:$0xf0]  ;;  %v7698_v20 = vld [vmem:[%s11812_s25 + $0x64] sm:$0xf] }
  0x55   :  { %623 = vmatpush.bf16.msra.mxu3 %v6439_v12  ;;  %v6427_v21 = vor.u32 %v7699_v19, %v6426_v18  ;;  %v6428_v22 = vld [vmem:[%s11812_s25 + $0x68] sm:$0xf0]  ;;  %v6354_v23 = vld [vmem:[%s11812_s25 + $0xd0] sm:$0xf]  ;;  %v7713_v24 = vld [vmem:[%s11812_s25 + $0xd4] sm:$0xf0] }
  0x56   :  { %v6431_v25 = vor.u32 %v7698_v20, %v6428_v22  ;;  %v7712_v26 = vld [vmem:[%s11812_s25 + $0xd4] sm:$0xf]  ;;  %v6356_v27 = vld [vmem:[%s11812_s25 + $0xd8] sm:$0xf0]  ;;  %v6418_v28 = vld [vmem:[%s11812_s25 + $0x50] sm:$0xf]  ;;  %v6355_v29 = vor.u32 %v7713_v24, %v6354_v23 }
  0x57   :  { %487 = vmatpush.bf16.msra.mxu0 %v6363_v16  ;;  %v7697_v30 = vld [vmem:[%s11812_s25 + $0x54] sm:$0xf0]  ;;  %v7696_v31 = vld [vmem:[%s11812_s25 + $0x54] sm:$0xf]  ;;  %v6420_v32 = vld [vmem:[%s11812_s25 + $0x58] sm:$0xf0]  ;;  %v6359_v33 = vor.u32 %v7712_v26, %v6356_v27 }
  0x58   :  { %506 = vmatpush.bf16.msra.mxu1 %v6367_v17  ;;  %605 = vmatpush.bf16.msra.mxu2 %v6427_v21  ;;  %v6419_v34 = vor.u32 %v7697_v30, %v6418_v28  ;;  %v6346_v35 = vld [vmem:[%s11812_s25 + $0xc0] sm:$0xf]  ;;  %v7711_v36 = vld [vmem:[%s11812_s25 + $0xc4] sm:$0xf0]  ;;  %v7710_v37 = vld [vmem:[%s11812_s25 + $0xc4] sm:$0xf]  ;;  %v6423_v38 = vor.u32 %v7696_v31, %v6420_v32 }
  0x59   :  { %624 = vmatpush.bf16.msra.mxu3 %v6431_v25  ;;  %v6348_v39 = vld [vmem:[%s11812_s25 + $0xc8] sm:$0xf0]  ;;  %v6410_v40 = vld [vmem:[%s11812_s25 + $0x40] sm:$0xf]  ;;  %v7695_v41 = vld [vmem:[%s11812_s25 + $0x44] sm:$0xf0]  ;;  %v6347_v44 = vor.u32 %v7711_v36, %v6346_v35 }
  0x5a   :  { %v7694_v42 = vld [vmem:[%s11812_s25 + $0x44] sm:$0xf]  ;;  %v6412_v43 = vld [vmem:[%s11812_s25 + $0x48] sm:$0xf0]  ;;  %v6351_v46 = vor.u32 %v7710_v37, %v6348_v39  ;;  %v6411_v47 = vor.u32 %v7695_v41, %v6410_v40  ;;  %v6338_v48 = vld [vmem:[%s11812_s25 + $0xb0] sm:$0xf] }
  0x5b   :  { %488 = vmatpush.bf16.msra.mxu0 %v6355_v29  ;;  %v7709_v49 = vld [vmem:[%s11812_s25 + $0xb4] sm:$0xf0]  ;;  %v7708_v50 = vld [vmem:[%s11812_s25 + $0xb4] sm:$0xf]  ;;  %v6415_v51 = vor.u32 %v7694_v42, %v6412_v43  ;;  %v6340_v52 = vld [vmem:[%s11812_s25 + $0xb8] sm:$0xf0] }
  0x5c   :  { %507 = vmatpush.bf16.msra.mxu1 %v6359_v33  ;;  %606 = vmatpush.bf16.msra.mxu2 %v6419_v34  ;;  %v6402_v53 = vld [vmem:[%s11812_s25 + $0x30] sm:$0xf]  ;;  %v7693_v54 = vld [vmem:[%s11812_s25 + $0x34] sm:$0xf0]  ;;  %v7692_v55 = vld [vmem:[%s11812_s25 + $0x34] sm:$0xf]  ;;  %v6339_v57 = vor.u32 %v7709_v49, %v6338_v48  ;;  %v6343_v59 = vor.u32 %v7708_v50, %v6340_v52 }
  0x5d   :  { %625 = vmatpush.bf16.msra.mxu3 %v6423_v38  ;;  %v6404_v56 = vld [vmem:[%s11812_s25 + $0x38] sm:$0xf0]  ;;  %v6403_v60 = vor.u32 %v7693_v54, %v6402_v53  ;;  %v6330_v61 = vld [vmem:[%s11812_s25 + $0xa0] sm:$0xf]  ;;  %v7707_v62 = vld [vmem:[%s11812_s25 + $0xa4] sm:$0xf0] }
  0x5e   :  { %v7706_v63 = vld [vmem:[%s11812_s25 + $0xa4] sm:$0xf]  ;;  %v6407_v0 = vor.u32 %v7692_v55, %v6404_v56  ;;  %v6332_v1 = vld [vmem:[%s11812_s25 + $0xa8] sm:$0xf0]  ;;  %v6394_v2 = vld [vmem:[%s11812_s25 + $0x20] sm:$0xf]  ;;  %v6331_v7 = vor.u32 %v7707_v62, %v6330_v61 }
  0x5f   :  { %489 = vmatpush.bf16.msra.mxu0 %v6347_v44  ;;  %v7691_v3 = vld [vmem:[%s11812_s25 + $0x24] sm:$0xf0]  ;;  %v7690_v4 = vld [vmem:[%s11812_s25 + $0x24] sm:$0xf]  ;;  %v6396_v5 = vld [vmem:[%s11812_s25 + $0x28] sm:$0xf0]  ;;  %v6335_v11 = vor.u32 %v7706_v63, %v6332_v1 }
  0x60   :  { %508 = vmatpush.bf16.msra.mxu1 %v6351_v46  ;;  %607 = vmatpush.bf16.msra.mxu2 %v6411_v47  ;;  %v6322_v6 = vld [vmem:[%s11812_s25 + $0x90] sm:$0xf]  ;;  %v7705_v8 = vld [vmem:[%s11812_s25 + $0x94] sm:$0xf0]  ;;  %v7704_v9 = vld [vmem:[%s11812_s25 + $0x94] sm:$0xf]  ;;  %v6395_v12 = vor.u32 %v7691_v3, %v6394_v2  ;;  %v6399_v16 = vor.u32 %v7690_v4, %v6396_v5 }
  0x61   :  { %626 = vmatpush.bf16.msra.mxu3 %v6415_v51  ;;  %v6324_v10 = vld [vmem:[%s11812_s25 + $0x98] sm:$0xf0]  ;;  %v6386_v13 = vld [vmem:[%s11812_s25 + $0x10] sm:$0xf]  ;;  %v7689_v14 = vld [vmem:[%s11812_s25 + $0x14] sm:$0xf0]  ;;  %v6323_v24 = vor.u32 %v7705_v8, %v6322_v6 }
  0x62   :  { %v7688_v15 = vld [vmem:[%s11812_s25 + $0x14] sm:$0xf]  ;;  %v6388_v17 = vld [vmem:[%s11812_s25 + $0x18] sm:$0xf0]  ;;  %v8886_v18 = vld [vmem:[#allocation2] sm:$0xff]  ;;  %v274_v23 = vand.u32 15, %v8836_v58  ;;  %v6327_v25 = vor.u32 %v7704_v9, %v6324_v10  ;;  %v6387_v29 = vor.u32 %v7689_v14, %v6386_v13 }
  0x63   :  { %490 = vmatpush.bf16.msra.mxu0 %v6339_v57  ;;  %v8888_v19 = vld [vmem:[#allocation2 + $0x8] sm:$0xff]  ;;  %v6314_v20 = vld [vmem:[%s11812_s25 + $0x80] sm:$0xf]  ;;  %v8896_v22 = vld [vmem:[#allocation2 + $0x18] sm:$0xff]  ;;  %v327_v31 = vrot.slane %v8886_v18, 7  ;;  %v6391_v34 = vor.u32 %v7688_v15, %v6388_v17  ;;  %v268_v62 = vadd.s32 16, %v8836_v58 }
  0x64   :  { %509 = vmatpush.bf16.msra.mxu1 %v6343_v59  ;;  %608 = vmatpush.bf16.msra.mxu2 %v6403_v60  ;;  %v7703_v21 = vld [vmem:[%s11812_s25 + $0x84] sm:$0xf0]  ;;  %v7702_v26 = vld [vmem:[%s11812_s25 + $0x84] sm:$0xf]  ;;  %v6316_v27 = vld [vmem:[%s11812_s25 + $0x88] sm:$0xf0]  ;;  %v387_v49 = vpack.c.bf16 %v8888_v19, %v8886_v18 }
  0x65   :  { %627 = vmatpush.bf16.msra.mxu3 %v6407_v0  ;;  %v6378_v28 = vld [vmem:[%s11812_s25] sm:$0xf]  ;;  %v7687_v30 = vld [vmem:[%s11812_s25 + $0x4] sm:$0xf0]  ;;  %v328_v32 = vrot.slane %v8888_v19, 7  ;;  %v330_v33 = vrot.slane %v8896_v22, 7  ;;  %v6315_v40 = vor.u32 %v7703_v21, %v6314_v20  ;;  %v6319_v41 = vor.u32 %v7702_v26, %v6316_v27 }
  0x66   :  { %v7686_v35 = vld [vmem:[%s11812_s25 + $0x4] sm:$0xf]  ;;  %v6380_v36 = vld [vmem:[%s11812_s25 + $0x8] sm:$0xf0]  ;;  %vm8921_vm1 = vcmp.eq.s32.totalorder %v274_v23, 0  ;;  %v6379_v44 = vor.u32 %v7687_v30, %v6378_v28  ;;  %v8986_v2 = vld [vmem:[#allocation2 + $0x10] sm:$0xff] }
  0x67   :  { %491 = vmatpush.bf16.msra.mxu0 %v6331_v7  ;;  %v6530_v38 = vld [vmem:[%s11812_s25 + $0x170] sm:$0xf]  ;;  %v7733_v39 = vld [vmem:[%s11812_s25 + $0x174] sm:$0xf0]  ;;  %v7732_v42 = vld [vmem:[%s11812_s25 + $0x174] sm:$0xf]  ;;  %v334_v45 = vsel %vm11784_vm0, %v327_v31, %v328_v32  ;;  %v335_v46 = vsel %vm11784_vm0, %v330_v33, %v327_v31  ;;  %v6383_v47 = vor.u32 %v7686_v35, %v6380_v36  ;;  %v388_v23 = vpack.c.bf16 %v8896_v22, %v8986_v2 }
  0x68   :  { %510 = vmatpush.bf16.msra.mxu1 %v6335_v11  ;;  %609 = vmatpush.bf16.msra.mxu2 %v6395_v12  ;;  %v6532_v43 = vld [vmem:[%s11812_s25 + $0x178] sm:$0xf0]  ;;  %vm6440_vm2 = vmneg %vm8921_vm1  ;;  %v6531_v48 = vor.u32 %v7733_v39, %v6530_v38  ;;  %v6522_v51 = vld [vmem:[%s11812_s25 + $0x160] sm:$0xf]  ;;  %v6442_v53 = vpack.c.bf16 %v334_v45, %v335_v46  ;;  %v288_v6 = vand.u32 15, %v268_v62  ;;  %v329_v9 = vrot.slane %v8986_v2, 7 }
  0x69   :  { %628 = vmatpush.bf16.msra.mxu3 %v6399_v16  ;;  %v6535_v50 = vor.u32 %v7732_v42, %v6532_v43  ;;  %v7731_v52 = vld [vmem:[%s11812_s25 + $0x164] sm:$0xf0]  ;;  %v7730_v54 = vld [vmem:[%s11812_s25 + $0x164] sm:$0xf]  ;;  %v6524_v55 = vld [vmem:[%s11812_s25 + $0x168] sm:$0xf0] }
  0x6a   :  { %vm8962_vm4 = vmpackc.low %vm8516_vm3, %vm6440_vm2  ;;  %v6523_v57 = vor.u32 %v7731_v52, %v6522_v51  ;;  %v6527_v59 = vor.u32 %v7730_v54, %v6524_v55  ;;  %v6514_v60 = vld [vmem:[%s11812_s25 + $0x150] sm:$0xf]  ;;  %v7729_v61 = vld [vmem:[%s11812_s25 + $0x154] sm:$0xf0]  ;;  %vm8998_vm5 = vcmp.eq.s32.totalorder %v288_v6, 0  ;;  %v332_v17 = vsel %vm11784_vm0, %v329_v9, %v330_v33  ;;  %s12059_s1 = sld [smem:[#allocation42_spill]] }
  0x6b   :  { %492 = vmatpush.bf16.msra.mxu0 %v6323_v24  ;;  %v7728_v63 = vld [vmem:[%s11812_s25 + $0x154] sm:$0xf]  ;;  %v6516_v0 = vld [vmem:[%s11812_s25 + $0x158] sm:$0xf0]  ;;  %v6506_v1 = vld [vmem:[%s11812_s25 + $0x140] sm:$0xf]  ;;  %v6515_v3 = vor.u32 %v7729_v61, %v6514_v60  ;;  %v333_v20 = vsel %vm11784_vm0, %v328_v32, %v329_v9 }
  0x6c   :  { %511 = vmatpush.bf16.msra.mxu1 %v6327_v25  ;;  %610 = vmatpush.bf16.msra.mxu2 %v6387_v29  ;;  %v7727_v4 = vld [vmem:[%s11812_s25 + $0x144] sm:$0xf0]  ;;  %v6519_v5 = vor.u32 %v7728_v63, %v6516_v0  ;;  %v7726_v7 = vld [vmem:[%s11812_s25 + $0x144] sm:$0xf]  ;;  %v6508_v8 = vld [vmem:[%s11812_s25 + $0x148] sm:$0xf0]  ;;  %v6446_v27 = vpack.c.bf16 %v332_v17, %v333_v20 }
  0x6d   :  { %629 = vmatpush.bf16.msra.mxu3 %v6391_v34  ;;  %v6507_v10 = vor.u32 %v7727_v4, %v6506_v1  ;;  %v6511_v11 = vor.u32 %v7726_v7, %v6508_v8  ;;  %v6498_v13 = vld [vmem:[%s11812_s25 + $0x130] sm:$0xf]  ;;  %v7725_v14 = vld [vmem:[%s11812_s25 + $0x134] sm:$0xf0]  ;;  %v7724_v15 = vld [vmem:[%s11812_s25 + $0x134] sm:$0xf] }
  0x6e   :  { %v6500_v16 = vld [vmem:[%s11812_s25 + $0x138] sm:$0xf0]  ;;  %vm6444_vm6 = vmneg %vm8998_vm5  ;;  %v6499_v21 = vor.u32 %v7725_v14, %v6498_v13  ;;  %v6490_v25 = vld [vmem:[%s11812_s25 + $0x120] sm:$0xf]  ;;  %v267_v32 = vadd.s32 8, %v8836_v58  ;;  %v349_v45 = vrot.slane %v8888_v19, 1 }
  0x6f   :  { %493 = vmatpush.bf16.msra.mxu0 %v6315_v40  ;;  %v6503_v24 = vor.u32 %v7724_v15, %v6500_v16  ;;  %v7723_v26 = vld [vmem:[%s11812_s25 + $0x124] sm:$0xf0]  ;;  %v7722_v28 = vld [vmem:[%s11812_s25 + $0x124] sm:$0xf]  ;;  %v6492_v29 = vld [vmem:[%s11812_s25 + $0x128] sm:$0xf0] }
  0x70   :  { %512 = vmatpush.bf16.msra.mxu1 %v6319_v41  ;;  %611 = vmatpush.bf16.msra.mxu2 %v6379_v44  ;;  %vm9039_vm7 = vmpackc.low %vm8516_vm3, %vm6444_vm6  ;;  %v6491_v31 = vor.u32 %v7723_v26, %v6490_v25  ;;  %v6495_v33 = vor.u32 %v7722_v28, %v6492_v29  ;;  %v6482_v34 = vld [vmem:[%s11812_s25 + $0x110] sm:$0xf]  ;;  %v7721_v35 = vld [vmem:[%s11812_s25 + $0x114] sm:$0xf0]  ;;  %v281_v40 = vand.u32 15, %v267_v32  ;;  %v348_v41 = vrot.slane %v8886_v18, 1 }
  0x71   :  { %630 = vmatpush.bf16.msra.mxu3 %v6383_v47  ;;  %v7720_v36 = vld [vmem:[%s11812_s25 + $0x114] sm:$0xf]  ;;  %v6484_v38 = vld [vmem:[%s11812_s25 + $0x118] sm:$0xf0]  ;;  %v6483_v39 = vor.u32 %v7721_v35, %v6482_v34  ;;  %v6474_v43 = vld [vmem:[%s11812_s25 + $0x100] sm:$0xf] }
  0x72   :  { %494 = vmatmul.bf16.vlgmr.msra.gmra.mxu0 %v387_v49  ;;  %v6487_v42 = vor.u32 %v7720_v36, %v6484_v38  ;;  %v7719_v44 = vld [vmem:[%s11812_s25 + $0x104] sm:$0xf0]  ;;  %v350_v46 = vrot.slane %v8986_v2, 1  ;;  %v7718_v47 = vld [vmem:[%s11812_s25 + $0x104] sm:$0xf]  ;;  %vm9076_vm9 = vcmp.eq.s32.totalorder %v281_v40, 15  ;;  %v355_v51 = vsel %vm11783_vm8, %v348_v41, %v349_v45 }
  0x73   :  { %741 = vmatpush.bf16.msrb.mxu0 %v6531_v48  ;;  %513 = vmatmul.bf16.vlgmr.msra.gmra.mxu1 %v387_v49  ;;  %v6476_v18 = vld [vmem:[%s11812_s25 + $0x108] sm:$0xf0]  ;;  %v6475_v48 = vor.u32 %v7719_v44, %v6474_v43  ;;  %vm6536_vm10 = vmneg %vm9076_vm9  ;;  %v269_v54 = vadd.s32 24, %v8836_v58  ;;  %v11827_v63 = vmov 0  ;;  %v7752_v0 = vld [vmem:[%s11829_s13 + $0x90] sm:$0xff]  ;;  %vm11787_vm2 = vcmask 1041408  }
  0x74   :  { %760 = vmatpush.bf16.msrb.mxu1 %v6535_v50  ;;  %6443 = vmatmul.msk.bf16.vlgmr.msra.gmra.mxu2 %vm8962_vm4, %v6442_v53  ;;  %v6479_v19 = vor.u32 %v7718_v47, %v6476_v18  ;;  %v354_v50 = vsel %vm11783_vm8, %v349_v45, %v350_v46  ;;  %vm9087_vm11 = vmpackc.low %vm6536_vm10, %vm8516_vm3  ;;  %v7751_v1 = vld [vmem:[%s11829_s13 + $0x88] sm:$0xff]  ;;  %v7750_v2 = vld [vmem:[%s11829_s13 + $0x80] sm:$0xff]  ;;  %vm11786_vm6 = vcmask 146432   ;;  %vm11788_vm10 = vcmask 130048   ;;  %s12070_s27 = sld [smem:[#allocation43_spill]]  ;;  %s8533_s23 = smov [#allocation22]  }
  0x75   :  { %6451 = vmatmul.msk.bf16.vlgmr.msra.gmra.mxu3 %vm8962_vm4, %v6442_v53  ;;  %v6538_v52 = vpack.c.bf16 %v354_v50, %v355_v51  ;;  %v11823_v53 = vmov 0  ;;  %v295_v55 = vand.u32 15, %v269_v54  ;;  %v7757_v6 = vld [vmem:[%s11829_s13 + $0xb8] sm:$0xff]  ;;  %v7748_v8 = vld [vmem:[%s11829_s13 + $0x70] sm:$0xff]  ;;  %v7747_v14 = vld [vmem:[%s11829_s13 + $0x68] sm:$0xff]  ;;  %s6275_s28 = sshll.u32 %s8533_s23, 4  ;;  %s6276_s28 = int_to_ptr.vmem [resolvable:$true] %s6275_s28 }
  0x76   :  { %v11824_v53 = vsel %vm9087_vm11, 4294967295, %v11823_v53  ;;  %1016 = vmatpush.bf16.msrb.mxu3 %v7757_v6  ;;  %v7741_v7 = vld [vmem:[%s11829_s13 + $0x38] sm:$0xff]  ;;  %v7756_v9 = vld [vmem:[%s11829_s13 + $0xb0] sm:$0xff]  ;;  %v7755_v15 = vld [vmem:[%s11829_s13 + $0xa8] sm:$0xff] }
  0x77   :  { %742 = vmatpush.bf16.msrb.mxu0 %v6523_v57  ;;  %v351_v57 = vrot.slane %v8896_v22, 1  ;;  %vm9097_vm12 = vcmp.eq.s32.totalorder %v295_v55, 15  ;;  %v7753_v22 = vld [vmem:[%s11829_s13 + $0x98] sm:$0xff]  ;;  %v7740_v13 = vld [vmem:[%s11829_s13 + $0x30] sm:$0xff]  ;;  %v7739_v16 = vld [vmem:[%s11829_s13 + $0x28] sm:$0xff] }
  0x78   :  { %761 = vmatpush.bf16.msrb.mxu1 %v6527_v59  ;;  %vm6540_vm13 = vmneg %vm9097_vm12  ;;  %993 = vmatpush.bf16.msrb.mxu2 %v7753_v22  ;;  %v7746_v17 = vld [vmem:[%s11829_s13 + $0x60] sm:$0xff]  ;;  %v7765_v25 = vld [vmem:[%s11829_s13 + $0xf8] sm:$0xff] }
  0x79   :  { %v353_v60 = vsel %vm11783_vm8, %v350_v46, %v351_v57  ;;  %v356_v61 = vsel %vm11783_vm8, %v351_v57, %v348_v41  ;;  %vm9108_vm14 = vmpackc.low %vm6540_vm13, %vm8516_vm3  ;;  %v7754_v20 = vld [vmem:[%s11829_s13 + $0xa0] sm:$0xff]  ;;  %v7737_v26 = vld [vmem:[%s11829_s13 + $0x18] sm:$0xff]  ;;  %vm11785_vm3 = vcmask 293888  }
  0x7a   :  { %v6542_v62 = vpack.c.bf16 %v356_v61, %v353_v60  ;;  %v11828_v63 = vsel %vm9108_vm14, 4294967295, %v11827_v63  ;;  %1017 = vmatpush.bf16.msrb.mxu3 %v7756_v9  ;;  %v7745_v28 = vld [vmem:[%s11829_s13 + $0x58] sm:$0xff]  ;;  %v7764_v29 = vld [vmem:[%s11829_s13 + $0xf0] sm:$0xff]  ;;  %v7763_v36 = vld [vmem:[%s11829_s13 + $0xe8] sm:$0xff]  ;;  %s6277_s21 = sshll.u32 %s12070_s27, 4  ;;  %s6278_s21 = int_to_ptr.hbm [resolvable:$true] %s6277_s21 }
  0x7b   :  { %743 = vmatpush.bf16.msrb.mxu0 %v6515_v3  ;;  %v7736_v34 = vld [vmem:[%s11829_s13 + $0x10] sm:$0xff]  ;;  %v7735_v38 = vld [vmem:[%s11829_s13 + $0x8] sm:$0xff]  ;;  %v7762_v40 = vld [vmem:[%s11829_s13 + $0xe0] sm:$0xff] }
  0x7c   :  { %762 = vmatpush.bf16.msrb.mxu1 %v6519_v5  ;;  %994 = vmatpush.bf16.msrb.mxu2 %v7752_v0  ;;  %v7749_v5 = vld [vmem:[%s11829_s13 + $0x78] sm:$0xff]  ;;  %v7744_v35 = vld [vmem:[%s11829_s13 + $0x50] sm:$0xff]  ;;  %v326_v44 = vld [vmem:[%s11830_s29] sm:$0x3]  ;;  %s11831_s29 = sld [smem:[#allocation36_spill]] }
  0x7d   :  { %v7734_v46 = vld [vmem:[%s11829_s13] sm:$0xff]  ;;  %v7761_v18 = vld [vmem:[%s11829_s13 + $0xd8] sm:$0xff]  ;;  %v789_v55 = vperm.slane %v326_v44, 1  ;;  %v7760_v57 = vld [vmem:[%s11829_s13 + $0xd0] sm:$0xff] }
  0x7e   :  { %1018 = vmatpush.bf16.msrb.mxu3 %v7755_v15  ;;  %v7742_v47 = vld [vmem:[%s11829_s13 + $0x40] sm:$0xff]  ;;  %v7768_v60 = vld [vmem:[%s11829_s13 + $0x110] sm:$0xff]  ;;  %v7759_v0 = vld [vmem:[%s11829_s13 + $0xc8] sm:$0xff] }
  0x7f   :  { %744 = vmatpush.bf16.msrb.mxu0 %v6507_v10  ;;  %v7766_v15 = vld [vmem:[%s11829_s13 + $0x100] sm:$0xff] }
  0x80   :  { %763 = vmatpush.bf16.msrb.mxu1 %v6511_v11  ;;  %995 = vmatpush.bf16.msrb.mxu2 %v7751_v1 }
  0x82   :  { %499 = vmatmul.bf16.gmra.mxu0 %v388_v23  ;;  %1019 = vmatpush.bf16.msrb.mxu3 %v7754_v20 }
  0x83   :  { %745 = vmatpush.bf16.msrb.mxu0 %v6499_v21  ;;  %518 = vmatmul.bf16.gmra.mxu1 %v388_v23 }
  0x84   :  { %764 = vmatpush.bf16.msrb.mxu1 %v6503_v24  ;;  %6447 = vmatmul.msk.bf16.gmra.mxu2 %vm9039_vm7, %v6446_v27  ;;  %v7738_v24 = vld [vmem:[%s11829_s13 + $0x20] sm:$0xff] }
  0x85   :  { %6455 = vmatmul.msk.bf16.gmra.mxu3 %vm9039_vm7, %v6446_v27  ;;  %996 = vmatpush.bf16.msrb.mxu2 %v7750_v2 }
  0x87   :  { %746 = vmatpush.bf16.msrb.mxu0 %v6491_v31 }
  0x88   :  { %765 = vmatpush.bf16.msrb.mxu1 %v6495_v33 }
  0x89   :  { %997 = vmatpush.bf16.msrb.mxu2 %v7749_v5 }
  0x8b   :  { %747 = vmatpush.bf16.msrb.mxu0 %v6483_v39  ;;  %v7743_v39 = vld [vmem:[%s11829_s13 + $0x48] sm:$0xff] }
  0x8c   :  { %766 = vmatpush.bf16.msrb.mxu1 %v6487_v42 }
  0x8d   :  { %998 = vmatpush.bf16.msrb.mxu2 %v7748_v8 }
  0x8f   :  { %748 = vmatpush.bf16.msrb.mxu0 %v6475_v48  ;;  %v7769_v48 = vld [vmem:[%s11829_s13 + $0x118] sm:$0xff] }
  0x90   :  { %767 = vmatpush.bf16.msrb.mxu1 %v6479_v19  ;;  %1277 = vmatpush.bf16.msra.mxu3 %v7769_v48 }
  0x91   :  { %999 = vmatpush.bf16.msrb.mxu2 %v7747_v14 }
  0x92   :  { %6539 = vmatmul.msk.bf16.vlgmr.msrb.gmra.mxu0 %vm9087_vm11, %v6538_v52 }
  0x93   :  { %6547 = vmatmul.msk.bf16.vlgmr.msrb.gmra.mxu1 %vm9087_vm11, %v6538_v52  ;;  %1109 = vmatpush.bf16.msra.mxu0 %v7741_v7  ;;  %v788_v52 = vperm.slane %v326_v44, 0 }
  0x94   :  { %1132 = vmatpush.bf16.msra.mxu1 %v7745_v28  ;;  %1278 = vmatpush.bf16.msra.mxu3 %v7768_v60 }
  0x95   :  { %1000 = vmatpush.bf16.msrb.mxu2 %v7746_v17 }
  0x97   :  { %1110 = vmatpush.bf16.msra.mxu0 %v7740_v13 }
  0x98   :  { %1133 = vmatpush.bf16.msra.mxu1 %v7744_v35 }
  0x99   :  { %1254 = vmatpush.bf16.msra.mxu2 %v7765_v25 }
  0x9b   :  { %1111 = vmatpush.bf16.msra.mxu0 %v7739_v16 }
  0x9c   :  { %1134 = vmatpush.bf16.msra.mxu1 %v7743_v39 }
  0x9d   :  { %1255 = vmatpush.bf16.msra.mxu2 %v7764_v29 }
  0x9f   :  { %1112 = vmatpush.bf16.msra.mxu0 %v7738_v24 }
  0xa0   :  { %1135 = vmatpush.bf16.msra.mxu1 %v7742_v47 }
  0xa1   :  { %1256 = vmatpush.bf16.msra.mxu2 %v7763_v36 }
  0xa2   :  { %6543 = vmatmul.msk.bf16.gmra.mxu0 %vm9108_vm14, %v6542_v62 }
  0xa3   :  { %6551 = vmatmul.msk.bf16.gmra.mxu1 %vm9108_vm14, %v6542_v62  ;;  %1113 = vmatpush.bf16.msra.mxu0 %v7737_v26 }
  0xa5   :  { %1257 = vmatpush.bf16.msra.mxu2 %v7762_v40 }
  0xa7   :  { %1114 = vmatpush.bf16.msra.mxu0 %v7736_v34 }
  0xa9   :  { %1258 = vmatpush.bf16.msra.mxu2 %v7761_v18 }
  0xab   :  { %1115 = vmatpush.bf16.msra.mxu0 %v7735_v38 }
  0xad   :  { %1259 = vmatpush.bf16.msra.mxu2 %v7760_v57 }
  0xaf   :  { %1116 = vmatpush.bf16.msra.mxu0 %v7734_v46 }
  0xb1   :  { %1260 = vmatpush.bf16.msra.mxu2 %v7759_v0 }
  0xef   :  { %v9128_v3 = vpop.f32.mrf.mxu0 }
  0xf0   :  { %v9130_v4 = vpop.f32.mrf.mxu1 }
  0xf7   :  { %v9147_v10 = vpop.f32.mrf.mxu0  ;;  %v613_v27 = vpop.f32.mrf.mxu2 }
  0xf8   :  { %v9149_v11 = vpop.f32.mrf.mxu1  ;;  %v632_v31 = vpop.f32.mrf.mxu3  ;;  %v614_v19 = vadd.f32 %v613_v27, %v9128_v3 }
  0xf9   :  { %v633_v50 = vadd.f32 %v632_v31, %v9130_v4  ;;  %v7767_v4 = vld [vmem:[%s11829_s13 + $0x108] sm:$0xff] }
  0xfa   :  { %1279 = vmatpush.bf16.msra.mxu3 %v7767_v4 }
  0xfe   :  { %1280 = vmatpush.bf16.msra.mxu3 %v7766_v15 }
  0xff   :  { %v9169_v21 = vpop.f32.mrf.mxu0  ;;  %v615_v41 = vpop.f32.mrf.mxu2 }
 0x100   :  { %v9171_v23 = vpop.f32.mrf.mxu1  ;;  %v634_v43 = vpop.f32.mrf.mxu3  ;;  %v616_v61 = vadd.f32 %v615_v41, %v9147_v10 }
 0x101   :  { %v635_v62 = vadd.f32 %v634_v43, %v9149_v11  ;;  %v7758_v11 = vld [vmem:[%s11829_s13 + $0xc0] sm:$0xff] }
 0x102   :  { %1261 = vmatpush.bf16.msra.mxu2 %v7758_v11 }
 0x107   :  { %v9188_v32 = vpop.f32.mrf.mxu0  ;;  %v618_v5 = vpop.f32.mrf.mxu2 }
 0x108   :  { %v9190_v33 = vpop.f32.mrf.mxu1  ;;  %v637_v8 = vpop.f32.mrf.mxu3  ;;  %v619_v27 = vadd.f32 %v618_v5, %v9169_v21 }
 0x109   :  { %v638_v28 = vadd.f32 %v637_v8, %v9171_v23 }
 0x10f   :  { %v750_v42 = vpop.f32.mrf.mxu0  ;;  %v620_v29 = vpop.f32.mrf.mxu2 }
 0x110   :  { %v769_v45 = vpop.f32.mrf.mxu1  ;;  %v779_v51 = vadd.f32 %v750_v42, %v614_v19  ;;  %v639_v31 = vpop.f32.mrf.mxu3  ;;  %v621_v36 = vadd.f32 %v620_v29, %v9188_v32 }
 0x111   :  { %v780_v54 = vadd.f32 %v769_v45, %v633_v50  ;;  %v640_v38 = vadd.f32 %v639_v31, %v9190_v33 }
 0x112   :  { %v792_v1 = vadd.f32 %v788_v52, %v779_v51 }
 0x113   :  { %v793_v6 = vadd.f32 %v789_v55, %v780_v54 }
 0x114   :  { %v9244_v13 = vmax.f32 %v792_v1, 0.0 }
 0x115   :  { %v9251_v16 = vmax.f32 %v793_v6, 0.0 }
 0x116   :  { %v809_v19 = vrot.slane %v9244_v13, 7  ;;  %v833_v6 = vrot.slane %v9244_v13, 1 }
 0x117   :  { %v752_v22 = vpop.f32.mrf.mxu0  ;;  %v810_v51 = vrot.slane %v9251_v16, 7 }
 0x118   :  { %v781_v2 = vadd.f32 %v752_v22, %v616_v61  ;;  %v771_v3 = vpop.f32.mrf.mxu1 }
 0x119   :  { %v782_v7 = vadd.f32 %v771_v3, %v635_v62 }
 0x11a   :  { %v794_v9 = vadd.f32 %v788_v52, %v781_v2 }
 0x11b   :  { %v795_v10 = vadd.f32 %v789_v55, %v782_v7 }
 0x11c   :  { %v9246_v14 = vmax.f32 %v794_v9, 0.0  ;;  %v834_v9 = vrot.slane %v9251_v16, 1 }
 0x11d   :  { %v9253_v17 = vmax.f32 %v795_v10, 0.0 }
 0x11e   :  { %v885_v20 = vpack.c.bf16 %v9246_v14, %v9244_v13  ;;  %v811_v21 = vrot.slane %v9246_v14, 7  ;;  %v835_v4 = vrot.slane %v9246_v14, 1 }
 0x11f   :  { %v755_v24 = vpop.f32.mrf.mxu0  ;;  %v886_v25 = vpack.c.bf16 %v9253_v17, %v9251_v16  ;;  %v812_v32 = vrot.slane %v9253_v17, 7  ;;  %v836_v2 = vrot.slane %v9253_v17, 1 }
 0x120   :  { %v774_v26 = vpop.f32.mrf.mxu1  ;;  %1001 = vmatmul.bf16.vlgmr.msrb.gmra.mxu2 %v885_v20  ;;  %v783_v34 = vadd.f32 %v755_v24, %v619_v27  ;;  %v845_v15 = vsel %vm11783_vm8, %v833_v6, %v835_v4 }
 0x121   :  { %6624 = vmatmul.msk.bf16.vlgmr.msrb.gmra.mxu3 %vm11782_vm15, %v886_v25  ;;  %v784_v35 = vadd.f32 %v774_v26, %v638_v28  ;;  %v822_v62 = vsel %vm11784_vm0, %v810_v51, %v812_v32  ;;  %v846_v14 = vsel %vm11783_vm8, %v834_v9, %v836_v2 }
 0x122   :  { %v796_v40 = vadd.f32 %v788_v52, %v783_v34 }
 0x123   :  { %v797_v43 = vadd.f32 %v789_v55, %v784_v35 }
 0x124   :  { %v804_v47 = vmax.f32 %v796_v40, 0.0 }
 0x125   :  { %v805_v18 = vmax.f32 %v797_v43, 0.0 }
 0x126   :  { %v837_v3 = vrot.slane %v804_v47, 1  ;;  %v813_v10 = vrot.slane %v804_v47, 7 }
 0x127   :  { %v757_v39 = vpop.f32.mrf.mxu0  ;;  %v838_v1 = vrot.slane %v805_v18, 1  ;;  %v814_v8 = vrot.slane %v805_v18, 7 }
 0x128   :  { %v785_v41 = vadd.f32 %v757_v39, %v621_v36  ;;  %v776_v42 = vpop.f32.mrf.mxu1  ;;  %v843_v7 = vsel %vm11783_vm8, %v835_v4, %v837_v3  ;;  %v819_v16 = vsel %vm11784_vm0, %v811_v21, %v813_v10 }
 0x129   :  { %v786_v44 = vadd.f32 %v776_v42, %v640_v38  ;;  %v844_v5 = vsel %vm11783_vm8, %v836_v2, %v838_v1  ;;  %v6758_v17 = vpack.c.bf16 %v843_v7, %v845_v15  ;;  %v820_v24 = vsel %vm11784_vm0, %v812_v32, %v814_v8 }
 0x12a   :  { %v798_v45 = vadd.f32 %v788_v52, %v785_v41  ;;  %v821_v52 = vsel %vm11784_vm0, %v809_v19, %v811_v21  ;;  %v852_v11 = vsel %vm9076_vm9, 0.0, %v844_v5  ;;  %v830_v27 = vsel %vm8998_vm5, 0.0, %v820_v24 }
 0x12b   :  { %v799_v46 = vadd.f32 %v789_v55, %v786_v44  ;;  %v1148_v20 = vpack.c.bf16 %v852_v11, %v846_v14  ;;  %v1309_v44 = vld [vmem:[%s11831_s29 + $0x10] sm:$0x3] }
 0x12c   :  { %v806_v23 = vmax.f32 %v798_v45, 0.0  ;;  %v1363_v45 = vld [vmem:[#allocation8 + $0x10] sm:$0x3]  ;;  %v1323_v21 = vunpack.c.l.b16 %v1309_v44 }
 0x12d   :  { %v807_v48 = vmax.f32 %v799_v46, 0.0  ;;  %v1409_v46 = vld [vmem:[#allocation11 + $0x10] sm:$0x3] }
 0x12e   :  { %v815_v50 = vrot.slane %v806_v23, 7  ;;  %v887_v33 = vpack.c.bf16 %v806_v23, %v804_v47  ;;  %v839_v31 = vrot.slane %v806_v23, 1  ;;  %v1377_v47 = vunpack.c.l.b16 %v1363_v45 }
 0x12f   :  { %v816_v54 = vrot.slane %v807_v48, 7  ;;  %v888_v57 = vpack.c.bf16 %v807_v48, %v805_v18  ;;  %v840_v29 = vrot.slane %v807_v48, 1  ;;  %v1423_v23 = vunpack.c.l.b16 %v1409_v46 }
 0x130   :  { %1006 = vmatmul.bf16.gmra.mxu2 %v887_v33  ;;  %v823_v55 = vsel %vm11784_vm0, %v815_v50, %v809_v19  ;;  %v817_v13 = vsel %vm11784_vm0, %v813_v10, %v815_v50  ;;  %v841_v35 = vsel %vm11783_vm8, %v837_v3, %v839_v31  ;;  %v847_v36 = vsel %vm11783_vm8, %v839_v31, %v833_v6 }
 0x131   :  { %v824_v60 = vsel %vm11784_vm0, %v816_v54, %v810_v51  ;;  %6625 = vmatmul.msk.bf16.gmra.mxu3 %vm11782_vm15, %v888_v57  ;;  %v6676_v61 = vpack.c.bf16 %v821_v52, %v823_v55  ;;  %v818_v25 = vsel %vm11784_vm0, %v814_v8, %v816_v54  ;;  %v6680_v26 = vpack.c.bf16 %v817_v13, %v819_v16  ;;  %v7771_v57 = vld [vmem:[%s11831_s29 + $0x8] sm:$0xff] }
 0x132   :  { %v826_v22 = vsel %vm8921_vm1, 0.0, %v824_v60  ;;  %v860_v28 = vpack.c.bf16 %v818_v25, %v830_v27  ;;  %v848_v34 = vsel %vm11783_vm8, %v840_v29, %v834_v9  ;;  %v842_v38 = vsel %vm11783_vm8, %v838_v1, %v840_v29  ;;  %v7773_v52 = vld [vmem:[#allocation8 + $0x8] sm:$0xff]  ;;  %v7775_v55 = vld [vmem:[#allocation11 + $0x8] sm:$0xff] }
 0x133   :  { %6677 = vmatmul.msk.bf16.vlgmr.msra.gmra.mxu0 %vm8962_vm4, %v6676_v61  ;;  %v858_v0 = vpack.c.bf16 %v822_v62, %v826_v22  ;;  %v856_v39 = vsel %vm9097_vm12, 0.0, %v848_v34  ;;  %v6762_v40 = vpack.c.bf16 %v847_v36, %v841_v35  ;;  %v1326_v18 = vpack.c.b16 %v1323_v21, %v1323_v21  ;;  %v7770_v60 = vld [vmem:[%s11831_s29] sm:$0xff]  ;;  %s8522_s29 = smov 80  }
 0x134   :  { %v1150_v41 = vpack.c.bf16 %v856_v39, %v842_v38  ;;  %v1380_v48 = vpack.c.b16 %v1377_v47, %v1377_v47  ;;  %v1426_v19 = vpack.c.b16 %v1423_v23, %v1423_v23  ;;  %v7772_v61 = vld [vmem:[#allocation8] sm:$0xff]  ;;  %v7774_v62 = vld [vmem:[#allocation11] sm:$0xff] }
 0x135   :  { %6682 = vmatmul.msk.bf16.vlgmr.msra.gmra.mxu1 %vm11782_vm15, %v858_v0  ;;  %v1338_v50 = vsel %vm11787_vm2, %v1326_v18, 0 }
 0x136   :  { %v1384_v33 = vsel %vm11787_vm2, %v1380_v48, 0  ;;  %v1430_v51 = vsel %vm11787_vm2, %v1426_v19, 0  ;;  %1345 = vmatpush.bf16.msrb.mxu0 %v1338_v50 }
 0x137   :  { %1391 = vmatpush.bf16.msrb.mxu1 %v1384_v33  ;;  %1437 = vmatpush.bf16.msrb.mxu2 %v1430_v51  ;;  %v7994_v51 = vld [vmem:[#allocation7] ss:$0 sm:$0xff] }
 0x13a   :  { %1346 = vmatpush.bf16.msrb.mxu0 %v7771_v57 }
 0x13b   :  { %1392 = vmatpush.bf16.msrb.mxu1 %v7773_v52  ;;  %1438 = vmatpush.bf16.msrb.mxu2 %v7775_v55 }
 0x13e   :  { %1347 = vmatpush.bf16.msrb.mxu0 %v7770_v60 }
 0x13f   :  { %1393 = vmatpush.bf16.msrb.mxu1 %v7772_v61  ;;  %1439 = vmatpush.bf16.msrb.mxu2 %v7774_v62 }
 0x140   :  { %6759 = vmatmul.msk.bf16.vlgmr.msra.gmra.mxu2 %vm9087_vm11, %v6758_v17 }
 0x141   :  { %6764 = vmatmul.msk.bf16.vlgmr.msra.gmra.mxu3 %vm11782_vm15, %v1148_v20 }
 0x143   :  { %6681 = vmatmul.msk.bf16.gmra.mxu0 %vm9039_vm7, %v6680_v26  ;;  %v7993_v26 = vld [vmem:[#allocation5] ss:$0 sm:$0xff] }
 0x145   :  { %6683 = vmatmul.msk.bf16.gmra.mxu1 %vm11782_vm15, %v860_v28 }
 0x150   :  { %6763 = vmatmul.msk.bf16.gmra.mxu2 %vm9108_vm14, %v6762_v40 }
 0x151   :  { %6765 = vmatmul.msk.bf16.gmra.mxu3 %vm11782_vm15, %v1150_v41 }
 0x1a3   :  { %v1002_v42 = vpop.f32.mrf.mxu2 }
 0x1a4   :  { %v1021_v43 = vpop.f32.mrf.mxu3 }
 0x1a5   :  { %v1022_v8 = vadd.f32 %v1021_v43, %v1002_v42 }
 0x1ab   :  { %v1004_v32 = vpop.f32.mrf.mxu2 }
 0x1ac   :  { %v1023_v54 = vpop.f32.mrf.mxu3 }
 0x1ad   :  { %v1024_v10 = vadd.f32 %v1023_v54, %v1004_v32  ;;  %v7995_v54 = vld [vmem:[#allocation10] ss:$0 sm:$0xff] }
 0x1b0   :  { %v1118_v1 = vpop.f32.mrf.mxu0 }
 0x1b1   :  { %v1119_v11 = vadd.f32 %v1118_v1, %v1022_v8 }
 0x1b2   :  { %v1137_v3 = vpop.f32.mrf.mxu1 }
 0x1b3   :  { %v1007_v22 = vpop.f32.mrf.mxu2  ;;  %v1138_v14 = vadd.f32 %v1137_v3, %v1119_v11 }
 0x1b4   :  { %v1026_v0 = vpop.f32.mrf.mxu3 }
 0x1b5   :  { %v1027_v39 = vadd.f32 %v1026_v0, %v1007_v22  ;;  %v7996_v0 = vld [vmem:[#allocation13] ss:$0 sm:$0xff] }
 0x1b8   :  { %v1120_v5 = vpop.f32.mrf.mxu0 }
 0x1b9   :  { %v1121_v15 = vadd.f32 %v1120_v5, %v1024_v10 }
 0x1ba   :  { %v1139_v9 = vpop.f32.mrf.mxu1 }
 0x1bb   :  { %v1009_v2 = vpop.f32.mrf.mxu2  ;;  %v1140_v16 = vadd.f32 %v1139_v9, %v1121_v15 }
 0x1bc   :  { %v1028_v4 = vpop.f32.mrf.mxu3 }
 0x1bd   :  { %v1029_v41 = vadd.f32 %v1028_v4, %v1009_v2 }
 0x1c0   :  { %v1123_v20 = vpop.f32.mrf.mxu0 }
 0x1c1   :  { %v1124_v42 = vadd.f32 %v1123_v20, %v1027_v39 }
 0x1c2   :  { %v1142_v29 = vpop.f32.mrf.mxu1 }
 0x1c3   :  { %v1263_v6 = vpop.f32.mrf.mxu2  ;;  %v1143_v46 = vadd.f32 %v1142_v29, %v1124_v42 }
 0x1c4   :  { %v1282_v7 = vpop.f32.mrf.mxu3 }
 0x1c5   :  { %v1283_v17 = vadd.f32 %v1282_v7, %v1263_v6 }
 0x1c7   :  { %v1292_v25 = vadd.f32 %v1283_v17, %v1138_v14 }
 0x1c8   :  { %v1125_v40 = vpop.f32.mrf.mxu0 }
 0x1c9   :  { %v1299_v31 = vadd.f32 %v7993_v26, %v1292_v25  ;;  %v1126_v43 = vadd.f32 %v1125_v40, %v1029_v41 }
 0x1ca   :  { %v1144_v45 = vpop.f32.mrf.mxu1 }
 0x1cb   :  { %v1265_v13 = vpop.f32.mrf.mxu2  ;;  %v1145_v23 = vadd.f32 %v1144_v45, %v1126_v43 }
 0x1cc   :  { %v1284_v24 = vpop.f32.mrf.mxu3 }
 0x1cd   :  { %v1285_v27 = vadd.f32 %v1284_v24, %v1265_v13 }
 0x1cf   :  { %v1293_v28 = vadd.f32 %v1285_v27, %v1140_v16 }
 0x1d1   :  { %v1300_v34 = vadd.f32 %v7993_v26, %v1293_v28 }
 0x1d3   :  { %v1303_v35 = vpack.c.bf16 %v1300_v34, %v1299_v31  ;;  %v1268_v36 = vpop.f32.mrf.mxu2 }
 0x1d4   :  { %v1287_v38 = vpop.f32.mrf.mxu3 }
 0x1d5   :  { %6774 = vmatmul.msk.bf16.vlgmr.msrb.gmra.mxu0 %vm11785_vm3, %v1303_v35  ;;  %6784 = vmatmul.msk.bf16.vlgmr.msrb.gmra.mxu1 %vm11785_vm3, %v1303_v35  ;;  %v1288_v44 = vadd.f32 %v1287_v38, %v1268_v36 }
 0x1d6   :  { %6794 = vmatmul.msk.bf16.vlgmr.msrb.gmra.mxu2 %vm11785_vm3, %v1303_v35 }
 0x1d7   :  { %v1294_v18 = vadd.f32 %v1288_v44, %v1143_v46 }
 0x1d9   :  { %v1301_v32 = vadd.f32 %v7993_v26, %v1294_v18 }
 0x1db   :  { %v1270_v21 = vpop.f32.mrf.mxu2 }
 0x1dc   :  { %v1289_v47 = vpop.f32.mrf.mxu3 }
 0x1dd   :  { %v1290_v48 = vadd.f32 %v1289_v47, %v1270_v21 }
 0x1df   :  { %v1295_v19 = vadd.f32 %v1290_v48, %v1145_v23 }
 0x1e1   :  { %v1302_v50 = vadd.f32 %v7993_v26, %v1295_v19 }
 0x1e3   :  { %v1304_v33 = vpack.c.bf16 %v1302_v50, %v1301_v32 }
 0x1e5   :  { %6775 = vmatmul.msk.bf16.gmra.mxu0 %vm11785_vm3, %v1304_v33  ;;  %6785 = vmatmul.msk.bf16.gmra.mxu1 %vm11785_vm3, %v1304_v33 }
 0x1e6   :  { %6795 = vmatmul.msk.bf16.gmra.mxu2 %vm11785_vm3, %v1304_v33 }
 0x252   :  { %v1349_v57 = vpop.f32.mrf.mxu0  ;;  %v1395_v52 = vpop.f32.mrf.mxu1 }
 0x253   :  { %v1350_v55 = vadd.f32 %v7994_v51, %v1349_v57  ;;  %v1396_v60 = vadd.f32 %v7995_v54, %v1395_v52 }
 0x255   :  { %v1451_v61 = vpack.c.bf16 %v1350_v55, %v1350_v55  ;;  %v1467_v62 = vpack.c.bf16 %v1396_v60, %v1396_v60 }
 0x257   :  { %1473 = vrot.lane.b32.xlu0 %v1467_v62, %s8517_s6  ;;  %1457 = vrot.lane.b32.xlu1 %v1451_v61, %s8517_s6  ;;  %v1502_v8 = vunpack.c.l.b16 %v1467_v62  ;;  %v1499_v34 = vunpack.c.l.b16 %v1451_v61 }
 0x259   :  { %v1441_v22 = vpop.f32.mrf.mxu2 }
 0x25a   :  { %v1351_v1 = vpop.f32.mrf.mxu0  ;;  %v1397_v2 = vpop.f32.mrf.mxu1  ;;  %v1442_v7 = vadd.f32 %v7996_v0, %v1441_v22 }
 0x25b   :  { %v1352_v3 = vadd.f32 %v7994_v51, %v1351_v1  ;;  %v1398_v4 = vadd.f32 %v7995_v54, %v1397_v2 }
 0x25c   :  { %v9347_v15 = vpack.c.bf16 %v1442_v7, %v1442_v7 }
 0x25d   :  { %v1452_v5 = vpack.c.bf16 %v1352_v3, %v1352_v3  ;;  %v1468_v6 = vpack.c.bf16 %v1398_v4, %v1398_v4 }
 0x25e   :  { %v1810_v29 = vunpack.c.l.b16 %v9347_v15 }
 0x25f   :  { %v1503_v9 = vunpack.c.l.b16 %v1468_v6  ;;  %1475 = vrot.lane.b32.xlu0 %v1468_v6, %s8517_s6  ;;  %1459 = vrot.lane.b32.xlu1 %v1452_v5, %s8517_s6  ;;  %v1500_v26 = vunpack.c.l.b16 %v1452_v5 }
 0x261   :  { %v1443_v10 = vpop.f32.mrf.mxu2  ;;  %v1504_v11 = vpack.c.b16 %v1503_v9, %v1502_v8  ;;  %v1501_v36 = vpack.c.b16 %v1500_v26, %v1499_v34 }
 0x262   :  { %v1444_v17 = vadd.f32 %v7996_v0, %v1443_v10  ;;  %v1354_v14 = vpop.f32.mrf.mxu0  ;;  %v1400_v13 = vpop.f32.mrf.mxu1 }
 0x263   :  { %v1355_v20 = vadd.f32 %v7994_v51, %v1354_v14  ;;  %v1401_v24 = vadd.f32 %v7995_v54, %v1400_v13  ;;  %v1510_v16 = vsel %vm11786_vm6, %v1504_v11, 0 }
 0x264   :  { %v9350_v25 = vpack.c.bf16 %v1444_v17, %v1444_v17  ;;  %1519 = vmatpush.bf16.xpose.msrb.mxu3 %v1510_v16 }
 0x265   :  { %v1453_v27 = vpack.c.bf16 %v1355_v20, %v1355_v20  ;;  %v1469_v28 = vpack.c.bf16 %v1401_v24, %v1401_v24 }
 0x266   :  { %v1811_v31 = vunpack.c.l.b16 %v9350_v25 }
 0x267   :  { %1479 = vrot.lane.b32.xlu2 %v1469_v28, %s8517_s6  ;;  %1463 = vrot.lane.b32.xlu0 %v1453_v27, %s8517_s6  ;;  %v1555_v46 = vunpack.c.l.b16 %v1469_v28 }
 0x268   :  { %v1812_v35 = vpack.c.b16 %v1811_v31, %v1810_v29 }
 0x269   :  { %v1446_v38 = vpop.f32.mrf.mxu2 }
 0x26a   :  { %1824 = vmatpush.bf16.msra.mxu2 %v1812_v35  ;;  %v1356_v39 = vpop.f32.mrf.mxu0  ;;  %v1402_v40 = vpop.f32.mrf.mxu1  ;;  %v1447_v45 = vadd.f32 %v7996_v0, %v1446_v38 }
 0x26b   :  { %v1357_v41 = vadd.f32 %v7994_v51, %v1356_v39  ;;  %v1403_v42 = vadd.f32 %v7995_v54, %v1402_v40  ;;  %6796 = vmatmul.msk.bf16.vlgmr.msrb.gmra.mxu3 %vm11786_vm6, %v1501_v36  ;;  %v1552_v54 = vunpack.c.l.b16 %v1453_v27 }
 0x26c   :  { %v9359_v18 = vpack.c.bf16 %v1447_v45, %v1447_v45 }
 0x26d   :  { %v1454_v43 = vpack.c.bf16 %v1357_v41, %v1357_v41  ;;  %v1470_v44 = vpack.c.bf16 %v1403_v42, %v1403_v42 }
 0x26e   :  { %v1862_v33 = vunpack.c.l.b16 %v9359_v18 }
 0x26f   :  { %v1556_v21 = vunpack.c.l.b16 %v1470_v44  ;;  %1481 = vrot.lane.b32.xlu2 %v1470_v44, %s8517_s6  ;;  %1465 = vrot.lane.b32.xlu1 %v1454_v43, %s8517_s6  ;;  %v1553_v50 = vunpack.c.l.b16 %v1454_v43 }
 0x271   :  { %v1448_v47 = vpop.f32.mrf.mxu2  ;;  %v1557_v23 = vpack.c.b16 %v1556_v21, %v1555_v46  ;;  %v1554_v52 = vpack.c.b16 %v1553_v50, %v1552_v54 }
 0x272   :  { %v1449_v48 = vadd.f32 %v7996_v0, %v1448_v47 }
 0x273   :  { %v1562_v19 = vsel %vm11786_vm6, %v1557_v23, 0 }
 0x274   :  { %v9362_v32 = vpack.c.bf16 %v1449_v48, %v1449_v48  ;;  %1571 = vmatpush.bf16.xpose.msra.mxu0 %v1562_v19 }
 0x276   :  { %v1863_v51 = vunpack.c.l.b16 %v9362_v32 }
 0x278   :  { %v1864_v57 = vpack.c.b16 %v1863_v51, %v1862_v33 }
 0x27b   :  { %6798 = vmatmul.msk.bf16.vlgmr.msra.gmra.mxu0 %vm11786_vm6, %v1554_v52 }
 0x27c   :  { %1876 = vmatpush.bf16.msrb.mxu0 %v1864_v57 }
 0x2c1   :  { %v1480_v55 = vpop.permute.xlu2 %1479 }
 0x2c2   :  { %v1581_v62 = vunpack.c.l.b16 %v1480_v55 }
 0x2c9   :  { %v1482_v60 = vpop.permute.xlu2 %1481  ;;  %v1474_v61 = vpop.permute.xlu0 %1473 }
 0x2ca   :  { %v1582_v22 = vunpack.c.l.b16 %v1482_v60  ;;  %v1458_v0 = vpop.permute.xlu1 %1457  ;;  %v1529_v4 = vunpack.c.l.b16 %v1474_v61 }
 0x2cb   :  { %v1526_v10 = vunpack.c.l.b16 %v1458_v0 }
 0x2cc   :  { %v1583_v1 = vpack.c.b16 %v1582_v22, %v1581_v62 }
 0x2ce   :  { %v1588_v2 = vsel %vm11786_vm6, %v1583_v1, 0 }
 0x2cf   :  { %1597 = vmatpush.bf16.xpose.msra.mxu1 %v1588_v2 }
 0x2d1   :  { %v1476_v3 = vpop.permute.xlu0 %1475 }
 0x2d2   :  { %v1530_v5 = vunpack.c.l.b16 %v1476_v3  ;;  %v1460_v7 = vpop.permute.xlu1 %1459 }
 0x2d3   :  { %v1527_v9 = vunpack.c.l.b16 %v1460_v7 }
 0x2d4   :  { %v1531_v6 = vpack.c.b16 %v1530_v5, %v1529_v4 }
 0x2d5   :  { %v1528_v11 = vpack.c.b16 %v1527_v9, %v1526_v10 }
 0x2d6   :  { %v1536_v8 = vsel %vm11786_vm6, %v1531_v6, 0 }
 0x2d7   :  { %1545 = vmatpush.bf16.xpose.msra.mxu3 %v1536_v8 }
 0x2d9   :  { %v1464_v17 = vpop.permute.xlu0 %1463 }
 0x2da   :  { %v1578_v13 = vunpack.c.l.b16 %v1464_v17 }
 0x2de   :  { %6797 = vmatmul.msk.bf16.vlgmr.msra.gmra.mxu3 %vm11786_vm6, %v1528_v11 }
 0x2e1   :  { %v1466_v14 = vpop.permute.xlu1 %1465 }
 0x2e2   :  { %v1579_v20 = vunpack.c.l.b16 %v1466_v14 }
 0x2e4   :  { %v1580_v24 = vpack.c.b16 %v1579_v20, %v1578_v13 }
 0x2e6   :  { %6799 = vmatmul.msk.bf16.vlgmr.msra.gmra.mxu1 %vm11786_vm6, %v1580_v24 }
 0x2ee   :  { %v1521_v28 = vpop.f32.mrf.mxu3 }
 0x2ef   :  { %v1605_v39 = vsel %vm11788_vm10, %v1521_v28, -inf }
 0x2f6   :  { %v1523_v29 = vpop.f32.mrf.mxu3 }
 0x2f7   :  { %v1608_v43 = vsel %vm11788_vm10, %v1523_v29, -inf }
 0x2f8   :  { %v9371_v16 = vpop.f32.mrf.mxu0 }
 0x2f9   :  { %v1617_v44 = vsel %vm11788_vm10, %v9371_v16, -inf }
 0x300   :  { %v9373_v26 = vpop.f32.mrf.mxu0 }
 0x301   :  { %v1620_v27 = vsel %vm11788_vm10, %v9373_v26, -inf }
 0x302   :  { %1621 = vmax.xlane.f32.xlu1 %v1620_v27 }
 0x361   :  { %v1547_v31 = vpop.f32.mrf.mxu3 }
 0x362   :  { %v1611_v34 = vsel %vm11788_vm10, %v1547_v31, -inf }
 0x363   :  { %v1599_v35 = vpop.f32.mrf.mxu1  ;;  %1612 = vmax.xlane.f32.xlu2 %v1611_v34 }
 0x364   :  { %v1623_v36 = vsel %vm11788_vm10, %v1599_v35, -inf }
 0x365   :  { %1624 = vmax.xlane.f32.xlu1 %v1623_v36 }
 0x369   :  { %v1549_v38 = vpop.f32.mrf.mxu3 }
 0x36a   :  { %v1614_v40 = vsel %vm11788_vm10, %v1549_v38, -inf }
 0x36b   :  { %1606 = vmax.xlane.f32.xlu2 %v1605_v39  ;;  %1615 = vmax.xlane.f32.xlu0 %v1614_v40  ;;  %v1601_v41 = vpop.f32.mrf.mxu1 }
 0x36c   :  { %v1626_v42 = vsel %vm11788_vm10, %v1601_v41, -inf }
 0x373   :  { %1627 = vmax.xlane.f32.xlu2 %v1626_v42  ;;  %1609 = vmax.xlane.f32.xlu0 %v1608_v43 }
 0x375   :  { %v1622_v46 = vpop.xlane.xlu1 %1621 }
 0x376   :  { %v1634_v34 = vsub.f32 %v9373_v26, %v1622_v46 }
 0x37b   :  { %1618 = vmax.xlane.f32.xlu0 %v1617_v44 }
 0x38b   :  { %1489 = vrot.lane.b32.xlu2 %v9347_v15, %s8517_s6 }
 0x38f   :  { %1491 = vrot.lane.b32.xlu0 %v9350_v25, %s8517_s6 }
 0x3d6   :  { %v1613_v45 = vpop.xlane.xlu2 %1612 }
 0x3d7   :  { %v1631_v19 = vsub.f32 %v1547_v31, %v1613_v45 }
 0x3d8   :  { %v1625_v54 = vpop.xlane.xlu1 %1624 }
 0x3d9   :  { %v1641_v51 = vmul.f32 1.442695, %v1631_v19  ;;  %v1635_v15 = vsub.f32 %v1599_v35, %v1625_v54  ;;  %v1647_v35 = vmul.f32 1.442695, %v1634_v34 }
 0x3db   :  { %v1649_v22 = vmul.f32 1.442695, %v1635_v15 }
 0x3de   :  { %v1607_v21 = vpop.xlane.xlu2 %1606  ;;  %v1616_v47 = vpop.xlane.xlu0 %1615 }
 0x3df   :  { %v1629_v23 = vsub.f32 %v1521_v28, %v1607_v21  ;;  %v1632_v48 = vsub.f32 %v1549_v38, %v1616_v47 }
 0x3e1   :  { %v1637_v50 = vmul.f32 1.442695, %v1629_v23  ;;  %v1643_v33 = vmul.f32 1.442695, %v1632_v48 }
 0x3e3   :  { %7998 = vpow2.f32 %v1637_v50 }
 0x3e4   :  { %8000 = vpow2.f32 %v1643_v33 }
 0x3e5   :  { %8002 = vpow2.f32 %v1641_v51 }
 0x3e6   :  { %v1610_v57 = vpop.xlane.xlu0 %1609  ;;  %v1628_v0 = vpop.xlane.xlu2 %1627 }
 0x3e7   :  { %v1630_v52 = vsub.f32 %v1523_v29, %v1610_v57  ;;  %v1636_v2 = vsub.f32 %v1601_v41, %v1628_v0 }
 0x3e9   :  { %v9389_v55 = vpop.eup %7998  ;;  %v1639_v25 = vmul.f32 1.442695, %v1630_v52  ;;  %v1651_v6 = vmul.f32 1.442695, %v1636_v2 }
 0x3ea   :  { %v9391_v60 = vpop.eup %8000  ;;  %v1653_v61 = vsel %vm11788_vm10, %v9389_v55, 0.0 }
 0x3eb   :  { %1654 = vadd.xlane.f32.xlu1 %v1653_v61  ;;  %v1662_v62 = vsel %vm11788_vm10, %v9391_v60, 0.0  ;;  %8004 = vpow2.f32 %v1639_v25  ;;  %v9397_v1 = vpop.eup %8002 }
 0x3ec   :  { %1663 = vadd.xlane.f32.xlu2 %v1662_v62  ;;  %8006 = vpow2.f32 %v1649_v22  ;;  %v1659_v4 = vsel %vm11788_vm10, %v9397_v1, 0.0 }
 0x3ed   :  { %8008 = vpow2.f32 %v1651_v6 }
 0x3ee   :  { %v1619_v8 = vpop.xlane.xlu0 %1618  ;;  %v1490_v11 = vpop.permute.xlu2 %1489 }
 0x3ef   :  { %v1836_v14 = vunpack.c.l.b16 %v1490_v11  ;;  %v1633_v27 = vsub.f32 %v9371_v16, %v1619_v8 }
 0x3f1   :  { %v9399_v3 = vpop.eup %8004  ;;  %v1645_v28 = vmul.f32 1.442695, %v1633_v27 }
 0x3f2   :  { %v1656_v5 = vsel %vm11788_vm10, %v9399_v3, 0.0  ;;  %v9405_v7 = vpop.eup %8006 }
 0x3f3   :  { %1660 = vadd.xlane.f32.xlu1 %v1659_v4  ;;  %1657 = vadd.xlane.f32.xlu0 %v1656_v5  ;;  %v1671_v9 = vsel %vm11788_vm10, %v9405_v7, 0.0  ;;  %v9409_v10 = vpop.eup %8008  ;;  %8010 = vpow2.f32 %v1645_v28 }
 0x3f4   :  { %v1674_v20 = vsel %vm11788_vm10, %v9409_v10, 0.0  ;;  %8012 = vpow2.f32 %v1647_v35 }
 0x3f9   :  { %v9418_v29 = vpop.eup %8010 }
 0x3fa   :  { %v1665_v31 = vsel %vm11788_vm10, %v9418_v29, 0.0  ;;  %v9423_v36 = vpop.eup %8012 }
 0x3fb   :  { %1672 = vadd.xlane.f32.xlu1 %v1671_v9 }
 0x401   :  { %v1492_v17 = vpop.permute.xlu0 %1491 }
 0x402   :  { %v1837_v13 = vunpack.c.l.b16 %v1492_v17 }
 0x403   :  { %1675 = vadd.xlane.f32.xlu1 %v1674_v20 }
 0x404   :  { %v1838_v24 = vpack.c.b16 %v1837_v13, %v1836_v14  ;;  %1495 = vrot.lane.b32.xlu2 %v9359_v18, %s8517_s6  ;;  %v1668_v18 = vsel %vm11788_vm10, %v9423_v36, 0.0 }
 0x406   :  { %1850 = vmatpush.bf16.msrb.mxu3 %v1838_v24 }
 0x41c   :  { %1497 = vrot.lane.b32.xlu1 %v9362_v32, %s8517_s6  ;;  %s11917_s6 = sld [smem:[#allocation41_spill]] }
 0x42d   :  { %1666 = vadd.xlane.f32.xlu2 %v1665_v31 }
 0x446   :  { %1669 = vadd.xlane.f32.xlu1 %v1668_v18 }
 0x45e   :  { %v1655_v16 = vpop.xlane.xlu1 %1654 }
 0x45f   :  { %8014 = vrcp.f32 %v1655_v16  ;;  %v1664_v32 = vpop.xlane.xlu2 %1663  ;;  %v1686_v46 = vand.u32 2147483647, %v1655_v16  ;;  %v1688_v19 = vand.u32 2147483648, %v1655_v16  ;;  %vm1682_vm0 = vweird.f32 %v1655_v16 }
 0x460   :  { %8016 = vrcp.f32 %v1664_v32  ;;  %v1733_v23 = vand.u32 2147483648, %v1664_v32  ;;  %vm1727_vm8 = vweird.f32 %v1664_v32  ;;  %v1731_v33 = vand.u32 2147483647, %v1664_v32 }
 0x461   :  { %vm1687_vm2 = vcmp.eq.f32.partialorder %v1686_v46, 8.507059e+37  ;;  %v1689_v2 = vor.u32 1.1754944e-38, %v1688_v19 }
 0x462   :  { %v1734_v62 = vor.u32 1.1754944e-38, %v1733_v23 }
 0x465   :  { %v8015_v38 = vpop.eup %8014 }
 0x466   :  { %v8017_v39 = vpop.eup %8016  ;;  %v1678_v40 = vmul.f32 %v8015_v38, %v1655_v16  ;;  %v1661_v41 = vpop.xlane.xlu1 %1660  ;;  %vm1683_vm15 = vweird.f32 %v8015_v38 }
 0x467   :  { %v1723_v42 = vmul.f32 %v8017_v39, %v1664_v32  ;;  %8018 = vrcp.f32 %v1661_v41  ;;  %v1658_v43 = vpop.xlane.xlu0 %1657  ;;  %vm1728_vm13 = vweird.f32 %v8017_v39  ;;  %vm9433_vm6 = vmor %vm1682_vm0, %vm1683_vm15  ;;  %v1716_v4 = vand.u32 2147483647, %v1661_v41 }
 0x468   :  { %v1679_v26 = vsub.f32 1.0, %v1678_v40  ;;  %8020 = vrcp.f32 %v1658_v43  ;;  %vm9427_vm3 = vmor %vm1727_vm8, %vm1728_vm13  ;;  %vm1732_vm8 = vcmp.eq.f32.partialorder %v1731_v33, 8.507059e+37  ;;  %v1718_v5 = vand.u32 2147483648, %v1661_v41 }
 0x469   :  { %v1724_v44 = vsub.f32 1.0, %v1723_v42  ;;  %vm1712_vm15 = vweird.f32 %v1661_v41  ;;  %v1703_v17 = vand.u32 2147483648, %v1658_v43  ;;  %v1701_v20 = vand.u32 2147483647, %v1658_v43 }
 0x46a   :  { %v1680_v45 = vmul.f32 %v8015_v38, %v1679_v26  ;;  %vm1717_vm13 = vcmp.eq.f32.partialorder %v1716_v4, 8.507059e+37  ;;  %v1719_v27 = vor.u32 1.1754944e-38, %v1718_v5  ;;  %vm1697_vm10 = vweird.f32 %v1658_v43 }
 0x46b   :  { %v1725_v21 = vmul.f32 %v8017_v39, %v1724_v44 }
 0x46c   :  { %v1681_v47 = vadd.f32 %v8015_v38, %v1680_v45 }
 0x46d   :  { %v8019_v48 = vpop.eup %8018  ;;  %v1726_v50 = vadd.f32 %v8017_v39, %v1725_v21 }
 0x46e   :  { %v1708_v54 = vmul.f32 %v8019_v48, %v1661_v41  ;;  %v9431_v57 = vpop.xlane.xlu1 %1672  ;;  %v8021_v52 = vpop.eup %8020  ;;  %v1685_v61 = vsel %vm9433_vm6, %v8015_v38, %v1681_v47  ;;  %vm1713_vm0 = vweird.f32 %v8019_v48  ;;  %v1704_v38 = vor.u32 1.1754944e-38, %v1703_v17 }
 0x46f   :  { %v1730_v25 = vsel %vm9427_vm3, %v8017_v39, %v1726_v50  ;;  %8022 = vrcp.f32 %v9431_v57  ;;  %v1693_v0 = vmul.f32 %v8021_v52, %v1658_v43  ;;  %v1690_v11 = vsel %vm1687_vm2, %v1689_v2, %v1685_v61  ;;  %vm1714_vm6 = vmor %vm1712_vm15, %vm1713_vm0 }
 0x470   :  { %v1709_v22 = vsub.f32 1.0, %v1708_v54  ;;  %v1735_v6 = vsel %vm1732_vm8, %v1734_v62, %v1730_v25  ;;  %vm1698_vm3 = vweird.f32 %v8021_v52  ;;  %v1691_v16 = vmul.f32 %v9389_v55, %v1690_v11 }
 0x471   :  { %v1694_v9 = vsub.f32 1.0, %v1693_v0  ;;  %v1736_v28 = vmul.f32 %v9391_v60, %v1735_v6  ;;  %vm1699_vm2 = vmor %vm1697_vm10, %vm1698_vm3  ;;  %vm1702_vm8 = vcmp.eq.f32.partialorder %v1701_v20, 8.507059e+37  ;;  %vm1772_vm0 = vweird.f32 %v9431_v57 }
 0x472   :  { %v1710_v8 = vmul.f32 %v8019_v48, %v1709_v22  ;;  %v1797_v26 = vpack.c.bf16 %v1691_v16, %v1691_v16  ;;  %vm11836_vm15 = vcmask 130048  }
 0x473   :  { %v1695_v13 = vmul.f32 %v8021_v52, %v1694_v9  ;;  %v1800_v43 = vpack.c.bf16 %v1736_v28, %v1736_v28 }
 0x474   :  { %v1711_v14 = vadd.f32 %v8019_v48, %v1710_v8  ;;  %v1496_v8 = vpop.permute.xlu2 %1495 }
 0x475   :  { %v8023_v24 = vpop.eup %8022  ;;  %v1696_v34 = vadd.f32 %v8021_v52, %v1695_v13  ;;  %v1834_v55 = vunpack.c.l.b16 %v1800_v43 }
 0x476   :  { %v1715_v31 = vsel %vm1714_vm6, %v8019_v48, %v1711_v14  ;;  %v1768_v35 = vmul.f32 %v8023_v24, %v9431_v57  ;;  %v1676_v18 = vpop.xlane.xlu1 %1675  ;;  %v1807_v48 = vunpack.c.l.b16 %v1797_v26  ;;  %vm1773_vm10 = vweird.f32 %v8023_v24  ;;  %vm11837_vm6 = vmmov %vm11836_vm15 }
 0x477   :  { %v1720_v32 = vsel %vm1717_vm13, %v1719_v27, %v1715_v31  ;;  %8024 = vrcp.f32 %v1676_v18  ;;  %v1700_v39 = vsel %vm1699_vm2, %v8021_v52, %v1696_v34  ;;  %v1776_v52 = vand.u32 2147483647, %v9431_v57  ;;  %vm1774_vm13 = vmor %vm1772_vm0, %vm1773_vm10 }
 0x478   :  { %v1769_v40 = vsub.f32 1.0, %v1768_v35  ;;  %v1721_v41 = vmul.f32 %v9397_v1, %v1720_v32  ;;  %v1705_v42 = vsel %vm1702_vm8, %v1704_v38, %v1700_v39  ;;  %v1778_v1 = vand.u32 2147483648, %v9431_v57  ;;  %vm11838_vm10 = vmmov %vm11837_vm6 }
 0x479   :  { %v1706_v60 = vmul.f32 %v9399_v3, %v1705_v42  ;;  %v1793_v3 = vand.u32 2147483648, %v1676_v18  ;;  %v1791_v25 = vand.u32 2147483647, %v1676_v18  ;;  %vm1787_vm2 = vweird.f32 %v1676_v18 }
 0x47a   :  { %v1799_v44 = vpack.c.bf16 %v1721_v41, %v1721_v41  ;;  %v1770_v45 = vmul.f32 %v8023_v24, %v1769_v40  ;;  %v1779_v22 = vor.u32 1.1754944e-38, %v1778_v1  ;;  %vm1777_vm14 = vcmp.eq.f32.partialorder %v1776_v52, 8.507059e+37 }
 0x47b   :  { %v1798_v46 = vpack.c.bf16 %v1706_v60, %v1706_v60  ;;  %v1794_v0 = vor.u32 1.1754944e-38, %v1793_v3  ;;  %vm1792_vm11 = vcmp.eq.f32.partialorder %v1791_v25, 8.507059e+37  ;;  %v1888_v14 = vunpack.c.l.b16 %v1496_v8 }
 0x47c   :  { %v1833_v21 = vunpack.c.l.b16 %v1799_v44  ;;  %v1771_v33 = vadd.f32 %v8023_v24, %v1770_v45 }
 0x47d   :  { %v8025_v47 = vpop.eup %8024  ;;  %v1808_v19 = vunpack.c.l.b16 %v1798_v46 }
 0x47e   :  { %v1783_v23 = vmul.f32 %v8025_v47, %v1676_v18  ;;  %v1835_v50 = vpack.c.b16 %v1834_v55, %v1833_v21  ;;  %vm1788_vm3 = vweird.f32 %v8025_v47  ;;  %v1775_v61 = vsel %vm1774_vm13, %v8023_v24, %v1771_v33 }
 0x47f   :  { %v1809_v54 = vpack.c.b16 %v1808_v19, %v1807_v48  ;;  %vm1789_vm8 = vmor %vm1787_vm2, %vm1788_vm3  ;;  %v1780_v4 = vsel %vm1777_vm14, %v1779_v22, %v1775_v61 }
 0x480   :  { %v1784_v51 = vsub.f32 1.0, %v1783_v23  ;;  %6801 = vmatmul.msk.bf16.vlgmr.msrb.gmra.mxu3 %vm11836_vm15, %v1835_v50  ;;  %v1781_v57 = vmul.f32 %v9405_v7, %v1780_v4 }
 0x481   :  { %6800 = vmatmul.msk.bf16.vlgmr.msra.gmra.mxu2 %vm11837_vm6, %v1809_v54 }
 0x482   :  { %v1785_v15 = vmul.f32 %v8025_v47, %v1784_v51  ;;  %v1803_v17 = vpack.c.bf16 %v1781_v57, %v1781_v57 }
 0x484   :  { %v1786_v62 = vadd.f32 %v8025_v47, %v1785_v15  ;;  %v1885_v27 = vunpack.c.l.b16 %v1803_v17  ;;  %v7776_v17 = vld [vmem:[#allocation14] sm:$0xff] }
 0x486   :  { %v1790_v2 = vsel %vm1789_vm8, %v8025_v47, %v1786_v62  ;;  %vm11839_vm8 = vmmov %vm11838_vm10 }
 0x487   :  { %v1795_v5 = vsel %vm1792_vm11, %v1794_v0, %v1790_v2 }
 0x488   :  { %v1796_v6 = vmul.f32 %v9409_v10, %v1795_v5 }
 0x48a   :  { %v1804_v9 = vpack.c.bf16 %v1796_v6, %v1796_v6  ;;  %v1951_v6 = vld [vmem:[#allocation14 + $0x10] sm:$0x3] }
 0x48b   :  { %v1965_v57 = vunpack.c.l.b16 %v1951_v6 }
 0x48c   :  { %v1886_v20 = vunpack.c.l.b16 %v1804_v9 }
 0x48d   :  { %v1968_v8 = vpack.c.b16 %v1965_v57, %v1965_v57 }
 0x48e   :  { %v1498_v11 = vpop.permute.xlu1 %1497  ;;  %v1887_v28 = vpack.c.b16 %v1886_v20, %v1885_v27 }
 0x48f   :  { %v1889_v13 = vunpack.c.l.b16 %v1498_v11  ;;  %v7777_v11 = vld [vmem:[#allocation14 + $0x8] sm:$0xff] }
 0x491   :  { %v1890_v24 = vpack.c.b16 %v1889_v13, %v1888_v14 }
 0x493   :  { %1902 = vmatpush.bf16.msrb.mxu1 %v1890_v24 }
 0x496   :  { %6803 = vmatmul.msk.bf16.vlgmr.msrb.gmra.mxu1 %vm11838_vm10, %v1887_v28  ;;  %vm11840_vm10 = vcmask 1041408  }
 0x497   :  { %v1976_v9 = vsel %vm11840_vm10, %v1968_v8, 0 }
 0x498   :  { %1983 = vmatpush.bf16.msrb.mxu2 %v1976_v9 }
 0x49c   :  { %1984 = vmatpush.bf16.msrb.mxu2 %v7777_v11 }
 0x4a0   :  { %v1667_v31 = vpop.xlane.xlu2 %1666  ;;  %1985 = vmatpush.bf16.msrb.mxu2 %v7776_v17 }
 0x4a1   :  { %8026 = vrcp.f32 %v1667_v31  ;;  %v1748_v32 = vand.u32 2147483648, %v1667_v31  ;;  %vm1742_vm14 = vweird.f32 %v1667_v31  ;;  %v1746_v38 = vand.u32 2147483647, %v1667_v31 }
 0x4a3   :  { %v1749_v42 = vor.u32 1.1754944e-38, %v1748_v32  ;;  %vm1747_vm15 = vcmp.eq.f32.partialorder %v1746_v38, 8.507059e+37 }
 0x4a7   :  { %v8027_v34 = vpop.eup %8026 }
 0x4a8   :  { %v1738_v35 = vmul.f32 %v8027_v34, %v1667_v31  ;;  %vm1743_vm11 = vweird.f32 %v8027_v34 }
 0x4a9   :  { %vm1744_vm0 = vmor %vm1742_vm14, %vm1743_vm11  ;;  %vm11841_vm11 = vcmask 146432   ;;  %vm11842_vm14 = vcmask 293888  }
 0x4aa   :  { %v1739_v10 = vsub.f32 1.0, %v1738_v35 }
 0x4ac   :  { %v1740_v18 = vmul.f32 %v8027_v34, %v1739_v10 }
 0x4ae   :  { %v1741_v16 = vadd.f32 %v8027_v34, %v1740_v18 }
 0x4b0   :  { %v1745_v40 = vsel %vm1744_vm0, %v8027_v34, %v1741_v16  ;;  %vm11843_vm0 = vmmov %vm11841_vm11 }
 0x4b1   :  { %v1750_v60 = vsel %vm1747_vm15, %v1749_v42, %v1745_v40  ;;  %vm11844_vm15 = vmmov %vm11842_vm14 }
 0x4b2   :  { %v1751_v21 = vmul.f32 %v9418_v29, %v1750_v60  ;;  %v7997_v60 = vld [vmem:[%s11765_s12] ss:$0 sm:$0xff]  ;;  %s8530_s12 = smov 120  }
 0x4b4   :  { %v1801_v19 = vpack.c.bf16 %v1751_v21, %v1751_v21 }
 0x4b6   :  { %v1859_v33 = vunpack.c.l.b16 %v1801_v19 }
 0x4b9   :  { %v1670_v7 = vpop.xlane.xlu1 %1669 }
 0x4ba   :  { %8028 = vrcp.f32 %v1670_v7  ;;  %v1763_v26 = vand.u32 2147483648, %v1670_v7  ;;  %v1761_v45 = vand.u32 2147483647, %v1670_v7  ;;  %vm1757_vm6 = vweird.f32 %v1670_v7 }
 0x4bc   :  { %v1764_v47 = vor.u32 1.1754944e-38, %v1763_v26  ;;  %vm1762_vm2 = vcmp.eq.f32.partialorder %v1761_v45, 8.507059e+37 }
 0x4c0   :  { %v8029_v39 = vpop.eup %8028 }
 0x4c1   :  { %v1753_v41 = vmul.f32 %v8029_v39, %v1670_v7  ;;  %vm1758_vm3 = vweird.f32 %v8029_v39 }
 0x4c2   :  { %vm1759_vm13 = vmor %vm1757_vm6, %vm1758_vm3 }
 0x4c3   :  { %v1754_v43 = vsub.f32 1.0, %v1753_v41  ;;  %vm11845_vm3 = vmmov %vm11842_vm14 }
 0x4c4   :  { %vm11846_vm6 = vmmov %vm11845_vm3 }
 0x4c5   :  { %v1755_v44 = vmul.f32 %v8029_v39, %v1754_v43  ;;  %v8519_v43 = vmov 16.0  }
 0x4c6   :  { %8030 = vrcp.f32 %v8519_v43 }
 0x4c7   :  { %v1756_v46 = vadd.f32 %v8029_v39, %v1755_v44 }
 0x4c9   :  { %v1760_v55 = vsel %vm1759_vm13, %v8029_v39, %v1756_v46 }
 0x4ca   :  { %v1765_v23 = vsel %vm1762_vm2, %v1764_v47, %v1760_v55  ;;  %vm11847_vm2 = vmmov %vm11845_vm3 }
 0x4cb   :  { %v1766_v48 = vmul.f32 %v9423_v36, %v1765_v23 }
 0x4cc   :  { %v8031_v44 = vpop.eup %8030 }
 0x4cd   :  { %v1802_v50 = vpack.c.bf16 %v1766_v48, %v1766_v48  ;;  %v2020_v47 = vmul.f32 16.0, %v8031_v44  ;;  %vm2024_vm13 = vweird.f32 %v8031_v44 }
 0x4cf   :  { %v1860_v51 = vunpack.c.l.b16 %v1802_v50  ;;  %v2021_v19 = vsub.f32 1.0, %v2020_v47 }
 0x4d1   :  { %v1861_v54 = vpack.c.b16 %v1860_v51, %v1859_v33 }
 0x4d3   :  { %6802 = vmatmul.msk.bf16.vlgmr.msrb.gmra.mxu0 %vm11839_vm8, %v1861_v54  ;;  %v2022_v54 = vmul.f32 %v8031_v44, %v2021_v19  ;;  %vm11848_vm8 = vmmov %vm11847_vm2 }
 0x503   :  { %v1852_v1 = vpop.f32.mrf.mxu3 }
 0x504   :  { %v1911_v3 = vpack.c.bf16 %v1852_v1, %v1852_v1  ;;  %v1826_v14 = vpop.f32.mrf.mxu2 }
 0x505   :  { %v1909_v24 = vpack.c.bf16 %v1826_v14, %v1826_v14 }
 0x506   :  { %v1924_v25 = vunpack.c.l.b16 %v1911_v3 }
 0x507   :  { %v1919_v31 = vunpack.c.l.b16 %v1909_v24 }
 0x50b   :  { %v1854_v52 = vpop.f32.mrf.mxu3 }
 0x50c   :  { %v1912_v15 = vpack.c.bf16 %v1854_v52, %v1854_v52  ;;  %v1828_v13 = vpop.f32.mrf.mxu2  ;;  %v2023_v52 = vadd.f32 %v8031_v44, %v2022_v54 }
 0x50d   :  { %v1910_v20 = vpack.c.bf16 %v1828_v13, %v1828_v13 }
 0x50e   :  { %v1925_v29 = vunpack.c.l.b16 %v1912_v15 }
 0x50f   :  { %v1920_v28 = vunpack.c.l.b16 %v1910_v20 }
 0x510   :  { %v1926_v61 = vpack.c.b16 %v1925_v29, %v1924_v25 }
 0x511   :  { %v1921_v34 = vpack.c.b16 %v1920_v28, %v1919_v31 }
 0x512   :  { %1927 = vrot.lane.b32.xlu0 %v1926_v61, %s8518_s19 }
 0x513   :  { %v1904_v62 = vpop.f32.mrf.mxu1 }
 0x514   :  { %v1915_v22 = vpack.c.bf16 %v1904_v62, %v1904_v62  ;;  %v9468_v62 = vsel %vm2024_vm13, %v8031_v44, %v2023_v52  ;;  %v6816_v44 = vld [vmem:[#allocation16 + $0x28] sm:$0xf] }
 0x516   :  { %v1939_v2 = vunpack.c.l.b16 %v1915_v22 }
 0x51b   :  { %v1906_v0 = vpop.f32.mrf.mxu1 }
 0x51c   :  { %v1916_v36 = vpack.c.bf16 %v1906_v0, %v1906_v0 }
 0x51e   :  { %v1940_v4 = vunpack.c.l.b16 %v1916_v36 }
 0x520   :  { %v1941_v5 = vpack.c.b16 %v1940_v4, %v1939_v2 }
 0x522   :  { %1942 = vrot.lane.b32.xlu2 %v1941_v5, %s8518_s19  ;;  %v2121_v5 = vld [vmem:[#allocation16 + $0x48] sm:$0x33]  ;;  %s8527_s19 = smov 48  }
 0x523   :  { %v2135_v8 = vunpack.c.l.b16 %v2121_v5  ;;  %v2136_v9 = vunpack.c.h.b16 %v2121_v5 }
 0x525   :  { %v2141_v13 = vpack.c.b16 %v2135_v8, %v2135_v8  ;;  %v2142_v20 = vpack.c.b16 %v2136_v9, %v2136_v9 }
 0x527   :  { %v2154_v31 = vsel %vm11840_vm10, %v2141_v13, 0  ;;  %v6844_v13 = vld [vmem:[#allocation16 + $0x10] sm:$0xf] }
 0x528   :  { %2164 = vmatpush.bf16.msra.mxu3 %v2154_v31 }
 0x550   :  { %v1878_v27 = vpop.f32.mrf.mxu0 }
 0x551   :  { %v1913_v16 = vpack.c.bf16 %v1878_v27, %v1878_v27 }
 0x553   :  { %v1934_v38 = vunpack.c.l.b16 %v1913_v16  ;;  %v6824_v16 = vld [vmem:[#allocation16 + $0x38] sm:$0xf] }
 0x558   :  { %v1880_v18 = vpop.f32.mrf.mxu0 }
 0x559   :  { %v1914_v7 = vpack.c.bf16 %v1880_v18, %v1880_v18 }
 0x55b   :  { %v1935_v32 = vunpack.c.l.b16 %v1914_v7 }
 0x55d   :  { %v1936_v40 = vpack.c.b16 %v1935_v32, %v1934_v38  ;;  %v7785_v32 = vld [vmem:[#allocation16 + $0x3c] sm:$0xf0]  ;;  %v7784_v38 = vld [vmem:[#allocation16 + $0x3c] sm:$0xf] }
 0x57c   :  { %v1943_v39 = vpop.permute.xlu2 %1942 }
 0x57d   :  { %v1946_v41 = vsel %vm11843_vm0, %v1936_v40, %v1943_v39  ;;  %vm11851_vm0 = vmmov %vm11847_vm2  ;;  %v6825_v40 = vor.u32 %v7785_v32, %v6824_v16  ;;  %v7778_v16 = vld [vmem:[#allocation16 + $0x4] sm:$0xf] }
 0x57f   :  { %2165 = vmatpush.bf16.msra.mxu3 %v6825_v40  ;;  %v2279_v40 = vld [vmem:[#allocation16 + $0x70] sm:$0x33] }
 0x584   :  { %v1928_v35 = vpop.permute.xlu0 %1927 }
 0x585   :  { %v1931_v10 = vsel %vm11841_vm11, %v1921_v34, %v1928_v35  ;;  %vm11849_vm11 = vmmov %vm11840_vm10 }
 0x586   :  { %6812 = vmatmul.msk.bf16.vlgmr.msrb.gmra.mxu2 %vm11842_vm14, %v1931_v10  ;;  %v2157_v34 = vsel %vm11849_vm11, %v2142_v20, 0  ;;  %vm11850_vm14 = vmmov %vm11847_vm2  ;;  %v7781_v20 = vld [vmem:[#allocation16 + $0x14] sm:$0xf0] }
 0x587   :  { %2183 = vmatpush.bf16.msra.mxu0 %v2157_v34 }
 0x596   :  { %6813 = vmatmul.msk.bf16.gmra.mxu2 %vm11844_vm15, %v1946_v41  ;;  %v6826_v41 = vld [vmem:[#allocation16 + $0x40] sm:$0xf0]  ;;  %vm11852_vm15 = vmmov %vm11851_vm0 }
 0x597   :  { %v6829_v43 = vor.u32 %v7784_v38, %v6826_v41 }
 0x599   :  { %2184 = vmatpush.bf16.msra.mxu0 %v6829_v43  ;;  %v2293_v43 = vunpack.c.l.b16 %v2279_v40 }
 0x609   :  { %v1987_v42 = vpop.f32.mrf.mxu2 }
 0x60a   :  { %v1988_v26 = vadd.f32 %v7997_v60, %v1987_v42 }
 0x60c   :  { %v1997_v46 = vmax.f32 %v1988_v26, 0.0 }
 0x60e   :  { %v2001_v23 = vsel %vm11845_vm3, %v1997_v46, 0.0  ;;  %vm11853_vm3 = vmmov %vm11851_vm0 }
 0x611   :  { %v1989_v45 = vpop.f32.mrf.mxu2 }
 0x612   :  { %v1990_v21 = vadd.f32 %v7997_v60, %v1989_v45  ;;  %v7783_v45 = vld [vmem:[#allocation16 + $0x2c] sm:$0xf0] }
 0x613   :  { %v6817_v47 = vor.u32 %v7783_v45, %v6816_v44  ;;  %v2299_v45 = vpack.c.b16 %v2293_v43, %v2293_v43 }
 0x614   :  { %v1998_v55 = vmax.f32 %v1990_v21, 0.0 }
 0x615   :  { %2166 = vmatpush.bf16.msra.mxu3 %v6817_v47  ;;  %v7789_v47 = vld [vmem:[#allocation16 + $0x64] sm:$0xf0] }
 0x616   :  { %v2002_v48 = vsel %vm11846_vm6, %v1998_v55, 0.0  ;;  %vm11854_vm6 = vmmov %vm11840_vm10 }
 0x617   :  { %v2003_v50 = vadd.f32 %v2002_v48, %v2001_v23  ;;  %vm11855_vm13 = vmmov %vm11854_vm6 }
 0x619   :  { %v2004_v33 = vrot.slane %v2003_v50, 4  ;;  %v1992_v51 = vpop.f32.mrf.mxu2 }
 0x61a   :  { %v1993_v15 = vadd.f32 %v7997_v60, %v1992_v51 }
 0x61b   :  { %v2005_v1 = vadd.f32 %v2004_v33, %v2003_v50 }
 0x61c   :  { %v1999_v22 = vmax.f32 %v1993_v15, 0.0 }
 0x61d   :  { %v2006_v3 = vrot.slane %v2005_v1, 2 }
 0x61e   :  { %v2010_v6 = vsel %vm11847_vm2, %v1999_v22, 0.0  ;;  %vm11856_vm2 = vmmov %vm11854_vm6 }
 0x61f   :  { %v2007_v25 = vadd.f32 %v2006_v3, %v2005_v1 }
 0x621   :  { %v2008_v29 = vrot.slane %v2007_v25, 1  ;;  %v1994_v61 = vpop.f32.mrf.mxu2 }
 0x622   :  { %v1995_v0 = vadd.f32 %v7997_v60, %v1994_v61 }
 0x623   :  { %v2009_v36 = vadd.f32 %v2008_v29, %v2007_v25  ;;  %v2113_v25 = vld [vmem:[#allocation16 + $0x20] sm:$0x33] }
 0x624   :  { %v2000_v2 = vmax.f32 %v1995_v0, 0.0  ;;  %v2210_v61 = vunpack.c.l.b16 %v2113_v25  ;;  %v2211_v0 = vunpack.c.h.b16 %v2113_v25  ;;  %v7787_v25 = vld [vmem:[#allocation16 + $0x54] sm:$0xf0] }
 0x625   :  { %v2026_v4 = vmul.f32 %v9468_v62, %v2009_v36 }
 0x626   :  { %v2011_v57 = vsel %vm11848_vm8, %v2000_v2, 0.0  ;;  %vm11857_vm8 = vmmov %vm11856_vm2 }
 0x627   :  { %v9473_v11 = vsub.f32 %v1997_v46, %v2026_v4  ;;  %v9475_v17 = vsub.f32 %v1998_v55, %v2026_v4  ;;  %v2012_v14 = vadd.f32 %v2011_v57, %v2010_v6  ;;  %v7782_v46 = vld [vmem:[#allocation16 + $0x2c] sm:$0xf]  ;;  %v6818_v55 = vld [vmem:[#allocation16 + $0x30] sm:$0xf0]  ;;  %v2217_v6 = vpack.c.b16 %v2211_v0, %v2211_v0  ;;  %v6858_v0 = vld [vmem:[#allocation16 + $0x58] sm:$0xf0] }
 0x628   :  { %v6821_v48 = vor.u32 %v7782_v46, %v6818_v55  ;;  %v7788_v55 = vld [vmem:[#allocation16 + $0x64] sm:$0xf] }
 0x629   :  { %v2032_v24 = vmul.f32 %v9473_v11, %v9473_v11  ;;  %v2033_v27 = vmul.f32 %v9475_v17, %v9475_v17  ;;  %v2013_v28 = vrot.slane %v2012_v14, 4  ;;  %v2232_v9 = vsel %vm11855_vm13, %v2217_v6, 0 }
 0x62a   :  { %2185 = vmatpush.bf16.msra.mxu0 %v6821_v48  ;;  %2258 = vmatpush.bf16.msra.mxu2 %v2232_v9  ;;  %v6866_v48 = vld [vmem:[#allocation16 + $0x68] sm:$0xf0] }
 0x62b   :  { %v2036_v35 = vsel %vm11850_vm14, %v2032_v24, 0.0  ;;  %v2037_v10 = vsel %vm11851_vm0, %v2033_v27, 0.0  ;;  %v2014_v18 = vadd.f32 %v2013_v28, %v2012_v14  ;;  %v7780_v24 = vld [vmem:[#allocation16 + $0x14] sm:$0xf]  ;;  %v6845_v27 = vor.u32 %v7781_v20, %v6844_v13  ;;  %v6846_v28 = vld [vmem:[#allocation16 + $0x18] sm:$0xf0] }
 0x62c   :  { %v2038_v7 = vadd.f32 %v2037_v10, %v2036_v35  ;;  %v6849_v34 = vor.u32 %v7780_v24, %v6846_v28 }
 0x62d   :  { %v2015_v39 = vrot.slane %v2014_v18, 2 }
 0x62e   :  { %v2039_v42 = vrot.slane %v2038_v7, 4  ;;  %2259 = vmatpush.bf16.msra.mxu2 %v6849_v34 }
 0x62f   :  { %v2016_v60 = vadd.f32 %v2015_v39, %v2014_v18  ;;  %v6836_v18 = vld [vmem:[#allocation16] sm:$0xf]  ;;  %v6838_v39 = vld [vmem:[#allocation16 + $0x8] sm:$0xf0] }
 0x630   :  { %v2040_v26 = vadd.f32 %v2039_v42, %v2038_v7  ;;  %v7779_v7 = vld [vmem:[#allocation16 + $0x4] sm:$0xf0]  ;;  %v6841_v42 = vor.u32 %v7778_v16, %v6838_v39 }
 0x631   :  { %v2017_v21 = vrot.slane %v2016_v60, 1  ;;  %v6837_v38 = vor.u32 %v7779_v7, %v6836_v18 }
 0x632   :  { %v2041_v23 = vrot.slane %v2040_v26, 2  ;;  %2260 = vmatpush.bf16.msra.mxu2 %v6841_v42 }
 0x633   :  { %v2018_v19 = vadd.f32 %v2017_v21, %v2016_v60  ;;  %v2294_v60 = vunpack.c.h.b16 %v2279_v40  ;;  %v6864_v21 = vld [vmem:[#allocation16 + $0x60] sm:$0xf] }
 0x634   :  { %v2042_v50 = vadd.f32 %v2041_v23, %v2040_v26 }
 0x635   :  { %v2027_v33 = vmul.f32 %v9468_v62, %v2018_v19  ;;  %v2300_v46 = vpack.c.b16 %v2294_v60, %v2294_v60 }
 0x636   :  { %v2043_v51 = vrot.slane %v2042_v50, 1 }
 0x637   :  { %v9486_v54 = vsub.f32 %v1999_v22, %v2027_v33  ;;  %v9488_v1 = vsub.f32 %v2000_v2, %v2027_v33  ;;  %v2216_v2 = vpack.c.b16 %v2210_v61, %v2210_v61  ;;  %v2315_v33 = vsel %vm11857_vm8, %v2300_v46, 0  ;;  %v7786_v61 = vld [vmem:[#allocation16 + $0x54] sm:$0xf]  ;;  %vm11860_vm8 = vmmov %vm11851_vm0 }
 0x638   :  { %v2044_v3 = vadd.f32 %v2043_v51, %v2042_v50  ;;  %v2312_v50 = vsel %vm11856_vm2, %v2299_v45, 0  ;;  %2341 = vmatpush.bf16.msrb.mxu0 %v2315_v33  ;;  %vm11859_vm2 = vcmp.lt.s32.totalorder %v8836_v58, 1  ;;  %v6958_v33 = vld [vmem:[%s11768_s15 + $0x138] sm:$0xf0] }
 0x639   :  { %v2034_v52 = vmul.f32 %v9486_v54, %v9486_v54  ;;  %v2035_v15 = vmul.f32 %v9488_v1, %v9488_v1  ;;  %v2229_v8 = vsel %vm11854_vm6, %v2216_v2, 0  ;;  %2322 = vmatpush.bf16.msrb.mxu3 %v2312_v50  ;;  %v6861_v2 = vor.u32 %v7786_v61, %v6858_v0  ;;  %v6940_v0 = vld [vmem:[%s11768_s15 + $0x110] sm:$0xf] }
 0x63a   :  { %v2054_v29 = vmul.f32 %v2044_v3, %v9468_v62  ;;  %2239 = vmatpush.bf16.msra.mxu1 %v2229_v8  ;;  %v6865_v3 = vor.u32 %v7789_v47, %v6864_v21 }
 0x63b   :  { %v2045_v36 = vsel %vm11852_vm15, %v2034_v52, 0.0  ;;  %v2046_v4 = vsel %vm11853_vm3, %v2035_v15, 0.0  ;;  %v6869_v52 = vor.u32 %v7788_v55, %v6866_v48  ;;  %v6856_v15 = vld [vmem:[#allocation16 + $0x50] sm:$0xf]  ;;  %vm11858_vm15 = vmmov %vm11851_vm0  ;;  %v7829_v48 = vld [vmem:[%s11768_s15 + $0x134] sm:$0xf0] }
 0x63c   :  { %v2056_v22 = vadd.f32 1e-05, %v2054_v29  ;;  %v2047_v5 = vadd.f32 %v2046_v4, %v2045_v36 }
 0x63d   :  { %2323 = vmatpush.bf16.msrb.mxu3 %v6865_v3  ;;  %2342 = vmatpush.bf16.msrb.mxu0 %v6869_v52  ;;  %v6948_v3 = vld [vmem:[%s11768_s15 + $0x120] sm:$0xf]  ;;  %v7827_v52 = vld [vmem:[%s11768_s15 + $0x124] sm:$0xf0] }
 0x63e   :  { %8032 = vrsqrt.f32 %v2056_v22  ;;  %v2048_v57 = vrot.slane %v2047_v5, 4  ;;  %2240 = vmatpush.bf16.msra.mxu1 %v6845_v27  ;;  %vm2064_vm11 = vweird.f32 %v2056_v22 }
 0x640   :  { %v2049_v14 = vadd.f32 %v2048_v57, %v2047_v5  ;;  %v6857_v5 = vor.u32 %v7787_v25, %v6856_v15  ;;  %v7826_v15 = vld [vmem:[%s11768_s15 + $0x124] sm:$0xf]  ;;  %v6949_v25 = vor.u32 %v7827_v52, %v6948_v3  ;;  %v6966_v52 = vld [vmem:[%s11768_s15 + $0x148] sm:$0xf0] }
 0x641   :  { %2343 = vmatpush.bf16.msrb.mxu0 %v6861_v2  ;;  %v6942_v2 = vld [vmem:[%s11768_s15 + $0x118] sm:$0xf0] }
 0x642   :  { %v2050_v31 = vrot.slane %v2049_v14, 2  ;;  %2241 = vmatpush.bf16.msra.mxu1 %v6837_v38  ;;  %2324 = vmatpush.bf16.msrb.mxu3 %v6857_v5  ;;  %v7824_v5 = vld [vmem:[%s11768_s15 + $0x114] sm:$0xf] }
 0x644   :  { %v8033_v35 = vpop.eup %8032  ;;  %v2051_v10 = vadd.f32 %v2050_v31, %v2049_v14 }
 0x645   :  { %v2059_v32 = vmul.f32 %v8033_v35, %v2056_v22  ;;  %vm2065_vm10 = vweird.f32 %v8033_v35 }
 0x646   :  { %v2052_v41 = vrot.slane %v2051_v10, 1  ;;  %vm2066_vm14 = vmor %vm2064_vm11, %vm2065_vm10 }
 0x647   :  { %v2060_v26 = vmul.f32 %v8033_v35, %v2059_v32  ;;  %vm11861_vm10 = vmmov %vm11851_vm0 }
 0x648   :  { %v2053_v44 = vadd.f32 %v2052_v41, %v2051_v10  ;;  %vm11862_vm11 = vmmov %vm11859_vm2 }
 0x649   :  { %v2061_v23 = vmul.f32 0.5, %v2060_v26 }
 0x64a   :  { %v2055_v19 = vmul.f32 %v2053_v44, %v9468_v62 }
 0x64b   :  { %v2062_v51 = vsub.f32 1.5, %v2061_v23  ;;  %v6956_v23 = vld [vmem:[%s11768_s15 + $0x130] sm:$0xf] }
 0x64c   :  { %v2057_v29 = vadd.f32 1e-05, %v2055_v19  ;;  %v7828_v19 = vld [vmem:[%s11768_s15 + $0x134] sm:$0xf]  ;;  %v6957_v50 = vor.u32 %v7829_v48, %v6956_v23  ;;  %v6918_v48 = vld [vmem:[%s11768_s15 + $0xe8] sm:$0xf0] }
 0x64d   :  { %v2063_v36 = vmul.f32 %v8033_v35, %v2062_v51  ;;  %v6961_v51 = vor.u32 %v7828_v19, %v6958_v33  ;;  %v7831_v33 = vld [vmem:[%s11768_s15 + $0x144] sm:$0xf0] }
 0x64e   :  { %8034 = vrsqrt.f32 %v2057_v29  ;;  %vm2074_vm6 = vweird.f32 %v2057_v29  ;;  %2616 = vmatpush.bf16.msrb.mxu1 %v6957_v50  ;;  %v6964_v50 = vld [vmem:[%s11768_s15 + $0x140] sm:$0xf] }
 0x64f   :  { %v2067_v4 = vsel %vm2066_vm14, %v8033_v35, %v2063_v36  ;;  %vm11863_vm14 = vmmov %vm11851_vm0  ;;  %v7825_v36 = vld [vmem:[%s11768_s15 + $0x114] sm:$0xf0]  ;;  %v6965_v3 = vor.u32 %v7831_v33, %v6964_v50  ;;  %v7032_v33 = vld [vmem:[%s11768_s15 + $0x40] sm:$0xf] }
 0x650   :  { %v2078_v6 = vmul.f32 %v2067_v4, %v9473_v11  ;;  %v2079_v57 = vmul.f32 %v2067_v4, %v9475_v17  ;;  %v6941_v4 = vor.u32 %v7825_v36, %v6940_v0  ;;  %v7816_v0 = vld [vmem:[%s11768_s15 + $0xd4] sm:$0xf] }
 0x652   :  { %v2114_v8 = vpack.c.bf16 %v2079_v57, %v2078_v6  ;;  %v2083_v28 = vrot.slane %v2078_v6, 7  ;;  %v2084_v31 = vrot.slane %v2079_v57, 7  ;;  %v2096_v16 = vrot.slane %v2079_v57, 1  ;;  %2617 = vmatpush.bf16.msrb.mxu1 %v6949_v25 }
 0x653   :  { %v2095_v39 = vrot.slane %v2078_v6, 1  ;;  %v6945_v57 = vor.u32 %v7824_v5, %v6942_v2 }
 0x654   :  { %v8035_v9 = vpop.eup %8034  ;;  %6830 = vmatmul.msk.bf16.vlgmr.msra.gmra.mxu3 %vm11851_vm0, %v2114_v8  ;;  %6832 = vmatmul.msk.bf16.vlgmr.msra.gmra.mxu0 %vm11858_vm15, %v2114_v8  ;;  %v2089_v18 = vsel %vm11862_vm11, %v2083_v28, %v2084_v31  ;;  %vm11864_vm15 = vcmp.lt.s32.totalorder %v8836_v58, 7  ;;  %vm11871_vm11 = vmmov %vm11851_vm0  ;;  %v6988_v8 = vld [vmem:[%s11768_s15 + $0x170] sm:$0xf] }
 0x655   :  { %v2069_v14 = vmul.f32 %v8035_v9, %v2057_v29  ;;  %vm2075_vm3 = vweird.f32 %v8035_v9  ;;  %2654 = vmatpush.bf16.msra.mxu3 %v6961_v51  ;;  %v6950_v29 = vld [vmem:[%s11768_s15 + $0x128] sm:$0xf0]  ;;  %v7830_v51 = vld [vmem:[%s11768_s15 + $0x144] sm:$0xf] }
 0x656   :  { %vm2076_vm13 = vmor %vm2074_vm6, %vm2075_vm3  ;;  %v6953_v61 = vor.u32 %v7826_v15, %v6950_v29  ;;  %2618 = vmatpush.bf16.msrb.mxu1 %v6941_v4  ;;  %v6969_v25 = vor.u32 %v7830_v51, %v6966_v52  ;;  %v6908_v29 = vld [vmem:[%s11768_s15 + $0xd0] sm:$0xf]  ;;  %v6910_v4 = vld [vmem:[%s11768_s15 + $0xd8] sm:$0xf0] }
 0x657   :  { %v2070_v22 = vmul.f32 %v8035_v9, %v2069_v14  ;;  %vm11865_vm3 = vmmov %vm11859_vm2  ;;  %v7836_v14 = vld [vmem:[%s11768_s15 + $0x174] sm:$0xf]  ;;  %v6913_v2 = vor.u32 %v7816_v0, %v6910_v4  ;;  %v7799_v51 = vld [vmem:[%s11768_s15 + $0x44] sm:$0xf0] }
 0x658   :  { %vm11866_vm6 = vmmov %vm11864_vm15  ;;  %v7080_v0 = vld [vmem:[%s11768_s15 + $0xa0] sm:$0xf] }
 0x659   :  { %v2071_v13 = vmul.f32 0.5, %v2070_v22  ;;  %v2101_v42 = vsel %vm11866_vm6, %v2095_v39, %v2096_v16  ;;  %2655 = vmatpush.bf16.msra.mxu3 %v6953_v61  ;;  %v7817_v61 = vld [vmem:[%s11768_s15 + $0xd4] sm:$0xf0] }
 0x65a   :  { %v6909_v36 = vor.u32 %v7817_v61, %v6908_v29  ;;  %v7034_v29 = vld [vmem:[%s11768_s15 + $0x48] sm:$0xf0] }
 0x65b   :  { %v2072_v20 = vsub.f32 1.5, %v2071_v13  ;;  %v6990_v13 = vld [vmem:[%s11768_s15 + $0x178] sm:$0xf0] }
 0x65d   :  { %v2073_v24 = vmul.f32 %v8035_v9, %v2072_v20  ;;  %2656 = vmatpush.bf16.msra.mxu3 %v6945_v57  ;;  %v6993_v20 = vor.u32 %v7836_v14, %v6990_v13  ;;  %v6900_v57 = vld [vmem:[%s11768_s15 + $0xc0] sm:$0xf] }
 0x65f   :  { %v2077_v27 = vsel %vm2076_vm13, %v8035_v9, %v2073_v24  ;;  %vm11867_vm13 = vmmov %vm11859_vm2  ;;  %v7837_v9 = vld [vmem:[%s11768_s15 + $0x174] sm:$0xf0]  ;;  %v6932_v24 = vld [vmem:[%s11768_s15 + $0x100] sm:$0xf]  ;;  %2677 = vmatpush.bf16.msra.mxu0 %v6993_v20 }
 0x660   :  { %v2080_v11 = vmul.f32 %v2077_v27, %v9486_v54  ;;  %v2081_v17 = vmul.f32 %v2077_v27, %v9488_v1  ;;  %v6989_v22 = vor.u32 %v7837_v9, %v6988_v8  ;;  %v7823_v27 = vld [vmem:[%s11768_s15 + $0x104] sm:$0xf0]  ;;  %v7814_v9 = vld [vmem:[%s11768_s15 + $0xc4] sm:$0xf] }
 0x661   :  { %v7815_v8 = vld [vmem:[%s11768_s15 + $0xc4] sm:$0xf0] }
 0x662   :  { %v2086_v34 = vrot.slane %v2081_v17, 7  ;;  %v2115_v35 = vpack.c.bf16 %v2081_v17, %v2080_v11  ;;  %v2097_v1 = vrot.slane %v2080_v11, 1  ;;  %v2085_v32 = vrot.slane %v2080_v11, 7  ;;  %v7822_v11 = vld [vmem:[%s11768_s15 + $0x104] sm:$0xf]  ;;  %2639 = vmatpush.bf16.msrb.mxu2 %v6989_v22 }
 0x663   :  { %v2098_v45 = vrot.slane %v2081_v17, 1  ;;  %v6933_v17 = vor.u32 %v7823_v27, %v6932_v24  ;;  %v6901_v14 = vor.u32 %v7815_v8, %v6900_v57  ;;  %v6902_v22 = vld [vmem:[%s11768_s15 + $0xc8] sm:$0xf0]  ;;  %v7056_v24 = vld [vmem:[%s11768_s15 + $0x70] sm:$0xf] }
 0x664   :  { %v2090_v10 = vsel %vm11859_vm2, %v2086_v34, %v2083_v28  ;;  %6831 = vmatmul.msk.bf16.gmra.mxu3 %vm11860_vm8, %v2115_v35  ;;  %6833 = vmatmul.msk.bf16.gmra.mxu0 %vm11861_vm10, %v2115_v35  ;;  %v2100_v38 = vsel %vm11864_vm15, %v2096_v16, %v2097_v1  ;;  %v2088_v41 = vsel %vm11865_vm3, %v2084_v31, %v2085_v32  ;;  %vm11868_vm2 = vmmov %vm11851_vm0  ;;  %v6934_v28 = vld [vmem:[%s11768_s15 + $0x108] sm:$0xf0]  ;;  %v7835_v35 = vld [vmem:[%s11768_s15 + $0x164] sm:$0xf0] }
 0x665   :  { %v2091_v7 = vsel %vm8921_vm1, 0.0, %v2090_v10  ;;  %v2104_v40 = vsel %vm9076_vm9, 0.0, %v2100_v38  ;;  %v2087_v60 = vsel %vm11867_vm13, %v2085_v32, %v2086_v34  ;;  %v2093_v26 = vsel %vm8998_vm5, 0.0, %v2088_v41  ;;  %vm11869_vm8 = vmmov %vm11851_vm0  ;;  %v6980_v34 = vld [vmem:[%s11768_s15 + $0x160] sm:$0xf]  ;;  %2619 = vmatpush.bf16.msrb.mxu1 %v6933_v17 }
 0x666   :  { %v2107_v54 = vpack.c.bf16 %v2089_v18, %v2091_v7  ;;  %v2272_v43 = vpack.c.bf16 %v2104_v40, %v2101_v42  ;;  %v2108_v44 = vpack.c.bf16 %v2087_v60, %v2093_v26  ;;  %vm11870_vm10 = vmmov %vm11851_vm0  ;;  %v6937_v31 = vor.u32 %v7822_v11, %v6934_v28  ;;  %v7834_v10 = vld [vmem:[%s11768_s15 + $0x164] sm:$0xf]  ;;  %v6982_v7 = vld [vmem:[%s11768_s15 + $0x168] sm:$0xf0] }
 0x667   :  { %vm11874_vm15 = vmmov %vm11868_vm2  ;;  %v6981_v18 = vor.u32 %v7835_v35, %v6980_v34  ;;  %v6924_v16 = vld [vmem:[%s11768_s15 + $0xf0] sm:$0xf]  ;;  %v7821_v32 = vld [vmem:[%s11768_s15 + $0xf4] sm:$0xf0]  ;;  %v6905_v13 = vor.u32 %v7814_v9, %v6902_v22 }
 0x668   :  { %6850 = vmatmul.msk.bf16.vlgmr.msra.gmra.mxu1 %vm11863_vm14, %v2107_v54  ;;  %6852 = vmatmul.msk.bf16.vlgmr.msra.gmra.mxu2 %vm11851_vm0, %v2107_v54  ;;  %vm11872_vm14 = vmmov %vm11866_vm6  ;;  %v7820_v38 = vld [vmem:[%s11768_s15 + $0xf4] sm:$0xf]  ;;  %v6926_v40 = vld [vmem:[%s11768_s15 + $0xf8] sm:$0xf0] }
 0x669   :  { %v2102_v46 = vsel %vm11872_vm14, %v2098_v45, %v2095_v39  ;;  %vm11873_vm0 = vmmov %vm11866_vm6  ;;  %2657 = vmatpush.bf16.msra.mxu3 %v6937_v31  ;;  %2640 = vmatpush.bf16.msrb.mxu2 %v6981_v18  ;;  %v6925_v39 = vor.u32 %v7821_v32, %v6924_v16  ;;  %v6929_v42 = vor.u32 %v7820_v38, %v6926_v40  ;;  %v7833_v60 = vld [vmem:[%s11768_s15 + $0x154] sm:$0xf0]  ;;  %v7832_v26 = vld [vmem:[%s11768_s15 + $0x154] sm:$0xf]  ;;  %vm11876_vm6 = vcmask 523264  }
 0x66a   :  { %v2099_v21 = vsel %vm11873_vm0, %v2097_v1, %v2098_v45  ;;  %v2106_v47 = vsel %vm9097_vm12, 0.0, %v2102_v46  ;;  %vm11875_vm3 = vmmov %vm11868_vm2  ;;  %v6985_v1 = vor.u32 %v7834_v10, %v6982_v7  ;;  %v6974_v45 = vld [vmem:[%s11768_s15 + $0x158] sm:$0xf0]  ;;  %v7805_v27 = vld [vmem:[%s11768_s15 + $0x74] sm:$0xf0] }
 0x66b   :  { %v2273_v55 = vpack.c.bf16 %v2106_v47, %v2099_v21  ;;  %2620 = vmatpush.bf16.msrb.mxu1 %v6925_v39  ;;  %v6977_v46 = vor.u32 %v7832_v26, %v6974_v45  ;;  %v6916_v21 = vld [vmem:[%s11768_s15 + $0xe0] sm:$0xf]  ;;  %v7819_v47 = vld [vmem:[%s11768_s15 + $0xe4] sm:$0xf0]  ;;  %v7804_v11 = vld [vmem:[%s11768_s15 + $0x74] sm:$0xf]  ;;  %v7057_v17 = vor.u32 %v7805_v27, %v7056_v24 }
 0x66c   :  { %2678 = vmatpush.bf16.msra.mxu0 %v6985_v1  ;;  %v6917_v23 = vor.u32 %v7819_v47, %v6916_v21  ;;  %v7058_v28 = vld [vmem:[%s11768_s15 + $0x78] sm:$0xf0]  ;;  %v7048_v10 = vld [vmem:[%s11768_s15 + $0x60] sm:$0xf]  ;;  %v7803_v18 = vld [vmem:[%s11768_s15 + $0x64] sm:$0xf0] }
 0x66d   :  { %2658 = vmatpush.bf16.msra.mxu3 %v6929_v42  ;;  %v7061_v34 = vor.u32 %v7804_v11, %v7058_v28  ;;  %v7802_v7 = vld [vmem:[%s11768_s15 + $0x64] sm:$0xf]  ;;  %v7049_v1 = vor.u32 %v7803_v18, %v7048_v10  ;;  %v7050_v16 = vld [vmem:[%s11768_s15 + $0x68] sm:$0xf0]  ;;  %v7040_v40 = vld [vmem:[%s11768_s15 + $0x50] sm:$0xf] }
 0x66e   :  { %v7053_v38 = vor.u32 %v7802_v7, %v7050_v16  ;;  %v7801_v42 = vld [vmem:[%s11768_s15 + $0x54] sm:$0xf0]  ;;  %v7042_v26 = vld [vmem:[%s11768_s15 + $0x58] sm:$0xf0]  ;;  %v7812_v47 = vld [vmem:[%s11768_s15 + $0xb4] sm:$0xf] }
 0x66f   :  { %2621 = vmatpush.bf16.msrb.mxu1 %v6917_v23  ;;  %v7813_v21 = vld [vmem:[%s11768_s15 + $0xb4] sm:$0xf0]  ;;  %v7082_v8 = vld [vmem:[%s11768_s15 + $0xa8] sm:$0xf0]  ;;  %v7796_v27 = vld [vmem:[%s11768_s15 + $0x34] sm:$0xf] }
 0x670   :  { %2679 = vmatpush.bf16.msra.mxu0 %v6977_v46  ;;  %v7088_v46 = vld [vmem:[%s11768_s15 + $0xb0] sm:$0xf]  ;;  %v7797_v24 = vld [vmem:[%s11768_s15 + $0x34] sm:$0xf0]  ;;  %v7026_v28 = vld [vmem:[%s11768_s15 + $0x38] sm:$0xf0] }
 0x671   :  { %v7072_v10 = vld [vmem:[%s11768_s15 + $0x90] sm:$0xf]  ;;  %v7809_v18 = vld [vmem:[%s11768_s15 + $0x94] sm:$0xf0]  ;;  %vm11877_vm13 = vmmov %vm11876_vm6 }
 0x673   :  { %2622 = vmatpush.bf16.msrb.mxu1 %v6909_v36  ;;  %v7811_v36 = vld [vmem:[%s11768_s15 + $0xa4] sm:$0xf0] }
 0x674   :  { %6870 = vmatmul.msk.bf16.vlgmr.msrb.gmra.mxu3 %vm11868_vm2, %v2272_v43  ;;  %6872 = vmatmul.msk.bf16.vlgmr.msrb.gmra.mxu0 %vm11869_vm8, %v2272_v43  ;;  %v6972_v43 = vld [vmem:[%s11768_s15 + $0x150] sm:$0xf]  ;;  %v7081_v57 = vor.u32 %v7811_v36, %v7080_v0  ;;  %vm11878_vm2 = vmmov %vm11876_vm6 }
 0x675   :  { %2680 = vmatpush.bf16.msra.mxu0 %v6969_v25  ;;  %v7033_v25 = vor.u32 %v7799_v51, %v7032_v33  ;;  %v7066_v33 = vld [vmem:[%s11768_s15 + $0x88] sm:$0xf0]  ;;  %v7793_v51 = vld [vmem:[%s11768_s15 + $0x14] sm:$0xf0]  ;;  %vm11879_vm8 = vmmov %vm11878_vm2 }
 0x676   :  { %vm11884_vm0 = vmmov %vm11878_vm2 }
 0x677   :  { %2623 = vmatpush.bf16.msrb.mxu1 %v6901_v14 }
 0x678   :  { %6851 = vmatmul.msk.bf16.gmra.mxu1 %vm11870_vm10, %v2108_v44  ;;  %6853 = vmatmul.msk.bf16.gmra.mxu2 %vm11871_vm11, %v2108_v44  ;;  %v6973_v44 = vor.u32 %v7833_v60, %v6972_v43  ;;  %v7800_v43 = vld [vmem:[%s11768_s15 + $0x54] sm:$0xf]  ;;  %v7041_v60 = vor.u32 %v7801_v42, %v7040_v40  ;;  %v7074_v40 = vld [vmem:[%s11768_s15 + $0x98] sm:$0xf0]  ;;  %v7016_v42 = vld [vmem:[%s11768_s15 + $0x20] sm:$0xf] }
 0x679   :  { %v7045_v45 = vor.u32 %v7800_v43, %v7042_v26  ;;  %v7795_v43 = vld [vmem:[%s11768_s15 + $0x24] sm:$0xf0]  ;;  %v7794_v26 = vld [vmem:[%s11768_s15 + $0x24] sm:$0xf]  ;;  %vm11880_vm10 = vcmp.lt.s32.totalorder %v8836_v58, 1  ;;  %vm11882_vm11 = vmmov %vm11878_vm2 }
 0x67a   :  { %2641 = vmatpush.bf16.msrb.mxu2 %v6973_v44 }
 0x67b   :  { %2818 = vmatpush.bf16.msra.mxu1 %v7057_v17 }
 0x67e   :  { %2642 = vmatpush.bf16.msrb.mxu2 %v6965_v3  ;;  %v7798_v3 = vld [vmem:[%s11768_s15 + $0x44] sm:$0xf] }
 0x67f   :  { %2819 = vmatpush.bf16.msra.mxu1 %v7049_v1  ;;  %v7037_v61 = vor.u32 %v7798_v3, %v7034_v29 }
 0x683   :  { %2820 = vmatpush.bf16.msra.mxu1 %v7041_v60 }
 0x684   :  { %6871 = vmatmul.msk.bf16.gmra.mxu3 %vm11874_vm15, %v2273_v55  ;;  %6873 = vmatmul.msk.bf16.gmra.mxu0 %vm11875_vm3, %v2273_v55  ;;  %v7818_v55 = vld [vmem:[%s11768_s15 + $0xe4] sm:$0xf] }
 0x685   :  { %v6921_v19 = vor.u32 %v7818_v55, %v6918_v48  ;;  %v2082_v55 = vld [vmem:[%s11767_s14] sm:$0x3]  ;;  %v7089_v48 = vor.u32 %v7813_v21, %v7088_v46  ;;  %s8523_s14 = smov 56  }
 0x686   :  { %v9822_v21 = vperm.slane %v2082_v55, 0 }
 0x687   :  { %2659 = vmatpush.bf16.msra.mxu3 %v6921_v19  ;;  %v7090_v19 = vld [vmem:[%s11768_s15 + $0xb8] sm:$0xf0]  ;;  %2841 = vmatpush.bf16.msra.mxu2 %v7089_v48  ;;  %v7807_v48 = vld [vmem:[%s11768_s15 + $0x84] sm:$0xf0] }
 0x688   :  { %v7093_v50 = vor.u32 %v7812_v47, %v7090_v19  ;;  %2821 = vmatpush.bf16.msra.mxu1 %v7033_v25  ;;  %v7806_v19 = vld [vmem:[%s11768_s15 + $0x84] sm:$0xf] }
 0x689   :  { %v7069_v29 = vor.u32 %v7806_v19, %v7066_v33 }
 0x68a   :  { %2879 = vmatpush.bf16.msrb.mxu0 %v7093_v50 }
 0x68b   :  { %2660 = vmatpush.bf16.msra.mxu3 %v6913_v2  ;;  %v9775_v2 = vperm.slane %v2082_v55, 1  ;;  %2842 = vmatpush.bf16.msra.mxu2 %v7081_v57  ;;  %v7008_v55 = vld [vmem:[%s11768_s15 + $0x10] sm:$0xf] }
 0x68c   :  { %v7009_v36 = vor.u32 %v7793_v51, %v7008_v55  ;;  %v7180_v55 = vld [vmem:[%s11768_s15 + $0x1d0] sm:$0xf]  ;;  %v7849_v51 = vld [vmem:[%s11768_s15 + $0x1d4] sm:$0xf0] }
 0x68f   :  { %2661 = vmatpush.bf16.msra.mxu3 %v6905_v13  ;;  %v7024_v13 = vld [vmem:[%s11768_s15 + $0x30] sm:$0xf] }
 0x690   :  { %v7025_v17 = vor.u32 %v7797_v24, %v7024_v13  ;;  %v7000_v13 = vld [vmem:[%s11768_s15] sm:$0xf]  ;;  %v7791_v24 = vld [vmem:[%s11768_s15 + $0x4] sm:$0xf0] }
 0x692   :  { %2822 = vmatpush.bf16.msra.mxu1 %v7025_v17 }
 0x693   :  { %2856 = vmatpush.bf16.msrb.mxu3 %v7061_v34 }
 0x697   :  { %2857 = vmatpush.bf16.msrb.mxu3 %v7053_v38  ;;  %v7073_v38 = vor.u32 %v7809_v18, %v7072_v10 }
 0x699   :  { %2843 = vmatpush.bf16.msra.mxu2 %v7073_v38  ;;  %v7852_v38 = vld [vmem:[%s11768_s15 + $0x1f4] sm:$0xf] }
 0x69b   :  { %2858 = vmatpush.bf16.msrb.mxu3 %v7045_v45  ;;  %v7064_v45 = vld [vmem:[%s11768_s15 + $0x80] sm:$0xf] }
 0x69c   :  { %v7065_v50 = vor.u32 %v7807_v48, %v7064_v45 }
 0x69e   :  { %2844 = vmatpush.bf16.msra.mxu2 %v7065_v50 }
 0x69f   :  { %2859 = vmatpush.bf16.msrb.mxu3 %v7037_v61  ;;  %v7792_v61 = vld [vmem:[%s11768_s15 + $0x14] sm:$0xf] }
 0x6d1   :  { %v9578_v6 = vpop.f32.mrf.mxu0 }
 0x6d7   :  { %v9616_v54 = vpop.f32.mrf.mxu3 }
 0x6d9   :  { %v9630_v41 = vpop.f32.mrf.mxu0 }
 0x6df   :  { %v9668_v15 = vpop.f32.mrf.mxu3 }
 0x6e1   :  { %v9682_v5 = vpop.f32.mrf.mxu0 }
 0x6e5   :  { %v2243_v32 = vpop.f32.mrf.mxu1 }
 0x6e6   :  { %v2244_v7 = vadd.f32 %v2243_v32, %v9616_v54  ;;  %v7017_v32 = vor.u32 %v7795_v43, %v7016_v42  ;;  %v7198_v42 = vld [vmem:[%s11768_s15 + $0x1f8] sm:$0xf0]  ;;  %v7188_v43 = vld [vmem:[%s11768_s15 + $0x1e0] sm:$0xf] }
 0x6e7   :  { %v9696_v20 = vpop.f32.mrf.mxu3 }
 0x6e8   :  { %2823 = vmatpush.bf16.msra.mxu1 %v7017_v32  ;;  %v7201_v32 = vor.u32 %v7852_v38, %v7198_v42 }
 0x6e9   :  { %v9710_v31 = vpop.f32.mrf.mxu0 }
 0x6eb   :  { %v2262_v35 = vpop.f32.mrf.mxu2 }
 0x6ec   :  { %v2263_v52 = vadd.f32 %v2262_v35, %v9578_v6  ;;  %v7810_v6 = vld [vmem:[%s11768_s15 + $0xa4] sm:$0xf]  ;;  %v7029_v35 = vor.u32 %v7796_v27, %v7026_v28  ;;  %2824 = vmatpush.bf16.msra.mxu1 %v7009_v36  ;;  %v7181_v36 = vor.u32 %v7849_v51, %v7180_v55 }
 0x6ed   :  { %v2245_v9 = vpop.f32.mrf.mxu1  ;;  %v7085_v22 = vor.u32 %v7810_v6, %v7082_v8  ;;  %v7010_v6 = vld [vmem:[%s11768_s15 + $0x18] sm:$0xf0]  ;;  %v7790_v27 = vld [vmem:[%s11768_s15 + $0x4] sm:$0xf] }
 0x6ee   :  { %2860 = vmatpush.bf16.msrb.mxu3 %v7029_v35  ;;  %v2246_v3 = vadd.f32 %v2245_v9, %v9668_v15  ;;  %v7002_v35 = vld [vmem:[%s11768_s15 + $0x8] sm:$0xf0] }
 0x6ef   :  { %v9724_v39 = vpop.f32.mrf.mxu3  ;;  %2880 = vmatpush.bf16.msrb.mxu0 %v7085_v22  ;;  %v7005_v18 = vor.u32 %v7790_v27, %v7002_v35 }
 0x6f1   :  { %v2345_v44 = vpop.f32.mrf.mxu0 }
 0x6f2   :  { %v2356_v4 = vadd.f32 %v2345_v44, %v2263_v52  ;;  %v7018_v44 = vld [vmem:[%s11768_s15 + $0x28] sm:$0xf0] }
 0x6f3   :  { %v2264_v23 = vpop.f32.mrf.mxu2 }
 0x6f4   :  { %v2265_v11 = vadd.f32 %v2264_v23, %v9630_v41  ;;  %v7808_v41 = vld [vmem:[%s11768_s15 + $0x94] sm:$0xf]  ;;  %v2369_v1 = vadd.f32 %v9775_v2, %v2356_v4  ;;  %v7021_v23 = vor.u32 %v7794_v26, %v7018_v44  ;;  %v7851_v26 = vld [vmem:[%s11768_s15 + $0x1e4] sm:$0xf0]  ;;  %v7190_v44 = vld [vmem:[%s11768_s15 + $0x1e8] sm:$0xf0] }
 0x6f5   :  { %v7077_v54 = vor.u32 %v7808_v41, %v7074_v40  ;;  %v2248_v8 = vpop.f32.mrf.mxu1  ;;  %v7189_v48 = vor.u32 %v7851_v26, %v7188_v43  ;;  %v7845_v26 = vld [vmem:[%s11768_s15 + $0x1b4] sm:$0xf0] }
 0x6f6   :  { %v9841_v52 = vmax.f32 %v2369_v1, 0.0  ;;  %2861 = vmatpush.bf16.msrb.mxu3 %v7021_v23  ;;  %v2249_v45 = vadd.f32 %v2248_v8, %v9696_v20  ;;  %v7848_v20 = vld [vmem:[%s11768_s15 + $0x1d4] sm:$0xf]  ;;  %v7228_v8 = vld [vmem:[%s11768_s15 + $0x230] sm:$0xf] }
 0x6f7   :  { %v2326_v14 = vpop.f32.mrf.mxu3  ;;  %2881 = vmatpush.bf16.msrb.mxu0 %v7077_v54 }
 0x6f8   :  { %v2355_v46 = vadd.f32 %v2326_v14, %v2244_v7  ;;  %v7013_v14 = vor.u32 %v7792_v61, %v7010_v6 }
 0x6f9   :  { %v2347_v34 = vpop.f32.mrf.mxu0 }
 0x6fa   :  { %v2358_v16 = vadd.f32 %v2347_v34, %v2265_v11  ;;  %v2368_v4 = vadd.f32 %v9822_v21, %v2355_v46  ;;  %2862 = vmatpush.bf16.msrb.mxu3 %v7013_v14  ;;  %v7001_v34 = vor.u32 %v7791_v24, %v7000_v13  ;;  %v2386_v13 = vrot.slane %v9841_v52, 7 }
 0x6fb   :  { %v2267_v60 = vpop.f32.mrf.mxu2  ;;  %2882 = vmatpush.bf16.msrb.mxu0 %v7069_v29 }
 0x6fc   :  { %v2371_v47 = vadd.f32 %v9775_v2, %v2358_v16  ;;  %v9866_v11 = vmax.f32 %v2368_v4, 0.0  ;;  %v2268_v17 = vadd.f32 %v2267_v60, %v9682_v5  ;;  %2825 = vmatpush.bf16.msra.mxu1 %v7001_v34  ;;  %v7196_v5 = vld [vmem:[%s11768_s15 + $0x1f0] sm:$0xf]  ;;  %v7853_v16 = vld [vmem:[%s11768_s15 + $0x1f4] sm:$0xf0] }
 0x6fd   :  { %v7197_v54 = vor.u32 %v7853_v16, %v7196_v5  ;;  %v2250_v23 = vpop.f32.mrf.mxu1  ;;  %v7859_v5 = vld [vmem:[%s11768_s15 + $0x224] sm:$0xf0]  ;;  %v7858_v16 = vld [vmem:[%s11768_s15 + $0x224] sm:$0xf] }
 0x6fe   :  { %v9843_v25 = vmax.f32 %v2371_v47, 0.0  ;;  %2863 = vmatpush.bf16.msrb.mxu3 %v7005_v18  ;;  %v2251_v29 = vadd.f32 %v2250_v23, %v9724_v39  ;;  %v7861_v39 = vld [vmem:[%s11768_s15 + $0x234] sm:$0xf0]  ;;  %v7846_v18 = vld [vmem:[%s11768_s15 + $0x1c4] sm:$0xf]  ;;  %v2409_v30 = vrot.slane %v9866_v11, 1 }
 0x6ff   :  { %v2328_v0 = vpop.f32.mrf.mxu3  ;;  %v7229_v24 = vor.u32 %v7861_v39, %v7228_v8  ;;  %v7841_v8 = vld [vmem:[%s11768_s15 + $0x194] sm:$0xf0] }
 0x700   :  { %v2462_v15 = vpack.c.bf16 %v9843_v25, %v9841_v52  ;;  %v2357_v57 = vadd.f32 %v2328_v0, %v2246_v3  ;;  %v7182_v3 = vld [vmem:[%s11768_s15 + $0x1d8] sm:$0xf0]  ;;  %v2388_v38 = vrot.slane %v9843_v25, 7 }
 0x701   :  { %v2350_v9 = vpop.f32.mrf.mxu0 }
 0x702   :  { %v2370_v22 = vadd.f32 %v9822_v21, %v2357_v57  ;;  %6994 = vmatmul.msk.bf16.vlgmr.msrb.gmra.mxu2 %vm11876_vm6, %v2462_v15  ;;  %6996 = vmatmul.msk.bf16.vlgmr.msra.gmra.mxu0 %vm11877_vm13, %v2462_v15  ;;  %v2360_v7 = vadd.f32 %v2350_v9, %v2268_v17  ;;  %v7185_v57 = vor.u32 %v7848_v20, %v7182_v3  ;;  %v7860_v9 = vld [vmem:[%s11768_s15 + $0x234] sm:$0xf]  ;;  %v7172_v17 = vld [vmem:[%s11768_s15 + $0x1c0] sm:$0xf]  ;;  %v7843_v20 = vld [vmem:[%s11768_s15 + $0x1a4] sm:$0xf0] }
 0x703   :  { %v2269_v10 = vpop.f32.mrf.mxu2  ;;  %3072 = vmatpush.bf16.msrb.mxu2 %v7229_v24  ;;  %v7842_v3 = vld [vmem:[%s11768_s15 + $0x1a4] sm:$0xf]  ;;  %v7840_v24 = vld [vmem:[%s11768_s15 + $0x194] sm:$0xf]  ;;  %vm11888_vm13 = vmmov %vm11884_vm0 }
 0x704   :  { %v9869_v28 = vmax.f32 %v2370_v22, 0.0  ;;  %v2270_v40 = vadd.f32 %v2269_v10, %v9710_v31  ;;  %v7850_v31 = vld [vmem:[%s11768_s15 + $0x1e4] sm:$0xf]  ;;  %v2373_v46 = vadd.f32 %v9775_v2, %v2360_v7  ;;  %v7230_v22 = vld [vmem:[%s11768_s15 + $0x238] sm:$0xf0] }
 0x705   :  { %v7193_v19 = vor.u32 %v7850_v31, %v7190_v44  ;;  %v7233_v27 = vor.u32 %v7860_v9, %v7230_v22  ;;  %v7844_v31 = vld [vmem:[%s11768_s15 + $0x1b4] sm:$0xf] }
 0x706   :  { %v2461_v41 = vpack.c.bf16 %v9869_v28, %v9866_v11  ;;  %v9917_v61 = vmax.f32 %v2373_v46, 0.0  ;;  %v7212_v46 = vld [vmem:[%s11768_s15 + $0x210] sm:$0xf] }
 0x707   :  { %v2331_v1 = vpop.f32.mrf.mxu3  ;;  %3110 = vmatpush.bf16.msra.mxu0 %v7233_v27  ;;  %v7150_v27 = vld [vmem:[%s11768_s15 + $0x198] sm:$0xf0] }
 0x708   :  { %2624 = vmatmul.bf16.vlgmr.msrb.gmra.mxu1 %v2461_v41  ;;  %2662 = vmatmul.bf16.vlgmr.msra.gmra.mxu3 %v2461_v41  ;;  %v2359_v50 = vadd.f32 %v2331_v1, %v2249_v45  ;;  %v7174_v41 = vld [vmem:[%s11768_s15 + $0x1c8] sm:$0xf0]  ;;  %v7220_v1 = vld [vmem:[%s11768_s15 + $0x220] sm:$0xf]  ;;  %v7166_v45 = vld [vmem:[%s11768_s15 + $0x1b8] sm:$0xf0] }
 0x709   :  { %v2352_v60 = vpop.f32.mrf.mxu0  ;;  %3049 = vmatpush.bf16.msrb.mxu1 %v7197_v54  ;;  %3087 = vmatpush.bf16.msra.mxu3 %v7201_v32  ;;  %v7177_v7 = vor.u32 %v7846_v18, %v7174_v41  ;;  %v7221_v43 = vor.u32 %v7859_v5, %v7220_v1  ;;  %v7164_v32 = vld [vmem:[%s11768_s15 + $0x1b0] sm:$0xf]  ;;  %v7169_v23 = vor.u32 %v7844_v31, %v7166_v45  ;;  %v2385_v18 = vrot.slane %v9866_v11, 7  ;;  %v7839_v5 = vld [vmem:[%s11768_s15 + $0x184] sm:$0xf0] }
 0x70a   :  { %v2362_v47 = vadd.f32 %v2352_v60, %v2270_v40  ;;  %v2372_v6 = vadd.f32 %v9822_v21, %v2359_v50  ;;  %v7222_v60 = vld [vmem:[%s11768_s15 + $0x228] sm:$0xf0]  ;;  %v7165_v44 = vor.u32 %v7845_v26, %v7164_v32  ;;  %v7156_v50 = vld [vmem:[%s11768_s15 + $0x1a0] sm:$0xf]  ;;  %v2387_v41 = vrot.slane %v9869_v28, 7 }
 0x70b   :  { %v7225_v54 = vor.u32 %v7858_v16, %v7222_v60  ;;  %3073 = vmatpush.bf16.msrb.mxu2 %v7221_v43  ;;  %v7838_v16 = vld [vmem:[%s11768_s15 + $0x184] sm:$0xf]  ;;  %v7142_v43 = vld [vmem:[%s11768_s15 + $0x188] sm:$0xf0]  ;;  %v2390_v26 = vrot.slane %v9917_v61, 7 }
 0x70c   :  { %v2375_v33 = vadd.f32 %v9775_v2, %v2362_v47  ;;  %v9946_v34 = vmax.f32 %v2372_v6, 0.0  ;;  %v7857_v47 = vld [vmem:[%s11768_s15 + $0x214] sm:$0xf0]  ;;  %v7855_v6 = vld [vmem:[%s11768_s15 + $0x204] sm:$0xf0] }
 0x70d   :  { %3050 = vmatpush.bf16.msrb.mxu1 %v7189_v48  ;;  %3088 = vmatpush.bf16.msra.mxu3 %v7193_v19  ;;  %v7856_v48 = vld [vmem:[%s11768_s15 + $0x214] sm:$0xf]  ;;  %v7214_v19 = vld [vmem:[%s11768_s15 + $0x218] sm:$0xf0]  ;;  %v7213_v55 = vor.u32 %v7857_v47, %v7212_v46 }
 0x70e   :  { %v9919_v2 = vmax.f32 %v2375_v33, 0.0  ;;  %3111 = vmatpush.bf16.msra.mxu0 %v7225_v54  ;;  %v7217_v51 = vor.u32 %v7856_v48, %v7214_v19  ;;  %v7145_v54 = vor.u32 %v7838_v16, %v7142_v43  ;;  %v2389_v47 = vrot.slane %v9946_v34, 7  ;;  %v7875_v16 = vld [vmem:[%s11770_s17 + $0x64] sm:$0xf0] }
 0x70f   :  { %v2333_v0 = vpop.f32.mrf.mxu3  ;;  %3074 = vmatpush.bf16.msrb.mxu2 %v7213_v55  ;;  %v2410_v19 = vrot.slane %v9841_v52, 1  ;;  %v2411_v55 = vrot.slane %v9869_v28, 1 }
 0x710   :  { %v2361_v4 = vadd.f32 %v2333_v0, %v2251_v29  ;;  %v2464_v15 = vpack.c.bf16 %v9919_v2, %v9917_v61  ;;  %v2392_v40 = vrot.slane %v9919_v2, 7  ;;  %v7158_v29 = vld [vmem:[%s11768_s15 + $0x1a8] sm:$0xf0]  ;;  %v7157_v0 = vor.u32 %v7843_v20, %v7156_v50 }
 0x711   :  { %3051 = vmatpush.bf16.msrb.mxu1 %v7181_v36  ;;  %3089 = vmatpush.bf16.msra.mxu3 %v7185_v57  ;;  %v7204_v36 = vld [vmem:[%s11768_s15 + $0x200] sm:$0xf]  ;;  %v7148_v57 = vld [vmem:[%s11768_s15 + $0x190] sm:$0xf]  ;;  %v7161_v9 = vor.u32 %v7842_v3, %v7158_v29  ;;  %v2416_v20 = vrot.slane %v9919_v2, 1 }
 0x712   :  { %v2374_v14 = vadd.f32 %v9822_v21, %v2361_v4  ;;  %6995 = vmatmul.msk.bf16.gmra.mxu2 %vm11878_vm2, %v2464_v15  ;;  %6997 = vmatmul.msk.bf16.gmra.mxu0 %vm11879_vm8, %v2464_v15  ;;  %v7847_v21 = vld [vmem:[%s11768_s15 + $0x1c4] sm:$0xf0]  ;;  %v2400_v33 = vsel %vm11880_vm10, %v2392_v40, %v2386_v13  ;;  %v7854_v4 = vld [vmem:[%s11768_s15 + $0x204] sm:$0xf]  ;;  %v7206_v15 = vld [vmem:[%s11768_s15 + $0x208] sm:$0xf0] }
 0x713   :  { %v7173_v10 = vor.u32 %v7847_v21, %v7172_v17  ;;  %v2402_v39 = vsel %vm8921_vm1, 0.0, %v2400_v33  ;;  %3112 = vmatpush.bf16.msra.mxu0 %v7217_v51  ;;  %v7209_v22 = vor.u32 %v7854_v4, %v7206_v15  ;;  %vm11881_vm1 = vmmov %vm11880_vm10  ;;  %v7149_v21 = vor.u32 %v7841_v8, %v7148_v57 }
 0x714   :  { %v9948_v35 = vmax.f32 %v2374_v14, 0.0  ;;  %v7205_v14 = vor.u32 %v7855_v6, %v7204_v36  ;;  %v2398_v37 = vsel %vm11881_vm1, %v2386_v13, %v2388_v38  ;;  %vm11883_vm14 = vmmov %vm11881_vm1  ;;  %v7140_v13 = vld [vmem:[%s11768_s15 + $0x180] sm:$0xf]  ;;  %v2413_v33 = vrot.slane %v9946_v34, 1 }
 0x715   :  { %3052 = vmatpush.bf16.msrb.mxu1 %v7173_v10  ;;  %3090 = vmatpush.bf16.msra.mxu3 %v7177_v7  ;;  %v2434_v10 = vpack.c.bf16 %v2398_v37, %v2402_v39  ;;  %v7153_v7 = vor.u32 %v7840_v24, %v7150_v27  ;;  %vm11885_vm15 = vmmov %vm11881_vm1  ;;  %v7312_v27 = vld [vmem:[%s11770_s17 + $0x70] sm:$0xf]  ;;  %v7877_v37 = vld [vmem:[%s11770_s17 + $0x74] sm:$0xf0] }
 0x716   :  { %v2463_v42 = vpack.c.bf16 %v9948_v35, %v9946_v34  ;;  %v2391_v17 = vrot.slane %v9948_v35, 7  ;;  %3075 = vmatpush.bf16.msrb.mxu2 %v7205_v14  ;;  %v2397_v60 = vsel %vm11885_vm15, %v2385_v18, %v2387_v41  ;;  %vm11886_vm3 = vmmov %vm11881_vm1  ;;  %v2415_v3 = vrot.slane %v9948_v35, 1 }
 0x717   :  { %3113 = vmatpush.bf16.msra.mxu0 %v7209_v22  ;;  %v2396_v31 = vsel %vm11886_vm3, %v2388_v38, %v2390_v26  ;;  %vm11887_vm6 = vmmov %vm11881_vm1 }
 0x718   :  { %2629 = vmatmul.bf16.gmra.mxu1 %v2463_v42  ;;  %2667 = vmatmul.bf16.gmra.mxu3 %v2463_v42  ;;  %v2399_v1 = vsel %vm11883_vm14, %v2391_v17, %v2385_v18  ;;  %v7141_v42 = vor.u32 %v7839_v5, %v7140_v13  ;;  %v2406_v45 = vsel %vm8998_vm5, 0.0, %v2396_v31  ;;  %vm11890_vm2 = vmmov %vm11881_vm1  ;;  %vm11892_vm5 = vcmp.lt.s32.totalorder %v8836_v58, 7  ;;  %v7304_v5 = vld [vmem:[%s11770_s17 + $0x60] sm:$0xf]  ;;  %v7873_v31 = vld [vmem:[%s11770_s17 + $0x54] sm:$0xf0] }
 0x719   :  { %3053 = vmatpush.bf16.msrb.mxu1 %v7165_v44  ;;  %3091 = vmatpush.bf16.msra.mxu3 %v7169_v23  ;;  %v7096_v32 = vpack.c.bf16 %v2397_v60, %v2399_v1  ;;  %v2394_v44 = vsel %vm11887_vm6, %v2390_v26, %v2392_v40  ;;  %v2393_v56 = vsel %vm11890_vm2, %v2389_v47, %v2391_v17  ;;  %vm11891_vm8 = vmmov %vm11881_vm1  ;;  %v2414_v23 = vrot.slane %v9917_v61, 1  ;;  %v7876_v17 = vld [vmem:[%s11770_s17 + $0x74] sm:$0xf]  ;;  %v7306_v60 = vld [vmem:[%s11770_s17 + $0x68] sm:$0xf0] }
 0x71a   :  { %v2436_v46 = vpack.c.bf16 %v2394_v44, %v2406_v45  ;;  %v2395_v38 = vsel %vm11891_vm8, %v2387_v41, %v2389_v47  ;;  %v2412_v40 = vrot.slane %v9843_v25, 1  ;;  %vm11893_vm10 = vmmov %vm11892_vm5  ;;  %vm11905_vm2 = vnez %v11828_v63  ;;  %v7296_v26 = vld [vmem:[%s11770_s17 + $0x50] sm:$0xf]  ;;  %v7872_v44 = vld [vmem:[%s11770_s17 + $0x54] sm:$0xf] }
 0x71b   :  { %v7100_v48 = vpack.c.bf16 %v2393_v56, %v2395_v38  ;;  %vm11894_vm1 = vmmov %vm11884_vm0  ;;  %v7305_v43 = vor.u32 %v7875_v16, %v7304_v5  ;;  %v7297_v45 = vor.u32 %v7873_v31, %v7296_v26  ;;  %v7266_v5 = vld [vmem:[%s11770_s17 + $0x18] sm:$0xf0]  ;;  %v7336_v16 = vld [vmem:[%s11770_s17 + $0xa0] sm:$0xf] }
 0x71c   :  { %v2420_v12 = vsel %vm11892_vm5, %v2412_v40, %v2414_v23  ;;  %v2422_v61 = vsel %vm11893_vm10, %v2410_v19, %v2412_v40  ;;  %vm11897_vm14 = vmmov %vm11892_vm5  ;;  %v7871_v40 = vld [vmem:[%s11770_s17 + $0x44] sm:$0xf0] }
 0x71d   :  { %3054 = vmatpush.bf16.msrb.mxu1 %v7157_v0  ;;  %3092 = vmatpush.bf16.msra.mxu3 %v7161_v9  ;;  %v2428_v50 = vsel %vm9076_vm9, 0.0, %v2420_v12  ;;  %v2421_v49 = vsel %vm11897_vm14, %v2409_v30, %v2411_v55  ;;  %vm11898_vm9 = vnez %v11824_v53  ;;  %vm11901_vm3 = vmmov %vm11894_vm1  ;;  %v7870_v12 = vld [vmem:[%s11770_s17 + $0x44] sm:$0xf] }
 0x71e   :  { %v2895_v25 = vpack.c.bf16 %v2428_v50, %v2422_v61  ;;  %vm11902_vm6 = vmmov %vm11894_vm1  ;;  %v7290_v50 = vld [vmem:[%s11770_s17 + $0x48] sm:$0xf0] }
 0x71f   :  { %vm11907_vm8 = vmmov %vm11894_vm1 }
 0x720   :  { %vm11909_vm10 = vmmov %vm11894_vm1 }
 0x721   :  { %3055 = vmatpush.bf16.msrb.mxu1 %v7149_v21  ;;  %3093 = vmatpush.bf16.msra.mxu3 %v7153_v7  ;;  %v7313_v21 = vor.u32 %v7877_v37, %v7312_v27  ;;  %v7346_v37 = vld [vmem:[%s11770_s17 + $0xb8] sm:$0xf0]  ;;  %vm11912_vm14 = vmmov %vm11894_vm1 }
 0x722   :  { %7102 = vmatmul.msk.bf16.vlgmr.msra.gmra.mxu2 %vm11882_vm11, %v2434_v10  ;;  %7112 = vmatmul.msk.bf16.vlgmr.msrb.gmra.mxu0 %vm11884_vm0, %v2434_v10  ;;  %vm11896_vm11 = vmmov %vm11884_vm0  ;;  %v7314_v10 = vld [vmem:[%s11770_s17 + $0x78] sm:$0xf0] }
 0x723   :  { %v7317_v18 = vor.u32 %v7876_v17, %v7314_v10  ;;  %v7264_v17 = vld [vmem:[%s11770_s17 + $0x10] sm:$0xf] }
 0x725   :  { %3056 = vmatpush.bf16.msrb.mxu1 %v7141_v42  ;;  %3094 = vmatpush.bf16.msra.mxu3 %v7145_v54  ;;  %v7874_v42 = vld [vmem:[%s11770_s17 + $0x64] sm:$0xf] }
 0x728   :  { %7097 = vmatmul.msk.bf16.vlgmr.msra.gmra.mxu1 %vm8962_vm4, %v7096_v32  ;;  %7107 = vmatmul.msk.bf16.vlgmr.msrb.gmra.mxu3 %vm8962_vm4, %v7096_v32  ;;  %vm11889_vm4 = vmmov %vm11884_vm0  ;;  %v7309_v32 = vor.u32 %v7874_v42, %v7306_v60  ;;  %v7882_v60 = vld [vmem:[%s11770_s17 + $0xa4] sm:$0xf] }
 0x729   :  { %vm11899_vm0 = vmmov %vm11892_vm5  ;;  %3306 = vmatpush.bf16.msra.mxu1 %v7313_v21  ;;  %3344 = vmatpush.bf16.msrb.mxu3 %v7317_v18  ;;  %v7865_v21 = vld [vmem:[%s11770_s17 + $0x14] sm:$0xf0] }
 0x72a   :  { %v2424_v11 = vsel %vm11899_vm0, %v2416_v20, %v2410_v19  ;;  %vm11900_vm15 = vmmov %vm11899_vm0  ;;  %v7265_v18 = vor.u32 %v7865_v21, %v7264_v17  ;;  %v7404_v21 = vld [vmem:[#allocation17 + $0x60] sm:$0xf] }
 0x72b   :  { %v2418_v28 = vsel %vm11900_vm15, %v2414_v23, %v2416_v20  ;;  %v2432_v34 = vsel %vm9097_vm12, 0.0, %v2424_v11  ;;  %vm11906_vm12 = vmmov %vm11894_vm1 }
 0x72c   :  { %v2897_v29 = vpack.c.bf16 %v2432_v34, %v2418_v28 }
 0x72d   :  { %3307 = vmatpush.bf16.msra.mxu1 %v7305_v43  ;;  %3345 = vmatpush.bf16.msrb.mxu3 %v7309_v32  ;;  %v7883_v43 = vld [vmem:[%s11770_s17 + $0xa4] sm:$0xf0]  ;;  %v7338_v32 = vld [vmem:[%s11770_s17 + $0xa8] sm:$0xf0] }
 0x72e   :  { %v7337_v26 = vor.u32 %v7883_v43, %v7336_v16  ;;  %v7341_v31 = vor.u32 %v7882_v60, %v7338_v32  ;;  %v7396_v60 = vld [vmem:[#allocation17 + $0x50] sm:$0xf]  ;;  %v7897_v32 = vld [vmem:[#allocation17 + $0x54] sm:$0xf0] }
 0x731   :  { %3308 = vmatpush.bf16.msra.mxu1 %v7297_v45  ;;  %v7256_v45 = vld [vmem:[%s11770_s17] sm:$0xf] }
 0x732   :  { %7103 = vmatmul.msk.bf16.gmra.mxu2 %vm11888_vm13, %v2436_v46  ;;  %7113 = vmatmul.msk.bf16.gmra.mxu0 %vm11889_vm4, %v2436_v46  ;;  %vm11903_vm13 = vmmov %vm11899_vm0  ;;  %v7298_v46 = vld [vmem:[%s11770_s17 + $0x58] sm:$0xf0] }
 0x733   :  { %v2417_v53 = vsel %vm11903_vm13, %v2413_v33, %v2415_v3  ;;  %vm11904_vm4 = vmmov %vm11899_vm0  ;;  %v7301_v47 = vor.u32 %v7872_v44, %v7298_v46  ;;  %v7863_v46 = vld [vmem:[%s11770_s17 + $0x4] sm:$0xf0]  ;;  %vm3888_vm13 = vcmask 64512  }
 0x734   :  { %v2423_v2 = vsel %vm11904_vm4, %v2415_v3, %v2409_v30  ;;  %v7868_v30 = vld [vmem:[%s11770_s17 + $0x34] sm:$0xf]  ;;  %v7272_v3 = vld [vmem:[%s11770_s17 + $0x20] sm:$0xf]  ;;  %vm11914_vm0 = vmmov %vm11894_vm1  ;;  %vm11918_vm4 = vcmask 130048  }
 0x735   :  { %v7240_v0 = vpack.c.bf16 %v2423_v2, %v2417_v53  ;;  %3346 = vmatpush.bf16.msrb.mxu3 %v7301_v47  ;;  %v7866_v53 = vld [vmem:[%s11770_s17 + $0x24] sm:$0xf]  ;;  %vm11915_vm15 = vmmov %vm11914_vm0 }
 0x736   :  { %v7862_v47 = vld [vmem:[%s11770_s17 + $0x4] sm:$0xf] }
 0x738   :  { %7101 = vmatmul.msk.bf16.gmra.mxu1 %vm9039_vm7, %v7100_v48  ;;  %7111 = vmatmul.msk.bf16.gmra.mxu3 %vm9039_vm7, %v7100_v48  ;;  %vm11895_vm7 = vmmov %vm11892_vm5  ;;  %v7288_v48 = vld [vmem:[%s11770_s17 + $0x40] sm:$0xf] }
 0x739   :  { %v2419_v51 = vsel %vm11895_vm7, %v2411_v55, %v2413_v33  ;;  %v7289_v19 = vor.u32 %v7871_v40, %v7288_v48  ;;  %v7293_v33 = vor.u32 %v7870_v12, %v7290_v50  ;;  %v7869_v55 = vld [vmem:[%s11770_s17 + $0x34] sm:$0xf0]  ;;  %v7257_v40 = vor.u32 %v7863_v46, %v7256_v45  ;;  %v7258_v12 = vld [vmem:[%s11770_s17 + $0x8] sm:$0xf0]  ;;  %vm11908_vm5 = vmmov %vm11894_vm1 }
 0x73a   :  { %v7236_v52 = vpack.c.bf16 %v2419_v51, %v2421_v49  ;;  %v7881_v50 = vld [vmem:[%s11770_s17 + $0x94] sm:$0xf0]  ;;  %v7397_v46 = vor.u32 %v7897_v32, %v7396_v60  ;;  %vm11910_vm7 = vmmov %vm11894_vm1 }
 0x73b   :  { %3309 = vmatpush.bf16.msra.mxu1 %v7289_v19  ;;  %3347 = vmatpush.bf16.msrb.mxu3 %v7293_v33  ;;  %v7328_v19 = vld [vmem:[%s11770_s17 + $0x90] sm:$0xf]  ;;  %v7261_v33 = vor.u32 %v7862_v47, %v7258_v12  ;;  %v7398_v47 = vld [vmem:[#allocation17 + $0x58] sm:$0xf0] }
 0x742   :  { %7242 = vmatmul.msk.bf16.vlgmr.msrb.gmra.mxu2 %vm11894_vm1, %v2895_v25  ;;  %7252 = vmatmul.msk.bf16.vlgmr.msra.gmra.mxu0 %vm11896_vm11, %v2895_v25  ;;  %v7280_v25 = vld [vmem:[%s11770_s17 + $0x30] sm:$0xf]  ;;  %vm11911_vm11 = vmmov %vm11894_vm1 }
 0x743   :  { %v7281_v49 = vor.u32 %v7869_v55, %v7280_v25  ;;  %v7329_v25 = vor.u32 %v7881_v50, %v7328_v19  ;;  %v7880_v55 = vld [vmem:[%s11770_s17 + $0x94] sm:$0xf]  ;;  %v2384_v50 = vld [vmem:[%s11769_s16] sm:$0x3] }
 0x745   :  { %3310 = vmatpush.bf16.msra.mxu1 %v7281_v49  ;;  %v7412_v49 = vld [vmem:[#allocation17 + $0x70] sm:$0xf] }
 0x748   :  { %7237 = vmatmul.msk.bf16.vlgmr.msrb.gmra.mxu1 %vm11898_vm9, %v7236_v52  ;;  %7247 = vmatmul.msk.bf16.vlgmr.msra.gmra.mxu3 %vm11898_vm9, %v7236_v52  ;;  %v7282_v52 = vld [vmem:[%s11770_s17 + $0x38] sm:$0xf0]  ;;  %vm11913_vm9 = vmmov %vm11894_vm1 }
 0x749   :  { %v7285_v20 = vor.u32 %v7868_v30, %v7282_v52  ;;  %v7330_v30 = vld [vmem:[%s11770_s17 + $0x98] sm:$0xf0] }
 0x74b   :  { %3348 = vmatpush.bf16.msrb.mxu3 %v7285_v20 }
 0x752   :  { %7243 = vmatmul.msk.bf16.gmra.mxu2 %vm11901_vm3, %v2897_v29  ;;  %7253 = vmatmul.msk.bf16.gmra.mxu0 %vm11902_vm6, %v2897_v29  ;;  %v7867_v29 = vld [vmem:[%s11770_s17 + $0x24] sm:$0xf0]  ;;  %vm11916_vm3 = vmmov %vm11914_vm0  ;;  %vm4081_vm6 = vcmask 195584  }
 0x753   :  { %v7273_v2 = vor.u32 %v7867_v29, %v7272_v3  ;;  %v7333_v3 = vor.u32 %v7880_v55, %v7330_v30  ;;  %v7901_v29 = vld [vmem:[#allocation17 + $0x74] sm:$0xf0]  ;;  %v7388_v55 = vld [vmem:[#allocation17 + $0x40] sm:$0xf]  ;;  %v7895_v30 = vld [vmem:[#allocation17 + $0x44] sm:$0xf0] }
 0x755   :  { %3311 = vmatpush.bf16.msra.mxu1 %v7273_v2  ;;  %v7414_v2 = vld [vmem:[#allocation17 + $0x78] sm:$0xf0] }
 0x758   :  { %7241 = vmatmul.msk.bf16.gmra.mxu1 %vm11905_vm2, %v7240_v0  ;;  %7251 = vmatmul.msk.bf16.gmra.mxu3 %vm11905_vm2, %v7240_v0  ;;  %v7274_v0 = vld [vmem:[%s11770_s17 + $0x28] sm:$0xf0]  ;;  %vm11919_vm2 = vmmov %vm11918_vm4 }
 0x759   :  { %3312 = vmatpush.bf16.msra.mxu1 %v7265_v18  ;;  %v7898_v18 = vld [vmem:[#allocation17 + $0x64] sm:$0xf] }
 0x75d   :  { %3313 = vmatpush.bf16.msra.mxu1 %v7257_v40 }
 0x77f   :  { %v2682_v59 = vpop.f32.mrf.mxu0 }
 0x785   :  { %v2625_v35 = vpop.f32.mrf.mxu1  ;;  %v2644_v36 = vpop.f32.mrf.mxu2 }
 0x786   :  { %v10133_v6 = vadd.f32 %v2644_v36, %v2625_v35  ;;  %v7344_v36 = vld [vmem:[%s11770_s17 + $0xb0] sm:$0xf] }
 0x787   :  { %v10135_v4 = vpop.f32.mrf.mxu0 }
 0x78b   :  { %v2663_v15 = vpop.f32.mrf.mxu3 }
 0x78c   :  { %v10137_v57 = vadd.f32 %v2682_v59, %v2663_v15  ;;  %v7277_v59 = vor.u32 %v7866_v53, %v7274_v0  ;;  %v7885_v15 = vld [vmem:[%s11770_s17 + $0xb4] sm:$0xf0]  ;;  %v7900_v53 = vld [vmem:[#allocation17 + $0x74] sm:$0xf]  ;;  %v7413_v0 = vor.u32 %v7901_v29, %v7412_v49  ;;  %v7894_v49 = vld [vmem:[#allocation17 + $0x44] sm:$0xf]  ;;  %v7389_v29 = vor.u32 %v7895_v30, %v7388_v55 }
 0x78d   :  { %v10139_v8 = vpop.f32.mrf.mxu1  ;;  %v10141_v58 = vpop.f32.mrf.mxu2  ;;  %v7345_v27 = vor.u32 %v7885_v15, %v7344_v36  ;;  %v7320_v36 = vld [vmem:[%s11770_s17 + $0x80] sm:$0xf]  ;;  %v7879_v15 = vld [vmem:[%s11770_s17 + $0x84] sm:$0xf0]  ;;  %v7889_v55 = vld [vmem:[#allocation17 + $0x14] sm:$0xf0] }
 0x78e   :  { %3349 = vmatpush.bf16.msrb.mxu3 %v7277_v59  ;;  %v7417_v59 = vor.u32 %v7900_v53, %v7414_v2  ;;  %3532 = vmatpush.bf16.msrb.mxu1 %v7413_v0  ;;  %v2647_v12 = vadd.f32 %v10141_v58, %v10139_v8  ;;  %v7390_v53 = vld [vmem:[#allocation17 + $0x48] sm:$0xf0]  ;;  %v7380_v2 = vld [vmem:[#allocation17 + $0x30] sm:$0xf]  ;;  %v7893_v8 = vld [vmem:[#allocation17 + $0x34] sm:$0xf0] }
 0x78f   :  { %v2687_v39 = vpop.f32.mrf.mxu0  ;;  %3329 = vmatpush.bf16.msra.mxu2 %v7345_v27  ;;  %v7321_v27 = vor.u32 %v7879_v15, %v7320_v36  ;;  %v7382_v0 = vld [vmem:[#allocation17 + $0x38] sm:$0xf0]  ;;  %v10346_v36 = vperm.slane %v2384_v50, 0 }
 0x793   :  { %v10143_v9 = vpop.f32.mrf.mxu3  ;;  %3330 = vmatpush.bf16.msra.mxu2 %v7337_v26  ;;  %v7896_v26 = vld [vmem:[#allocation17 + $0x54] sm:$0xf] }
 0x794   :  { %v7401_v40 = vor.u32 %v7896_v26, %v7398_v47  ;;  %v7890_v26 = vld [vmem:[#allocation17 + $0x24] sm:$0xf] }
 0x795   :  { %v2630_v14 = vpop.f32.mrf.mxu1  ;;  %v2649_v63 = vpop.f32.mrf.mxu2 }
 0x796   :  { %v10145_v22 = vadd.f32 %v2649_v63, %v2630_v14 }
 0x797   :  { %v10147_v24 = vpop.f32.mrf.mxu0  ;;  %3331 = vmatpush.bf16.msra.mxu2 %v7329_v25 }
 0x79b   :  { %v2668_v41 = vpop.f32.mrf.mxu3  ;;  %3332 = vmatpush.bf16.msra.mxu2 %v7321_v27  ;;  %v7381_v27 = vor.u32 %v7893_v8, %v7380_v2  ;;  %v7905_v2 = vld [vmem:[#allocation17 + $0x94] sm:$0xf0] }
 0x79c   :  { %v10161_v7 = vadd.f32 %v2687_v39, %v2668_v41  ;;  %v7884_v39 = vld [vmem:[%s11770_s17 + $0xb4] sm:$0xf] }
 0x79d   :  { %v10163_v1 = vpop.f32.mrf.mxu1  ;;  %v10165_v13 = vpop.f32.mrf.mxu2  ;;  %v7349_v10 = vor.u32 %v7884_v39, %v7346_v37  ;;  %v7864_v41 = vld [vmem:[%s11770_s17 + $0x14] sm:$0xf]  ;;  %v7878_v39 = vld [vmem:[%s11770_s17 + $0x84] sm:$0xf]  ;;  %v7322_v37 = vld [vmem:[%s11770_s17 + $0x88] sm:$0xf0] }
 0x79e   :  { %v7269_v42 = vor.u32 %v7864_v41, %v7266_v5  ;;  %v7325_v17 = vor.u32 %v7878_v39, %v7322_v37  ;;  %v7406_v5 = vld [vmem:[#allocation17 + $0x68] sm:$0xf0]  ;;  %v7372_v37 = vld [vmem:[#allocation17 + $0x20] sm:$0xf]  ;;  %s8534_s17 = smov 256  }
 0x79f   :  { %v10179_v54 = vpop.f32.mrf.mxu0  ;;  %3367 = vmatpush.bf16.msrb.mxu0 %v7349_v10  ;;  %v7899_v10 = vld [vmem:[#allocation17 + $0x64] sm:$0xf0]  ;;  %v7409_v16 = vor.u32 %v7898_v18, %v7406_v5  ;;  %v7909_v5 = vld [vmem:[#allocation17 + $0xb4] sm:$0xf0] }
 0x7a0   :  { %3350 = vmatpush.bf16.msrb.mxu3 %v7269_v42  ;;  %v7405_v41 = vor.u32 %v7899_v10, %v7404_v21 }
 0x7a2   :  { %3533 = vmatpush.bf16.msrb.mxu1 %v7405_v41  ;;  %v7444_v41 = vld [vmem:[#allocation17 + $0xb0] sm:$0xf] }
 0x7a3   :  { %v10193_v56 = vpop.f32.mrf.mxu3  ;;  %3368 = vmatpush.bf16.msrb.mxu0 %v7341_v31 }
 0x7a4   :  { %3351 = vmatpush.bf16.msrb.mxu3 %v7261_v33 }
 0x7a5   :  { %v10195_v38 = vpop.f32.mrf.mxu1  ;;  %v10197_v23 = vpop.f32.mrf.mxu2 }
 0x7a6   :  { %v2828_v19 = vadd.f32 %v10195_v38, %v10133_v6  ;;  %3534 = vmatpush.bf16.msrb.mxu1 %v7397_v46  ;;  %v7393_v6 = vor.u32 %v7894_v49, %v7390_v53  ;;  %v7892_v38 = vld [vmem:[#allocation17 + $0x34] sm:$0xf]  ;;  %v7436_v46 = vld [vmem:[#allocation17 + $0xa0] sm:$0xf]  ;;  %v7428_v53 = vld [vmem:[#allocation17 + $0x90] sm:$0xf] }
 0x7a7   :  { %v10211_v61 = vpop.f32.mrf.mxu0  ;;  %3369 = vmatpush.bf16.msrb.mxu0 %v7333_v3  ;;  %v7385_v18 = vor.u32 %v7892_v38, %v7382_v0  ;;  %v7366_v38 = vld [vmem:[#allocation17 + $0x18] sm:$0xf0]  ;;  %v7904_v0 = vld [vmem:[#allocation17 + $0x94] sm:$0xf] }
 0x7a8   :  { %3570 = vmatpush.bf16.msra.mxu3 %v7417_v59  ;;  %v2847_v58 = vadd.f32 %v10197_v23, %v2828_v19  ;;  %v2685_v59 = vadd.f32 %v10135_v4, %v10143_v9  ;;  %v7908_v4 = vld [vmem:[#allocation17 + $0xb4] sm:$0xf]  ;;  %v7438_v19 = vld [vmem:[#allocation17 + $0xa8] sm:$0xf0] }
 0x7aa   :  { %3535 = vmatpush.bf16.msrb.mxu1 %v7389_v29 }
 0x7ab   :  { %v10222_v51 = vpop.f32.mrf.mxu3  ;;  %3370 = vmatpush.bf16.msrb.mxu0 %v7325_v17  ;;  %v7891_v17 = vld [vmem:[#allocation17 + $0x24] sm:$0xf0] }
 0x7ac   :  { %3571 = vmatpush.bf16.msra.mxu3 %v7409_v16  ;;  %v7445_v16 = vor.u32 %v7909_v5, %v7444_v41  ;;  %v7373_v47 = vor.u32 %v7891_v17, %v7372_v37  ;;  %v7429_v37 = vor.u32 %v7905_v2, %v7428_v53  ;;  %v7925_v41 = vld [vmem:[#allocation19 + $0x74] sm:$0xf0]  ;;  %v7420_v5 = vld [vmem:[#allocation17 + $0x80] sm:$0xf] }
 0x7ad   :  { %v10227_v11 = vpop.f32.mrf.mxu1  ;;  %v10229_v28 = vpop.f32.mrf.mxu2 }
 0x7ae   :  { %v2830_v33 = vadd.f32 %v10227_v11, %v2647_v12  ;;  %v2866_v11 = vadd.f32 %v10222_v51, %v10137_v57  ;;  %v7446_v57 = vld [vmem:[#allocation17 + $0xb8] sm:$0xf0]  ;;  %3536 = vmatpush.bf16.msrb.mxu1 %v7381_v27  ;;  %3555 = vmatpush.bf16.msrb.mxu2 %v7445_v16  ;;  %v7906_v12 = vld [vmem:[#allocation17 + $0xa4] sm:$0xf]  ;;  %v7356_v27 = vld [vmem:[#allocation17] sm:$0xf] }
 0x7af   :  { %v10231_v34 = vpop.f32.mrf.mxu0  ;;  %v7441_v29 = vor.u32 %v7906_v12, %v7438_v19 }
 0x7b0   :  { %3572 = vmatpush.bf16.msra.mxu3 %v7401_v40  ;;  %v2849_v21 = vadd.f32 %v10229_v28, %v2830_v33  ;;  %v2885_v28 = vadd.f32 %v10179_v54, %v2866_v11  ;;  %v7907_v40 = vld [vmem:[#allocation17 + $0xa4] sm:$0xf0]  ;;  %v7888_v54 = vld [vmem:[#allocation17 + $0x14] sm:$0xf] }
 0x7b1   :  { %v7437_v30 = vor.u32 %v7907_v40, %v7436_v46  ;;  %v7924_v46 = vld [vmem:[#allocation19 + $0x74] sm:$0xf] }
 0x7b2   :  { %3537 = vmatpush.bf16.msrb.mxu1 %v7373_v47 }
 0x7b3   :  { %v10245_v35 = vpop.f32.mrf.mxu3  ;;  %3556 = vmatpush.bf16.msrb.mxu2 %v7437_v30 }
 0x7b4   :  { %3573 = vmatpush.bf16.msra.mxu3 %v7393_v6  ;;  %v2868_v51 = vadd.f32 %v10245_v35, %v2685_v59  ;;  %v7430_v59 = vld [vmem:[#allocation17 + $0x98] sm:$0xf0] }
 0x7b5   :  { %v10256_v14 = vpop.f32.mrf.mxu1  ;;  %v10258_v63 = vpop.f32.mrf.mxu2 }
 0x7b6   :  { %v2887_v8 = vadd.f32 %v10211_v61, %v2868_v51  ;;  %v7887_v61 = vld [vmem:[#allocation17 + $0x4] sm:$0xf0]  ;;  %v2833_v16 = vadd.f32 %v10256_v14, %v10145_v22 }
 0x7b7   :  { %v10287_v44 = vpop.f32.mrf.mxu0  ;;  %3557 = vmatpush.bf16.msrb.mxu2 %v7429_v37 }
 0x7b8   :  { %3574 = vmatpush.bf16.msra.mxu3 %v7385_v18  ;;  %v7433_v18 = vor.u32 %v7904_v0, %v7430_v59  ;;  %v7498_v0 = vld [vmem:[#allocation19 + $0x58] sm:$0xf0] }
 0x7bb   :  { %v10298_v48 = vpop.f32.mrf.mxu3 }
 0x7bc   :  { %v2871_v30 = vadd.f32 %v10298_v48, %v10161_v7  ;;  %v7496_v48 = vld [vmem:[#allocation19 + $0x50] sm:$0xf] }
 0x7bd   :  { %v10315_v52 = vpop.f32.mrf.mxu1  ;;  %v10317_v20 = vpop.f32.mrf.mxu2 }
 0x7be   :  { %v2890_v59 = vadd.f32 %v10231_v34, %v2871_v30  ;;  %v7918_v34 = vld [vmem:[#allocation19 + $0x44] sm:$0xf] }
 0x7bf   :  { %v3115_v43 = vpop.f32.mrf.mxu0 }
 0x7c3   :  { %v10331_v42 = vpop.f32.mrf.mxu3 }
 0x7c5   :  { %v3058_v31 = vpop.f32.mrf.mxu1  ;;  %v3077_v45 = vpop.f32.mrf.mxu2 }
 0x7c6   :  { %v3078_v25 = vadd.f32 %v3077_v45, %v3058_v31  ;;  %v7374_v31 = vld [vmem:[#allocation17 + $0x28] sm:$0xf0]  ;;  %v7449_v45 = vor.u32 %v7908_v4, %v7446_v57  ;;  %v7903_v4 = vld [vmem:[#allocation17 + $0x84] sm:$0xf0] }
 0x7c7   :  { %v3117_v9 = vpop.f32.mrf.mxu0  ;;  %v7421_v47 = vor.u32 %v7903_v4, %v7420_v5  ;;  %v7480_v4 = vld [vmem:[#allocation19 + $0x30] sm:$0xf] }
 0x7c8   :  { %v3125_v23 = vadd.f32 %v3078_v25, %v2847_v58  ;;  %v10352_v25 = vperm.slane %v2384_v50, 1  ;;  %3593 = vmatpush.bf16.msra.mxu0 %v7449_v45  ;;  %v7357_v45 = vor.u32 %v7887_v61, %v7356_v27 }
 0x7c9   :  { %3558 = vmatpush.bf16.msrb.mxu2 %v7421_v47 }
 0x7ca   :  { %v3138_v33 = vadd.f32 %v10346_v36, %v3125_v23  ;;  %v7512_v23 = vld [vmem:[#allocation19 + $0x70] sm:$0xf] }
 0x7cb   :  { %v3096_v3 = vpop.f32.mrf.mxu3  ;;  %v7513_v22 = vor.u32 %v7925_v41, %v7512_v23  ;;  %v7488_v23 = vld [vmem:[#allocation19 + $0x40] sm:$0xf] }
 0x7cc   :  { %v3116_v60 = vadd.f32 %v3115_v43, %v3096_v3  ;;  %v7364_v43 = vld [vmem:[#allocation17 + $0x10] sm:$0xf]  ;;  %v7377_v3 = vor.u32 %v7890_v26, %v7374_v31  ;;  %3594 = vmatpush.bf16.msra.mxu0 %v7441_v29  ;;  %v7422_v26 = vld [vmem:[#allocation17 + $0x88] sm:$0xf0] }
 0x7cd   :  { %v3060_v15 = vpop.f32.mrf.mxu1  ;;  %v3079_v39 = vpop.f32.mrf.mxu2  ;;  %v7506_v29 = vld [vmem:[#allocation19 + $0x68] sm:$0xf0] }
 0x7ce   :  { %v3080_v10 = vadd.f32 %v3079_v39, %v3060_v15  ;;  %v3126_v58 = vadd.f32 %v3116_v60, %v2885_v28  ;;  %v7365_v39 = vor.u32 %v7889_v55, %v7364_v43  ;;  %3575 = vmatpush.bf16.msra.mxu3 %v7377_v3  ;;  %v7358_v60 = vld [vmem:[#allocation17 + $0x8] sm:$0xf0]  ;;  %v7514_v28 = vld [vmem:[#allocation19 + $0x78] sm:$0xf0]  ;;  %v2852_v43 = vadd.f32 %v10258_v63, %v2833_v16 }
 0x7cf   :  { %v3120_v31 = vpop.f32.mrf.mxu0  ;;  %v2690_v55 = vadd.f32 %v10147_v24, %v10193_v56 }
 0x7d0   :  { %v3127_v32 = vadd.f32 %v3080_v10, %v2849_v21  ;;  %v7886_v21 = vld [vmem:[#allocation17 + $0x4] sm:$0xf]  ;;  %v7369_v10 = vor.u32 %v7888_v54, %v7366_v38  ;;  %v3139_v57 = vadd.f32 %v10352_v25, %v3126_v58  ;;  %3538 = vmatpush.bf16.msrb.mxu1 %v7365_v39  ;;  %3595 = vmatpush.bf16.msra.mxu0 %v7433_v18  ;;  %v7920_v38 = vld [vmem:[#allocation19 + $0x54] sm:$0xf] }
 0x7d1   :  { %v7361_v12 = vor.u32 %v7886_v21, %v7358_v60  ;;  %v7922_v54 = vld [vmem:[#allocation19 + $0x64] sm:$0xf]  ;;  %v2873_v58 = vadd.f32 %v10331_v42, %v2690_v55  ;;  %v7501_v21 = vor.u32 %v7920_v38, %v7498_v0  ;;  %v7482_v60 = vld [vmem:[#allocation19 + $0x38] sm:$0xf0]  ;;  %v7913_v55 = vld [vmem:[#allocation19 + $0x14] sm:$0xf0] }
 0x7d2   :  { %v3140_v35 = vadd.f32 %v10346_v36, %v3127_v32  ;;  %v7902_v32 = vld [vmem:[#allocation17 + $0x84] sm:$0xf]  ;;  %3576 = vmatpush.bf16.msra.mxu3 %v7369_v10  ;;  %v7509_v7 = vor.u32 %v7922_v54, %v7506_v29  ;;  %v7919_v10 = vld [vmem:[#allocation19 + $0x44] sm:$0xf0]  ;;  %v7912_v54 = vld [vmem:[#allocation19 + $0x14] sm:$0xf] }
 0x7d3   :  { %v3098_v49 = vpop.f32.mrf.mxu3  ;;  %v7425_v19 = vor.u32 %v7902_v32, %v7422_v26  ;;  %v7472_v26 = vld [vmem:[#allocation19 + $0x20] sm:$0xf]  ;;  %v7528_v29 = vld [vmem:[#allocation19 + $0x90] sm:$0xf]  ;;  %v7910_v38 = vld [vmem:[#allocation19 + $0x4] sm:$0xf] }
 0x7d4   :  { %v10356_v6 = vpack.c.bf16 %v3140_v35, %v3138_v33  ;;  %v3118_v50 = vadd.f32 %v3117_v9, %v3098_v49  ;;  %v2652_v9 = vadd.f32 %v10165_v13, %v10163_v1  ;;  %v7504_v33 = vld [vmem:[#allocation19 + $0x60] sm:$0xf]  ;;  %v7923_v35 = vld [vmem:[#allocation19 + $0x64] sm:$0xf0]  ;;  %3539 = vmatpush.bf16.msrb.mxu1 %v7357_v45  ;;  %v7544_v45 = vld [vmem:[#allocation19 + $0xb0] sm:$0xf] }
 0x7d5   :  { %v3063_v11 = vpop.f32.mrf.mxu1  ;;  %v3082_v15 = vpop.f32.mrf.mxu2  ;;  %3596 = vmatpush.bf16.msra.mxu0 %v7425_v19  ;;  %v7458_v0 = vld [vmem:[#allocation19 + $0x8] sm:$0xf0] }
 0x7d6   :  { %v3128_v17 = vadd.f32 %v3118_v50, %v2887_v8  ;;  %3314 = vmatmul.bf16.vlgmr.msra.gmra.mxu1 %v10356_v6  ;;  %3352 = vmatmul.bf16.vlgmr.msrb.gmra.mxu3 %v10356_v6  ;;  %v2835_v40 = vadd.f32 %v10315_v52, %v2652_v9  ;;  %v3083_v13 = vadd.f32 %v3082_v15, %v3063_v11  ;;  %v7921_v50 = vld [vmem:[#allocation19 + $0x54] sm:$0xf0] }
 0x7d7   :  { %v7517_v52 = vor.u32 %v7924_v46, %v7514_v28  ;;  %v7505_v8 = vor.u32 %v7923_v35, %v7504_v33  ;;  %3577 = vmatpush.bf16.msra.mxu3 %v7361_v12  ;;  %v2892_v15 = vadd.f32 %v10287_v44, %v2873_v58  ;;  %v3122_v42 = vpop.f32.mrf.mxu0  ;;  %v7497_v27 = vor.u32 %v7921_v50, %v7496_v48  ;;  %v7917_v9 = vld [vmem:[#allocation19 + $0x34] sm:$0xf0]  ;;  %v7932_v46 = vld [vmem:[#allocation19 + $0xb4] sm:$0xf]  ;;  %v7536_v12 = vld [vmem:[#allocation19 + $0xa0] sm:$0xf] }
 0x7d8   :  { %v3141_v51 = vadd.f32 %v10352_v25, %v3128_v17  ;;  %v2854_v63 = vadd.f32 %v10317_v20, %v2835_v40  ;;  %v3129_v53 = vadd.f32 %v3083_v13, %v2852_v43  ;;  %3758 = vmatpush.bf16.msra.mxu1 %v7513_v22  ;;  %v7489_v44 = vor.u32 %v7919_v10, %v7488_v23  ;;  %v7546_v40 = vld [vmem:[#allocation19 + $0xb8] sm:$0xf0]  ;;  %v7914_v13 = vld [vmem:[#allocation19 + $0x24] sm:$0xf]  ;;  %v7474_v22 = vld [vmem:[#allocation19 + $0x28] sm:$0xf0] }
 0x7d9   :  { %v7481_v32 = vor.u32 %v7917_v9, %v7480_v4  ;;  %v7931_v33 = vld [vmem:[#allocation19 + $0xa4] sm:$0xf0]  ;;  %v7930_v35 = vld [vmem:[#allocation19 + $0xa4] sm:$0xf]  ;;  %v7538_v43 = vld [vmem:[#allocation19 + $0xa8] sm:$0xf0] }
 0x7da   :  { %v10367_v1 = vpack.c.bf16 %v3141_v51, %v3139_v57  ;;  %v3142_v20 = vadd.f32 %v10346_v36, %v3129_v53  ;;  %v7916_v51 = vld [vmem:[#allocation19 + $0x34] sm:$0xf]  ;;  %v7537_v30 = vor.u32 %v7931_v33, %v7536_v12  ;;  %v7466_v53 = vld [vmem:[#allocation19 + $0x18] sm:$0xf0] }
 0x7db   :  { %v3101_v14 = vpop.f32.mrf.mxu3  ;;  %3796 = vmatpush.bf16.msrb.mxu3 %v7517_v52  ;;  %v7485_v28 = vor.u32 %v7916_v51, %v7482_v60  ;;  %v7464_v52 = vld [vmem:[#allocation19 + $0x10] sm:$0xf]  ;;  %v7469_v50 = vor.u32 %v7912_v54, %v7466_v53 }
 0x7dc   :  { %7350 = vmatmul.msk.bf16.vlgmr.msra.gmra.mxu2 %vm11906_vm12, %v10367_v1  ;;  %7352 = vmatmul.msk.bf16.vlgmr.msrb.gmra.mxu0 %vm11907_vm8, %v10367_v1  ;;  %v3121_v24 = vadd.f32 %v3120_v31, %v3101_v14  ;;  %v7915_v31 = vld [vmem:[#allocation19 + $0x24] sm:$0xf0]  ;;  %v7549_v14 = vor.u32 %v7932_v46, %v7546_v40  ;;  %v7465_v58 = vor.u32 %v7913_v55, %v7464_v52  ;;  %vm11920_vm12 = vmmov %vm11919_vm2 }
 0x7dd   :  { %v3065_v49 = vpop.f32.mrf.mxu1  ;;  %v3084_v3 = vpop.f32.mrf.mxu2  ;;  %3759 = vmatpush.bf16.msra.mxu1 %v7505_v8  ;;  %v7473_v19 = vor.u32 %v7915_v31, %v7472_v26  ;;  %v7530_v8 = vld [vmem:[#allocation19 + $0x98] sm:$0xf0]  ;;  %vm11921_vm8 = vmmov %vm11919_vm2 }
 0x7de   :  { %v3085_v2 = vadd.f32 %v3084_v3, %v3065_v49  ;;  %v3130_v37 = vadd.f32 %v3121_v24, %v2890_v59  ;;  %3819 = vmatpush.bf16.msrb.mxu0 %v7549_v14  ;;  %v7541_v49 = vor.u32 %v7930_v35, %v7538_v43  ;;  %v7477_v3 = vor.u32 %v7914_v13, %v7474_v22  ;;  %v7520_v59 = vld [vmem:[#allocation19 + $0x80] sm:$0xf] }
 0x7df   :  { %3797 = vmatpush.bf16.msrb.mxu3 %v7509_v7  ;;  %v7911_v7 = vld [vmem:[#allocation19 + $0x4] sm:$0xf0] }
 0x7e0   :  { %v3131_v56 = vadd.f32 %v3085_v2, %v2854_v63  ;;  %v3143_v41 = vadd.f32 %v10352_v25, %v3130_v37  ;;  %v7929_v63 = vld [vmem:[#allocation19 + $0x94] sm:$0xf0]  ;;  %v7928_v2 = vld [vmem:[#allocation19 + $0x94] sm:$0xf] }
 0x7e1   :  { %3760 = vmatpush.bf16.msra.mxu1 %v7497_v27  ;;  %v7529_v24 = vor.u32 %v7929_v63, %v7528_v29  ;;  %v7533_v48 = vor.u32 %v7928_v2, %v7530_v8  ;;  %v7461_v27 = vor.u32 %v7910_v38, %v7458_v0  ;;  %v3406_v29 = vld [vmem:[%s11773_s20] sm:$0x3] }
 0x7e2   :  { %v3144_v11 = vadd.f32 %v10346_v36, %v3131_v56  ;;  %v7490_v36 = vld [vmem:[#allocation19 + $0x48] sm:$0xf0]  ;;  %3820 = vmatpush.bf16.msrb.mxu0 %v7541_v49  ;;  %v7456_v56 = vld [vmem:[#allocation19] sm:$0xf]  ;;  %v3408_v2 = vperm.slane %v3406_v29, 0  ;;  %v3409_v8 = vperm.slane %v3406_v29, 1 }
 0x7e3   :  { %v3103_v39 = vpop.f32.mrf.mxu3  ;;  %3798 = vmatpush.bf16.msrb.mxu3 %v7501_v21  ;;  %v7493_v16 = vor.u32 %v7918_v34, %v7490_v36 }
 0x7e4   :  { %v10384_v17 = vpack.c.bf16 %v3144_v11, %v3142_v20  ;;  %v3123_v61 = vadd.f32 %v3122_v42, %v3103_v39  ;;  %v7927_v20 = vld [vmem:[#allocation19 + $0x84] sm:$0xf0]  ;;  %v7926_v11 = vld [vmem:[#allocation19 + $0x84] sm:$0xf]  ;;  %v7522_v39 = vld [vmem:[#allocation19 + $0x88] sm:$0xf0] }
 0x7e5   :  { %3761 = vmatpush.bf16.msra.mxu1 %v7489_v44  ;;  %v7521_v42 = vor.u32 %v7927_v20, %v7520_v59  ;;  %v7525_v37 = vor.u32 %v7926_v11, %v7522_v39 }
 0x7e6   :  { %v3132_v18 = vadd.f32 %v3123_v61, %v2892_v15  ;;  %3319 = vmatmul.bf16.gmra.mxu1 %v10384_v17  ;;  %3357 = vmatmul.bf16.gmra.mxu3 %v10384_v17  ;;  %v7457_v15 = vor.u32 %v7911_v7, %v7456_v56 }
 0x7e7   :  { %3799 = vmatpush.bf16.msrb.mxu3 %v7493_v16  ;;  %3821 = vmatpush.bf16.msrb.mxu0 %v7533_v48 }
 0x7e8   :  { %v3145_v5 = vadd.f32 %v10352_v25, %v3132_v18  ;;  %v7933_v25 = vld [vmem:[#allocation19 + $0xb4] sm:$0xf0] }
 0x7e9   :  { %v7545_v47 = vor.u32 %v7933_v25, %v7544_v45  ;;  %3762 = vmatpush.bf16.msra.mxu1 %v7481_v32 }
 0x7ea   :  { %v10390_v57 = vpack.c.bf16 %v3145_v5, %v3143_v41 }
 0x7eb   :  { %3781 = vmatpush.bf16.msra.mxu2 %v7545_v47  ;;  %3800 = vmatpush.bf16.msrb.mxu3 %v7485_v28 }
 0x7ec   :  { %7351 = vmatmul.msk.bf16.gmra.mxu2 %vm11908_vm5, %v10390_v57  ;;  %7353 = vmatmul.msk.bf16.gmra.mxu0 %vm11909_vm10, %v10390_v57  ;;  %vm11922_vm5 = vmmov %vm11919_vm2 }
 0x7ed   :  { %3763 = vmatpush.bf16.msra.mxu1 %v7473_v19  ;;  %3822 = vmatpush.bf16.msrb.mxu0 %v7525_v37  ;;  %vm11923_vm10 = vmmov %vm11919_vm2 }
 0x7ef   :  { %3782 = vmatpush.bf16.msra.mxu2 %v7537_v30  ;;  %3801 = vmatpush.bf16.msrb.mxu3 %v7477_v3 }
 0x7f1   :  { %3764 = vmatpush.bf16.msra.mxu1 %v7465_v58 }
 0x7f3   :  { %3783 = vmatpush.bf16.msra.mxu2 %v7529_v24  ;;  %3802 = vmatpush.bf16.msrb.mxu3 %v7469_v50 }
 0x7f5   :  { %3765 = vmatpush.bf16.msra.mxu1 %v7457_v15 }
 0x7f6   :  { %3540 = vmatmul.bf16.vlgmr.msrb.gmra.mxu1 %v10356_v6  ;;  %3578 = vmatmul.bf16.vlgmr.msra.gmra.mxu3 %v10356_v6 }
 0x7f7   :  { %3784 = vmatpush.bf16.msra.mxu2 %v7521_v42  ;;  %3803 = vmatpush.bf16.msrb.mxu3 %v7461_v27 }
 0x7fc   :  { %7450 = vmatmul.msk.bf16.vlgmr.msrb.gmra.mxu2 %vm11894_vm1, %v10367_v1  ;;  %7452 = vmatmul.msk.bf16.vlgmr.msra.gmra.mxu0 %vm11910_vm7, %v10367_v1  ;;  %vm11924_vm1 = vmmov %vm11919_vm2 }
 0x7fd   :  { %vm11925_vm7 = vmmov %vm11924_vm1 }
 0x806   :  { %3545 = vmatmul.bf16.gmra.mxu1 %v10384_v17  ;;  %3583 = vmatmul.bf16.gmra.mxu3 %v10384_v17 }
 0x80c   :  { %7451 = vmatmul.msk.bf16.gmra.mxu2 %vm11911_vm11, %v10390_v57  ;;  %7453 = vmatmul.msk.bf16.gmra.mxu0 %vm11912_vm14, %v10390_v57  ;;  %vm11926_vm11 = vmmov %vm11924_vm1 }
 0x80d   :  { %vm11927_vm14 = vmmov %vm11924_vm1 }
 0x816   :  { %3766 = vmatmul.bf16.vlgmr.msra.gmra.mxu1 %v10356_v6  ;;  %3804 = vmatmul.bf16.vlgmr.msrb.gmra.mxu3 %v10356_v6  ;;  %v3174_v6 = vld [vmem:[%s11771_s18] sm:$0x3]  ;;  %s8521_s18 = smov 112  }
 0x817   :  { %v3177_v21 = vperm.slane %v3174_v6, 1  ;;  %v3176_v18 = vperm.slane %v3174_v6, 0 }
 0x81c   :  { %7550 = vmatmul.msk.bf16.vlgmr.msra.gmra.mxu2 %vm11913_vm9, %v10367_v1  ;;  %7552 = vmatmul.msk.bf16.vlgmr.msrb.gmra.mxu0 %vm11914_vm0, %v10367_v1  ;;  %vm11928_vm9 = vmmov %vm11924_vm1 }
 0x81d   :  { %vm11929_vm0 = vmmov %vm11924_vm1 }
 0x826   :  { %3771 = vmatmul.bf16.gmra.mxu1 %v10384_v17  ;;  %3809 = vmatmul.bf16.gmra.mxu3 %v10384_v17 }
 0x82c   :  { %7551 = vmatmul.msk.bf16.gmra.mxu2 %vm11915_vm15, %v10390_v57  ;;  %7553 = vmatmul.msk.bf16.gmra.mxu0 %vm11916_vm3, %v10390_v57  ;;  %vm11930_vm15 = vmmov %vm11929_vm0 }
 0x82d   :  { %vm11931_vm3 = vmmov %vm11929_vm0 }
 0x853   :  { %v3315_v61 = vpop.f32.mrf.mxu1 }
 0x854   :  { %v3316_v36 = vadd.f32 %v3315_v61, %v3176_v18 }
 0x859   :  { %v3353_v23 = vpop.f32.mrf.mxu3  ;;  %v3372_v10 = vpop.f32.mrf.mxu0 }
 0x85a   :  { %v3354_v34 = vadd.f32 %v3353_v23, %v3177_v21 }
 0x85b   :  { %v3317_v1 = vpop.f32.mrf.mxu1 }
 0x85c   :  { %v3373_v17 = vadd.f32 %v3372_v10, %v3354_v34  ;;  %v3318_v51 = vadd.f32 %v3317_v1, %v3176_v18 }
 0x85f   :  { %v3334_v44 = vpop.f32.mrf.mxu2 }
 0x860   :  { %v3335_v41 = vadd.f32 %v3334_v44, %v3316_v36 }
 0x861   :  { %v3355_v5 = vpop.f32.mrf.mxu3  ;;  %v3374_v4 = vpop.f32.mrf.mxu0 }
 0x862   :  { %v10423_v9 = vpack.c.bf16 %v3373_v17, %v3335_v41  ;;  %v3356_v57 = vadd.f32 %v3355_v5, %v3177_v21 }
 0x863   :  { %v3320_v16 = vpop.f32.mrf.mxu1 }
 0x864   :  { %3846 = vrot.lane.b32.xlu1 %v10423_v9, %s8520_s22  ;;  %3840 = vrot.lane.b32.xlu2 %v10423_v9, %s8521_s18  ;;  %v3375_v32 = vadd.f32 %v3374_v4, %v3356_v57  ;;  %v3321_v13 = vadd.f32 %v3320_v16, %v3176_v18  ;;  %v4075_v5 = vunpack.c.l.b16 %v10423_v9 }
 0x865   :  { %3870 = vrot.lane.b32.xlu0 %v10423_v9, %s8522_s29 }
 0x867   :  { %v3336_v60 = vpop.f32.mrf.mxu2 }
 0x868   :  { %v3337_v26 = vadd.f32 %v3336_v60, %v3318_v51 }
 0x869   :  { %v3358_v31 = vpop.f32.mrf.mxu3  ;;  %v3377_v45 = vpop.f32.mrf.mxu0 }
 0x86a   :  { %v10431_v25 = vpack.c.bf16 %v3375_v32, %v3337_v26  ;;  %v3359_v22 = vadd.f32 %v3358_v31, %v3177_v21 }
 0x86b   :  { %v3322_v46 = vpop.f32.mrf.mxu1 }
 0x86c   :  { %3882 = vrot.lane.b32.xlu1 %v10423_v9, %s8508_s11  ;;  %3872 = vrot.lane.b32.xlu2 %v10431_v25, %s8522_s29  ;;  %v3378_v33 = vadd.f32 %v3377_v45, %v3359_v22  ;;  %v3323_v35 = vadd.f32 %v3322_v46, %v3176_v18  ;;  %v4076_v44 = vunpack.c.l.b16 %v10431_v25 }
 0x86d   :  { %3874 = vrot.lane.b32.xlu0 %v10423_v9, %s8523_s14 }
 0x86e   :  { %v4077_v16 = vpack.c.b16 %v4076_v44, %v4075_v5 }
 0x86f   :  { %v3339_v28 = vpop.f32.mrf.mxu2 }
 0x870   :  { %v3340_v14 = vadd.f32 %v3339_v28, %v3321_v13 }
 0x871   :  { %v3360_v47 = vpop.f32.mrf.mxu3  ;;  %v3379_v40 = vpop.f32.mrf.mxu0 }
 0x872   :  { %v3361_v12 = vadd.f32 %v3360_v47, %v3177_v21  ;;  %v10445_v52 = vpack.c.bf16 %v3378_v33, %v3340_v14 }
 0x873   :  { %v3541_v19 = vpop.f32.mrf.mxu1 }
 0x874   :  { %3878 = vrot.lane.b32.xlu1 %v10423_v9, %s8524_s24  ;;  %3876 = vrot.lane.b32.xlu2 %v10431_v25, %s8523_s14  ;;  %v3380_v55 = vadd.f32 %v3379_v40, %v3361_v12  ;;  %v4284_v63 = vunpack.c.l.b16 %v10445_v52  ;;  %v3542_v48 = vadd.f32 %v3541_v19, %v3408_v2  ;;  %v3632_v12 = vld [vmem:[%s11917_s6] sm:$0x3] }
 0x875   :  { %3866 = vrot.lane.b32.xlu0 %v10423_v9, %s8525_s2 }
 0x877   :  { %v3341_v43 = vpop.f32.mrf.mxu2 }
 0x878   :  { %v3342_v30 = vadd.f32 %v3341_v43, %v3323_v35  ;;  %v10549_v43 = vperm.slane %v3632_v12, 0 }
 0x879   :  { %v3579_v49 = vpop.f32.mrf.mxu3  ;;  %v3598_v3 = vpop.f32.mrf.mxu0 }
 0x87a   :  { %v10447_v54 = vpack.c.bf16 %v3380_v55, %v3342_v30  ;;  %v3580_v50 = vadd.f32 %v3579_v49, %v3409_v8 }
 0x87b   :  { %v3543_v24 = vpop.f32.mrf.mxu1 }
 0x87c   :  { %3868 = vrot.lane.b32.xlu1 %v10431_v25, %s8525_s2  ;;  %3848 = vrot.lane.b32.xlu2 %v10431_v25, %s8520_s22  ;;  %v4285_v53 = vunpack.c.l.b16 %v10447_v54  ;;  %v3599_v20 = vadd.f32 %v3598_v3, %v3580_v50  ;;  %v3544_v11 = vadd.f32 %v3543_v24, %v3408_v2 }
 0x87d   :  { %3842 = vrot.lane.b32.xlu0 %v10431_v25, %s8521_s18 }
 0x87e   :  { %v10460_v58 = vpack.c.b16 %v4285_v53, %v4284_v63 }
 0x87f   :  { %v3560_v56 = vpop.f32.mrf.mxu2 }
 0x880   :  { %v3561_v0 = vadd.f32 %v3560_v56, %v3542_v48 }
 0x881   :  { %v3581_v7 = vpop.f32.mrf.mxu3  ;;  %v3600_v38 = vpop.f32.mrf.mxu0 }
 0x882   :  { %v3582_v59 = vadd.f32 %v3581_v7, %v3409_v8  ;;  %v3915_v42 = vpack.c.bf16 %v3599_v20, %v3561_v0 }
 0x883   :  { %v3546_v37 = vpop.f32.mrf.mxu1 }
 0x884   :  { %3891 = vrot.lane.b32.xlu1 %v10445_v52, %s8525_s2  ;;  %3884 = vrot.lane.b32.xlu2 %v10431_v25, %s8508_s11  ;;  %v3601_v39 = vadd.f32 %v3600_v38, %v3582_v59  ;;  %v4078_v21 = vunpack.c.l.b16 %v3915_v42  ;;  %v3547_v9 = vadd.f32 %v3546_v37, %v3408_v2 }
 0x885   :  { %3895 = vrot.lane.b32.xlu0 %v10445_v52, %s8522_s29 }
 0x887   :  { %v3562_v15 = vpop.f32.mrf.mxu2 }
 0x888   :  { %v3563_v27 = vadd.f32 %v3562_v15, %v3544_v11 }
 0x889   :  { %v3584_v61 = vpop.f32.mrf.mxu3  ;;  %v3603_v10 = vpop.f32.mrf.mxu0 }
 0x88a   :  { %v3916_v6 = vpack.c.bf16 %v3601_v39, %v3563_v27  ;;  %v3585_v31 = vadd.f32 %v3584_v61, %v3409_v8 }
 0x88b   :  { %v3548_v17 = vpop.f32.mrf.mxu1 }
 0x88c   :  { %3903 = vrot.lane.b32.xlu1 %v10445_v52, %s8524_s24  ;;  %3880 = vrot.lane.b32.xlu2 %v10431_v25, %s8524_s24  ;;  %v4079_v23 = vunpack.c.l.b16 %v3916_v6  ;;  %v3549_v4 = vadd.f32 %v3548_v17, %v3408_v2  ;;  %v3604_v46 = vadd.f32 %v3603_v10, %v3585_v31 }
 0x88d   :  { %3854 = vrot.lane.b32.xlu0 %v10445_v52, %s8521_s18 }
 0x88e   :  { %v4080_v18 = vpack.c.b16 %v4079_v23, %v4078_v21 }
 0x88f   :  { %v3565_v1 = vpop.f32.mrf.mxu2 }
 0x890   :  { %v4086_v34 = vsel %vm4081_vm6, %v4080_v18, 0  ;;  %v3566_v45 = vadd.f32 %v3565_v1, %v3547_v9 }
 0x891   :  { %v3586_v36 = vpop.f32.mrf.mxu3  ;;  %4095 = vmatpush.bf16.xpose.msrb.mxu1 %v4086_v34  ;;  %v3605_v57 = vpop.f32.mrf.mxu0 }
 0x892   :  { %v3587_v41 = vadd.f32 %v3586_v36, %v3409_v8  ;;  %v10510_v28 = vpack.c.bf16 %v3604_v46, %v3566_v45 }
 0x893   :  { %v3767_v55 = vpop.f32.mrf.mxu1 }
 0x894   :  { %3897 = vrot.lane.b32.xlu1 %v10447_v54, %s8522_s29  ;;  %3899 = vrot.lane.b32.xlu2 %v10445_v52, %s8523_s14  ;;  %v3606_v60 = vadd.f32 %v3605_v57, %v3587_v41  ;;  %v3768_v3 = vadd.f32 %v3767_v55, %v10549_v43 }
 0x895   :  { %3901 = vrot.lane.b32.xlu0 %v10447_v54, %s8523_s14 }
 0x897   :  { %v3567_v51 = vpop.f32.mrf.mxu2 }
 0x898   :  { %v3568_v32 = vadd.f32 %v3567_v51, %v3549_v4  ;;  %7554 = vmatmul.msk.bf16.vlgmr.msrb.gmra.mxu1 %vm4081_vm6, %v4077_v16 }
 0x899   :  { %v3805_v30 = vpop.f32.mrf.mxu3  ;;  %v3824_v2 = vpop.f32.mrf.mxu0 }
 0x89a   :  { %v10484_v26 = vpack.c.bf16 %v3606_v60, %v3568_v32 }
 0x89b   :  { %v3769_v38 = vpop.f32.mrf.mxu1 }
 0x89c   :  { %3856 = vrot.lane.b32.xlu1 %v10447_v54, %s8521_s18  ;;  %3860 = vrot.lane.b32.xlu2 %v10445_v52, %s8520_s22  ;;  %v3770_v23 = vadd.f32 %v3769_v38, %v10549_v43 }
 0x89d   :  { %3862 = vrot.lane.b32.xlu0 %v10447_v54, %s8520_s22 }
 0x89f   :  { %v3786_v49 = vpop.f32.mrf.mxu2 }
 0x8a0   :  { %v3787_v29 = vadd.f32 %v3786_v49, %v3768_v3 }
 0x8a1   :  { %v3807_v0 = vpop.f32.mrf.mxu3 }
 0x8a3   :  { %v3772_v39 = vpop.f32.mrf.mxu1 }
 0x8a4   :  { %3955 = vrot.lane.b32.xlu1 %v3915_v42, %s8523_s14  ;;  %3907 = vrot.lane.b32.xlu2 %v10445_v52, %s8508_s11  ;;  %v10551_v52 = vperm.slane %v3632_v12, 1 }
 0x8a5   :  { %3909 = vrot.lane.b32.xlu0 %v10447_v54, %s8508_s11 }
 0x8a6   :  { %v3808_v10 = vadd.f32 %v3807_v0, %v10551_v52 }
 0x8a7   :  { %v3788_v11 = vpop.f32.mrf.mxu2 }
 0x8a8   :  { %v3789_v1 = vadd.f32 %v3788_v11, %v3770_v23 }
 0x8a9   :  { %v3810_v61 = vpop.f32.mrf.mxu3 }
 0x8ab   :  { %v3774_v41 = vpop.f32.mrf.mxu1 }
 0x8ac   :  { %3927 = vrot.lane.b32.xlu1 %v3915_v42, %s8520_s22  ;;  %3893 = vrot.lane.b32.xlu2 %v10447_v54, %s8525_s2  ;;  %v3775_v57 = vadd.f32 %v3774_v41, %v10549_v43 }
 0x8ad   :  { %3951 = vrot.lane.b32.xlu0 %v3915_v42, %s8522_s29 }
 0x8af   :  { %v3791_v21 = vpop.f32.mrf.mxu2 }
 0x8b1   :  { %v3812_v5 = vpop.f32.mrf.mxu3 }
 0x8b2   :  { %v3813_v51 = vadd.f32 %v3812_v5, %v10551_v52 }
 0x8b4   :  { %3949 = vrot.lane.b32.xlu1 %v3916_v6, %s8525_s2  ;;  %3905 = vrot.lane.b32.xlu2 %v10447_v54, %s8524_s24  ;;  %v3806_v54 = vadd.f32 %v3805_v30, %v10551_v52 }
 0x8b5   :  { %3947 = vrot.lane.b32.xlu0 %v3915_v42, %s8525_s2 }
 0x8b6   :  { %v3825_v7 = vadd.f32 %v3824_v2, %v3806_v54 }
 0x8b7   :  { %v3793_v16 = vpop.f32.mrf.mxu2 }
 0x8b8   :  { %v10565_v50 = vpack.c.bf16 %v3825_v7, %v3787_v29  ;;  %v3794_v60 = vadd.f32 %v3793_v16, %v3775_v57 }
 0x8bc   :  { %3965 = vrot.lane.b32.xlu1 %v3916_v6, %s8508_s11  ;;  %3921 = vrot.lane.b32.xlu2 %v3915_v42, %s8521_s18 }
 0x8bd   :  { %3963 = vrot.lane.b32.xlu0 %v3915_v42, %s8508_s11 }
 0x8be   :  { %v10508_v25 = vpop.permute.xlu2 %3840 }
 0x8c4   :  { %3971 = vrot.lane.b32.xlu1 %v10510_v28, %s8525_s2  ;;  %3959 = vrot.lane.b32.xlu2 %v3915_v42, %s8524_s24  ;;  %v3826_v42 = vpop.f32.mrf.mxu0 }
 0x8c5   :  { %3953 = vrot.lane.b32.xlu0 %v3916_v6, %s8522_s29  ;;  %v3827_v17 = vadd.f32 %v3826_v42, %v3808_v10  ;;  %v3773_v10 = vadd.f32 %v3772_v39, %v10549_v43 }
 0x8c6   :  { %v10516_v47 = vpop.permute.xlu2 %3872 }
 0x8c7   :  { %v10599_v4 = vpack.c.bf16 %v3827_v17, %v3789_v1  ;;  %v3811_v1 = vadd.f32 %v3810_v61, %v10551_v52 }
 0x8cc   :  { %3987 = vrot.lane.b32.xlu1 %v10510_v28, %s8508_s11  ;;  %3957 = vrot.lane.b32.xlu2 %v3916_v6, %s8523_s14  ;;  %v3829_v18 = vpop.f32.mrf.mxu0 }
 0x8cd   :  { %3923 = vrot.lane.b32.xlu0 %v3916_v6, %s8521_s18  ;;  %v3830_v16 = vadd.f32 %v3829_v18, %v3811_v1 }
 0x8ce   :  { %v10522_v40 = vpop.permute.xlu2 %3876 }
 0x8d4   :  { %3977 = vrot.lane.b32.xlu1 %v10484_v26, %s8522_s29  ;;  %3929 = vrot.lane.b32.xlu2 %v3916_v6, %s8520_s22  ;;  %v3831_v31 = vpop.f32.mrf.mxu0 }
 0x8d5   :  { %3961 = vrot.lane.b32.xlu0 %v3916_v6, %s8524_s24  ;;  %v3832_v55 = vadd.f32 %v3831_v31, %v3813_v51 }
 0x8d6   :  { %v10528_v13 = vpop.permute.xlu1 %3846  ;;  %v10530_v22 = vpop.permute.xlu2 %3848 }
 0x8d7   :  { %v10532_v14 = vpop.permute.xlu0 %3870  ;;  %v10615_v49 = vpack.c.bf16 %v3832_v55, %v3794_v60 }
 0x8dc   :  { %3937 = vrot.lane.b32.xlu1 %v10484_v26, %s8521_s18  ;;  %3979 = vrot.lane.b32.xlu2 %v10510_v28, %s8523_s14 }
 0x8dd   :  { %3975 = vrot.lane.b32.xlu0 %v10510_v28, %s8522_s29 }
 0x8de   :  { %v10543_v19 = vpop.permute.xlu1 %3882  ;;  %v10545_v33 = vpop.permute.xlu2 %3884 }
 0x8df   :  { %v10547_v35 = vpop.permute.xlu0 %3874 }
 0x8e4   :  { %3985 = vrot.lane.b32.xlu1 %v10484_v26, %s8524_s24  ;;  %3941 = vrot.lane.b32.xlu2 %v10510_v28, %s8520_s22 }
 0x8e5   :  { %3935 = vrot.lane.b32.xlu0 %v10510_v28, %s8521_s18 }
 0x8e6   :  { %v3879_v63 = vpop.permute.xlu1 %3878  ;;  %v3881_v53 = vpop.permute.xlu2 %3880 }
 0x8e7   :  { %v4180_v8 = vunpack.c.l.b16 %v3879_v63  ;;  %v4181_v24 = vunpack.c.l.b16 %v3881_v53  ;;  %v10561_v56 = vpop.permute.xlu0 %3866 }
 0x8e9   :  { %v10563_v48 = vpack.c.b16 %v4181_v24, %v4180_v8 }
 0x8ec   :  { %4035 = vrot.lane.b32.xlu1 %v10565_v50, %s8523_s14  ;;  %3973 = vrot.lane.b32.xlu2 %v10484_v26, %s8525_s2 }
 0x8ed   :  { %3983 = vrot.lane.b32.xlu0 %v10510_v28, %s8524_s24 }
 0x8ee   :  { %v10573_v59 = vpop.permute.xlu1 %3868  ;;  %v10575_v20 = vpop.permute.xlu2 %3899 }
 0x8ef   :  { %v10577_v15 = vpop.permute.xlu0 %3842 }
 0x8f4   :  { %4027 = vrot.lane.b32.xlu1 %v10565_v50, %s8525_s2  ;;  %3989 = vrot.lane.b32.xlu2 %v10484_v26, %s8508_s11 }
 0x8f5   :  { %3981 = vrot.lane.b32.xlu0 %v10484_v26, %s8523_s14 }
 0x8f6   :  { %v3892_v27 = vpop.permute.xlu1 %3891  ;;  %v10585_v37 = vpop.permute.xlu2 %3860 }
 0x8f7   :  { %v10587_v6 = vpop.permute.xlu0 %3895  ;;  %v4310_v45 = vunpack.c.l.b16 %v3892_v27 }
 0x8fc   :  { %4039 = vrot.lane.b32.xlu1 %v10565_v50, %s8524_s24  ;;  %4031 = vrot.lane.b32.xlu2 %v10565_v50, %s8522_s29 }
 0x8fd   :  { %3943 = vrot.lane.b32.xlu0 %v10484_v26, %s8520_s22 }
 0x8fe   :  { %v3904_v34 = vpop.permute.xlu1 %3903  ;;  %v3908_v36 = vpop.permute.xlu2 %3907 }
 0x8ff   :  { %v10597_v44 = vpop.permute.xlu0 %3854  ;;  %v4388_v29 = vunpack.c.l.b16 %v3904_v34  ;;  %v3911_v8 = vrot.slane %v3908_v36, 4 }
 0x901   :  { %v3913_v0 = vsel %vm3888_vm13, %v3908_v36, %v3911_v8  ;;  %v3792_v36 = vadd.f32 %v3791_v21, %v3773_v10  ;;  %v4155_v8 = vunpack.c.l.b16 %v10522_v40 }
 0x902   :  { %v4414_v27 = vunpack.c.l.b16 %v3913_v0 }
 0x903   :  { %v10651_v43 = vpack.c.bf16 %v3830_v16, %v3792_v36 }
 0x904   :  { %4045 = vrot.lane.b32.xlu1 %v10599_v4, %s8508_s11  ;;  %4001 = vrot.lane.b32.xlu2 %v10565_v50, %s8521_s18 }
 0x905   :  { %4043 = vrot.lane.b32.xlu0 %v10565_v50, %s8508_s11 }
 0x906   :  { %v10609_v32 = vpop.permute.xlu1 %3897  ;;  %v3894_v9 = vpop.permute.xlu2 %3893 }
 0x907   :  { %v4311_v46 = vunpack.c.l.b16 %v3894_v9  ;;  %v10611_v12 = vpop.permute.xlu0 %3901 }
 0x909   :  { %v10613_v30 = vpack.c.b16 %v4311_v46, %v4310_v45  ;;  %v4154_v46 = vunpack.c.l.b16 %v10547_v35 }
 0x90c   :  { %4057 = vrot.lane.b32.xlu1 %v10615_v49, %s8522_s29  ;;  %4007 = vrot.lane.b32.xlu2 %v10565_v50, %s8520_s22 }
 0x90d   :  { %4033 = vrot.lane.b32.xlu0 %v10599_v4, %s8522_s29 }
 0x90e   :  { %v10623_v3 = vpop.permute.xlu1 %3856  ;;  %v3906_v54 = vpop.permute.xlu2 %3905 }
 0x90f   :  { %v4389_v63 = vunpack.c.l.b16 %v3906_v54  ;;  %v10625_v53 = vpop.permute.xlu0 %3862  ;;  %v4103_v54 = vunpack.c.l.b16 %v10573_v59 }
 0x911   :  { %v10627_v2 = vpack.c.b16 %v4389_v63, %v4388_v29 }
 0x914   :  { %4053 = vrot.lane.b32.xlu1 %v10615_v49, %s8525_s2  ;;  %4009 = vrot.lane.b32.xlu2 %v10599_v4, %s8520_s22 }
 0x915   :  { %4037 = vrot.lane.b32.xlu0 %v10599_v4, %s8523_s14 }
 0x916   :  { %v3956_v24 = vpop.permute.xlu1 %3955  ;;  %v10635_v7 = vpop.permute.xlu2 %3921 }
 0x917   :  { %v3910_v38 = vpop.permute.xlu0 %3909  ;;  %v4157_v61 = vunpack.c.l.b16 %v3956_v24 }
 0x918   :  { %v3912_v11 = vrot.slane %v3910_v38, 4 }
 0x91a   :  { %v3914_v42 = vsel %vm3888_vm13, %v3910_v38, %v3912_v11  ;;  %v4102_v11 = vunpack.c.l.b16 %v10561_v56 }
 0x91b   :  { %v4415_v23 = vunpack.c.l.b16 %v3914_v42 }
 0x91c   :  { %4023 = vrot.lane.b32.xlu1 %v10615_v49, %s8520_s22  ;;  %4041 = vrot.lane.b32.xlu2 %v10599_v4, %s8524_s24  ;;  %v4104_v1 = vpack.c.b16 %v4103_v54, %v4102_v11 }
 0x91d   :  { %v10645_v34 = vpack.c.b16 %v4415_v23, %v4414_v27  ;;  %4029 = vrot.lane.b32.xlu0 %v10599_v4, %s8525_s2  ;;  %v4156_v27 = vpack.c.b16 %v4155_v8, %v4154_v46 }
 0x91e   :  { %v3928_v17 = vpop.permute.xlu1 %3927  ;;  %v10649_v41 = vpop.permute.xlu2 %3959 }
 0x91f   :  { %v3952_v5 = vpop.permute.xlu0 %3951  ;;  %v3931_v55 = vrot.slane %v3928_v17, 4 }
 0x921   :  { %v4261_v23 = vunpack.c.l.b16 %v3931_v55 }
 0x924   :  { %4015 = vrot.lane.b32.xlu2 %v10651_v43, %s8521_s18 }
 0x925   :  { %4003 = vrot.lane.b32.xlu0 %v10599_v4, %s8521_s18 }
 0x926   :  { %v3950_v52 = vpop.permute.xlu1 %3949  ;;  %v3958_v39 = vpop.permute.xlu2 %3957 }
 0x927   :  { %v4106_v57 = vunpack.c.l.b16 %v3950_v52  ;;  %v4158_v51 = vunpack.c.l.b16 %v3958_v39  ;;  %v3948_v60 = vpop.permute.xlu0 %3947 }
 0x928   :  { %v4105_v21 = vunpack.c.l.b16 %v3948_v60 }
 0x929   :  { %v4159_v9 = vpack.c.b16 %v4158_v51, %v4157_v61  ;;  %v3886_v61 = vrot.slane %v10543_v19, 4 }
 0x92a   :  { %v4107_v31 = vpack.c.b16 %v4106_v57, %v4105_v21  ;;  %v3887_v57 = vrot.slane %v10545_v33, 4  ;;  %v4131_v21 = vunpack.c.l.b16 %v3952_v5  ;;  %v4128_v5 = vunpack.c.l.b16 %v10532_v14 }
 0x92b   :  { %v4164_v45 = vsel %vm4081_vm6, %v4159_v9, 0  ;;  %v3889_v46 = vsel %vm3888_vm13, %v10543_v19, %v3886_v61  ;;  %v4183_v61 = vunpack.c.l.b16 %v10649_v41 }
 0x92c   :  { %4061 = vrot.lane.b32.xlu2 %v10615_v49, %s8523_s14  ;;  %4173 = vmatpush.bf16.xpose.msra.mxu3 %v4164_v45  ;;  %v4112_v18 = vsel %vm4081_vm6, %v4107_v31, 0  ;;  %v3850_v31 = vrot.slane %v10528_v13, 4  ;;  %v3851_v45 = vrot.slane %v10530_v22, 4  ;;  %v3890_v55 = vsel %vm3888_vm13, %v10545_v33, %v3887_v57 }
 0x92d   :  { %4055 = vrot.lane.b32.xlu0 %v10651_v43, %s8522_s29  ;;  %4121 = vmatpush.bf16.xpose.msra.mxu1 %v4112_v18  ;;  %v4206_v13 = vunpack.c.l.b16 %v3889_v46  ;;  %v4207_v8 = vunpack.c.l.b16 %v3890_v55  ;;  %v3925_v22 = vrot.slane %v10635_v7, 4  ;;  %v4129_v33 = vunpack.c.l.b16 %v10516_v47 }
 0x92e   :  { %v3966_v29 = vpop.permute.xlu1 %3965  ;;  %v3930_v63 = vpop.permute.xlu2 %3929  ;;  %v4288_v7 = vunpack.c.l.b16 %v10484_v26 }
 0x92f   :  { %v3968_v24 = vrot.slane %v3966_v29, 4  ;;  %v3932_v38 = vrot.slane %v3930_v63, 4  ;;  %v3964_v0 = vpop.permute.xlu0 %3963  ;;  %v4259_v63 = vunpack.c.l.b16 %v3851_v45  ;;  %v3844_v45 = vrot.slane %v10508_v25, 4 }
 0x930   :  { %v3967_v42 = vrot.slane %v3964_v0, 4 }
 0x931   :  { %v3970_v35 = vsel %vm3888_vm13, %v3966_v29, %v3968_v24  ;;  %v4262_v10 = vunpack.c.l.b16 %v3932_v38  ;;  %v4258_v29 = vunpack.c.l.b16 %v3850_v31 }
 0x932   :  { %v4210_v36 = vunpack.c.l.b16 %v3970_v35  ;;  %v3969_v17 = vsel %vm3888_vm13, %v3964_v0, %v3967_v42  ;;  %v4130_v42 = vpack.c.b16 %v4129_v33, %v4128_v5  ;;  %v4235_v35 = vunpack.c.l.b16 %v3925_v22 }
 0x933   :  { %v4263_v59 = vpack.c.b16 %v4262_v10, %v4261_v23  ;;  %v4209_v16 = vunpack.c.l.b16 %v3969_v17  ;;  %7557 = vmatmul.msk.bf16.vlgmr.msra.gmra.mxu3 %vm4081_vm6, %v4156_v27  ;;  %v4260_v11 = vpack.c.b16 %v4259_v63, %v4258_v29  ;;  %v4208_v27 = vpack.c.b16 %v4207_v8, %v4206_v13  ;;  %v10693_v23 = vpop.f32.mrf.mxu1 }
 0x934   :  { %7555 = vmatmul.msk.bf16.vlgmr.msra.gmra.mxu1 %vm4081_vm6, %v4104_v1  ;;  %v4492_v47 = vsel %vm11918_vm4, %v10693_v23, -inf  ;;  %v4232_v29 = vunpack.c.l.b16 %v3844_v45  ;;  %vm11932_vm4 = vmmov %vm11929_vm0 }
 0x935   :  { %v4211_v40 = vpack.c.b16 %v4210_v36, %v4209_v16  ;;  %4059 = vrot.lane.b32.xlu0 %v10651_v43, %s8523_s14  ;;  %v4268_v56 = vsel %vm4081_vm6, %v4263_v59, 0 }
 0x936   :  { %v3972_v52 = vpop.permute.xlu1 %3971  ;;  %4277 = vmatpush.bf16.xpose.msrb.mxu3 %v4268_v56  ;;  %v10674_v39 = vpop.permute.xlu2 %3979  ;;  %v4287_v56 = vunpack.c.l.b16 %v10510_v28 }
 0x937   :  { %v3954_v51 = vpop.permute.xlu0 %3953  ;;  %v4216_v60 = vsel %vm4081_vm6, %v4211_v40, 0  ;;  %v4313_v59 = vunpack.c.l.b16 %v3972_v52 }
 0x938   :  { %v4132_v9 = vunpack.c.l.b16 %v3954_v51  ;;  %4225 = vmatpush.bf16.xpose.msrb.mxu1 %v4216_v60  ;;  %v4289_v60 = vpack.c.b16 %v4288_v7, %v4287_v56 }
 0x93a   :  { %v4133_v18 = vpack.c.b16 %v4132_v9, %v4131_v21  ;;  %v3845_v21 = vrot.slane %v10577_v15, 4  ;;  %v4294_v28 = vsel %vm4081_vm6, %v4289_v60, 0 }
 0x93b   :  { %v10715_v8 = vpop.f32.mrf.mxu1 }
 0x93c   :  { %v4138_v54 = vsel %vm4081_vm6, %v4133_v18, 0  ;;  %v4233_v41 = vunpack.c.l.b16 %v3845_v21  ;;  %v5297_v21 = vunpack.c.l.b16 %v10565_v50 }
 0x93d   :  { %4051 = vrot.lane.b32.xlu0 %v10651_v43, %s8525_s2  ;;  %4147 = vmatpush.bf16.xpose.msrb.mxu2 %v4138_v54 }
 0x93e   :  { %v3988_v24 = vpop.permute.xlu1 %3987  ;;  %v10690_v38 = vpop.permute.xlu2 %3941  ;;  %v4234_v13 = vpack.c.b16 %v4233_v41, %v4232_v29  ;;  %v4363_v41 = vunpack.c.l.b16 %v10611_v12 }
 0x93f   :  { %v3924_v19 = vpop.permute.xlu0 %3923  ;;  %v3991_v26 = vrot.slane %v3988_v24, 4 }
 0x940   :  { %v3926_v0 = vrot.slane %v3924_v19, 4 }
 0x941   :  { %v3993_v15 = vsel %vm3888_vm13, %v3988_v24, %v3991_v26 }
 0x942   :  { %v4236_v10 = vunpack.c.l.b16 %v3926_v0  ;;  %v4417_v22 = vunpack.c.l.b16 %v3993_v15 }
 0x943   :  { %7561 = vmatmul.msk.bf16.vlgmr.msrb.gmra.mxu3 %vm4081_vm6, %v4260_v11  ;;  %v4495_v11 = vsel %vm11919_vm2, %v10715_v8, -inf  ;;  %vm11933_vm2 = vmmov %vm11929_vm0 }
 0x944   :  { %v4237_v14 = vpack.c.b16 %v4236_v10, %v4235_v35  ;;  %7556 = vmatmul.msk.bf16.vlgmr.msrb.gmra.mxu2 %vm4081_vm6, %v4130_v42  ;;  %7559 = vmatmul.msk.bf16.vlgmr.msrb.gmra.mxu1 %vm4081_vm6, %v4208_v27 }
 0x945   :  { %4021 = vrot.lane.b32.xlu0 %v10651_v43, %s8520_s22 }
 0x946   :  { %v3978_v1 = vpop.permute.xlu1 %3977  ;;  %v3974_v36 = vpop.permute.xlu2 %3973  ;;  %v4242_v17 = vsel %vm4081_vm6, %v4237_v14, 0  ;;  %4493 = vmax.xlane.f32.xlu1 %v4492_v47 }
 0x947   :  { %v4314_v16 = vunpack.c.l.b16 %v3974_v36  ;;  %4251 = vmatpush.bf16.xpose.msra.mxu2 %v4242_v17  ;;  %v3962_v40 = vpop.permute.xlu0 %3961  ;;  %v4340_v63 = vunpack.c.l.b16 %v3978_v1  ;;  %v4337_v1 = vunpack.c.l.b16 %v10609_v32 }
 0x948   :  { %v4184_v57 = vunpack.c.l.b16 %v3962_v40 }
 0x949   :  { %v4315_v51 = vpack.c.b16 %v4314_v16, %v4313_v59  ;;  %v4336_v16 = vunpack.c.l.b16 %v10587_v6 }
 0x94a   :  { %v4185_v9 = vpack.c.b16 %v4184_v57, %v4183_v61  ;;  %v5298_v57 = vunpack.c.l.b16 %v10599_v4  ;;  %v4365_v4 = vunpack.c.l.b16 %v10674_v39  ;;  %v4362_v39 = vunpack.c.l.b16 %v10575_v20 }
 0x94b   :  { %v4320_v31 = vsel %vm4081_vm6, %v4315_v51, 0  ;;  %v4338_v51 = vpack.c.b16 %v4337_v1, %v4336_v16 }
 0x94c   :  { %v4190_v52 = vsel %vm4081_vm6, %v4185_v9, 0  ;;  %4329 = vmatpush.bf16.xpose.msra.mxu1 %v4320_v31  ;;  %v5299_v9 = vpack.c.b16 %v5298_v57, %v5297_v21  ;;  %v4364_v29 = vpack.c.b16 %v4363_v41, %v4362_v39 }
 0x94d   :  { %4067 = vrot.lane.b32.xlu0 %v10651_v43, %s8508_s11  ;;  %4199 = vmatpush.bf16.xpose.msra.mxu0 %v4190_v52 }
 0x94e   :  { %v3938_v18 = vpop.permute.xlu1 %3937  ;;  %v3990_v46 = vpop.permute.xlu2 %3989 }
 0x94f   :  { %v3992_v55 = vrot.slane %v3990_v46, 4  ;;  %v3976_v54 = vpop.permute.xlu0 %3975  ;;  %v3940_v42 = vrot.slane %v3938_v18, 4 }
 0x950   :  { %v4339_v25 = vunpack.c.l.b16 %v3976_v54 }
 0x951   :  { %v3994_v5 = vsel %vm3888_vm13, %v3990_v46, %v3992_v55  ;;  %v4444_v47 = vunpack.c.l.b16 %v3940_v42 }
 0x952   :  { %v4418_v19 = vunpack.c.l.b16 %v3994_v5  ;;  %v4341_v33 = vpack.c.b16 %v4340_v63, %v4339_v25 }
 0x954   :  { %v4419_v0 = vpack.c.b16 %v4418_v19, %v4417_v22  ;;  %7558 = vmatmul.msk.bf16.vlgmr.msra.gmra.mxu0 %vm4081_vm6, %v10563_v48  ;;  %7560 = vmatmul.msk.bf16.vlgmr.msra.gmra.mxu2 %vm4081_vm6, %v4234_v13  ;;  %v4346_v24 = vsel %vm4081_vm6, %v4341_v33, 0  ;;  %v3865_v33 = vrot.slane %v10625_v53, 4 }
 0x955   :  { %4303 = vmatpush.bf16.xpose.msrb.mxu0 %v4294_v28  ;;  %7563 = vmatmul.msk.bf16.vlgmr.msra.gmra.mxu1 %vm4081_vm6, %v10613_v30  ;;  %v3858_v28 = vrot.slane %v10597_v44, 4 }
 0x956   :  { %4017 = vrot.lane.b32.xlu0 %v10615_v49, %s8521_s18  ;;  %4355 = vmatpush.bf16.xpose.msrb.mxu2 %v4346_v24  ;;  %v3986_v27 = vpop.permute.xlu1 %3985  ;;  %v10727_v35 = vpop.permute.xlu2 %4031  ;;  %v4424_v48 = vsel %vm4081_vm6, %v4419_v0, 0  ;;  %v3864_v0 = vrot.slane %v10585_v37, 4  ;;  %v4467_v24 = vunpack.c.l.b16 %v3865_v33 }
 0x957   :  { %4496 = vmax.xlane.f32.xlu2 %v4495_v11  ;;  %v3936_v10 = vpop.permute.xlu0 %3935  ;;  %4433 = vmatpush.bf16.xpose.msrb.mxu1 %v4424_v48  ;;  %v4392_v40 = vunpack.c.l.b16 %v3986_v27  ;;  %v4440_v54 = vunpack.c.l.b16 %v3858_v28 }
 0x958   :  { %v3939_v14 = vrot.slane %v3936_v10, 4  ;;  %v4466_v42 = vunpack.c.l.b16 %v3864_v0 }
 0x95a   :  { %v4443_v7 = vunpack.c.l.b16 %v3939_v14  ;;  %v4468_v48 = vpack.c.b16 %v4467_v24, %v4466_v42 }
 0x95c   :  { %v4445_v30 = vpack.c.b16 %v4444_v47, %v4443_v7 }
 0x95e   :  { %v10731_v36 = vpop.permute.xlu2 %4001  ;;  %v4450_v17 = vsel %vm4081_vm6, %v4445_v30, 0  ;;  %v10735_v56 = vpop.permute.xlu1 %4035 }
 0x95f   :  { %4459 = vmatpush.bf16.xpose.msra.mxu2 %v4450_v17  ;;  %v3984_v59 = vpop.permute.xlu0 %3983  ;;  %v5375_v53 = vunpack.c.l.b16 %v10735_v56 }
 0x960   :  { %v4391_v61 = vunpack.c.l.b16 %v3984_v59 }
 0x962   :  { %v4393_v60 = vpack.c.b16 %v4392_v40, %v4391_v61 }
 0x964   :  { %7562 = vmatmul.msk.bf16.vlgmr.msrb.gmra.mxu0 %vm4081_vm6, %v10460_v58  ;;  %7564 = vmatmul.msk.bf16.vlgmr.msrb.gmra.mxu2 %vm4081_vm6, %v4338_v51  ;;  %v4398_v32 = vsel %vm4081_vm6, %v4393_v60, 0  ;;  %v3859_v58 = vrot.slane %v10623_v3, 4 }
 0x965   :  { %7567 = vmatmul.msk.bf16.vlgmr.msrb.gmra.mxu1 %vm4081_vm6, %v10645_v34  ;;  %4407 = vmatpush.bf16.xpose.msra.mxu0 %v4398_v32  ;;  %v3945_v34 = vrot.slane %v10690_v38, 4 }
 0x966   :  { %v4008_v6 = vpop.permute.xlu2 %4007  ;;  %v10746_v45 = vpop.permute.xlu1 %4027  ;;  %v4441_v46 = vunpack.c.l.b16 %v3859_v58 }
 0x967   :  { %v3982_v26 = vpop.permute.xlu0 %3981  ;;  %v4469_v63 = vunpack.c.l.b16 %v3945_v34  ;;  %v4011_v47 = vrot.slane %v4008_v6, 4  ;;  %v5323_v32 = vunpack.c.l.b16 %v10746_v45 }
 0x968   :  { %v4366_v31 = vunpack.c.l.b16 %v3982_v26  ;;  %v4442_v3 = vpack.c.b16 %v4441_v46, %v4440_v54  ;;  %v4005_v26 = vrot.slane %v10731_v36, 4 }
 0x969   :  { %v5479_v16 = vunpack.c.l.b16 %v4011_v47 }
 0x96a   :  { %v4367_v50 = vpack.c.b16 %v4366_v31, %v4365_v4 }
 0x96c   :  { %v4372_v52 = vsel %vm4081_vm6, %v4367_v50, 0  ;;  %v5453_v50 = vunpack.c.l.b16 %v4005_v26 }
 0x96d   :  { %5311 = vmatpush.bf16.msrb.mxu0 %v5299_v9  ;;  %4381 = vmatpush.bf16.xpose.msra.mxu3 %v4372_v52 }
 0x96e   :  { %v4010_v18 = vpop.permute.xlu2 %4009  ;;  %v4040_v5 = vpop.permute.xlu1 %4039 }
 0x96f   :  { %v3944_v15 = vpop.permute.xlu0 %3943  ;;  %v5401_v38 = vunpack.c.l.b16 %v4040_v5  ;;  %v4012_v14 = vrot.slane %v4010_v18, 4 }
 0x970   :  { %v3946_v55 = vrot.slane %v3944_v15, 4 }
 0x971   :  { %v5480_v30 = vunpack.c.l.b16 %v4012_v14 }
 0x972   :  { %v4470_v25 = vunpack.c.l.b16 %v3946_v55 }
 0x973   :  { %v5481_v61 = vpack.c.b16 %v5480_v30, %v5479_v16 }
 0x974   :  { %v4471_v13 = vpack.c.b16 %v4470_v25, %v4469_v63  ;;  %7565 = vmatmul.msk.bf16.vlgmr.msra.gmra.mxu3 %vm4081_vm6, %v4364_v29  ;;  %7566 = vmatmul.msk.bf16.vlgmr.msra.gmra.mxu0 %vm4081_vm6, %v10627_v2  ;;  %v5349_v2 = vunpack.c.l.b16 %v10727_v35 }
 0x975   :  { %7568 = vmatmul.msk.bf16.vlgmr.msra.gmra.mxu2 %vm4081_vm6, %v4442_v3 }
 0x976   :  { %v4042_v44 = vpop.permute.xlu2 %4041  ;;  %v4476_v12 = vsel %vm4081_vm6, %v4471_v13, 0  ;;  %v4046_v7 = vpop.permute.xlu1 %4045 }
 0x977   :  { %v5402_v20 = vunpack.c.l.b16 %v4042_v44  ;;  %4485 = vmatpush.bf16.xpose.msrb.mxu3 %v4476_v12  ;;  %v4044_v22 = vpop.permute.xlu0 %4043  ;;  %v4048_v17 = vrot.slane %v4046_v7, 4 }
 0x978   :  { %v4047_v37 = vrot.slane %v4044_v22, 4 }
 0x979   :  { %v5403_v19 = vpack.c.b16 %v5402_v20, %v5401_v38  ;;  %v4050_v35 = vsel %vm3888_vm13, %v4046_v7, %v4048_v17 }
 0x97a   :  { %v4049_v57 = vsel %vm3888_vm13, %v4044_v22, %v4047_v37  ;;  %v5428_v51 = vunpack.c.l.b16 %v4050_v35 }
 0x97b   :  { %5415 = vmatpush.bf16.msra.mxu0 %v5403_v19  ;;  %v5427_v60 = vunpack.c.l.b16 %v4049_v57 }
 0x97d   :  { %v5429_v56 = vpack.c.b16 %v5428_v51, %v5427_v60 }
 0x97e   :  { %v4058_v28 = vpop.permute.xlu1 %4057 }
 0x97f   :  { %v4034_v11 = vpop.permute.xlu0 %4033  ;;  %v5558_v34 = vunpack.c.l.b16 %v4058_v28 }
 0x980   :  { %v5350_v27 = vunpack.c.l.b16 %v4034_v11  ;;  %v10796_v11 = vpop.permute.xlu2 %4015 }
 0x982   :  { %v5351_v10 = vpack.c.b16 %v5350_v27, %v5349_v2 }
 0x984   :  { %7569 = vmatmul.msk.bf16.vlgmr.msrb.gmra.mxu3 %vm4081_vm6, %v4468_v48  ;;  %5363 = vmatpush.bf16.msrb.mxu2 %v5351_v10 }
 0x986   :  { %v4054_v15 = vpop.permute.xlu1 %4053 }
 0x987   :  { %v4038_v1 = vpop.permute.xlu0 %4037  ;;  %v5532_v55 = vunpack.c.l.b16 %v4054_v15 }
 0x988   :  { %v5376_v59 = vunpack.c.l.b16 %v4038_v1  ;;  %v10798_v42 = vpop.permute.xlu2 %4061 }
 0x98a   :  { %v5377_v40 = vpack.c.b16 %v5376_v59, %v5375_v53 }
 0x98c   :  { %5389 = vmatpush.bf16.msra.mxu3 %v5377_v40 }
 0x98e   :  { %v4024_v25 = vpop.permute.xlu1 %4023 }
 0x98f   :  { %v4030_v21 = vpop.permute.xlu0 %4029  ;;  %v4026_v3 = vrot.slane %v4024_v25, 4 }
 0x990   :  { %5493 = vmatpush.bf16.msrb.mxu3 %v5481_v61  ;;  %v5324_v9 = vunpack.c.l.b16 %v4030_v21 }
 0x991   :  { %v10784_v20 = vunpack.c.l.b16 %v4026_v3 }
 0x992   :  { %v5325_v6 = vpack.c.b16 %v5324_v9, %v5323_v32 }
 0x994   :  { %5337 = vmatpush.bf16.msra.mxu1 %v5325_v6 }
 0x997   :  { %v4004_v4 = vpop.permute.xlu0 %4003 }
 0x998   :  { %5441 = vmatpush.bf16.msrb.mxu1 %v5429_v56  ;;  %v4006_v31 = vrot.slane %v4004_v4, 4 }
 0x99a   :  { %v5454_v58 = vunpack.c.l.b16 %v4006_v31 }
 0x99c   :  { %v5455_v52 = vpack.c.b16 %v5454_v58, %v5453_v50 }
 0x99e   :  { %5467 = vmatpush.bf16.msra.mxu2 %v5455_v52 }
 0x99f   :  { %v4056_v41 = vpop.permute.xlu0 %4055 }
 0x9a0   :  { %v5557_v18 = vunpack.c.l.b16 %v4056_v41 }
 0x9a2   :  { %v10768_v46 = vpack.c.b16 %v5558_v34, %v5557_v18 }
 0x9a7   :  { %v10770_v45 = vpop.permute.xlu0 %4059 }
 0x9af   :  { %v4052_v39 = vpop.permute.xlu0 %4051 }
 0x9b0   :  { %v5531_v54 = vunpack.c.l.b16 %v4052_v39 }
 0x9b1   :  { %v10772_v29 = vpop.f32.mrf.mxu1 }
 0x9b2   :  { %v10774_v36 = vpack.c.b16 %v5532_v55, %v5531_v54  ;;  %v4498_v63 = vsel %vm11920_vm12, %v10772_v29, -inf  ;;  %vm11934_vm12 = vmmov %vm11929_vm0 }
 0x9b3   :  { %4499 = vmax.xlane.f32.xlu0 %v4498_v63 }
 0x9b6   :  { %v10778_v5 = vpop.f32.mrf.mxu3 }
 0x9b7   :  { %v4022_v13 = vpop.permute.xlu0 %4021  ;;  %v4510_v44 = vsel %vm11921_vm8, %v10778_v5, -inf  ;;  %vm11935_vm8 = vmmov %vm11929_vm0 }
 0x9b8   :  { %v4025_v12 = vrot.slane %v4022_v13, 4  ;;  %4511 = vmax.xlane.f32.xlu2 %v4510_v44 }
 0x9b9   :  { %v10782_v38 = vpop.f32.mrf.mxu1  ;;  %v4494_v2 = vpop.xlane.xlu1 %4493 }
 0x9ba   :  { %v10786_v22 = vunpack.c.l.b16 %v4025_v12  ;;  %v4501_v19 = vsel %vm11922_vm5, %v10782_v38, -inf  ;;  %v4588_v27 = vsub.f32 %v10693_v23, %v4494_v2  ;;  %vm11936_vm5 = vmmov %vm11929_vm0 }
 0x9bb   :  { %4502 = vmax.xlane.f32.xlu1 %v4501_v19 }
 0x9bc   :  { %v4620_v47 = vmul.f32 1.442695, %v4588_v27 }
 0x9be   :  { %8036 = vpow2.f32 %v4620_v47  ;;  %v10816_v37 = vpop.f32.mrf.mxu3 }
 0x9bf   :  { %v4513_v32 = vsel %vm11930_vm15, %v10816_v37, -inf  ;;  %vm11943_vm15 = vmmov %vm11929_vm0 }
 0x9c1   :  { %v10792_v0 = vpop.f32.mrf.mxu1 }
 0x9c2   :  { %v4522_v24 = vsel %vm11923_vm10, %v10792_v0, -inf  ;;  %vm11937_vm10 = vmmov %vm11929_vm0 }
 0x9c3   :  { %4523 = vmax.xlane.f32.xlu2 %v4522_v24 }
 0x9c4   :  { %v10818_v16 = vpop.eup %8036 }
 0x9c6   :  { %v10832_v60 = vpop.f32.mrf.mxu3 }
 0x9c7   :  { %v10801_v48 = vpop.f32.mrf.mxu2  ;;  %v4534_v50 = vsel %vm11933_vm2, %v10832_v60, -inf  ;;  %vm11946_vm2 = vmmov %vm11929_vm0 }
 0x9c8   :  { %v4504_v53 = vsel %vm11925_vm7, %v10801_v48, -inf  ;;  %vm11939_vm7 = vmmov %vm11929_vm0 }
 0x9c9   :  { %v10828_v57 = vpop.f32.mrf.mxu1 }
 0x9ca   :  { %v4497_v7 = vpop.xlane.xlu2 %4496  ;;  %v4525_v58 = vsel %vm11934_vm12, %v10828_v57, -inf  ;;  %vm11947_vm12 = vmmov %vm11929_vm0 }
 0x9cb   :  { %v4589_v30 = vsub.f32 %v10715_v8, %v4497_v7  ;;  %v4684_v8 = vsel %vm11927_vm14, %v10818_v16, 0.0  ;;  %vm11941_vm14 = vmmov %vm11929_vm0 }
 0x9cd   :  { %v4622_v59 = vmul.f32 1.442695, %v4589_v30  ;;  %v10898_v30 = vpop.permute.xlu0 %4067 }
 0x9ce   :  { %v10848_v31 = vpop.f32.mrf.mxu3 }
 0x9cf   :  { %v10814_v17 = vpop.f32.mrf.mxu2  ;;  %8038 = vpow2.f32 %v4622_v59  ;;  %v4537_v52 = vsel %vm11935_vm8, %v10848_v31, -inf  ;;  %vm11948_vm8 = vmmov %vm11929_vm0 }
 0x9d0   :  { %v4507_v61 = vsel %vm11928_vm9, %v10814_v17, -inf  ;;  %vm11942_vm9 = vmmov %vm11929_vm0 }
 0x9d1   :  { %v10803_v10 = vpop.f32.mrf.mxu0 }
 0x9d2   :  { %v4516_v14 = vsel %vm11924_vm1, %v10803_v10, -inf  ;;  %v10844_v26 = vpop.f32.mrf.mxu1  ;;  %vm11938_vm1 = vmmov %vm11929_vm0 }
 0x9d3   :  { %4517 = vmax.xlane.f32.xlu0 %v4516_v14  ;;  %v4546_v15 = vsel %vm11937_vm10, %v10844_v26, -inf  ;;  %vm11950_vm10 = vmmov %vm11929_vm0 }
 0x9d5   :  { %v10834_v21 = vpop.eup %8038 }
 0x9d6   :  { %v4687_v9 = vsel %vm11931_vm3, %v10834_v21, 0.0  ;;  %vm11944_vm3 = vmmov %vm11929_vm0 }
 0x9d7   :  { %v10830_v51 = vpop.f32.mrf.mxu2 }
 0x9d8   :  { %v4528_v6 = vsel %vm11932_vm4, %v10830_v51, -inf  ;;  %vm11945_vm4 = vmmov %vm11929_vm0 }
 0x9d9   :  { %v10808_v1 = vpop.f32.mrf.mxu0 }
 0x9da   :  { %v4519_v23 = vsel %vm11926_vm11, %v10808_v1, -inf  ;;  %v10858_v41 = vpop.f32.mrf.mxu1  ;;  %vm11940_vm11 = vmmov %vm11929_vm0 }
 0x9db   :  { %4505 = vmax.xlane.f32.xlu0 %v4504_v53  ;;  %4520 = vmax.xlane.f32.xlu1 %v4519_v23  ;;  %v4549_v39 = vsel %vm11938_vm1, %v10858_v41, -inf  ;;  %vm11951_vm1 = vmmov %vm11929_vm0 }
 0x9df   :  { %v10846_v4 = vpop.f32.mrf.mxu2 }
 0x9e0   :  { %v4531_v63 = vsel %vm11939_vm7, %v10846_v4, -inf  ;;  %vm11952_vm7 = vmmov %vm11929_vm0 }
 0x9e1   :  { %v10820_v40 = vpop.f32.mrf.mxu0 }
 0x9e2   :  { %v4540_v35 = vsel %vm11929_vm0, %v10820_v40, -inf  ;;  %v10888_v2 = vpop.f32.mrf.mxu1 }
 0x9e3   :  { %4685 = vadd.xlane.f32.xlu0 %v4684_v8  ;;  %4508 = vmax.xlane.f32.xlu1 %v4507_v61  ;;  %v4570_v7 = vsel %vm11946_vm2, %v10888_v2, -inf }
 0x9e4   :  { %4541 = vmax.xlane.f32.xlu2 %v4540_v35 }
 0x9e7   :  { %v10860_v34 = vpop.f32.mrf.mxu2 }
 0x9e8   :  { %v4552_v12 = vsel %vm11929_vm0, %v10860_v34, -inf }
 0x9e9   :  { %v10842_v56 = vpop.f32.mrf.mxu0 }
 0x9ea   :  { %v4543_v18 = vsel %vm11936_vm5, %v10842_v56, -inf  ;;  %v10902_v23 = vpop.f32.mrf.mxu1  ;;  %vm11949_vm5 = vmmov %vm11929_vm0 }
 0x9eb   :  { %4514 = vmax.xlane.f32.xlu0 %v4513_v32  ;;  %4688 = vadd.xlane.f32.xlu1 %v4687_v9  ;;  %v4573_v61 = vsel %vm11948_vm8, %v10902_v23, -inf  ;;  %v10912_v32 = vpop.permute.xlu0 %4017  ;;  %vm11958_vm8 = vmmov %vm11951_vm1 }
 0x9ec   :  { %4529 = vmax.xlane.f32.xlu2 %v4528_v6 }
 0x9ef   :  { %v10876_v3 = vpop.f32.mrf.mxu2 }
 0x9f0   :  { %v4555_v24 = vsel %vm11943_vm15, %v10876_v3, -inf  ;;  %vm11956_vm15 = vmmov %vm11951_vm1 }
 0x9f1   :  { %v10856_v28 = vpop.f32.mrf.mxu0 }
 0x9f2   :  { %v4564_v25 = vsel %vm11940_vm11, %v10856_v28, -inf  ;;  %vm11953_vm11 = vmmov %vm11929_vm0 }
 0x9f3   :  { %4535 = vmax.xlane.f32.xlu1 %v4534_v50  ;;  %4526 = vmax.xlane.f32.xlu0 %v4525_v58 }
 0x9f4   :  { %4538 = vmax.xlane.f32.xlu2 %v4537_v52 }
 0x9f7   :  { %v10870_v54 = vpop.f32.mrf.mxu3 }
 0x9f8   :  { %v4558_v44 = vsel %vm11942_vm9, %v10870_v54, -inf  ;;  %v10890_v27 = vpop.f32.mrf.mxu2  ;;  %vm11955_vm9 = vmmov %vm11929_vm0 }
 0x9f9   :  { %v10868_v55 = vpop.f32.mrf.mxu0  ;;  %v4576_v14 = vsel %vm11944_vm3, %v10890_v27, -inf }
 0x9fa   :  { %v4567_v13 = vsel %vm11941_vm14, %v10868_v55, -inf  ;;  %vm11954_vm14 = vmmov %vm11929_vm0 }
 0x9fb   :  { %4544 = vmax.xlane.f32.xlu0 %v4543_v18  ;;  %4547 = vmax.xlane.f32.xlu1 %v4546_v15 }
 0x9fc   :  { %4550 = vmax.xlane.f32.xlu2 %v4549_v39 }
 0x9ff   :  { %v10884_v19 = vpop.f32.mrf.mxu3 }
 0xa00   :  { %v4561_v47 = vsel %vm11945_vm4, %v10884_v19, -inf  ;;  %v10904_v59 = vpop.f32.mrf.mxu2  ;;  %vm11957_vm4 = vmmov %vm11951_vm1 }
 0xa01   :  { %v4579_v8 = vsel %vm11947_vm12, %v10904_v59, -inf }
 0xa03   :  { %4532 = vmax.xlane.f32.xlu0 %v4531_v63  ;;  %4565 = vmax.xlane.f32.xlu1 %v4564_v25 }
 0xa04   :  { %4568 = vmax.xlane.f32.xlu2 %v4567_v13 }
 0xa07   :  { %v10900_v53 = vpop.f32.mrf.mxu3 }
 0xa08   :  { %v4582_v35 = vsel %vm11949_vm5, %v10900_v53, -inf }
 0xa0b   :  { %4559 = vmax.xlane.f32.xlu0 %v4558_v44  ;;  %4553 = vmax.xlane.f32.xlu1 %v4552_v12 }
 0xa0c   :  { %4556 = vmax.xlane.f32.xlu2 %v4555_v24 }
 0xa0f   :  { %v10914_v9 = vpop.f32.mrf.mxu3 }
 0xa10   :  { %v4585_v6 = vsel %vm11950_vm10, %v10914_v9, -inf  ;;  %vm11959_vm10 = vmmov %vm11951_vm1 }
 0xa13   :  { %4577 = vmax.xlane.f32.xlu0 %v4576_v14  ;;  %4562 = vmax.xlane.f32.xlu1 %v4561_v47 }
 0xa14   :  { %4571 = vmax.xlane.f32.xlu2 %v4570_v7 }
 0xa1b   :  { %4580 = vmax.xlane.f32.xlu1 %v4579_v8  ;;  %4574 = vmax.xlane.f32.xlu0 %v4573_v61 }
 0xa1c   :  { %4583 = vmax.xlane.f32.xlu2 %v4582_v35 }
 0xa23   :  { %4586 = vmax.xlane.f32.xlu0 %v4585_v6 }
 0xa26   :  { %v4500_v50 = vpop.xlane.xlu0 %4499 }
 0xa27   :  { %v4590_v58 = vsub.f32 %v10772_v29, %v4500_v50 }
 0xa29   :  { %v4624_v52 = vmul.f32 1.442695, %v4590_v58 }
 0xa2b   :  { %8040 = vpow2.f32 %v4624_v52  ;;  %v4512_v18 = vpop.xlane.xlu2 %4511 }
 0xa2c   :  { %v4594_v15 = vsub.f32 %v10778_v5, %v4512_v18 }
 0xa2e   :  { %v4632_v39 = vmul.f32 1.442695, %v4594_v15  ;;  %v4503_v29 = vpop.xlane.xlu1 %4502 }
 0xa2f   :  { %v4591_v6 = vsub.f32 %v10782_v38, %v4503_v29 }
 0xa30   :  { %8042 = vpow2.f32 %v4632_v39 }
 0xa31   :  { %v10920_v63 = vpop.eup %8040 }
 0xa32   :  { %v4690_v25 = vsel %vm11951_vm1, %v10920_v63, 0.0 }
 0xa33   :  { %4691 = vadd.xlane.f32.xlu2 %v4690_v25 }
 0xa36   :  { %v10924_v13 = vpop.eup %8042  ;;  %v4524_v7 = vpop.xlane.xlu2 %4523 }
 0xa37   :  { %v4702_v44 = vsel %vm11952_vm7, %v10924_v13, 0.0  ;;  %v4598_v18 = vsub.f32 %v10792_v0, %v4524_v7 }
 0xa38   :  { %4703 = vadd.xlane.f32.xlu1 %v4702_v44 }
 0xa39   :  { %v4640_v44 = vmul.f32 1.442695, %v4598_v18 }
 0xa46   :  { %v4518_v12 = vpop.xlane.xlu0 %4517 }
 0xa47   :  { %v4596_v24 = vsub.f32 %v10803_v10, %v4518_v12  ;;  %v4626_v10 = vmul.f32 1.442695, %v4591_v6 }
 0xa49   :  { %v4636_v14 = vmul.f32 1.442695, %v4596_v24 }
 0xa4b   :  { %8044 = vpow2.f32 %v4636_v14 }
 0xa4e   :  { %v4506_v5 = vpop.xlane.xlu0 %4505  ;;  %v4521_v47 = vpop.xlane.xlu1 %4520 }
 0xa4f   :  { %v4592_v8 = vsub.f32 %v10801_v48, %v4506_v5  ;;  %v4597_v61 = vsub.f32 %v10808_v1, %v4521_v47 }
 0xa51   :  { %v10931_v35 = vpop.eup %8044  ;;  %v4628_v50 = vmul.f32 1.442695, %v4592_v8  ;;  %v4638_v58 = vmul.f32 1.442695, %v4597_v61 }
 0xa52   :  { %v4708_v52 = vsel %vm11953_vm11, %v10931_v35, 0.0 }
 0xa53   :  { %8046 = vpow2.f32 %v4628_v50  ;;  %4709 = vadd.xlane.f32.xlu2 %v4708_v52 }
 0xa54   :  { %8048 = vpow2.f32 %v4638_v58 }
 0xa56   :  { %v4686_v15 = vpop.xlane.xlu0 %4685  ;;  %v4509_v39 = vpop.xlane.xlu1 %4508 }
 0xa57   :  { %8050 = vrcp.f32 %v4686_v15  ;;  %v4542_v48 = vpop.xlane.xlu2 %4541  ;;  %v4593_v1 = vsub.f32 %v10814_v17, %v4509_v39  ;;  %vm4785_vm3 = vweird.f32 %v4686_v15 }
 0xa58   :  { %8052 = vpow2.f32 %v4626_v10  ;;  %v4604_v6 = vsub.f32 %v10820_v40, %v4542_v48 }
 0xa59   :  { %v10938_v25 = vpop.eup %8046  ;;  %v4630_v29 = vmul.f32 1.442695, %v4593_v1  ;;  %v4791_v1 = vand.u32 2147483648, %v4686_v15 }
 0xa5a   :  { %v10940_v38 = vpop.eup %8048  ;;  %v4696_v12 = vsel %vm11954_vm14, %v10938_v25, 0.0  ;;  %v4652_v48 = vmul.f32 1.442695, %v4604_v6 }
 0xa5b   :  { %v4711_v24 = vsel %vm11955_vm9, %v10940_v38, 0.0  ;;  %4697 = vadd.xlane.f32.xlu0 %v4696_v12  ;;  %8054 = vpow2.f32 %v4630_v29  ;;  %vm11960_vm9 = vmmov %vm11951_vm1 }
 0xa5c   :  { %4712 = vadd.xlane.f32.xlu1 %v4711_v24  ;;  %8056 = vpow2.f32 %v4640_v44 }
 0xa5d   :  { %v8051_v0 = vpop.eup %8050 }
 0xa5e   :  { %v4781_v14 = vmul.f32 %v8051_v0, %v4686_v15  ;;  %v4515_v17 = vpop.xlane.xlu0 %4514  ;;  %v4689_v5 = vpop.xlane.xlu1 %4688  ;;  %vm4786_vm0 = vweird.f32 %v8051_v0 }
 0xa5f   :  { %v10946_v47 = vpop.eup %8052  ;;  %v4595_v7 = vsub.f32 %v10816_v37, %v4515_v17  ;;  %8058 = vrcp.f32 %v4689_v5  ;;  %v4530_v8 = vpop.xlane.xlu2 %4529  ;;  %vm4787_vm2 = vmor %vm4785_vm3, %vm4786_vm0  ;;  %vm4800_vm7 = vweird.f32 %v4689_v5 }
 0xa60   :  { %v4782_v61 = vsub.f32 1.0, %v4781_v14  ;;  %v4600_v50 = vsub.f32 %v10830_v51, %v4530_v8  ;;  %v4693_v39 = vsel %vm11956_vm15, %v10946_v47, 0.0  ;;  %v4789_v51 = vand.u32 2147483647, %v4686_v15  ;;  %vm11961_vm0 = vmmov %vm11951_vm1 }
 0xa61   :  { %v4634_v58 = vmul.f32 1.442695, %v4595_v7  ;;  %v10951_v52 = vpop.eup %8054  ;;  %v4792_v7 = vor.u32 1.1754944e-38, %v4791_v1  ;;  %v4804_v1 = vand.u32 2147483647, %v4689_v5  ;;  %vm11962_vm15 = vmmov %vm11961_vm0 }
 0xa62   :  { %v4783_v10 = vmul.f32 %v8051_v0, %v4782_v61  ;;  %v4644_v18 = vmul.f32 1.442695, %v4600_v50  ;;  %v4699_v37 = vsel %vm11957_vm4, %v10951_v52, 0.0  ;;  %v10957_v44 = vpop.eup %8056  ;;  %vm4790_vm12 = vcmp.eq.f32.partialorder %v4789_v51, 8.507059e+37  ;;  %vm11963_vm3 = vmmov %vm11961_vm0 }
 0xa63   :  { %8060 = vpow2.f32 %v4634_v58  ;;  %4694 = vadd.xlane.f32.xlu0 %v4693_v39  ;;  %v4714_v15 = vsel %vm11958_vm8, %v10957_v44, 0.0  ;;  %vm4805_vm14 = vcmp.eq.f32.partialorder %v4804_v1, 8.507059e+37  ;;  %vm11964_vm4 = vmmov %vm11961_vm0 }
 0xa64   :  { %v4784_v40 = vadd.f32 %v8051_v0, %v4783_v10  ;;  %8062 = vpow2.f32 %v4644_v18  ;;  %4700 = vadd.xlane.f32.xlu1 %v4699_v37  ;;  %v4806_v10 = vand.u32 2147483648, %v4689_v5  ;;  %vm11967_vm8 = vmmov %vm11961_vm0 }
 0xa65   :  { %v8059_v29 = vpop.eup %8058  ;;  %8064 = vpow2.f32 %v4652_v48 }
 0xa66   :  { %v4788_v12 = vsel %vm4787_vm2, %v8051_v0, %v4784_v40  ;;  %v4796_v24 = vmul.f32 %v8059_v29, %v4689_v5  ;;  %v4536_v14 = vpop.xlane.xlu1 %4535  ;;  %v4527_v17 = vpop.xlane.xlu0 %4526  ;;  %vm4801_vm5 = vweird.f32 %v8059_v29  ;;  %vm11965_vm2 = vmmov %vm11961_vm0 }
 0xa67   :  { %v4602_v8 = vsub.f32 %v10832_v60, %v4536_v14  ;;  %v4539_v61 = vpop.xlane.xlu2 %4538  ;;  %v4793_v58 = vsel %vm4790_vm12, %v4792_v7, %v4788_v12  ;;  %v4599_v0 = vsub.f32 %v10828_v57, %v4527_v17  ;;  %vm4802_vm11 = vmor %vm4800_vm7, %vm4801_vm5  ;;  %v4807_v57 = vor.u32 1.1754944e-38, %v4806_v10 }
 0xa68   :  { %v4797_v50 = vsub.f32 1.0, %v4796_v24  ;;  %v4794_v51 = vmul.f32 %v10818_v16, %v4793_v58  ;;  %v4603_v10 = vsub.f32 %v10848_v31, %v4539_v61  ;;  %v5505_v31 = vunpack.c.l.b16 %v10651_v43  ;;  %vm11966_vm12 = vmmov %vm11961_vm0 }
 0xa69   :  { %v10963_v6 = vpop.eup %8060  ;;  %v4648_v18 = vmul.f32 1.442695, %v4602_v8  ;;  %v4642_v12 = vmul.f32 1.442695, %v4599_v0  ;;  %vm11968_vm5 = vmmov %vm11961_vm0 }
 0xa6a   :  { %v10966_v39 = vpop.eup %8062  ;;  %v4798_v37 = vmul.f32 %v8059_v29, %v4797_v50  ;;  %v4705_v60 = vsel %vm11959_vm10, %v10963_v6, 0.0  ;;  %v5260_v16 = vpack.c.bf16 %v4794_v51, %v4794_v51  ;;  %vm11969_vm10 = vmmov %vm11961_vm0 }
 0xa6b   :  { %8066 = vpow2.f32 %v4648_v18  ;;  %v4720_v40 = vsel %vm11951_vm1, %v10966_v39, 0.0  ;;  %4706 = vadd.xlane.f32.xlu2 %v4705_v60  ;;  %4715 = vadd.xlane.f32.xlu0 %v4714_v15  ;;  %v10973_v24 = vpop.eup %8064  ;;  %vm11970_vm1 = vmmov %vm11961_vm0 }
 0xa6c   :  { %v4799_v48 = vadd.f32 %v8059_v29, %v4798_v37  ;;  %4721 = vadd.xlane.f32.xlu1 %v4720_v40  ;;  %8068 = vpow2.f32 %v4642_v12  ;;  %v4732_v1 = vsel %vm11960_vm9, %v10973_v24, 0.0  ;;  %v4650_v40 = vmul.f32 1.442695, %v4603_v10  ;;  %vm11971_vm7 = vmmov %vm11961_vm0 }
 0xa6d   :  { %vm11974_vm9 = vmmov %vm11961_vm0 }
 0xa6e   :  { %v4803_v14 = vsel %vm4802_vm11, %v8059_v29, %v4799_v48  ;;  %v4545_v17 = vpop.xlane.xlu0 %4544  ;;  %v4548_v7 = vpop.xlane.xlu1 %4547  ;;  %vm11972_vm11 = vmmov %vm11961_vm0 }
 0xa6f   :  { %v4808_v8 = vsel %vm4805_vm14, %v4807_v57, %v4803_v14  ;;  %v4605_v50 = vsub.f32 %v10842_v56, %v4545_v17  ;;  %v4606_v18 = vsub.f32 %v10844_v26, %v4548_v7  ;;  %v10977_v15 = vpop.xlane.xlu2 %4550  ;;  %v5506_v26 = vunpack.c.l.b16 %v10615_v49  ;;  %vm11973_vm14 = vmmov %vm11961_vm0 }
 0xa70   :  { %v4809_v5 = vmul.f32 %v10834_v21, %v4808_v8  ;;  %v5294_v21 = vunpack.c.l.b16 %v5260_v16 }
 0xa71   :  { %v10980_v58 = vpop.eup %8066  ;;  %v4654_v0 = vmul.f32 1.442695, %v4605_v50  ;;  %v4656_v29 = vmul.f32 1.442695, %v4606_v18  ;;  %v5507_v17 = vpack.c.b16 %v5506_v26, %v5505_v31 }
 0xa72   :  { %v5261_v37 = vpack.c.bf16 %v4809_v5, %v4809_v5  ;;  %v4726_v56 = vsel %vm11961_vm0, %v10980_v58, 0.0  ;;  %v10989_v57 = vpop.eup %8068 }
 0xa73   :  { %8070 = vpow2.f32 %v4654_v0  ;;  %4733 = vadd.xlane.f32.xlu2 %v4732_v1  ;;  %4727 = vadd.xlane.f32.xlu0 %v4726_v56 }
 0xa74   :  { %v5295_v60 = vunpack.c.l.b16 %v5261_v37  ;;  %8072 = vpow2.f32 %v4656_v29 }
 0xa75   :  { %8074 = vpow2.f32 %v4650_v40  ;;  %v4607_v40 = vsub.f32 %v10858_v41, %v10977_v15 }
 0xa76   :  { %v5296_v61 = vpack.c.b16 %v5295_v60, %v5294_v21  ;;  %v4533_v51 = vpop.xlane.xlu0 %4532  ;;  %v4566_v48 = vpop.xlane.xlu1 %4565 }
 0xa77   :  { %v4601_v12 = vsub.f32 %v10846_v4, %v4533_v51  ;;  %v4569_v14 = vpop.xlane.xlu2 %4568  ;;  %v4612_v18 = vsub.f32 %v10856_v28, %v4566_v48  ;;  %v4717_v4 = vsel %vm11964_vm4, %v10989_v57, 0.0  ;;  %vm11977_vm4 = vmmov %vm11961_vm0 }
 0xa78   :  { %v4613_v7 = vsub.f32 %v10868_v55, %v4569_v14  ;;  %7570 = vmatmul.msk.bf16.vlgmr.msrb.gmra.mxu0 %vm11962_vm15, %v5296_v61  ;;  %vm11975_vm15 = vmmov %vm11961_vm0 }
 0xa79   :  { %v10994_v8 = vpop.eup %8070  ;;  %v4646_v50 = vmul.f32 1.442695, %v4601_v12  ;;  %5519 = vmatpush.bf16.msrb.mxu0 %v5507_v17  ;;  %v4668_v0 = vmul.f32 1.442695, %v4612_v18 }
 0xa7a   :  { %v10997_v16 = vpop.eup %8072  ;;  %v4670_v5 = vmul.f32 1.442695, %v4613_v7  ;;  %v4735_v10 = vsel %vm11963_vm3, %v10994_v8, 0.0  ;;  %vm11976_vm3 = vmmov %vm11961_vm0 }
 0xa7b   :  { %8076 = vpow2.f32 %v4646_v50  ;;  %4736 = vadd.xlane.f32.xlu1 %v4735_v10  ;;  %4718 = vadd.xlane.f32.xlu2 %v4717_v4  ;;  %v4738_v55 = vsel %vm11965_vm2, %v10997_v16, 0.0  ;;  %v11005_v37 = vpop.eup %8074  ;;  %vm11978_vm2 = vmmov %vm11961_vm0 }
 0xa7c   :  { %4739 = vadd.xlane.f32.xlu0 %v4738_v55  ;;  %8078 = vpow2.f32 %v4670_v5  ;;  %v4729_v31 = vsel %vm11966_vm12, %v11005_v37, 0.0  ;;  %vm11979_vm12 = vmmov %vm11961_vm0 }
 0xa7d   :  { %8080 = vpow2.f32 %v4668_v0 }
 0xa7e   :  { %v4560_v28 = vpop.xlane.xlu0 %4559  ;;  %v4554_v29 = vpop.xlane.xlu1 %4553 }
 0xa7f   :  { %v4608_v1 = vsub.f32 %v10860_v34, %v4554_v29  ;;  %v4557_v56 = vpop.xlane.xlu2 %4556  ;;  %v4610_v21 = vsub.f32 %v10870_v54, %v4560_v28  ;;  %v4658_v54 = vmul.f32 1.442695, %v4607_v40 }
 0xa80   :  { %v4609_v5 = vsub.f32 %v10876_v3, %v4557_v56 }
 0xa81   :  { %v11008_v26 = vpop.eup %8076  ;;  %v4660_v60 = vmul.f32 1.442695, %v4608_v1  ;;  %v4664_v48 = vmul.f32 1.442695, %v4610_v21 }
 0xa82   :  { %v4723_v61 = vsel %vm11967_vm8, %v11008_v26, 0.0  ;;  %v11017_v51 = vpop.eup %8078  ;;  %v4662_v55 = vmul.f32 1.442695, %v4609_v5 }
 0xa83   :  { %4730 = vadd.xlane.f32.xlu1 %v4729_v31  ;;  %4724 = vadd.xlane.f32.xlu2 %v4723_v61  ;;  %8082 = vpow2.f32 %v4660_v60  ;;  %v4759_v34 = vsel %vm11968_vm5, %v11017_v51, 0.0  ;;  %v11021_v41 = vpop.eup %8080 }
 0xa84   :  { %4760 = vadd.xlane.f32.xlu0 %v4759_v34  ;;  %8084 = vpow2.f32 %v4664_v48  ;;  %v4756_v10 = vsel %vm11969_vm10, %v11021_v41, 0.0 }
 0xa85   :  { %8086 = vpow2.f32 %v4658_v54 }
 0xa86   :  { %v4578_v12 = vpop.xlane.xlu0 %4577  ;;  %v4563_v14 = vpop.xlane.xlu1 %4562 }
 0xa87   :  { %v4611_v15 = vsub.f32 %v10884_v19, %v4563_v14  ;;  %v4572_v17 = vpop.xlane.xlu2 %4571  ;;  %v4616_v7 = vsub.f32 %v10890_v27, %v4578_v12 }
 0xa88   :  { %v4614_v21 = vsub.f32 %v10888_v2, %v4572_v17 }
 0xa89   :  { %v4666_v50 = vmul.f32 1.442695, %v4611_v15  ;;  %v11025_v18 = vpop.eup %8082  ;;  %v4676_v19 = vmul.f32 1.442695, %v4616_v7 }
 0xa8a   :  { %v4744_v4 = vsel %vm11970_vm1, %v11025_v18, 0.0  ;;  %v11032_v28 = vpop.eup %8084 }
 0xa8b   :  { %4757 = vadd.xlane.f32.xlu1 %v4756_v10  ;;  %8088 = vpow2.f32 %v4666_v50  ;;  %4745 = vadd.xlane.f32.xlu2 %v4744_v4  ;;  %v11034_v29 = vpop.eup %8086  ;;  %v4750_v40 = vsel %vm11971_vm7, %v11032_v28, 0.0 }
 0xa8c   :  { %8090 = vpow2.f32 %v4676_v19  ;;  %v4741_v31 = vsel %vm11972_vm11, %v11034_v29, 0.0 }
 0xa8d   :  { %8092 = vpow2.f32 %v4662_v55 }
 0xa8e   :  { %v4575_v0 = vpop.xlane.xlu0 %4574  ;;  %v4581_v2 = vpop.xlane.xlu1 %4580 }
 0xa8f   :  { %v4584_v27 = vpop.xlane.xlu2 %4583  ;;  %v4615_v3 = vsub.f32 %v10902_v23, %v4575_v0  ;;  %v4672_v23 = vmul.f32 1.442695, %v4614_v21  ;;  %v4617_v17 = vsub.f32 %v10904_v59, %v4581_v2 }
 0xa90   :  { %v4618_v1 = vsub.f32 %v10900_v53, %v4584_v27 }
 0xa91   :  { %v11038_v56 = vpop.eup %8088  ;;  %v4674_v53 = vmul.f32 1.442695, %v4615_v3  ;;  %v4678_v5 = vmul.f32 1.442695, %v4617_v17 }
 0xa92   :  { %v4680_v60 = vmul.f32 1.442695, %v4618_v1  ;;  %v4753_v61 = vsel %vm11973_vm14, %v11038_v56, 0.0  ;;  %v11047_v48 = vpop.eup %8090 }
 0xa93   :  { %4751 = vadd.xlane.f32.xlu1 %v4750_v40  ;;  %4742 = vadd.xlane.f32.xlu2 %v4741_v31  ;;  %v11050_v12 = vpop.eup %8092  ;;  %v4768_v7 = vsel %vm11974_vm9, %v11047_v48, 0.0 }
 0xa94   :  { %8094 = vpow2.f32 %v4680_v60  ;;  %4754 = vadd.xlane.f32.xlu0 %v4753_v61  ;;  %v4747_v50 = vsel %vm11961_vm0, %v11050_v12, 0.0 }
 0xa95   :  { %8096 = vpow2.f32 %v4674_v53 }
 0xa96   :  { %v4587_v34 = vpop.xlane.xlu0 %4586  ;;  %8098 = vpow2.f32 %v4672_v23 }
 0xa97   :  { %v4619_v54 = vsub.f32 %v10914_v9, %v4587_v34 }
 0xa99   :  { %v4682_v14 = vmul.f32 1.442695, %v4619_v54 }
 0xa9a   :  { %v11052_v15 = vpop.eup %8094 }
 0xa9b   :  { %8100 = vpow2.f32 %v4682_v14  ;;  %4769 = vadd.xlane.f32.xlu1 %v4768_v7  ;;  %v4774_v9 = vsel %vm11975_vm15, %v11052_v15, 0.0  ;;  %4748 = vadd.xlane.f32.xlu2 %v4747_v50  ;;  %v11061_v10 = vpop.eup %8096 }
 0xa9c   :  { %4775 = vadd.xlane.f32.xlu0 %v4774_v9  ;;  %v11063_v4 = vpop.eup %8098  ;;  %8102 = vpow2.f32 %v4678_v5  ;;  %v4765_v59 = vsel %vm11976_vm3, %v11061_v10, 0.0 }
 0xa9d   :  { %v4762_v0 = vsel %vm11978_vm2, %v11063_v4, 0.0 }
 0xaa1   :  { %v11065_v19 = vpop.eup %8100 }
 0xaa2   :  { %v4777_v55 = vsel %vm11977_vm4, %v11065_v19, 0.0  ;;  %v11073_v27 = vpop.eup %8102 }
 0xaa3   :  { %4766 = vadd.xlane.f32.xlu1 %v4765_v59  ;;  %4763 = vadd.xlane.f32.xlu2 %v4762_v0  ;;  %v4771_v1 = vsel %vm11979_vm12, %v11073_v27, 0.0 }
 0xaa4   :  { %4778 = vadd.xlane.f32.xlu0 %v4777_v55 }
 0xaa6   :  { %v4692_v3 = vpop.xlane.xlu2 %4691 }
 0xaa7   :  { %8104 = vrcp.f32 %v4692_v3  ;;  %v4819_v7 = vand.u32 2147483647, %v4692_v3  ;;  %v4821_v50 = vand.u32 2147483648, %v4692_v3  ;;  %vm4815_vm5 = vweird.f32 %v4692_v3 }
 0xaa9   :  { %vm4820_vm7 = vcmp.eq.f32.partialorder %v4819_v7, 8.507059e+37 }
 0xaab   :  { %4772 = vadd.xlane.f32.xlu2 %v4771_v1  ;;  %v4704_v21 = vpop.xlane.xlu1 %4703  ;;  %v4019_v1 = vrot.slane %v10796_v11, 4 }
 0xaac   :  { %8106 = vrcp.f32 %v4704_v21  ;;  %vm4875_vm11 = vweird.f32 %v4704_v21 }
 0xaad   :  { %v8105_v60 = vpop.eup %8104 }
 0xaae   :  { %v4811_v40 = vmul.f32 %v8105_v60, %v4692_v3  ;;  %vm4816_vm8 = vweird.f32 %v8105_v60  ;;  %v4822_v3 = vor.u32 1.1754944e-38, %v4821_v50  ;;  %v11103_v50 = vunpack.c.l.b16 %v4019_v1 }
 0xaaf   :  { %vm11085_vm10 = vmor %vm4815_vm5, %vm4816_vm8 }
 0xab0   :  { %v4812_v61 = vsub.f32 1.0, %v4811_v40  ;;  %v4881_v40 = vand.u32 2147483648, %v4704_v21 }
 0xab2   :  { %v8107_v31 = vpop.eup %8106  ;;  %v4813_v34 = vmul.f32 %v8105_v60, %v4812_v61  ;;  %v4879_v61 = vand.u32 2147483647, %v4704_v21  ;;  %v4882_v5 = vor.u32 1.1754944e-38, %v4881_v40 }
 0xab3   :  { %v4871_v53 = vmul.f32 %v8107_v31, %v4704_v21  ;;  %vm4876_vm1 = vweird.f32 %v8107_v31 }
 0xab4   :  { %v4814_v54 = vadd.f32 %v8105_v60, %v4813_v34  ;;  %vm11097_vm9 = vmor %vm4875_vm11, %vm4876_vm1  ;;  %vm4880_vm3 = vcmp.eq.f32.partialorder %v4879_v61, 8.507059e+37 }
 0xab5   :  { %v4872_v2 = vsub.f32 1.0, %v4871_v53 }
 0xab6   :  { %v4818_v59 = vsel %vm11085_vm10, %v8105_v60, %v4814_v54 }
 0xab7   :  { %v4873_v14 = vmul.f32 %v8107_v31, %v4872_v2  ;;  %v4823_v34 = vsel %vm4820_vm7, %v4822_v3, %v4818_v59 }
 0xab8   :  { %4065 = vrot.lane.b32.xlu0 %v10615_v49, %s8524_s24  ;;  %v11112_v3 = vmul.f32 %v10920_v63, %v4823_v34 }
 0xab9   :  { %v4874_v55 = vadd.f32 %v8107_v31, %v4873_v14 }
 0xabb   :  { %v4878_v54 = vsel %vm11097_vm9, %v8107_v31, %v4874_v55 }
 0xabc   :  { %4069 = vrot.lane.b32.xlu1 %v10615_v49, %s8508_s11  ;;  %v4883_v1 = vsel %vm4880_vm3, %v4882_v5, %v4878_v54  ;;  %s8526_s11 = smov 24  }
 0xabd   :  { %v11132_v59 = vmul.f32 %v10924_v13, %v4883_v1 }
 0xac3   :  { %4063 = vrot.lane.b32.xlu2 %v10651_v43, %s8524_s24 }
 0xac6   :  { %v4710_v23 = vpop.xlane.xlu2 %4709 }
 0xac7   :  { %8108 = vrcp.f32 %v4710_v23  ;;  %v4911_v60 = vand.u32 2147483648, %v4710_v23  ;;  %vm4905_vm0 = vweird.f32 %v4710_v23  ;;  %v4909_v11 = vand.u32 2147483647, %v4710_v23 }
 0xac9   :  { %vm4910_vm4 = vcmp.eq.f32.partialorder %v4909_v11, 8.507059e+37 }
 0xacd   :  { %v8109_v17 = vpop.eup %8108 }
 0xace   :  { %v4901_v49 = vmul.f32 %v8109_v17, %v4710_v23  ;;  %v11083_v9 = vpop.xlane.xlu0 %4697  ;;  %vm4906_vm14 = vweird.f32 %v8109_v17 }
 0xacf   :  { %v11089_v43 = vpop.xlane.xlu1 %4712  ;;  %8110 = vrcp.f32 %v11083_v9  ;;  %vm11107_vm15 = vmor %vm4905_vm0, %vm4906_vm14  ;;  %v4849_v63 = vand.u32 2147483647, %v11083_v9  ;;  %vm4845_vm5 = vweird.f32 %v11083_v9 }
 0xad0   :  { %v4902_v0 = vsub.f32 1.0, %v4901_v49  ;;  %8112 = vrcp.f32 %v11089_v43  ;;  %v4924_v34 = vand.u32 2147483647, %v11089_v43  ;;  %v4926_v54 = vand.u32 2147483648, %v11089_v43 }
 0xad1   :  { %vm4920_vm8 = vweird.f32 %v11089_v43  ;;  %vm4850_vm7 = vcmp.eq.f32.partialorder %v4849_v63, 8.507059e+37 }
 0xad2   :  { %v4903_v53 = vmul.f32 %v8109_v17, %v4902_v0  ;;  %vm11137_vm10 = vcmp.eq.f32.partialorder %v4924_v34, 8.507059e+37  ;;  %v4927_v1 = vor.u32 1.1754944e-38, %v4926_v54 }
 0xad4   :  { %v4904_v14 = vadd.f32 %v8109_v17, %v4903_v53  ;;  %v4912_v53 = vor.u32 1.1754944e-38, %v4911_v60 }
 0xad5   :  { %v8111_v7 = vpop.eup %8110 }
 0xad6   :  { %v8113_v0 = vpop.eup %8112  ;;  %v4908_v31 = vsel %vm11107_vm15, %v8109_v17, %v4904_v14  ;;  %v4841_v23 = vmul.f32 %v8111_v7, %v11083_v9  ;;  %v11117_v55 = vpop.xlane.xlu0 %4694  ;;  %v4851_v14 = vand.u32 2147483648, %v11083_v9  ;;  %vm4846_vm2 = vweird.f32 %v8111_v7 }
 0xad7   :  { %v4916_v40 = vmul.f32 %v8113_v0, %v11089_v43  ;;  %v11120_v2 = vpop.xlane.xlu1 %4700  ;;  %8114 = vrcp.f32 %v11117_v55  ;;  %v4913_v61 = vsel %vm4910_vm4, %v4912_v53, %v4908_v31  ;;  %vm4921_vm12 = vweird.f32 %v8113_v0  ;;  %vm4847_vm1 = vmor %vm4845_vm5, %vm4846_vm2 }
 0xad8   :  { %v4842_v33 = vsub.f32 1.0, %v4841_v23  ;;  %8116 = vrcp.f32 %v11120_v2  ;;  %v4914_v31 = vmul.f32 %v10931_v35, %v4913_v61  ;;  %v4852_v11 = vor.u32 1.1754944e-38, %v4851_v14  ;;  %vm4922_vm11 = vmor %vm4920_vm8, %vm4921_vm12 }
 0xad9   :  { %v4917_v17 = vsub.f32 1.0, %v4916_v40  ;;  %v4864_v35 = vand.u32 2147483647, %v11120_v2  ;;  %v4834_v49 = vand.u32 2147483647, %v11117_v55  ;;  %vm4860_vm9 = vweird.f32 %v11120_v2 }
 0xada   :  { %v4843_v5 = vmul.f32 %v8111_v7, %v4842_v33  ;;  %v5268_v63 = vpack.c.bf16 %v4914_v31, %v4914_v31  ;;  %vm4830_vm3 = vweird.f32 %v11117_v55  ;;  %vm11994_vm8 = vcmask 130048  }
 0xadb   :  { %v4918_v23 = vmul.f32 %v8113_v0, %v4917_v17  ;;  %vm11160_vm15 = vcmp.eq.f32.partialorder %v4864_v35, 8.507059e+37  ;;  %vm4835_vm12 = vcmp.eq.f32.partialorder %v4834_v49, 8.507059e+37 }
 0xadc   :  { %v4844_v53 = vadd.f32 %v8111_v7, %v4843_v5 }
 0xadd   :  { %v8115_v40 = vpop.eup %8114  ;;  %v4919_v60 = vadd.f32 %v8113_v0, %v4918_v23  ;;  %v4866_v23 = vand.u32 2147483648, %v11120_v2 }
 0xade   :  { %v8117_v13 = vpop.eup %8116  ;;  %v4848_v17 = vsel %vm4847_vm1, %v8111_v7, %v4844_v53  ;;  %v4826_v43 = vmul.f32 %v8115_v40, %v11117_v55  ;;  %v11143_v61 = vpop.xlane.xlu2 %4706  ;;  %vm4831_vm14 = vweird.f32 %v8115_v40 }
 0xadf   :  { %v4923_v9 = vsel %vm4922_vm11, %v8113_v0, %v4919_v60  ;;  %v4853_v5 = vsel %vm4850_vm7, %v4852_v11, %v4848_v17  ;;  %v4856_v34 = vmul.f32 %v8117_v13, %v11120_v2  ;;  %v11147_v21 = vpop.xlane.xlu1 %4721  ;;  %v4836_v0 = vand.u32 2147483648, %v11117_v55  ;;  %v11155_v60 = vpop.xlane.xlu0 %4715  ;;  %vm4832_vm4 = vmor %vm4830_vm3, %vm4831_vm14 }
 0xae0   :  { %v4928_v14 = vsel %vm11137_vm10, %v4927_v1, %v4923_v9  ;;  %v4827_v54 = vsub.f32 1.0, %v4826_v43  ;;  %8118 = vrcp.f32 %v11147_v21  ;;  %v4854_v11 = vmul.f32 %v10938_v25, %v4853_v5  ;;  %vm11995_vm14 = vmmov %vm11994_vm8 }
 0xae1   :  { %v4929_v7 = vmul.f32 %v10940_v38, %v4928_v14  ;;  %v4857_v53 = vsub.f32 1.0, %v4856_v34  ;;  %8120 = vrcp.f32 %v11143_v61  ;;  %vm4861_vm0 = vweird.f32 %v8117_v13 }
 0xae2   :  { %v4828_v17 = vmul.f32 %v8115_v40, %v4827_v54  ;;  %v5398_v1 = vunpack.c.l.b16 %v5268_v63  ;;  %v4837_v25 = vor.u32 1.1754944e-38, %v4836_v0  ;;  %8122 = vrcp.f32 %v11155_v60  ;;  %vm4862_vm2 = vmor %vm4860_vm9, %vm4861_vm0 }
 0xae3   :  { %v5269_v31 = vpack.c.bf16 %v4929_v7, %v4929_v7  ;;  %v4858_v33 = vmul.f32 %v8117_v13, %v4857_v53  ;;  %v5264_v14 = vpack.c.bf16 %v4854_v11, %v4854_v11  ;;  %v4867_v2 = vor.u32 1.1754944e-38, %v4866_v23 }
 0xae4   :  { %v4829_v43 = vadd.f32 %v8115_v40, %v4828_v17  ;;  %v11990_v0 = vunpack.c.l.b16 %v10770_v45  ;;  %v11992_v11 = vrot.slane %v10898_v30, 4  ;;  %v11993_v23 = vpack.c.bf16 %v11112_v3, %v11112_v3 }
 0xae5   :  { %v5399_v9 = vunpack.c.l.b16 %v5269_v31  ;;  %v4859_v34 = vadd.f32 %v8117_v13, %v4858_v33  ;;  %v11991_v31 = vunpack.c.l.b16 %v10798_v42  ;;  %v4969_v38 = vand.u32 2147483647, %v11147_v21 }
 0xae6   :  { %v11166_v5 = vpop.eup %8118  ;;  %v4833_v54 = vsel %vm4832_vm4, %v8115_v40, %v4829_v43  ;;  %v11170_v55 = vpop.xlane.xlu2 %4733  ;;  %v11182_v49 = vsel %vm3888_vm13, %v10898_v30, %v11992_v11  ;;  %v5266_v30 = vpack.c.bf16 %v11132_v59, %v11132_v59  ;;  %v4020_v11 = vrot.slane %v10912_v32, 4 }
 0xae7   :  { %v5400_v35 = vpack.c.b16 %v5399_v9, %v5398_v1  ;;  %v4863_v63 = vsel %vm4862_vm2, %v8117_v13, %v4859_v34  ;;  %v4838_v7 = vsel %vm4835_vm12, %v4837_v25, %v4833_v54  ;;  %v4961_v53 = vmul.f32 %v11166_v5, %v11147_v21  ;;  %v8121_v17 = vpop.eup %8120 }
 0xae8   :  { %v11176_v33 = vpack.c.b16 %v11991_v31, %v11990_v0  ;;  %v4868_v40 = vsel %vm11160_vm15, %v4867_v2, %v4863_v63  ;;  %v4839_v13 = vmul.f32 %v10946_v47, %v4838_v7  ;;  %v5320_v1 = vunpack.c.l.b16 %v11993_v23  ;;  %v11197_v47 = vpop.eup %8122  ;;  %v11200_v2 = vpop.xlane.xlu0 %4727  ;;  %vm11998_vm15 = vmmov %vm11994_vm8 }
 0xae9   :  { %v4869_v45 = vmul.f32 %v10951_v52, %v4868_v40  ;;  %v4962_v42 = vsub.f32 1.0, %v4961_v53  ;;  %v4886_v43 = vmul.f32 %v8121_v17, %v11143_v61  ;;  %7574 = vmatmul.msk.bf16.vlgmr.msra.gmra.mxu0 %vm11994_vm8, %v5400_v35  ;;  %8124 = vrcp.f32 %v11170_v55 }
 0xaea   :  { %v5263_v9 = vpack.c.bf16 %v4839_v13, %v4839_v13  ;;  %v5346_v34 = vunpack.c.l.b16 %v5264_v14  ;;  %v4894_v35 = vand.u32 2147483647, %v11143_v61  ;;  %v4896_v63 = vand.u32 2147483648, %v11143_v61 }
 0xaeb   :  { %v5265_v3 = vpack.c.bf16 %v4869_v45, %v4869_v45  ;;  %v4963_v25 = vmul.f32 %v11166_v5, %v4962_v42  ;;  %v4887_v52 = vsub.f32 1.0, %v4886_v43  ;;  %v4931_v59 = vmul.f32 %v11197_v47, %v11155_v60 }
 0xaec   :  { %v5321_v54 = vunpack.c.l.b16 %v5263_v9  ;;  %vm4966_vm5 = vweird.f32 %v11166_v5  ;;  %vm4891_vm10 = vweird.f32 %v8121_v17  ;;  %8126 = vrcp.f32 %v11200_v2 }
 0xaed   :  { %v5347_v7 = vunpack.c.l.b16 %v5265_v3  ;;  %v4888_v53 = vmul.f32 %v8121_v17, %v4887_v52  ;;  %v4964_v0 = vadd.f32 %v11166_v5, %v4963_v25  ;;  %v4932_v31 = vsub.f32 1.0, %v4931_v59 }
 0xaee   :  { %v5322_v14 = vpack.c.b16 %v5321_v54, %v5320_v1  ;;  %vm4890_vm1 = vweird.f32 %v11143_v61  ;;  %vm4965_vm7 = vweird.f32 %v11147_v21  ;;  %v4971_v45 = vand.u32 2147483648, %v11147_v21  ;;  %v11216_v43 = vpop.xlane.xlu1 %4736 }
 0xaef   :  { %v5348_v40 = vpack.c.b16 %v5347_v7, %v5346_v34  ;;  %v4889_v13 = vadd.f32 %v8121_v17, %v4888_v53  ;;  %v11211_v23 = vpop.eup %8124  ;;  %vm4892_vm11 = vmor %vm4890_vm1, %vm4891_vm10  ;;  %v4897_v42 = vor.u32 1.1754944e-38, %v4896_v63  ;;  %v4933_v1 = vmul.f32 %v11197_v47, %v4932_v31 }
 0xaf0   :  { %7571 = vmatmul.msk.bf16.vlgmr.msra.gmra.mxu1 %vm11995_vm14, %v5322_v14  ;;  %v5372_v9 = vunpack.c.l.b16 %v5266_v30  ;;  %vm11221_vm9 = vmor %vm4965_vm7, %vm4966_vm5  ;;  %vm4895_vm0 = vcmp.eq.f32.partialorder %v4894_v35, 8.507059e+37  ;;  %v5021_v21 = vmul.f32 %v11211_v23, %v11170_v55  ;;  %vm11232_vm3 = vcmp.eq.f32.partialorder %v4969_v38, 8.507059e+37  ;;  %v11246_v35 = vpop.xlane.xlu2 %4718 }
 0xaf1   :  { %v4893_v61 = vsel %vm4892_vm11, %v8121_v17, %v4889_v13  ;;  %7572 = vmatmul.msk.bf16.vlgmr.msrb.gmra.mxu2 %vm11998_vm15, %v5348_v40  ;;  %5545 = vmatpush.bf16.msra.mxu1 %v10774_v36  ;;  %v4968_v34 = vsel %vm11221_vm9, %v11166_v5, %v4964_v0  ;;  %vm4936_vm4 = vweird.f32 %v11197_v47  ;;  %v4934_v25 = vadd.f32 %v11197_v47, %v4933_v1  ;;  %vm12005_vm9 = vmmov %vm11998_vm15 }
 0xaf2   :  { %v4898_v3 = vsel %vm4895_vm0, %v4897_v42, %v4893_v61  ;;  %5571 = vmatpush.bf16.msrb.mxu2 %v10768_v46  ;;  %v5022_v52 = vsub.f32 1.0, %v5021_v21  ;;  %8128 = vrcp.f32 %v11216_v43  ;;  %v11241_v36 = vpop.eup %8126  ;;  %v4972_v54 = vor.u32 1.1754944e-38, %v4971_v45  ;;  %v11280_v21 = vpop.xlane.xlu0 %4739 }
 0xaf3   :  { %v4899_v17 = vmul.f32 %v10963_v6, %v4898_v3  ;;  %vm4935_vm2 = vweird.f32 %v11155_v60  ;;  %v4939_v5 = vand.u32 2147483647, %v11155_v60  ;;  %v4941_v38 = vand.u32 2147483648, %v11155_v60 }
 0xaf4   :  { %v5023_v46 = vmul.f32 %v11211_v23, %v5022_v52  ;;  %vm5026_vm12 = vweird.f32 %v11211_v23  ;;  %v5031_v6 = vand.u32 2147483648, %v11170_v55  ;;  %v4973_v59 = vsel %vm11232_vm3, %v4972_v54, %v4968_v34  ;;  %vm11255_vm8 = vmor %vm4935_vm2, %vm4936_vm4 }
 0xaf5   :  { %v5267_v63 = vpack.c.bf16 %v4899_v17, %v4899_v17  ;;  %vm5025_vm5 = vweird.f32 %v11170_v55  ;;  %v5029_v60 = vand.u32 2147483647, %v11170_v55  ;;  %v4991_v53 = vmul.f32 %v11241_v36, %v11200_v2 }
 0xaf6   :  { %v4938_v0 = vsel %vm11255_vm8, %v11197_v47, %v4934_v25  ;;  %v5024_v31 = vadd.f32 %v11211_v23, %v5023_v46  ;;  %8130 = vrcp.f32 %v11246_v35  ;;  %v11268_v40 = vunpack.c.l.b16 %v4020_v11  ;;  %vm11270_vm1 = vmor %vm5025_vm5, %vm5026_vm12 }
 0xaf7   :  { %v5373_v14 = vunpack.c.l.b16 %v5267_v63  ;;  %vm4940_vm10 = vcmp.eq.f32.partialorder %v4939_v5, 8.507059e+37  ;;  %v4942_v13 = vor.u32 1.1754944e-38, %v4941_v38  ;;  %v4992_v55 = vsub.f32 1.0, %v4991_v53 }
 0xaf8   :  { %v8129_v42 = vpop.eup %8128  ;;  %v11275_v1 = vmul.f32 %v10966_v39, %v4973_v59  ;;  %v5028_v47 = vsel %vm11270_vm1, %v11211_v23, %v5024_v31  ;;  %v5032_v61 = vor.u32 1.1754944e-38, %v5031_v6  ;;  %v4999_v30 = vand.u32 2147483647, %v11200_v2  ;;  %v11302_v59 = vpop.xlane.xlu1 %4730 }
 0xaf9   :  { %v5374_v32 = vpack.c.b16 %v5373_v14, %v5372_v9  ;;  %v4943_v11 = vsel %vm4940_vm10, %v4942_v13, %v4938_v0  ;;  %v4993_v34 = vmul.f32 %v11241_v36, %v4992_v55  ;;  %v5036_v3 = vmul.f32 %v8129_v42, %v11216_v43  ;;  %v11320_v13 = vpop.xlane.xlu2 %4724 }
 0xafa   :  { %vm5030_vm7 = vcmp.eq.f32.partialorder %v5029_v60, 8.507059e+37  ;;  %vm4995_vm11 = vweird.f32 %v11200_v2  ;;  %vm4996_vm14 = vweird.f32 %v11241_v36  ;;  %v5001_v39 = vand.u32 2147483648, %v11200_v2 }
 0xafb   :  { %7573 = vmatmul.msk.bf16.vlgmr.msra.gmra.mxu3 %vm12005_vm9, %v5374_v32  ;;  %v5033_v23 = vsel %vm5030_vm7, %v5032_v61, %v5028_v47  ;;  %v4994_v9 = vadd.f32 %v11241_v36, %v4993_v34  ;;  %v5037_v17 = vsub.f32 1.0, %v5036_v3  ;;  %8132 = vrcp.f32 %v11280_v21  ;;  %vm11309_vm3 = vmor %vm4995_vm11, %vm4996_vm14 }
 0xafc   :  { %5597 = vmatpush.bf16.msra.mxu3 %v11176_v33  ;;  %v8131_v25 = vpop.eup %8130  ;;  %v5272_v52 = vpack.c.bf16 %v11275_v1, %v11275_v1  ;;  %v4944_v54 = vmul.f32 %v10957_v44, %v4943_v11  ;;  %v5044_v5 = vand.u32 2147483647, %v11216_v43  ;;  %v5046_v38 = vand.u32 2147483648, %v11216_v43  ;;  %v11333_v11 = vpop.xlane.xlu0 %4760 }
 0xafd   :  { %vm11297_vm0 = vcmp.eq.f32.partialorder %v4999_v30, 8.507059e+37  ;;  %v5038_v46 = vmul.f32 %v8129_v42, %v5037_v17  ;;  %vm5041_vm15 = vweird.f32 %v8129_v42  ;;  %v4946_v6 = vmul.f32 %v8131_v25, %v11246_v35 }
 0xafe   :  { %v5034_v33 = vmul.f32 %v10973_v24, %v5033_v23  ;;  %v5002_v7 = vor.u32 1.1754944e-38, %v5001_v39  ;;  %vm5040_vm4 = vweird.f32 %v11216_v43  ;;  %v4954_v60 = vand.u32 2147483647, %v11246_v35 }
 0xaff   :  { %v4998_v53 = vsel %vm11309_vm3, %v11241_v36, %v4994_v9  ;;  %v5039_v14 = vadd.f32 %v8129_v42, %v5038_v46  ;;  %v4947_v0 = vsub.f32 1.0, %v4946_v6  ;;  %v4956_v24 = vand.u32 2147483648, %v11246_v35  ;;  %vm5042_vm2 = vmor %vm5040_vm4, %vm5041_vm15 }
 0xb00   :  { %v5270_v31 = vpack.c.bf16 %v4944_v54, %v4944_v54  ;;  %vm5045_vm12 = vcmp.eq.f32.partialorder %v5044_v5, 8.507059e+37  ;;  %v5047_v2 = vor.u32 1.1754944e-38, %v5046_v38  ;;  %8134 = vrcp.f32 %v11302_v59 }
 0xb01   :  { %v11322_v45 = vpop.eup %8132  ;;  %v5043_v43 = vsel %vm5042_vm2, %v8129_v42, %v5039_v14  ;;  %v4948_v55 = vmul.f32 %v8131_v25, %v4947_v0  ;;  %vm4950_vm8 = vweird.f32 %v11246_v35  ;;  %vm4951_vm5 = vweird.f32 %v8131_v25 }
 0xb02   :  { %v5003_v36 = vsel %vm11297_vm0, %v5002_v7, %v4998_v53  ;;  %v5048_v32 = vsel %vm5045_vm12, %v5047_v2, %v5043_v43  ;;  %vm11327_vm10 = vcmp.eq.f32.partialorder %v4954_v60, 8.507059e+37  ;;  %v5051_v61 = vmul.f32 %v11322_v45, %v11280_v21  ;;  %vm4952_vm1 = vmor %vm4950_vm8, %vm4951_vm5 }
 0xb03   :  { %v5276_v34 = vpack.c.bf16 %v5034_v33, %v5034_v33  ;;  %v5049_v42 = vmul.f32 %v10994_v8, %v5048_v32  ;;  %v4949_v30 = vadd.f32 %v8131_v25, %v4948_v55  ;;  %v4957_v3 = vor.u32 1.1754944e-38, %v4956_v24  ;;  %v11359_v55 = vpop.xlane.xlu2 %4745 }
 0xb04   :  { %v5052_v35 = vsub.f32 1.0, %v5051_v61  ;;  %v5059_v39 = vand.u32 2147483647, %v11280_v21  ;;  %v5061_v23 = vand.u32 2147483648, %v11280_v21  ;;  %8136 = vrcp.f32 %v11320_v13 }
 0xb05   :  { %v5004_v9 = vmul.f32 %v10980_v58, %v5003_v36  ;;  %v5277_v17 = vpack.c.bf16 %v5049_v42, %v5049_v42  ;;  %v4953_v54 = vsel %vm4952_vm1, %v8131_v25, %v4949_v30  ;;  %8138 = vrcp.f32 %v11333_v11  ;;  %v11347_v58 = vpop.xlane.xlu1 %4757 }
 0xb06   :  { %v8135_v5 = vpop.eup %8134  ;;  %v5424_v38 = vunpack.c.l.b16 %v5270_v31  ;;  %v4958_v8 = vsel %vm11327_vm10, %v4957_v3, %v4953_v54  ;;  %v5053_v63 = vmul.f32 %v11322_v45, %v5052_v35  ;;  %vm5055_vm7 = vweird.f32 %v11280_v21 }
 0xb07   :  { %v5502_v46 = vunpack.c.l.b16 %v5276_v34  ;;  %v5503_v6 = vunpack.c.l.b16 %v5277_v17  ;;  %v4959_v33 = vmul.f32 %v10989_v57, %v4958_v8  ;;  %v5006_v44 = vmul.f32 %v8135_v5, %v11302_v59 }
 0xb08   :  { %vm11349_vm11 = vcmp.eq.f32.partialorder %v5059_v39, 8.507059e+37  ;;  %v5062_v7 = vor.u32 1.1754944e-38, %v5061_v23  ;;  %v5014_v60 = vand.u32 2147483647, %v11302_v59  ;;  %v5016_v53 = vand.u32 2147483648, %v11302_v59 }
 0xb09   :  { %v5274_v14 = vpack.c.bf16 %v5004_v9, %v5004_v9  ;;  %v5504_v0 = vpack.c.b16 %v5503_v6, %v5502_v46  ;;  %v5271_v24 = vpack.c.bf16 %v4959_v33, %v4959_v33  ;;  %v5007_v31 = vsub.f32 1.0, %v5006_v44 }
 0xb0a   :  { %v8137_v2 = vpop.eup %8136  ;;  %v5054_v57 = vadd.f32 %v11322_v45, %v5053_v63  ;;  %vm5056_vm14 = vweird.f32 %v11322_v45  ;;  %v4984_v43 = vand.u32 2147483647, %v11320_v13  ;;  %8140 = vrcp.f32 %v11347_v58 }
 0xb0b   :  { %v11361_v36 = vpop.eup %8138  ;;  %v5425_v32 = vunpack.c.l.b16 %v5271_v24  ;;  %v5008_v47 = vmul.f32 %v8135_v5, %v5007_v31  ;;  %vm5011_vm9 = vweird.f32 %v8135_v5  ;;  %v4976_v61 = vmul.f32 %v8137_v2, %v11320_v13  ;;  %vm11379_vm4 = vmor %vm5055_vm7, %vm5056_vm14 }
 0xb0c   :  { %vm12014_vm0 = vcmask 130048   ;;  %vm5010_vm15 = vweird.f32 %v11302_v59  ;;  %vm11366_vm3 = vcmp.eq.f32.partialorder %v5014_v60, 8.507059e+37  ;;  %v4986_v42 = vand.u32 2147483648, %v11320_v13 }
 0xb0d   :  { %7578 = vmatmul.msk.bf16.vlgmr.msrb.gmra.mxu0 %vm12014_vm0, %v5504_v0  ;;  %v5156_v30 = vmul.f32 %v11361_v36, %v11333_v11  ;;  %v11373_v3 = vunpack.c.l.b16 %v5274_v14  ;;  %v5426_v35 = vpack.c.b16 %v5425_v32, %v5424_v38  ;;  %v5009_v59 = vadd.f32 %v8135_v5, %v5008_v47  ;;  %vm5012_vm2 = vmor %vm5010_vm15, %vm5011_vm9 }
 0xb0e   :  { %v4977_v23 = vsub.f32 1.0, %v4976_v61  ;;  %v5058_v9 = vsel %vm11379_vm4, %v11322_v45, %v5054_v57  ;;  %v5017_v17 = vor.u32 1.1754944e-38, %v5016_v53  ;;  %vm4980_vm12 = vweird.f32 %v11320_v13  ;;  %vm12021_vm10 = vmmov %vm12014_vm0  ;;  %v11400_v53 = vpop.xlane.xlu1 %4751 }
 0xb0f   :  { %v5157_v54 = vsub.f32 1.0, %v5156_v30  ;;  %v5013_v38 = vsel %vm5012_vm2, %v8135_v5, %v5009_v59  ;;  %vm4981_vm8 = vweird.f32 %v8137_v2  ;;  %vm11387_vm5 = vcmp.eq.f32.partialorder %v4984_v43, 8.507059e+37  ;;  %7575 = vmatmul.msk.bf16.vlgmr.msrb.gmra.mxu1 %vm12021_vm10, %v5426_v35  ;;  %v11414_v43 = vpop.xlane.xlu2 %4742  ;;  %vm12026_vm4 = vmmov %vm12021_vm10 }
 0xb10   :  { %v4978_v8 = vmul.f32 %v8137_v2, %v4977_v23  ;;  %v8141_v63 = vpop.eup %8140  ;;  %v5018_v46 = vsel %vm11366_vm3, %v5017_v17, %v5013_v38  ;;  %v4987_v6 = vor.u32 1.1754944e-38, %v4986_v42  ;;  %vm5160_vm1 = vweird.f32 %v11333_v11  ;;  %vm4982_vm7 = vmor %vm4980_vm12, %vm4981_vm8 }
 0xb11   :  { %v5158_v45 = vmul.f32 %v11361_v36, %v5157_v54  ;;  %v5063_v5 = vsel %vm11349_vm11, %v5062_v7, %v5058_v9  ;;  %v5019_v33 = vmul.f32 %v11005_v37, %v5018_v46  ;;  %v5141_v60 = vmul.f32 %v8141_v63, %v11347_v58  ;;  %vm12028_vm8 = vmmov %vm12026_vm4 }
 0xb12   :  { %v4979_v44 = vadd.f32 %v8137_v2, %v4978_v8  ;;  %vm5161_vm14 = vweird.f32 %v11361_v36  ;;  %v5166_v0 = vand.u32 2147483648, %v11333_v11  ;;  %8142 = vrcp.f32 %v11359_v55 }
 0xb13   :  { %v5159_v14 = vadd.f32 %v11361_v36, %v5158_v45  ;;  %v5275_v25 = vpack.c.bf16 %v5019_v33, %v5019_v33  ;;  %v5164_v37 = vand.u32 2147483647, %v11333_v11  ;;  %v5142_v24 = vsub.f32 1.0, %v5141_v60  ;;  %vm11419_vm11 = vmor %vm5160_vm1, %vm5161_vm14 }
 0xb14   :  { %v4983_v7 = vsel %vm4982_vm7, %v8137_v2, %v4979_v44  ;;  %v5064_v31 = vmul.f32 %v10997_v16, %v5063_v5  ;;  %v5151_v13 = vand.u32 2147483648, %v11347_v58  ;;  %8144 = vrcp.f32 %v11400_v53 }
 0xb15   :  { %v4988_v57 = vsel %vm11387_vm5, %v4987_v6, %v4983_v7  ;;  %v5477_v32 = vunpack.c.l.b16 %v5275_v25  ;;  %v5143_v61 = vmul.f32 %v8141_v63, %v5142_v24  ;;  %vm5146_vm9 = vweird.f32 %v8141_v63 }
 0xb16   :  { %v4989_v47 = vmul.f32 %v11008_v26, %v4988_v57  ;;  %v5450_v16 = vunpack.c.l.b16 %v5272_v52  ;;  %v5163_v34 = vsel %vm11419_vm11, %v11361_v36, %v5159_v14  ;;  %v5167_v42 = vor.u32 1.1754944e-38, %v5166_v0 }
 0xb17   :  { %v5149_v30 = vand.u32 2147483647, %v11347_v58  ;;  %v5478_v26 = vpack.c.b16 %v5477_v32, %v11373_v3  ;;  %v5144_v35 = vadd.f32 %v8141_v63, %v5143_v61  ;;  %vm5145_vm0 = vweird.f32 %v11347_v58  ;;  %v11443_v58 = vpop.xlane.xlu0 %4754  ;;  %v11472_v25 = vpop.xlane.xlu2 %4748 }
 0xb18   :  { %v5273_v11 = vpack.c.bf16 %v4989_v47, %v4989_v47  ;;  %v11432_v39 = vpop.eup %8142  ;;  %v5278_v59 = vpack.c.bf16 %v5064_v31, %v5064_v31  ;;  %vm5165_vm15 = vcmp.eq.f32.partialorder %v5164_v37, 8.507059e+37  ;;  %vm11434_vm3 = vmor %vm5145_vm0, %vm5146_vm9  ;;  %v5152_v52 = vor.u32 1.1754944e-38, %v5151_v13 }
 0xb19   :  { %8146 = vrcp.f32 %v11414_v43  ;;  %v5168_v23 = vsel %vm5165_vm15, %v5167_v42, %v5163_v34  ;;  %v5148_v3 = vsel %vm11434_vm3, %v8141_v63, %v5144_v35  ;;  %v5081_v9 = vmul.f32 %v11432_v39, %v11359_v55  ;;  %7577 = vmatmul.msk.bf16.vlgmr.msrb.gmra.mxu3 %vm12026_vm4, %v5478_v26 }
 0xb1a   :  { %v5451_v36 = vunpack.c.l.b16 %v5273_v11  ;;  %v8145_v17 = vpop.eup %8144  ;;  %v5635_v54 = vunpack.c.l.b16 %v11182_v49  ;;  %v5663_v38 = vpack.c.b16 %v11268_v40, %v11103_v50  ;;  %vm5150_vm2 = vcmp.eq.f32.partialorder %v5149_v30, 8.507059e+37 }
 0xb1b   :  { %v5089_v8 = vand.u32 2147483647, %v11359_v55  ;;  %v12027_v21 = vpack.c.b16 %v10784_v20, %v10786_v22  ;;  %v5153_v46 = vsel %vm5150_vm2, %v5152_v52, %v5148_v3  ;;  %v5082_v6 = vsub.f32 1.0, %v5081_v9  ;;  %v11462_v22 = vpop.xlane.xlu1 %4769 }
 0xb1c   :  { %v5452_v63 = vpack.c.b16 %v5451_v36, %v5450_v16  ;;  %v5111_v45 = vmul.f32 %v8145_v17, %v11400_v53  ;;  %v11454_v5 = vunpack.c.l.b16 %v5278_v59  ;;  %v5169_v33 = vmul.f32 %v11017_v51, %v5168_v23 }
 0xb1d   :  { %5701 = vmatpush.bf16.msrb.mxu3 %v12027_v21  ;;  %v5091_v44 = vand.u32 2147483648, %v11359_v55  ;;  %8148 = vrcp.f32 %v11443_v58  ;;  %v5083_v50 = vmul.f32 %v11432_v39, %v5082_v6  ;;  %vm5085_vm12 = vweird.f32 %v11359_v55 }
 0xb1e   :  { %v5112_v40 = vsub.f32 1.0, %v5111_v45  ;;  %v5119_v20 = vand.u32 2147483647, %v11400_v53  ;;  %7576 = vmatmul.msk.bf16.vlgmr.msra.gmra.mxu2 %vm12028_vm8, %v5452_v63  ;;  %v5154_v14 = vmul.f32 %v11021_v41, %v5153_v46  ;;  %vm5086_vm5 = vweird.f32 %v11432_v39 }
 0xb1f   :  { %v8147_v60 = vpop.eup %8146  ;;  %vm11467_vm10 = vcmp.eq.f32.partialorder %v5089_v8, 8.507059e+37  ;;  %v5121_v0 = vand.u32 2147483648, %v11400_v53  ;;  %5675 = vmatpush.bf16.msra.mxu2 %v5663_v38  ;;  %v5084_v7 = vadd.f32 %v11432_v39, %v5083_v50  ;;  %vm5116_vm1 = vweird.f32 %v8145_v17  ;;  %vm11480_vm7 = vmor %vm5085_vm12, %vm5086_vm5  ;;  %v11507_v8 = vpop.xlane.xlu0 %4775 }
 0xb20   :  { %v5113_v37 = vmul.f32 %v8145_v17, %v5112_v40  ;;  %v5066_v24 = vmul.f32 %v8147_v60, %v11414_v43  ;;  %v5285_v31 = vpack.c.bf16 %v5169_v33, %v5169_v33  ;;  %v5092_v57 = vor.u32 1.1754944e-38, %v5091_v44  ;;  %v11515_v46 = vpop.xlane.xlu2 %4763 }
 0xb21   :  { %v5074_v41 = vand.u32 2147483647, %v11414_v43  ;;  %8150 = vrcp.f32 %v11462_v22  ;;  %vm5115_vm14 = vweird.f32 %v11400_v53  ;;  %vm5120_vm11 = vcmp.eq.f32.partialorder %v5119_v20, 8.507059e+37 }
 0xb22   :  { %v5114_v32 = vadd.f32 %v8145_v17, %v5113_v37  ;;  %v5067_v47 = vsub.f32 1.0, %v5066_v24  ;;  %v5284_v61 = vpack.c.bf16 %v5154_v14, %v5154_v14  ;;  %v5088_v16 = vsel %vm11480_vm7, %v11432_v39, %v5084_v7  ;;  %vm5117_vm9 = vmor %vm5115_vm14, %vm5116_vm1 }
 0xb23   :  { %v8149_v2 = vpop.eup %8148  ;;  %v5122_v34 = vor.u32 1.1754944e-38, %v5121_v0  ;;  %v5076_v42 = vand.u32 2147483648, %v11414_v43  ;;  %vm5071_vm0 = vweird.f32 %v8147_v60  ;;  %v11490_v11 = vunpack.c.l.b16 %v5285_v31  ;;  %v11525_v7 = vpop.xlane.xlu1 %4766 }
 0xb24   :  { %v5118_v55 = vsel %vm5117_vm9, %v8145_v17, %v5114_v32  ;;  %v5068_v30 = vmul.f32 %v8147_v60, %v5067_v47  ;;  %v5126_v26 = vmul.f32 %v8149_v2, %v11443_v58  ;;  %vm5070_vm15 = vweird.f32 %v11414_v43 }
 0xb25   :  { %v5123_v53 = vsel %vm5120_vm11, %v5122_v34, %v5118_v55  ;;  %vm11493_vm3 = vcmp.eq.f32.partialorder %v5074_v41, 8.507059e+37  ;;  %v5093_v39 = vsel %vm11467_vm10, %v5092_v57, %v5088_v16  ;;  %v5134_v52 = vand.u32 2147483647, %v11443_v58  ;;  %vm5072_vm4 = vmor %vm5070_vm15, %vm5071_vm0 }
 0xb26   :  { %v5069_v59 = vadd.f32 %v8147_v60, %v5068_v30  ;;  %v5127_v1 = vsub.f32 1.0, %v5126_v26  ;;  %v5124_v23 = vmul.f32 %v11032_v28, %v5123_v53  ;;  %v5077_v3 = vor.u32 1.1754944e-38, %v5076_v42 }
 0xb27   :  { %v11500_v36 = vpop.eup %8150  ;;  %v5136_v9 = vand.u32 2147483648, %v11443_v58  ;;  %8152 = vrcp.f32 %v11472_v25  ;;  %v11505_v43 = vunpack.c.l.b16 %v5284_v61  ;;  %vm5131_vm2 = vweird.f32 %v8149_v2  ;;  %v11549_v53 = vpop.xlane.xlu0 %4778 }
 0xb28   :  { %v5073_v17 = vsel %vm5072_vm4, %v8147_v60, %v5069_v59  ;;  %v5128_v38 = vmul.f32 %v8149_v2, %v5127_v1  ;;  %v5094_v21 = vmul.f32 %v11025_v18, %v5093_v39  ;;  %vm5130_vm12 = vweird.f32 %v11443_v58 }
 0xb29   :  { %v5078_v63 = vsel %vm11493_vm3, %v5077_v3, %v5073_v17  ;;  %v5201_v28 = vmul.f32 %v11500_v36, %v11462_v22  ;;  %vm5135_vm8 = vcmp.eq.f32.partialorder %v5134_v52, 8.507059e+37  ;;  %v5211_v33 = vand.u32 2147483648, %v11462_v22  ;;  %vm5132_vm5 = vmor %vm5130_vm12, %vm5131_vm2  ;;  %v11560_v17 = vpop.xlane.xlu2 %4772 }
 0xb2a   :  { %v5079_v6 = vmul.f32 %v11034_v29, %v5078_v63  ;;  %v5129_v45 = vadd.f32 %v8149_v2, %v5128_v38  ;;  %v5282_v44 = vpack.c.bf16 %v5124_v23, %v5124_v23  ;;  %v5137_v50 = vor.u32 1.1754944e-38, %v5136_v9 }
 0xb2b   :  { %v5202_v18 = vsub.f32 1.0, %v5201_v28  ;;  %8154 = vrcp.f32 %v11507_v8  ;;  %v5608_v58 = vpack.c.b16 %v11490_v11, %v11505_v43  ;;  %v5280_v14 = vpack.c.bf16 %v5094_v21, %v5094_v21  ;;  %v11645_v11 = vpop.f32.mrf.mxu0 }
 0xb2c   :  { %v5279_v40 = vpack.c.bf16 %v5079_v6, %v5079_v6  ;;  %v5133_v20 = vsel %vm5132_vm5, %v8149_v2, %v5129_v45  ;;  %8156 = vrcp.f32 %v11515_v46  ;;  %v5209_v51 = vand.u32 2147483647, %v11462_v22 }
 0xb2d   :  { %v8153_v60 = vpop.eup %8152  ;;  %v5138_v29 = vsel %vm5135_vm8, %v5137_v50, %v5133_v20  ;;  %v5104_v0 = vand.u32 2147483647, %v11472_v25  ;;  %vm5205_vm10 = vweird.f32 %v11462_v22  ;;  %v11529_v31 = vor.u32 1.1754944e-38, %v5211_v33 }
 0xb2e   :  { %v5529_v37 = vunpack.c.l.b16 %v5279_v40  ;;  %v5139_v24 = vmul.f32 %v11038_v56, %v5138_v29  ;;  %v5096_v57 = vmul.f32 %v8153_v60, %v11472_v25  ;;  %v5580_v41 = vunpack.c.l.b16 %v5282_v44 }
 0xb2f   :  { %v5203_v13 = vmul.f32 %v11500_v36, %v5202_v18  ;;  %vm5100_vm1 = vweird.f32 %v11472_v25  ;;  %v5106_v32 = vand.u32 2147483648, %v11472_v25  ;;  %8158 = vrcp.f32 %v11525_v7 }
 0xb30   :  { %v5530_v47 = vpack.c.b16 %v5529_v37, %v11454_v5  ;;  %v5283_v2 = vpack.c.bf16 %v5139_v24, %v5139_v24  ;;  %v5097_v61 = vsub.f32 1.0, %v5096_v57  ;;  %v11539_v16 = vunpack.c.l.b16 %v5280_v14 }
 0xb31   :  { %v11537_v56 = vpop.eup %8154  ;;  %vm5206_vm7 = vweird.f32 %v11500_v36  ;;  %vm11542_vm14 = vcmp.eq.f32.partialorder %v5104_v0, 8.507059e+37  ;;  %v5239_v42 = vand.u32 2147483647, %v11507_v8  ;;  %vm5101_vm11 = vweird.f32 %v8153_v60 }
 0xb32   :  { %v8157_v55 = vpop.eup %8156  ;;  %v5581_v30 = vunpack.c.l.b16 %v5283_v2  ;;  %v5098_v26 = vmul.f32 %v8153_v60, %v5097_v61  ;;  %v5231_v5 = vmul.f32 %v11537_v56, %v11507_v8  ;;  %vm12037_vm9 = vcmask 130048   ;;  %vm5102_vm3 = vmor %vm5100_vm1, %vm5101_vm11 }
 0xb33   :  { %7579 = vmatmul.msk.bf16.vlgmr.msra.gmra.mxu1 %vm12037_vm9, %v5530_v47  ;;  %v5107_v35 = vor.u32 1.1754944e-38, %v5106_v32  ;;  %vm5235_vm0 = vweird.f32 %v11507_v8  ;;  %v5241_v39 = vand.u32 2147483648, %v11507_v8  ;;  %v5171_v59 = vmul.f32 %v8157_v55, %v11515_v46  ;;  %vm12042_vm8 = vmmov %vm12037_vm9  ;;  %v11647_v43 = vpop.f32.mrf.mxu0 }
 0xb34   :  { %v5582_v1 = vpack.c.b16 %v5581_v30, %v5580_v41  ;;  %v5204_v52 = vadd.f32 %v11500_v36, %v5203_v13  ;;  %vm11556_vm15 = vcmp.eq.f32.partialorder %v5209_v51, 8.507059e+37  ;;  %v5099_v3 = vadd.f32 %v8153_v60, %v5098_v26  ;;  %vm11579_vm5 = vmor %vm5205_vm10, %vm5206_vm7  ;;  %v4064_v26 = vpop.permute.xlu2 %4063 }
 0xb35   :  { %v5232_v9 = vsub.f32 1.0, %v5231_v5  ;;  %vm11564_vm4 = vcmp.eq.f32.partialorder %v5239_v42, 8.507059e+37  ;;  %v5172_v21 = vsub.f32 1.0, %v5171_v59  ;;  %v5179_v63 = vand.u32 2147483647, %v11515_v46  ;;  %v8159_v6 = vpop.eup %8158 }
 0xb36   :  { %v5181_v28 = vand.u32 2147483648, %v11515_v46  ;;  %8160 = vrcp.f32 %v11549_v53  ;;  %v5103_v45 = vsel %vm5102_vm3, %v8153_v60, %v5099_v3  ;;  %vm5236_vm2 = vweird.f32 %v11537_v56  ;;  %7581 = vmatmul.msk.bf16.vlgmr.msra.gmra.mxu3 %vm12042_vm8, %v5582_v1 }
 0xb37   :  { %v5233_v33 = vmul.f32 %v11537_v56, %v5232_v9  ;;  %vm5175_vm12 = vweird.f32 %v11515_v46  ;;  %v5108_v44 = vsel %vm11542_vm14, %v5107_v35, %v5103_v45  ;;  %v5173_v50 = vmul.f32 %v8157_v55, %v5172_v21  ;;  %vm11593_vm10 = vmor %vm5235_vm0, %vm5236_vm2  ;;  %v4066_v35 = vpop.permute.xlu0 %4065 }
 0xb38   :  { %vm5176_vm1 = vweird.f32 %v8157_v55  ;;  %v5186_v18 = vmul.f32 %v8159_v6, %v11525_v7  ;;  %v5208_v40 = vsel %vm11579_vm5, %v11500_v36, %v5204_v52  ;;  %v5109_v20 = vmul.f32 %v11050_v12, %v5108_v44 }
 0xb39   :  { %v5234_v60 = vadd.f32 %v11537_v56, %v5233_v33  ;;  %v5242_v22 = vor.u32 1.1754944e-38, %v5241_v39  ;;  %v5174_v29 = vadd.f32 %v8157_v55, %v5173_v50  ;;  %vm5180_vm7 = vcmp.eq.f32.partialorder %v5179_v63, 8.507059e+37  ;;  %vm5177_vm14 = vmor %vm5175_vm12, %vm5176_vm1 }
 0xb3a   :  { %v5182_v51 = vor.u32 1.1754944e-38, %v5181_v28  ;;  %v5187_v0 = vsub.f32 1.0, %v5186_v18  ;;  %v5281_v37 = vpack.c.bf16 %v5109_v20, %v5109_v20  ;;  %v5194_v36 = vand.u32 2147483647, %v11525_v7 }
 0xb3b   :  { %v5196_v12 = vand.u32 2147483648, %v11525_v7  ;;  %8162 = vrcp.f32 %v11560_v17  ;;  %v5238_v8 = vsel %vm11593_vm10, %v11537_v56, %v5234_v60  ;;  %v5178_v57 = vsel %vm5177_vm14, %v8157_v55, %v5174_v29 }
 0xb3c   :  { %v8161_v24 = vpop.eup %8160  ;;  %v5188_v41 = vmul.f32 %v8159_v6, %v5187_v0  ;;  %vm5191_vm11 = vweird.f32 %v8159_v6  ;;  %v5555_v13 = vunpack.c.l.b16 %v5281_v37  ;;  %v5183_v32 = vsel %vm5180_vm7, %v5182_v51, %v5178_v57 }
 0xb3d   :  { %v5246_v47 = vmul.f32 %v8161_v24, %v11549_v53  ;;  %v5254_v46 = vand.u32 2147483647, %v11549_v53  ;;  %v5213_v2 = vsel %vm11556_vm15, %v11529_v31, %v5208_v40  ;;  %v5184_v61 = vmul.f32 %v11063_v4, %v5183_v32  ;;  %v4070_v4 = vpop.permute.xlu1 %4069 }
 0xb3e   :  { %v5189_v34 = vadd.f32 %v8159_v6, %v5188_v41  ;;  %vm5190_vm9 = vweird.f32 %v11525_v7  ;;  %v5556_v56 = vpack.c.b16 %v5555_v13, %v11539_v16  ;;  %v5243_v42 = vsel %vm11564_vm4, %v5242_v22, %v5238_v8  ;;  %vm12049_vm4 = vmmov %vm12042_vm8 }
 0xb3f   :  { %vm5192_vm0 = vmor %vm5190_vm9, %vm5191_vm11  ;;  %v5197_v55 = vor.u32 1.1754944e-38, %v5196_v12  ;;  %v5247_v30 = vsub.f32 1.0, %v5246_v47  ;;  %vm5195_vm3 = vcmp.eq.f32.partialorder %v5194_v36, 8.507059e+37  ;;  %vm5250_vm2 = vweird.f32 %v11549_v53 }
 0xb40   :  { %v5193_v5 = vsel %vm5192_vm0, %v8159_v6, %v5189_v34  ;;  %v5256_v31 = vand.u32 2147483648, %v11549_v53  ;;  %vm5251_vm15 = vweird.f32 %v8161_v24  ;;  %vm11617_vm12 = vcmp.eq.f32.partialorder %v5254_v46, 8.507059e+37  ;;  %7580 = vmatmul.msk.bf16.vlgmr.msrb.gmra.mxu2 %vm12049_vm4, %v5556_v56  ;;  %vm12050_vm7 = vmmov %vm12049_vm4 }
 0xb41   :  { %v8163_v39 = vpop.eup %8162  ;;  %v5198_v59 = vsel %vm5195_vm3, %v5197_v55, %v5193_v5  ;;  %v5248_v7 = vmul.f32 %v8161_v24, %v5247_v30  ;;  %v5244_v1 = vmul.f32 %v11052_v15, %v5243_v42  ;;  %v5286_v52 = vpack.c.bf16 %v5184_v61, %v5184_v61  ;;  %vm5252_vm8 = vmor %vm5250_vm2, %vm5251_vm15 }
 0xb42   :  { %v5199_v23 = vmul.f32 %v11061_v10, %v5198_v59  ;;  %v5216_v3 = vmul.f32 %v8163_v39, %v11560_v17  ;;  %v5609_v38 = vunpack.c.l.b16 %v4064_v26  ;;  %v5610_v21 = vunpack.c.l.b16 %v4066_v35  ;;  %vm12051_vm14 = vmmov %vm12049_vm4 }
 0xb43   :  { %v5249_v9 = vadd.f32 %v8161_v24, %v5248_v7  ;;  %v4072_v63 = vrot.slane %v4070_v4, 4  ;;  %v5257_v6 = vor.u32 1.1754944e-38, %v5256_v31  ;;  %v5224_v33 = vand.u32 2147483647, %v11560_v17  ;;  %vm12052_vm11 = vmmov %vm12049_vm4 }
 0xb44   :  { %v5287_v28 = vpack.c.bf16 %v5199_v23, %v5199_v23  ;;  %v5217_v45 = vsub.f32 1.0, %v5216_v3  ;;  %v5226_v15 = vand.u32 2147483648, %v11560_v17  ;;  %v5611_v44 = vpack.c.b16 %v5610_v21, %v5609_v38  ;;  %vm12053_vm9 = vmmov %vm12049_vm4 }
 0xb45   :  { %v5253_v25 = vsel %vm5252_vm8, %v8161_v24, %v5249_v9  ;;  %v4074_v10 = vsel %vm3888_vm13, %v4070_v4, %v4072_v63  ;;  %vm5221_vm5 = vweird.f32 %v8163_v39  ;;  %v5290_v20 = vpack.c.bf16 %v5244_v1, %v5244_v1 }
 0xb46   :  { %v5258_v50 = vsel %vm11617_vm12, %v5257_v6, %v5253_v25  ;;  %v5218_v18 = vmul.f32 %v8163_v39, %v5217_v45  ;;  %v5636_v40 = vunpack.c.l.b16 %v4074_v10  ;;  %v5632_v60 = vunpack.c.l.b16 %v5286_v52  ;;  %5623 = vmatpush.bf16.msra.mxu0 %v5611_v44 }
 0xb47   :  { %v5633_v53 = vunpack.c.l.b16 %v5287_v28  ;;  %v5259_v22 = vmul.f32 %v11065_v19, %v5258_v50  ;;  %v5214_v14 = vmul.f32 %v11047_v48, %v5213_v2  ;;  %vm5220_vm1 = vweird.f32 %v11560_v17 }
 0xb48   :  { %v5219_v29 = vadd.f32 %v8163_v39, %v5218_v18  ;;  %v5637_v51 = vpack.c.b16 %v5636_v40, %v5635_v54  ;;  %vm5222_vm13 = vmor %vm5220_vm1, %vm5221_vm5  ;;  %v5227_v37 = vor.u32 1.1754944e-38, %v5226_v15  ;;  %vm5225_vm10 = vcmp.eq.f32.partialorder %v5224_v33, 8.507059e+37 }
 0xb49   :  { %v5291_v0 = vpack.c.bf16 %v5259_v22, %v5259_v22  ;;  %7582 = vmatmul.msk.bf16.vlgmr.msra.gmra.mxu0 %vm12050_vm7, %v5608_v58  ;;  %v5684_v19 = vunpack.c.l.b16 %v5290_v20  ;;  %v5634_v12 = vpack.c.b16 %v5633_v53, %v5632_v60  ;;  %v5288_v8 = vpack.c.bf16 %v5214_v14, %v5214_v14  ;;  %vm12056_vm1 = vmmov %vm12049_vm4 }
 0xb4a   :  { %v5223_v36 = vsel %vm5222_vm13, %v8163_v39, %v5219_v29  ;;  %5649 = vmatpush.bf16.msrb.mxu1 %v5637_v51  ;;  %vm5797_vm0 = vcmask 392192   ;;  %vm5800_vm3 = vcmask 588800   ;;  %vm5803_vm2 = vcmask 785408  }
 0xb4b   :  { %v5685_v48 = vunpack.c.l.b16 %v5291_v0  ;;  %v5228_v24 = vsel %vm5225_vm10, %v5227_v37, %v5223_v36  ;;  %v5658_v57 = vunpack.c.l.b16 %v5288_v8  ;;  %vm5806_vm15 = vcmask 982016  }
 0xb4c   :  { %v5229_v17 = vmul.f32 %v11073_v27, %v5228_v24  ;;  %vm5812_vm12 = vcmask 326656   ;;  %vm12054_vm8 = vcmask 523264  }
 0xb4d   :  { %v5686_v49 = vpack.c.b16 %v5685_v48, %v5684_v19  ;;  %7583 = vmatmul.msk.bf16.vlgmr.msrb.gmra.mxu1 %vm12051_vm14, %v5634_v12  ;;  %vm12055_vm5 = vmmov %vm12054_vm8 }
 0xb4e   :  { %v5289_v54 = vpack.c.bf16 %v5229_v17, %v5229_v17  ;;  %vm12058_vm13 = vmmov %vm12055_vm5 }
 0xb4f   :  { %7585 = vmatmul.msk.bf16.vlgmr.msrb.gmra.mxu3 %vm12052_vm11, %v5686_v49  ;;  %vm12060_vm10 = vmmov %vm12055_vm5 }
 0xb50   :  { %v5659_v41 = vunpack.c.l.b16 %v5289_v54  ;;  %vm12061_vm7 = vmmov %vm12055_vm5 }
 0xb51   :  { %vm12062_vm14 = vmmov %vm12055_vm5 }
 0xb52   :  { %v5660_v13 = vpack.c.b16 %v5659_v41, %v5658_v57  ;;  %vm12063_vm11 = vmmov %vm12055_vm5 }
 0xb54   :  { %7584 = vmatmul.msk.bf16.vlgmr.msra.gmra.mxu2 %vm12053_vm9, %v5660_v13 }
 0xb66   :  { %v5417_v58 = vpop.f32.mrf.mxu0 }
 0xb67   :  { %v5716_v26 = vpack.c.bf16 %v5417_v58, %v5417_v58 }
 0xb69   :  { %v5768_v7 = vunpack.c.l.b16 %v5716_v26 }
 0xb6d   :  { %v5339_v32 = vpop.f32.mrf.mxu1 }
 0xb6e   :  { %v5710_v47 = vpack.c.bf16 %v5339_v32, %v5339_v32  ;;  %v5419_v61 = vpop.f32.mrf.mxu0 }
 0xb6f   :  { %v5717_v42 = vpack.c.bf16 %v5419_v61, %v5419_v61 }
 0xb70   :  { %v5747_v34 = vunpack.c.l.b16 %v5710_v47 }
 0xb71   :  { %v5769_v35 = vunpack.c.l.b16 %v5717_v42  ;;  %v7644_v42 = vld [vmem:[#allocation20 + $0x70] sm:$0xf] }
 0xb73   :  { %v5770_v1 = vpack.c.b16 %v5769_v35, %v5768_v7  ;;  %v7646_v35 = vld [vmem:[#allocation20 + $0x78] sm:$0xf0]  ;;  %v7946_v7 = vld [vmem:[#allocation20 + $0x64] sm:$0xf] }
 0xb74   :  { %v5365_v46 = vpop.f32.mrf.mxu2 }
 0xb75   :  { %v5341_v27 = vpop.f32.mrf.mxu1  ;;  %v5712_v30 = vpack.c.bf16 %v5365_v46, %v5365_v46 }
 0xb76   :  { %v5711_v2 = vpack.c.bf16 %v5341_v27, %v5341_v27 }
 0xb77   :  { %v5754_v39 = vunpack.c.l.b16 %v5712_v30  ;;  %v7948_v30 = vld [vmem:[#allocation20 + $0x74] sm:$0xf] }
 0xb78   :  { %v5748_v56 = vunpack.c.l.b16 %v5711_v2 }
 0xb7a   :  { %v5749_v55 = vpack.c.b16 %v5748_v56, %v5747_v34 }
 0xb7c   :  { %v5367_v5 = vpop.f32.mrf.mxu2  ;;  %5750 = vrot.lane.b32.xlu1 %v5749_v55, %s8526_s11  ;;  %v7949_v55 = vld [vmem:[#allocation20 + $0x74] sm:$0xf0] }
 0xb7d   :  { %v5713_v31 = vpack.c.bf16 %v5367_v5, %v5367_v5 }
 0xb7e   :  { %v5391_v4 = vpop.f32.mrf.mxu3 }
 0xb7f   :  { %v5755_v59 = vunpack.c.l.b16 %v5713_v31  ;;  %v5714_v52 = vpack.c.bf16 %v5391_v4, %v5391_v4  ;;  %v7645_v31 = vor.u32 %v7949_v55, %v7644_v42  ;;  %v7636_v4 = vld [vmem:[#allocation20 + $0x60] sm:$0xf] }
 0xb81   :  { %v5756_v16 = vpack.c.b16 %v5755_v59, %v5754_v39  ;;  %v5761_v9 = vunpack.c.l.b16 %v5714_v52  ;;  %v7947_v39 = vld [vmem:[#allocation20 + $0x64] sm:$0xf0]  ;;  %v7649_v59 = vor.u32 %v7948_v30, %v7646_v35  ;;  %6039 = vmatpush.bf16.msrb.mxu0 %v7645_v31  ;;  %v7937_v31 = vld [vmem:[#allocation20 + $0x14] sm:$0xf0]  ;;  %v7936_v35 = vld [vmem:[#allocation20 + $0x14] sm:$0xf] }
 0xb83   :  { %5757 = vrot.lane.b32.xlu2 %v5756_v16, %s8527_s19  ;;  %v7638_v16 = vld [vmem:[#allocation20 + $0x68] sm:$0xf0]  ;;  %6077 = vmatpush.bf16.msrb.mxu2 %v7649_v59 }
 0xb84   :  { %5771 = vrot.lane.b32.xlu1 %v5770_v1, %s8528_s7  ;;  %v7637_v1 = vor.u32 %v7947_v39, %v7636_v4  ;;  %v7598_v4 = vld [vmem:[#allocation20 + $0x18] sm:$0xf0] }
 0xb86   :  { %v5393_v23 = vpop.f32.mrf.mxu3  ;;  %6040 = vmatpush.bf16.msrb.mxu0 %v7637_v1 }
 0xb87   :  { %v5715_v3 = vpack.c.bf16 %v5393_v23, %v5393_v23  ;;  %v7641_v23 = vor.u32 %v7946_v7, %v7638_v16 }
 0xb89   :  { %v5762_v38 = vunpack.c.l.b16 %v5715_v3  ;;  %v7628_v3 = vld [vmem:[#allocation20 + $0x50] sm:$0xf]  ;;  %6078 = vmatpush.bf16.msrb.mxu2 %v7641_v23  ;;  %v7601_v23 = vor.u32 %v7936_v35, %v7598_v4 }
 0xb8a   :  { %v5521_v21 = vpop.f32.mrf.mxu0 }
 0xb8b   :  { %v5763_v63 = vpack.c.b16 %v5762_v38, %v5761_v9  ;;  %v5724_v6 = vpack.c.bf16 %v5521_v21, %v5521_v21  ;;  %v7945_v9 = vld [vmem:[#allocation20 + $0x54] sm:$0xf0]  ;;  %v7944_v21 = vld [vmem:[#allocation20 + $0x54] sm:$0xf] }
 0xb8c   :  { %v5443_v28 = vpop.f32.mrf.mxu1 }
 0xb8d   :  { %5764 = vrot.lane.b32.xlu0 %v5763_v63, %s8529_s26  ;;  %v5718_v25 = vpack.c.bf16 %v5443_v28, %v5443_v28  ;;  %v11653_v15 = vunpack.c.l.b16 %v5724_v6  ;;  %v7630_v63 = vld [vmem:[#allocation20 + $0x58] sm:$0xf0] }
 0xb8f   :  { %v5775_v40 = vunpack.c.l.b16 %v5718_v25  ;;  %v7633_v25 = vor.u32 %v7944_v21, %v7630_v63  ;;  %v7588_v21 = vld [vmem:[#allocation20] sm:$0xf]  ;;  %v7935_v63 = vld [vmem:[#allocation20 + $0x4] sm:$0xf0] }
 0xb91   :  { %6079 = vmatpush.bf16.msrb.mxu2 %v7633_v25 }
 0xb92   :  { %v5523_v45 = vpop.f32.mrf.mxu0 }
 0xb93   :  { %v5725_v33 = vpack.c.bf16 %v5523_v45, %v5523_v45  ;;  %v7629_v45 = vor.u32 %v7945_v9, %v7628_v3 }
 0xb94   :  { %v5445_v10 = vpop.f32.mrf.mxu1 }
 0xb95   :  { %v11655_v44 = vunpack.c.l.b16 %v5725_v33  ;;  %v5719_v50 = vpack.c.bf16 %v5445_v10, %v5445_v10  ;;  %v7620_v10 = vld [vmem:[#allocation20 + $0x40] sm:$0xf]  ;;  %6041 = vmatpush.bf16.msrb.mxu0 %v7629_v45  ;;  %v7590_v45 = vld [vmem:[#allocation20 + $0x8] sm:$0xf0] }
 0xb97   :  { %v5819_v18 = vpack.c.b16 %v11655_v44, %v11653_v15  ;;  %v5776_v20 = vunpack.c.l.b16 %v5719_v50  ;;  %v7943_v50 = vld [vmem:[#allocation20 + $0x44] sm:$0xf0] }
 0xb99   :  { %v5777_v60 = vpack.c.b16 %v5776_v20, %v5775_v40 }
 0xb9b   :  { %5778 = vrot.lane.b32.xlu2 %v5777_v60, %s8530_s12 }
 0xb9c   :  { %v5495_v53 = vpop.f32.mrf.mxu3 }
 0xb9d   :  { %v5722_v14 = vpack.c.bf16 %v5495_v53, %v5495_v53  ;;  %v7942_v53 = vld [vmem:[#allocation20 + $0x44] sm:$0xf] }
 0xb9f   :  { %v5789_v37 = vunpack.c.l.b16 %v5722_v14 }
 0xba1   :  { %v5469_v22 = vpop.f32.mrf.mxu2 }
 0xba2   :  { %v5720_v0 = vpack.c.bf16 %v5469_v22, %v5469_v22  ;;  %v7622_v22 = vld [vmem:[#allocation20 + $0x48] sm:$0xf0] }
 0xba4   :  { %v5497_v29 = vpop.f32.mrf.mxu3  ;;  %v5782_v24 = vunpack.c.l.b16 %v5720_v0  ;;  %v7621_v0 = vor.u32 %v7943_v50, %v7620_v10  ;;  %v5709_v10 = vpack.c.bf16 %v11647_v43, %v11647_v43  ;;  %v5708_v50 = vpack.c.bf16 %v11645_v11, %v11645_v11 }
 0xba5   :  { %v5723_v51 = vpack.c.bf16 %v5497_v29, %v5497_v29 }
 0xba6   :  { %6042 = vmatpush.bf16.msrb.mxu0 %v7621_v0 }
 0xba7   :  { %v5790_v36 = vunpack.c.l.b16 %v5723_v51 }
 0xba9   :  { %v5471_v19 = vpop.f32.mrf.mxu2  ;;  %v5791_v48 = vpack.c.b16 %v5790_v36, %v5789_v37 }
 0xbaa   :  { %v5721_v12 = vpack.c.bf16 %v5471_v19, %v5471_v19 }
 0xbab   :  { %5792 = vrot.lane.b32.xlu1 %v5791_v48, %s8531_s30  ;;  %v7625_v48 = vor.u32 %v7942_v53, %v7622_v22  ;;  %v7676_v22 = vld [vmem:[#allocation20 + $0xb0] sm:$0xf] }
 0xbac   :  { %v5783_v8 = vunpack.c.l.b16 %v5721_v12 }
 0xbad   :  { %6080 = vmatpush.bf16.msrb.mxu2 %v7625_v48  ;;  %v7954_v48 = vld [vmem:[#allocation20 + $0xa4] sm:$0xf] }
 0xbae   :  { %v5784_v17 = vpack.c.b16 %v5783_v8, %v5782_v24 }
 0xbb0   :  { %v5547_v49 = vpop.f32.mrf.mxu1  ;;  %5785 = vrot.lane.b32.xlu0 %v5784_v17, %s8532_s3 }
 0xbb1   :  { %v5726_v54 = vpack.c.bf16 %v5547_v49, %v5547_v49 }
 0xbb3   :  { %v5822_v58 = vunpack.c.l.b16 %v5726_v54 }
 0xbb8   :  { %v5549_v57 = vpop.f32.mrf.mxu1 }
 0xbb9   :  { %v5727_v41 = vpack.c.bf16 %v5549_v57, %v5549_v57  ;;  %v5599_v13 = vpop.f32.mrf.mxu3 }
 0xbba   :  { %v5730_v46 = vpack.c.bf16 %v5599_v13, %v5599_v13  ;;  %v7941_v13 = vld [vmem:[#allocation20 + $0x34] sm:$0xf0] }
 0xbbb   :  { %v5823_v32 = vunpack.c.l.b16 %v5727_v41  ;;  %v7612_v41 = vld [vmem:[#allocation20 + $0x30] sm:$0xf] }
 0xbbc   :  { %v5836_v34 = vunpack.c.l.b16 %v5730_v46  ;;  %v7604_v46 = vld [vmem:[#allocation20 + $0x20] sm:$0xf] }
 0xbbd   :  { %v5824_v47 = vpack.c.b16 %v5823_v32, %v5822_v58  ;;  %v7940_v58 = vld [vmem:[#allocation20 + $0x34] sm:$0xf]  ;;  %v7613_v32 = vor.u32 %v7941_v13, %v7612_v41 }
 0xbbf   :  { %5825 = vrot.lane.b32.xlu2 %v5824_v47, %s8526_s11  ;;  %v7614_v47 = vld [vmem:[#allocation20 + $0x38] sm:$0xf0]  ;;  %6043 = vmatpush.bf16.msrb.mxu0 %v7613_v32 }
 0xbc1   :  { %v5601_v27 = vpop.f32.mrf.mxu3 }
 0xbc2   :  { %v5731_v2 = vpack.c.bf16 %v5601_v27, %v5601_v27  ;;  %v7939_v27 = vld [vmem:[#allocation20 + $0x24] sm:$0xf0] }
 0xbc3   :  { %v5573_v61 = vpop.f32.mrf.mxu2  ;;  %v7605_v55 = vor.u32 %v7939_v27, %v7604_v46 }
 0xbc4   :  { %v5837_v56 = vunpack.c.l.b16 %v5731_v2  ;;  %v5728_v38 = vpack.c.bf16 %v5573_v61, %v5573_v61  ;;  %v7617_v61 = vor.u32 %v7940_v58, %v7614_v47 }
 0xbc5   :  { %6044 = vmatpush.bf16.msrb.mxu0 %v7605_v55  ;;  %v7654_v55 = vld [vmem:[#allocation20 + $0x88] sm:$0xf0] }
 0xbc6   :  { %v5838_v26 = vpack.c.b16 %v5837_v56, %v5836_v34  ;;  %v5625_v5 = vpop.f32.mrf.mxu0  ;;  %v5829_v40 = vunpack.c.l.b16 %v5728_v38  ;;  %v7938_v34 = vld [vmem:[#allocation20 + $0x24] sm:$0xf]  ;;  %v7606_v56 = vld [vmem:[#allocation20 + $0x28] sm:$0xf0]  ;;  %6081 = vmatpush.bf16.msrb.mxu2 %v7617_v61  ;;  %v7652_v61 = vld [vmem:[#allocation20 + $0x80] sm:$0xf] }
 0xbc7   :  { %v5732_v33 = vpack.c.bf16 %v5625_v5, %v5625_v5  ;;  %v7596_v5 = vld [vmem:[#allocation20 + $0x10] sm:$0xf] }
 0xbc8   :  { %5839 = vrot.lane.b32.xlu1 %v5838_v26, %s8529_s26  ;;  %v7609_v26 = vor.u32 %v7938_v34, %v7606_v56  ;;  %v7597_v16 = vor.u32 %v7937_v31, %v7596_v5  ;;  %v7951_v34 = vld [vmem:[#allocation20 + $0x84] sm:$0xf0] }
 0xbc9   :  { %v5843_v37 = vunpack.c.l.b16 %v5732_v33 }
 0xbca   :  { %v5651_v52 = vpop.f32.mrf.mxu1  ;;  %6082 = vmatpush.bf16.msrb.mxu2 %v7609_v26  ;;  %6045 = vmatpush.bf16.msrb.mxu0 %v7597_v16 }
 0xbcb   :  { %v5575_v28 = vpop.f32.mrf.mxu2  ;;  %v5734_v51 = vpack.c.bf16 %v5651_v52, %v5651_v52 }
 0xbcc   :  { %v5729_v6 = vpack.c.bf16 %v5575_v28, %v5575_v28  ;;  %v7934_v28 = vld [vmem:[#allocation20 + $0x4] sm:$0xf] }
 0xbcd   :  { %v5850_v17 = vunpack.c.l.b16 %v5734_v51  ;;  %v7593_v25 = vor.u32 %v7934_v28, %v7590_v45 }
 0xbce   :  { %v5830_v20 = vunpack.c.l.b16 %v5729_v6  ;;  %v5627_v60 = vpop.f32.mrf.mxu0  ;;  %6083 = vmatpush.bf16.msrb.mxu2 %v7601_v23  ;;  %v7589_v6 = vor.u32 %v7935_v63, %v7588_v21 }
 0xbcf   :  { %v5733_v14 = vpack.c.bf16 %v5627_v60, %v5627_v60  ;;  %v5742_v60 = vunpack.c.l.b16 %v5708_v50 }
 0xbd0   :  { %v5831_v29 = vpack.c.b16 %v5830_v20, %v5829_v40  ;;  %6046 = vmatpush.bf16.msrb.mxu0 %v7589_v6  ;;  %v5743_v40 = vunpack.c.l.b16 %v5709_v10 }
 0xbd1   :  { %v5844_v19 = vunpack.c.l.b16 %v5733_v14  ;;  %v7957_v14 = vld [vmem:[#allocation20 + $0xb4] sm:$0xf0] }
 0xbd2   :  { %v5703_v36 = vpop.f32.mrf.mxu3  ;;  %v5653_v12 = vpop.f32.mrf.mxu1  ;;  %5832 = vrot.lane.b32.xlu0 %v5831_v29, %s8527_s19  ;;  %6084 = vmatpush.bf16.msrb.mxu2 %v7593_v25  ;;  %v7956_v29 = vld [vmem:[#allocation20 + $0xb4] sm:$0xf]  ;;  %v5744_v51 = vpack.c.b16 %v5743_v40, %v5742_v60  ;;  %v7677_v0 = vor.u32 %v7957_v14, %v7676_v22 }
 0xbd3   :  { %v5735_v24 = vpack.c.bf16 %v5653_v12, %v5653_v12  ;;  %v5845_v8 = vpack.c.b16 %v5844_v19, %v5843_v37  ;;  %v5738_v2 = vpack.c.bf16 %v5703_v36, %v5703_v36  ;;  %v7678_v37 = vld [vmem:[#allocation20 + $0xb8] sm:$0xf0]  ;;  %v7668_v36 = vld [vmem:[#allocation20 + $0xa0] sm:$0xf]  ;;  %v7955_v19 = vld [vmem:[#allocation20 + $0xa4] sm:$0xf0] }
 0xbd4   :  { %v7681_v12 = vor.u32 %v7956_v29, %v7678_v37  ;;  %6062 = vmatpush.bf16.msra.mxu1 %v7677_v0  ;;  %v7669_v11 = vor.u32 %v7955_v19, %v7668_v36 }
 0xbd5   :  { %v5851_v49 = vunpack.c.l.b16 %v5735_v24  ;;  %5846 = vrot.lane.b32.xlu2 %v5845_v8, %s8528_s7  ;;  %v5864_v39 = vunpack.c.l.b16 %v5738_v2  ;;  %v7670_v24 = vld [vmem:[#allocation20 + $0xa8] sm:$0xf0] }
 0xbd6   :  { %6100 = vmatpush.bf16.msra.mxu3 %v7681_v12  ;;  %v7673_v8 = vor.u32 %v7954_v48, %v7670_v24 }
 0xbd7   :  { %v5677_v54 = vpop.f32.mrf.mxu2  ;;  %v5852_v57 = vpack.c.b16 %v5851_v49, %v5850_v17  ;;  %v7660_v17 = vld [vmem:[#allocation20 + $0x90] sm:$0xf]  ;;  %v7953_v49 = vld [vmem:[#allocation20 + $0x94] sm:$0xf0] }
 0xbd8   :  { %v5736_v7 = vpack.c.bf16 %v5677_v54, %v5677_v54  ;;  %v7952_v54 = vld [vmem:[#allocation20 + $0x94] sm:$0xf]  ;;  %6063 = vmatpush.bf16.msra.mxu1 %v7669_v11  ;;  %v7661_v47 = vor.u32 %v7953_v49, %v7660_v17 }
 0xbda   :  { %v5705_v42 = vpop.f32.mrf.mxu3  ;;  %5853 = vrot.lane.b32.xlu0 %v5852_v57, %s8530_s12  ;;  %v5857_v9 = vunpack.c.l.b16 %v5736_v7  ;;  %v7662_v57 = vld [vmem:[#allocation20 + $0x98] sm:$0xf0]  ;;  %6101 = vmatpush.bf16.msra.mxu3 %v7673_v8 }
 0xbdb   :  { %v5739_v30 = vpack.c.bf16 %v5705_v42, %v5705_v42  ;;  %v7665_v2 = vor.u32 %v7952_v54, %v7662_v57  ;;  %v7950_v42 = vld [vmem:[#allocation20 + $0x84] sm:$0xf] }
 0xbdc   :  { %6064 = vmatpush.bf16.msra.mxu1 %v7661_v47  ;;  %v7657_v26 = vor.u32 %v7950_v42, %v7654_v55 }
 0xbdd   :  { %v5865_v59 = vunpack.c.l.b16 %v5739_v30  ;;  %v5758_v53 = vpop.permute.xlu2 %5757  ;;  %v7653_v30 = vor.u32 %v7951_v34, %v7652_v61 }
 0xbde   :  { %6102 = vmatpush.bf16.msra.mxu3 %v7665_v2 }
 0xbdf   :  { %v5866_v1 = vpack.c.b16 %v5865_v59, %v5864_v39  ;;  %v5679_v52 = vpop.f32.mrf.mxu2 }
 0xbe0   :  { %v5737_v3 = vpack.c.bf16 %v5679_v52, %v5679_v52  ;;  %6065 = vmatpush.bf16.msra.mxu1 %v7653_v30 }
 0xbe1   :  { %5867 = vrot.lane.b32.xlu2 %v5866_v1, %s8531_s30 }
 0xbe2   :  { %v5858_v38 = vunpack.c.l.b16 %v5737_v3  ;;  %6103 = vmatpush.bf16.msra.mxu3 %v7657_v26 }
 0xbe4   :  { %v5859_v33 = vpack.c.b16 %v5858_v38, %v5857_v9 }
 0xbe6   :  { %5860 = vrot.lane.b32.xlu1 %v5859_v33, %s8532_s3 }
 0xbee   :  { %v5751_v20 = vpop.permute.xlu1 %5750 }
 0xbef   :  { %v5796_v43 = vsel %vm4081_vm6, %v5744_v51, %v5751_v20 }
 0xbf0   :  { %v5799_v41 = vsel %vm5797_vm0, %v5796_v43, %v5758_v53 }
 0xbf5   :  { %v5779_v46 = vpop.permute.xlu2 %5778 }
 0xbf6   :  { %v5772_v58 = vpop.permute.xlu1 %5771 }
 0xbff   :  { %v5765_v13 = vpop.permute.xlu0 %5764 }
 0xc00   :  { %v5802_v32 = vsel %vm5800_vm3, %v5799_v41, %v5765_v13 }
 0xc01   :  { %v5805_v27 = vsel %vm5803_vm2, %v5802_v32, %v5772_v58 }
 0xc02   :  { %v5808_v56 = vsel %vm5806_vm15, %v5805_v27, %v5779_v46 }
 0xc03   :  { %6047 = vmatmul.bf16.vlgmr.msrb.gmra.mxu0 %v5808_v56  ;;  %6085 = vmatmul.bf16.vlgmr.msrb.gmra.mxu2 %v5808_v56 }
 0xc19   :  { %v5826_v39 = vpop.permute.xlu2 %5825 }
 0xc1a   :  { %v5871_v7 = vsel %vm4081_vm6, %v5819_v18, %v5826_v39  ;;  %vm12057_vm6 = vmmov %vm12055_vm5  ;;  %v5909_v18 = vld [vmem:[%s12059_s1] sm:$0x3] }
 0xc1b   :  { %v11697_v33 = vperm.slane %v5909_v18, 0  ;;  %v11700_v50 = vperm.slane %v5909_v18, 1 }
 0xc1d   :  { %v5793_v5 = vpop.permute.xlu1 %5792 }
 0xc22   :  { %v5786_v31 = vpop.permute.xlu0 %5785 }
 0xc23   :  { %v5811_v35 = vsel %vm12049_vm4, %v5779_v46, %v5786_v31 }
 0xc24   :  { %v5814_v4 = vsel %vm5812_vm12, %v5811_v35, %v5793_v5 }
 0xc25   :  { %7682 = vmatmul.msk.bf16.vlgmr.msra.gmra.mxu1 %vm12054_vm8, %v5814_v4  ;;  %7684 = vmatmul.msk.bf16.vlgmr.msra.gmra.mxu3 %vm12055_vm5, %v5814_v4 }
 0xc2f   :  { %v5847_v23 = vpop.permute.xlu2 %5846 }
 0xc3a   :  { %v5840_v1 = vpop.permute.xlu1 %5839 }
 0xc3b   :  { %v5868_v63 = vpop.permute.xlu2 %5867 }
 0xc44   :  { %v5833_v59 = vpop.permute.xlu0 %5832 }
 0xc45   :  { %v5873_v16 = vsel %vm5797_vm0, %v5871_v7, %v5833_v59 }
 0xc46   :  { %v5875_v52 = vsel %vm5800_vm3, %v5873_v16, %v5840_v1 }
 0xc47   :  { %v5877_v9 = vsel %vm5803_vm2, %v5875_v52, %v5847_v23  ;;  %vm12064_vm2 = vmmov %vm12055_vm5 }
 0xc48   :  { %vm12066_vm5 = vmmov %vm12064_vm2 }
 0xc4c   :  { %v5854_v3 = vpop.permute.xlu0 %5853 }
 0xc4d   :  { %v5879_v38 = vsel %vm5806_vm15, %v5877_v9, %v5854_v3 }
 0xc4e   :  { %6052 = vmatmul.bf16.gmra.mxu0 %v5879_v38  ;;  %6090 = vmatmul.bf16.gmra.mxu2 %v5879_v38 }
 0xc58   :  { %v5861_v21 = vpop.permute.xlu1 %5860 }
 0xc59   :  { %v5882_v28 = vsel %vm12056_vm1, %v5854_v3, %v5861_v21  ;;  %vm12067_vm1 = vmmov %vm12064_vm2 }
 0xc5a   :  { %v5884_v15 = vsel %vm5812_vm12, %v5882_v28, %v5868_v63  ;;  %vm12065_vm12 = vmmov %vm12064_vm2 }
 0xc5b   :  { %7683 = vmatmul.msk.bf16.gmra.mxu1 %vm12057_vm6, %v5884_v15  ;;  %7685 = vmatmul.msk.bf16.gmra.mxu3 %vm12058_vm13, %v5884_v15  ;;  %vm12068_vm6 = vmmov %vm12067_vm1 }
 0xc5c   :  { %vm12069_vm13 = vmmov %vm12067_vm1 }
 0xc80   :  { %v6048_v44 = vpop.f32.mrf.mxu0 }
 0xc81   :  { %v6049_v10 = vadd.f32 %v6048_v44, %v11697_v33 }
 0xc86   :  { %v6086_v6 = vpop.f32.mrf.mxu2 }
 0xc87   :  { %v6087_v22 = vadd.f32 %v6086_v6, %v11700_v50 }
 0xc88   :  { %v6050_v25 = vpop.f32.mrf.mxu0 }
 0xc89   :  { %v6051_v20 = vadd.f32 %v6050_v25, %v11697_v33 }
 0xc8e   :  { %v6088_v29 = vpop.f32.mrf.mxu2 }
 0xc8f   :  { %v6089_v36 = vadd.f32 %v6088_v29, %v11700_v50 }
 0xca2   :  { %v6067_v45 = vpop.f32.mrf.mxu1 }
 0xca3   :  { %v6068_v60 = vadd.f32 %v6067_v45, %v6049_v10 }
 0xca5   :  { %v6115_v51 = vmax.f32 %v6068_v60, 0.0 }
 0xca8   :  { %v6105_v40 = vpop.f32.mrf.mxu3 }
 0xca9   :  { %v6106_v0 = vadd.f32 %v6105_v40, %v6087_v22 }
 0xcaa   :  { %v6069_v53 = vpop.f32.mrf.mxu1 }
 0xcab   :  { %v6070_v14 = vadd.f32 %v6069_v53, %v6051_v20  ;;  %v6116_v48 = vmax.f32 %v6106_v0, 0.0 }
 0xcad   :  { %v6117_v37 = vmax.f32 %v6070_v14, 0.0  ;;  %v6130_v17 = vsel %vm12060_vm10, %v6116_v48, 0.0 }
 0xcaf   :  { %v6123_v19 = vadd.f32 %v6117_v37, %v6115_v51 }
 0xcb0   :  { %v6107_v12 = vpop.f32.mrf.mxu3 }
 0xcb1   :  { %v6124_v24 = vrot.slane %v6123_v19, 4  ;;  %v6108_v43 = vadd.f32 %v6107_v12, %v6089_v36 }
 0xcb3   :  { %v6125_v11 = vadd.f32 %v6124_v24, %v6123_v19  ;;  %v6118_v8 = vmax.f32 %v6108_v43, 0.0 }
 0xcb5   :  { %v6126_v49 = vrot.slane %v6125_v11, 2  ;;  %v6131_v54 = vsel %vm12061_vm7, %v6118_v8, 0.0 }
 0xcb6   :  { %v6132_v57 = vadd.f32 %v6131_v54, %v6130_v17 }
 0xcb7   :  { %v6127_v41 = vadd.f32 %v6126_v49, %v6125_v11 }
 0xcb8   :  { %v6133_v13 = vrot.slane %v6132_v57, 4 }
 0xcb9   :  { %v6128_v58 = vrot.slane %v6127_v41, 1 }
 0xcba   :  { %v6134_v32 = vadd.f32 %v6133_v13, %v6132_v57 }
 0xcbb   :  { %v6129_v47 = vadd.f32 %v6128_v58, %v6127_v41 }
 0xcbc   :  { %v6135_v46 = vrot.slane %v6134_v32, 2 }
 0xcbd   :  { %v6155_v27 = vmul.f32 %v6129_v47, %v9468_v62 }
 0xcbe   :  { %v6136_v2 = vadd.f32 %v6135_v46, %v6134_v32 }
 0xcbf   :  { %v11708_v61 = vsub.f32 %v6115_v51, %v6155_v27  ;;  %v11710_v34 = vsub.f32 %v6117_v37, %v6155_v27 }
 0xcc0   :  { %v6137_v56 = vrot.slane %v6136_v2, 1 }
 0xcc1   :  { %v6167_v42 = vmul.f32 %v11708_v61, %v11708_v61  ;;  %v6169_v55 = vmul.f32 %v11710_v34, %v11710_v34 }
 0xcc2   :  { %v6138_v30 = vadd.f32 %v6137_v56, %v6136_v2 }
 0xcc3   :  { %v6175_v26 = vadd.f32 %v6169_v55, %v6167_v42 }
 0xcc4   :  { %v6156_v5 = vmul.f32 %v6138_v30, %v9468_v62 }
 0xcc5   :  { %v6176_v31 = vrot.slane %v6175_v26, 4 }
 0xcc6   :  { %v11717_v35 = vsub.f32 %v6116_v48, %v6156_v5  ;;  %v11719_v4 = vsub.f32 %v6118_v8, %v6156_v5 }
 0xcc7   :  { %v6177_v39 = vadd.f32 %v6176_v31, %v6175_v26 }
 0xcc8   :  { %v6168_v59 = vmul.f32 %v11717_v35, %v11717_v35  ;;  %v6170_v7 = vmul.f32 %v11719_v4, %v11719_v4 }
 0xcc9   :  { %v6178_v16 = vrot.slane %v6177_v39, 2 }
 0xcca   :  { %v6182_v1 = vsel %vm12062_vm14, %v6168_v59, 0.0  ;;  %v6183_v52 = vsel %vm12063_vm11, %v6170_v7, 0.0 }
 0xccb   :  { %v6179_v23 = vadd.f32 %v6178_v16, %v6177_v39  ;;  %v6184_v3 = vadd.f32 %v6183_v52, %v6182_v1  ;;  %v6053_v44 = vpop.f32.mrf.mxu0 }
 0xccc   :  { %v6054_v29 = vadd.f32 %v6053_v44, %v11697_v33 }
 0xccd   :  { %v6180_v9 = vrot.slane %v6179_v23, 1  ;;  %v6185_v38 = vrot.slane %v6184_v3, 4 }
 0xccf   :  { %v6181_v21 = vadd.f32 %v6180_v9, %v6179_v23  ;;  %v6186_v63 = vadd.f32 %v6185_v38, %v6184_v3 }
 0xcd1   :  { %v6207_v28 = vmul.f32 %v6181_v21, %v9468_v62  ;;  %v6187_v15 = vrot.slane %v6186_v63, 2  ;;  %v6091_v40 = vpop.f32.mrf.mxu2 }
 0xcd2   :  { %v6092_v19 = vadd.f32 %v6091_v40, %v11700_v50 }
 0xcd3   :  { %v6211_v18 = vadd.f32 1e-05, %v6207_v28  ;;  %v6188_v6 = vadd.f32 %v6187_v15, %v6186_v63  ;;  %v6055_v22 = vpop.f32.mrf.mxu0 }
 0xcd4   :  { %v6056_v36 = vadd.f32 %v6055_v22, %v11697_v33 }
 0xcd5   :  { %8164 = vrsqrt.f32 %v6211_v18  ;;  %v6189_v45 = vrot.slane %v6188_v6, 1  ;;  %vm6221_vm0 = vweird.f32 %v6211_v18 }
 0xcd7   :  { %v6190_v25 = vadd.f32 %v6189_v45, %v6188_v6 }
 0xcd8   :  { %v6072_v10 = vpop.f32.mrf.mxu1 }
 0xcd9   :  { %v6208_v20 = vmul.f32 %v6190_v25, %v9468_v62  ;;  %v6073_v37 = vadd.f32 %v6072_v10, %v6054_v29  ;;  %v6093_v11 = vpop.f32.mrf.mxu2 }
 0xcda   :  { %v6094_v58 = vadd.f32 %v6093_v11, %v11700_v50 }
 0xcdb   :  { %v8165_v60 = vpop.eup %8164  ;;  %v6212_v53 = vadd.f32 1e-05, %v6208_v20  ;;  %v6119_v17 = vmax.f32 %v6073_v37, 0.0 }
 0xcdc   :  { %v6216_v14 = vmul.f32 %v8165_v60, %v6211_v18  ;;  %vm6222_vm9 = vweird.f32 %v8165_v60 }
 0xcdd   :  { %8166 = vrsqrt.f32 %v6212_v53  ;;  %vm6223_vm3 = vmor %vm6221_vm0, %vm6222_vm9  ;;  %vm6231_vm4 = vweird.f32 %v6212_v53 }
 0xcde   :  { %v6110_v51 = vpop.f32.mrf.mxu3  ;;  %v6217_v0 = vmul.f32 %v8165_v60, %v6216_v14 }
 0xcdf   :  { %v6111_v43 = vadd.f32 %v6110_v51, %v6092_v19 }
 0xce0   :  { %v6074_v12 = vpop.f32.mrf.mxu1  ;;  %v6218_v48 = vmul.f32 0.5, %v6217_v0 }
 0xce1   :  { %v6075_v24 = vadd.f32 %v6074_v12, %v6056_v36  ;;  %v6120_v33 = vmax.f32 %v6111_v43, 0.0 }
 0xce2   :  { %v6219_v8 = vsub.f32 1.5, %v6218_v48 }
 0xce3   :  { %v6121_v49 = vmax.f32 %v6075_v24, 0.0  ;;  %v8167_v54 = vpop.eup %8166  ;;  %v6146_v5 = vsel %vm12064_vm2, %v6120_v33, 0.0  ;;  %vm12072_vm2 = vmmov %vm12067_vm1 }
 0xce4   :  { %v6220_v57 = vmul.f32 %v8165_v60, %v6219_v8  ;;  %v6226_v41 = vmul.f32 %v8167_v54, %v6212_v53  ;;  %vm6232_vm15 = vweird.f32 %v8167_v54 }
 0xce5   :  { %v6139_v13 = vadd.f32 %v6121_v49, %v6119_v17  ;;  %vm6233_vm8 = vmor %vm6231_vm4, %vm6232_vm15 }
 0xce6   :  { %v6112_v32 = vpop.f32.mrf.mxu3  ;;  %v6224_v47 = vsel %vm6223_vm3, %v8165_v60, %v6220_v57  ;;  %v6227_v46 = vmul.f32 %v8167_v54, %v6226_v41  ;;  %vm12071_vm3 = vmmov %vm12067_vm1 }
 0xce7   :  { %v6140_v27 = vrot.slane %v6139_v13, 4  ;;  %v6113_v2 = vadd.f32 %v6112_v32, %v6094_v58  ;;  %v6255_v56 = vmul.f32 %v6224_v47, %v11708_v61  ;;  %v6257_v42 = vmul.f32 %v6224_v47, %v11710_v34 }
 0xce8   :  { %v6228_v55 = vmul.f32 0.5, %v6227_v46 }
 0xce9   :  { %v6141_v30 = vadd.f32 %v6140_v27, %v6139_v13  ;;  %v6122_v26 = vmax.f32 %v6113_v2, 0.0  ;;  %6263 = vst [vmem:[#allocation22] sm:$0xff] %v6255_v56 }
 0xcea   :  { %6265 = vst [vmem:[#allocation22 + $0x10] sm:$0xff] %v6257_v42  ;;  %v6229_v31 = vsub.f32 1.5, %v6228_v55 }
 0xceb   :  { %v6142_v50 = vrot.slane %v6141_v30, 2  ;;  %v6147_v39 = vsel %vm12065_vm12, %v6122_v26, 0.0 }
 0xcec   :  { %v6148_v59 = vadd.f32 %v6147_v39, %v6146_v5  ;;  %v6230_v7 = vmul.f32 %v8167_v54, %v6229_v31 }
 0xced   :  { %v6143_v16 = vadd.f32 %v6142_v50, %v6141_v30 }
 0xcee   :  { %v6149_v61 = vrot.slane %v6148_v59, 4  ;;  %v6234_v1 = vsel %vm6233_vm8, %v8167_v54, %v6230_v7 }
 0xcef   :  { %v6144_v34 = vrot.slane %v6143_v16, 1  ;;  %v6256_v52 = vmul.f32 %v6234_v1, %v11717_v35  ;;  %v6258_v23 = vmul.f32 %v6234_v1, %v11719_v4 }
 0xcf0   :  { %v6150_v3 = vadd.f32 %v6149_v61, %v6148_v59 }
 0xcf1   :  { %v6145_v9 = vadd.f32 %v6144_v34, %v6143_v16  ;;  %6264 = vst.msk [vmem:[#allocation22 + $0x8] sm:$0xff] %vm12066_vm5, %v6256_v52 }
 0xcf2   :  { %v6151_v38 = vrot.slane %v6150_v3, 2  ;;  %6266 = vst.msk [vmem:[#allocation22 + $0x18] sm:$0xff] %vm12067_vm1, %v6258_v23 }
 0xcf3   :  { %v6157_v21 = vmul.f32 %v6145_v9, %v9468_v62 }
 0xcf4   :  { %v6152_v63 = vadd.f32 %v6151_v38, %v6150_v3 }
 0xcf5   :  { %v6163_v28 = vsub.f32 %v6119_v17, %v6157_v21  ;;  %v6165_v15 = vsub.f32 %v6121_v49, %v6157_v21 }
 0xcf6   :  { %v6153_v44 = vrot.slane %v6152_v63, 1 }
 0xcf7   :  { %v6171_v18 = vmul.f32 %v6163_v28, %v6163_v28  ;;  %v6173_v6 = vmul.f32 %v6165_v15, %v6165_v15 }
 0xcf8   :  { %v6154_v45 = vadd.f32 %v6153_v44, %v6152_v63 }
 0xcf9   :  { %v6191_v25 = vadd.f32 %v6173_v6, %v6171_v18 }
 0xcfa   :  { %v6158_v35 = vmul.f32 %v6154_v45, %v9468_v62 }
 0xcfb   :  { %v6192_v4 = vrot.slane %v6191_v25, 4 }
 0xcfc   :  { %v6164_v10 = vsub.f32 %v6120_v33, %v6158_v35  ;;  %v6166_v40 = vsub.f32 %v6122_v26, %v6158_v35 }
 0xcfd   :  { %v6193_v20 = vadd.f32 %v6192_v4, %v6191_v25 }
 0xcfe   :  { %v6172_v60 = vmul.f32 %v6164_v10, %v6164_v10  ;;  %v6174_v53 = vmul.f32 %v6166_v40, %v6166_v40 }
 0xcff   :  { %v6194_v22 = vrot.slane %v6193_v20, 2 }
 0xd00   :  { %v6198_v14 = vsel %vm12068_vm6, %v6172_v60, 0.0  ;;  %v6199_v29 = vsel %vm12069_vm13, %v6174_v53, 0.0 }
 0xd01   :  { %v6195_v51 = vadd.f32 %v6194_v22, %v6193_v20  ;;  %v6200_v0 = vadd.f32 %v6199_v29, %v6198_v14 }
 0xd03   :  { %v6196_v37 = vrot.slane %v6195_v51, 1  ;;  %v6201_v36 = vrot.slane %v6200_v0, 4 }
 0xd05   :  { %v6197_v19 = vadd.f32 %v6196_v37, %v6195_v51  ;;  %v6202_v12 = vadd.f32 %v6201_v36, %v6200_v0 }
 0xd07   :  { %v6209_v48 = vmul.f32 %v6197_v19, %v9468_v62  ;;  %v6203_v24 = vrot.slane %v6202_v12, 2 }
 0xd09   :  { %v6213_v43 = vadd.f32 1e-05, %v6209_v48  ;;  %v6204_v11 = vadd.f32 %v6203_v24, %v6202_v12 }
 0xd0b   :  { %8168 = vrsqrt.f32 %v6213_v43  ;;  %v6205_v8 = vrot.slane %v6204_v11, 1  ;;  %vm6241_vm7 = vweird.f32 %v6213_v43 }
 0xd0d   :  { %v6206_v17 = vadd.f32 %v6205_v8, %v6204_v11 }
 0xd0f   :  { %v6210_v49 = vmul.f32 %v6206_v17, %v9468_v62 }
 0xd11   :  { %v8169_v54 = vpop.eup %8168  ;;  %v6214_v57 = vadd.f32 1e-05, %v6210_v49 }
 0xd12   :  { %v6236_v41 = vmul.f32 %v8169_v54, %v6213_v43  ;;  %vm6242_vm10 = vweird.f32 %v8169_v54 }
 0xd13   :  { %8170 = vrsqrt.f32 %v6214_v57  ;;  %vm6243_vm14 = vmor %vm6241_vm7, %vm6242_vm10  ;;  %vm6251_vm9 = vweird.f32 %v6214_v57 }
 0xd14   :  { %v6237_v13 = vmul.f32 %v8169_v54, %v6236_v41 }
 0xd16   :  { %v6238_v58 = vmul.f32 0.5, %v6237_v13 }
 0xd18   :  { %v6239_v33 = vsub.f32 1.5, %v6238_v58 }
 0xd19   :  { %v8171_v32 = vpop.eup %8170 }
 0xd1a   :  { %v6240_v47 = vmul.f32 %v8169_v54, %v6239_v33  ;;  %v6246_v46 = vmul.f32 %v8171_v32, %v6214_v57  ;;  %vm6252_vm11 = vweird.f32 %v8171_v32 }
 0xd1b   :  { %vm6253_vm0 = vmor %vm6251_vm9, %vm6252_vm11 }
 0xd1c   :  { %v6244_v27 = vsel %vm6243_vm14, %v8169_v54, %v6240_v47  ;;  %v6247_v2 = vmul.f32 %v8171_v32, %v6246_v46 }
 0xd1d   :  { %v6259_v56 = vmul.f32 %v6244_v27, %v6163_v28  ;;  %v6261_v42 = vmul.f32 %v6244_v27, %v6165_v15 }
 0xd1e   :  { %v6248_v55 = vmul.f32 0.5, %v6247_v2 }
 0xd1f   :  { %6267 = vst [vmem:[#allocation22 + $0x20] sm:$0xff] %v6259_v56 }
 0xd20   :  { %6269 = vst [vmem:[#allocation22 + $0x30] sm:$0xff] %v6261_v42  ;;  %v6249_v62 = vsub.f32 1.5, %v6248_v55 }
 0xd22   :  { %v6250_v30 = vmul.f32 %v8171_v32, %v6249_v62 }
 0xd24   :  { %v6254_v26 = vsel %vm6253_vm0, %v8171_v32, %v6250_v30 }
 0xd25   :  { %v6260_v5 = vmul.f32 %v6254_v26, %v6164_v10  ;;  %v6262_v31 = vmul.f32 %v6254_v26, %v6166_v40 }
 0xd27   :  { %6268 = vst.msk [vmem:[#allocation22 + $0x28] sm:$0xff] %vm12071_vm3, %v6260_v5 }
 0xd28   :  { %6270 = vst.msk [vmem:[#allocation22 + $0x38] sm:$0xff] %vm12072_vm2, %v6262_v31 }
 0xd29   :  { %6283 = dma.vmem_to_hbm [thread:$0]  %s6276_s28, 1024, %s6278_s21, [#allocation4], %s8534_s17, %s8534_s17, %s8532_s3  }
 0xd2a   :  { %8498 = dma.done.wait [#allocation4], 1024  }
 0xd2b   :  { %8499 = vsyncadd [#allocation4], 4294966272 }
 0xd2c   :  { %6288 = vsyncpa [#allocation3], 1 }
 0xd2d   :  { %6289 = vsyncpa [#allocation6], 1 }
 0xd2e   :  { %6290 = vsyncpa [#allocation9], 1 }
 0xd2f   :  { %6291 = vsyncpa [#allocation12], 1 }
 0xd30   :  { %6292 = vsyncpa [#allocation15], 1 }
 0xd31   :  { %6293 = vsyncpa [#allocation18], 1 }
 0xd32   :  { %6294 = vsyncpa [#allocation21], 1 }
 0xd33   :  { %6295 = vsyncpa [#allocation4], 1 }

</bundles_post_ra>
